<compile_context>
chip_gen: v7x
topology: tpu7x:2x2x1
jax: 0.10.0
libtpu: 0.0.40
codegen_flags: <defaults>
</compile_context>

<pallas_src>
import numpy as np
import jax
import jax.numpy as jnp
from jax.experimental import pallas as pl
from jax.experimental.pallas import tpu as pltpu

KSIZE = 5              # conv kernel size
POOL_K, POOL_S = 2, 5  # AvgPool2d(kernel_size=2, stride=5)
LANE = 128


def _pool_out(n):
    return (n - POOL_K) // POOL_S + 1


# ----------------------------------------------------------------------------
# Constant-matrix construction (weight-dependent, built once per call)
# ----------------------------------------------------------------------------
def _conv_constants(w, b, hin, win, col_stride=None):
    """Matrices expressing Conv2d(5,valid)+Tanh+AvgPool(2,s5) via MXU matmuls.

    Output column layout of the pooled result is  co * col_stride + q
    (col_stride defaults to pw -> dense; pass LANE for a lane-padded layout).
    """
    w_np = np.asarray(w, np.float32)
    b_np = np.asarray(b, np.float32)
    cout, cin, K, _ = w_np.shape
    hout, wout = hin - K + 1, win - K + 1
    ph, pw = _pool_out(hout), _pool_out(wout)
    if col_stride is None:
        col_stride = pw
    assert pw <= col_stride
    nsel = POOL_K * pw                       # selected conv columns per cout
    NB = cout * nsel
    wpad = ((win + LANE - 1) // LANE) * LANE
    KDIM = cin * K * wpad

    # B[(ci*K+kh)*wpad + (5q+s+kw), co*nsel + 2q+s] = w[co, ci, kh, kw]
    bmat = np.zeros((KDIM, NB), np.float32)
    for co in range(cout):
        for ci in range(cin):
            for kh in range(K):
                for kw in range(K):
                    wv = w_np[co, ci, kh, kw]
                    for q in range(pw):
                        for s in range(POOL_K):
                            r = (ci * K + kh) * wpad + POOL_S * q + s + kw
                            c = co * nsel + POOL_K * q + s
                            bmat[r, c] = wv

    # 0/1 row selection: conv rows 5p, 5p+1 (pure gather, applied pre-tanh)
    rs = np.zeros((POOL_K * ph, hout), np.float32)
    for p in range(ph):
        rs[2 * p, POOL_S * p] = 1.0
        rs[2 * p + 1, POOL_S * p + 1] = 1.0

    # bias, broadcast over each output-channel block of nsel columns
    brow = np.repeat(b_np, nsel)[None, :]                        # (1, NB)

    # 2x2 average (post-tanh)
    ar = np.zeros((ph, POOL_K * ph), np.float32)
    for p in range(ph):
        ar[p, 2 * p] = 0.5
        ar[p, 2 * p + 1] = 0.5
    ac = np.zeros((NB, cout * col_stride), np.float32)
    for co in range(cout):
        for q in range(pw):
            ac[co * nsel + 2 * q, co * col_stride + q] = 0.5
            ac[co * nsel + 2 * q + 1, co * col_stride + q] = 0.5

    dims = dict(cout=cout, hout=hout, wout=wout, ph=ph, pw=pw,
                wpad=wpad, KDIM=KDIM, NB=NB, col_stride=col_stride)
    consts = tuple(jnp.asarray(a) for a in (bmat, rs, brow, ar, ac))
    return consts, dims


# ----------------------------------------------------------------------------
# Fused kernel: conv1 + tanh + pool + conv2 + tanh + pool + FC head + sigmoid
# ----------------------------------------------------------------------------
def _make_fused_kernel(cin1, win1, d1, d2):
    K = KSIZE
    hout1, wpad1 = d1["hout"], d1["wpad"]
    cin2, win2 = d1["cout"], d1["pw"]          # layer-2 input = layer-1 pooled
    hout2, wpad2, ph2 = d2["hout"], d2["wpad"], d2["ph"]

    def kernel(x_ref,
               bmat1_ref, rs1_ref, brow1_ref, ar1_ref, ac1_ref,
               bmat2_ref, rs2_ref, brow2_ref, ar2_ref, ac2_ref,
               w1_ref, b1_ref, w2_ref, b2_ref, w3_ref, b3_ref,
               o_ref,
               xall1_ref, p1_ref, xall2_ref):
        f32 = jnp.float32

        # ===== layer 1: Conv2d(cin1->6, 5) + Tanh + AvgPool(2, s5) =====
        # row-shifted slab X_all[h, (ci,kh,w)] = x[ci, h+kh, w]
        if wpad1 != win1:
            xall1_ref[...] = jnp.zeros_like(xall1_ref)
        for ci in range(cin1):
            for kh in range(K):
                seg = (ci * K + kh) * wpad1
                xall1_ref[:, seg:seg + win1] = x_ref[0, ci, kh:kh + hout1, :]
        # conv + pool-column selection as ONE MXU matmul
        acc1 = jnp.dot(xall1_ref[...], bmat1_ref[...],
                       preferred_element_type=f32)               # (hout1, NB1)
        # pool-row selection (0/1 gather) BEFORE tanh, then bias + tanh
        t1 = jnp.tanh(jnp.dot(rs1_ref[...], acc1,
                              preferred_element_type=f32) + brow1_ref[...])
        # 2x2 average -> lane-PADDED layout: channel ci in lanes [ci*128, ..)
        p1_ref[...] = jnp.dot(
            jnp.dot(ar1_ref[...], t1, preferred_element_type=f32),
            ac1_ref[...], preferred_element_type=f32)            # (ph1, 6*128)

        # ===== layer 2: Conv2d(6->16, 5) + Tanh + AvgPool(2, s5) =====
        xall2_ref[...] = jnp.zeros_like(xall2_ref)   # padded lanes must be 0
        for ci in range(cin2):
            src = ci * LANE                                      # lane-aligned
            for kh in range(K):
                seg = (ci * K + kh) * wpad2
                xall2_ref[:, seg:seg + win2] = p1_ref[kh:kh + hout2,
                                                      src:src + win2]
        acc2 = jnp.dot(xall2_ref[...], bmat2_ref[...],
                       preferred_element_type=f32)               # (hout2, NB2)
        t2 = jnp.tanh(jnp.dot(rs2_ref[...], acc2,
                              preferred_element_type=f32) + brow2_ref[...])
        pooled2 = jnp.dot(
            jnp.dot(ar2_ref[...], t2, preferred_element_type=f32),
            ac2_ref[...], preferred_element_type=f32)      # (ph2, cout2*pw2)

        # ===== FC head (W1 pre-permuted to the pooled layout) =====
        h1 = b1_ref[...]                                         # (1, 120)
        for p in range(ph2):
            h1 = h1 + jnp.dot(pooled2[p:p + 1, :], w1_ref[p],
                              preferred_element_type=f32)
        h1 = jnp.tanh(h1)
        h2 = jnp.tanh(jnp.dot(h1, w2_ref[...],
                              preferred_element_type=f32) + b2_ref[...])
        z = jnp.dot(h2, w3_ref[...], preferred_element_type=f32) + b3_ref[...]
        o_ref[0] = jax.nn.sigmoid(z)                             # (1, 1)

    return kernel


# ----------------------------------------------------------------------------
# pallas_call wrapper: full forward pass
# ----------------------------------------------------------------------------
def cnn_forward(x, params):
    wc1, bc1, wc2, bc2, w1, b1, w2, b2, w3, b3 = params
    n, cin1, hin1, win1 = x.shape

    # layer-1 constants (lane-padded pooled layout for aligned layer-2 build)
    (bmat1, rs1, brow1, ar1, ac1), d1 = _conv_constants(
        wc1, bc1, hin1, win1, col_stride=LANE)
    # layer-2 constants (dense pooled layout, feeds the FC head)
    (bmat2, rs2, brow2, ar2, ac2), d2 = _conv_constants(
        wc2, bc2, d1["ph"], d1["pw"])

    cout2, ph2, pw2 = d2["cout"], d2["ph"], d2["pw"]
    fdim = w1.shape[1]
    assert w1.shape[0] == cout2 * ph2 * pw2, "fc in_features mismatch"
    # permute W1's input axis from CHW order (co*ph*pw + p*pw + q) to the
    # kernel's pooled layout (p, co*pw + q)
    w1cube = (jnp.asarray(w1, jnp.float32)
              .reshape(cout2, ph2, pw2, fdim)
              .transpose(1, 0, 2, 3)
              .reshape(ph2, cout2 * pw2, fdim))

    kernel = _make_fused_kernel(cin1, win1, d1, d2)

    def _full(a):
        nd = a.ndim
        return pl.BlockSpec(a.shape, lambda i, _nd=nd: (0,) * _nd)

    out = pl.pallas_call(
        kernel,
        out_shape=jax.ShapeDtypeStruct((n, 1, 1), jnp.float32),
        grid=(n,),
        in_specs=[
            pl.BlockSpec((1, cin1, hin1, win1), lambda i: (i, 0, 0, 0)),
            _full(bmat1), _full(rs1), _full(brow1), _full(ar1), _full(ac1),
            _full(bmat2), _full(rs2), _full(brow2), _full(ar2), _full(ac2),
            _full(w1cube), _full(b1), _full(w2), _full(b2),
            _full(w3), _full(b3),
        ],
        out_specs=pl.BlockSpec((1, 1, 1), lambda i: (i, 0, 0)),
        scratch_shapes=[
            pltpu.VMEM((d1["hout"], d1["KDIM"]), jnp.float32),   # X_all layer1
            pltpu.VMEM((d1["ph"], d1["cout"] * LANE), jnp.float32),  # pooled1
            pltpu.VMEM((d2["hout"], d2["KDIM"]), jnp.float32),   # X_all layer2
        ],
        compiler_params=pltpu.CompilerParams(
            dimension_semantics=("parallel",),
            vmem_limit_bytes=32 * 1024 * 1024),
    )(x, bmat1, rs1, brow1, ar1, ac1,
      bmat2, rs2, brow2, ar2, ac2,
      w1cube, b1, w2, b2, w3, b3)
    return out.reshape(n, 1)


# ----------------------------------------------------------------------------
# Pure-JAX reference (mirrors the PyTorch module) and parameter init
# ----------------------------------------------------------------------------
def ref_forward(x, params):
    wc1, bc1, wc2, bc2, w1, b1, w2, b2, w3, b3 = params

    def conv(x, w, b):
        y = jax.lax.conv_general_dilated(
            x, w, (1, 1), "VALID",
            dimension_numbers=("NCHW", "OIHW", "NCHW"))
        return y + b[None, :, None, None]

    def pool(x):
        y = jax.lax.reduce_window(x, 0.0, jax.lax.add,
                                  (1, 1, POOL_K, POOL_K),
                                  (1, 1, POOL_S, POOL_S), "VALID")
        return y / float(POOL_K * POOL_K)

    h = pool(jnp.tanh(conv(x, wc1, bc1)))
    h = pool(jnp.tanh(conv(h, wc2, bc2)))
    h = h.reshape(h.shape[0], -1)
    h = jnp.tanh(h @ w1 + b1)
    h = jnp.tanh(h @ w2 + b2)
    return jax.nn.sigmoid(h @ w3 + b3)


def init_params(key):
    def uinit(k, shape, fan_in):
        bound = 1.0 / np.sqrt(fan_in)
        return jax.random.uniform(k, shape, jnp.float32, -bound, bound)

    ks = jax.random.split(key, 10)
    wc1 = uinit(ks[0], (6, 3, 5, 5), 3 * 25)
    bc1 = uinit(ks[1], (6,), 3 * 25)
    wc2 = uinit(ks[2], (16, 6, 5, 5), 6 * 25)
    bc2 = uinit(ks[3], (16,), 6 * 25)
    w1 = uinit(ks[4], (256, 120), 256)
    b1 = uinit(ks[5], (1, 120), 256)
    w2 = uinit(ks[6], (120, 84), 120)
    b2 = uinit(ks[7], (1, 84), 120)
    w3 = uinit(ks[8], (84, 1), 84)
    b3 = uinit(ks[9], (1, 1), 84)
    return (wc1, bc1, wc2, bc2, w1, b1, w2, b2, w3, b3)


if __name__ == "__main__":
    key = jax.random.PRNGKey(0)
    pkey, xkey = jax.random.split(key)
    params = init_params(pkey)
    # Smallest spatial size consistent with fc in_features=256:
    # 128 -> conv5 -> 124 -> pool(2,s5) -> 25 -> conv5 -> 21 -> pool -> 4,
    # and 16*4*4 = 256.
    x = jax.random.normal(xkey, (2, 3, 128, 128), jnp.float32)

    out = jax.block_until_ready(cnn_forward(x, params))
    ref = jax.block_until_ready(ref_forward(x, params))
    np.testing.assert_allclose(np.asarray(out), np.asarray(ref),
                               rtol=2e-3, atol=2e-3)
    assert out.shape == (2, 1) and out.dtype == jnp.float32
    print("KERNEL_OK")
</pallas_src>

<mosaic_0001>
module attributes {stable_mosaic.version = 11 : i64} {
  func.func @kernel(%arg0: i32, %arg1: memref<1x3x128x128xf32, #tpu.memory_space<vmem>>, %arg2: memref<1920x300xf32, #tpu.memory_space<vmem>>, %arg3: memref<50x124xf32, #tpu.memory_space<vmem>>, %arg4: memref<1x300xf32, #tpu.memory_space<vmem>>, %arg5: memref<25x50xf32, #tpu.memory_space<vmem>>, %arg6: memref<300x768xf32, #tpu.memory_space<vmem>>, %arg7: memref<3840x128xf32, #tpu.memory_space<vmem>>, %arg8: memref<8x21xf32, #tpu.memory_space<vmem>>, %arg9: memref<1x128xf32, #tpu.memory_space<vmem>>, %arg10: memref<4x8xf32, #tpu.memory_space<vmem>>, %arg11: memref<128x64xf32, #tpu.memory_space<vmem>>, %arg12: memref<4x64x120xf32, #tpu.memory_space<vmem>>, %arg13: memref<1x120xf32, #tpu.memory_space<vmem>>, %arg14: memref<120x84xf32, #tpu.memory_space<vmem>>, %arg15: memref<1x84xf32, #tpu.memory_space<vmem>>, %arg16: memref<84x1xf32, #tpu.memory_space<vmem>>, %arg17: memref<1x1xf32, #tpu.memory_space<vmem>>, %arg18: memref<1x1x1xf32, #tpu.memory_space<vmem>>, %arg19: memref<124x1920xf32, #tpu.memory_space<vmem>>, %arg20: memref<25x768xf32, #tpu.memory_space<vmem>>, %arg21: memref<21x3840xf32, #tpu.memory_space<vmem>>) attributes {dimension_semantics = [#tpu.dimension_semantics<parallel>], iteration_bounds = array<i64: 2>, scalar_prefetch = 0 : i64, scratch_operands = 3 : i64, tpu.core_type = #tpu.core_type<tc>, window_params = [{transform_indices = @transform_0, window_bounds = array<i64: 1, 3, 128, 128>}, {pipeline_mode = #tpu.pipeline_mode<synchronous>, transform_indices = @transform_1, window_bounds = array<i64: 1920, 300>}, {pipeline_mode = #tpu.pipeline_mode<synchronous>, transform_indices = @transform_2, window_bounds = array<i64: 50, 124>}, {pipeline_mode = #tpu.pipeline_mode<synchronous>, transform_indices = @transform_3, window_bounds = array<i64: 1, 300>}, {pipeline_mode = #tpu.pipeline_mode<synchronous>, transform_indices = @transform_4, window_bounds = array<i64: 25, 50>}, {pipeline_mode = #tpu.pipeline_mode<synchronous>, transform_indices = @transform_5, window_bounds = array<i64: 300, 768>}, {pipeline_mode = #tpu.pipeline_mode<synchronous>, transform_indices = @transform_6, window_bounds = array<i64: 3840, 128>}, {pipeline_mode = #tpu.pipeline_mode<synchronous>, transform_indices = @transform_7, window_bounds = array<i64: 8, 21>}, {pipeline_mode = #tpu.pipeline_mode<synchronous>, transform_indices = @transform_8, window_bounds = array<i64: 1, 128>}, {pipeline_mode = #tpu.pipeline_mode<synchronous>, transform_indices = @transform_9, window_bounds = array<i64: 4, 8>}, {pipeline_mode = #tpu.pipeline_mode<synchronous>, transform_indices = @transform_10, window_bounds = array<i64: 128, 64>}, {pipeline_mode = #tpu.pipeline_mode<synchronous>, transform_indices = @transform_11, window_bounds = array<i64: 4, 64, 120>}, {pipeline_mode = #tpu.pipeline_mode<synchronous>, transform_indices = @transform_12, window_bounds = array<i64: 1, 120>}, {pipeline_mode = #tpu.pipeline_mode<synchronous>, transform_indices = @transform_13, window_bounds = array<i64: 120, 84>}, {pipeline_mode = #tpu.pipeline_mode<synchronous>, transform_indices = @transform_14, window_bounds = array<i64: 1, 84>}, {pipeline_mode = #tpu.pipeline_mode<synchronous>, transform_indices = @transform_15, window_bounds = array<i64: 84, 1>}, {pipeline_mode = #tpu.pipeline_mode<synchronous>, transform_indices = @transform_16, window_bounds = array<i64: 1, 1>}, {transform_indices = @transform_17, window_bounds = array<i64: 1, 1, 1>}]} {
    %c0 = arith.constant 0 : index
    %c0_0 = arith.constant 0 : index
    %c0_1 = arith.constant 0 : index
    %c0_2 = arith.constant 0 : index
    %0 = vector.load %arg1[%c0, %c0_0, %c0_1, %c0_2] : memref<1x3x128x128xf32, #tpu.memory_space<vmem>>, vector<1x1x124x128xf32>
    %1 = vector.shape_cast %0 : vector<1x1x124x128xf32> to vector<124x128xf32>
    %c0_3 = arith.constant 0 : index
    %c0_4 = arith.constant 0 : index
    %2 = vector.load %arg19[%c0_3, %c0_4] : memref<124x1920xf32, #tpu.memory_space<vmem>>, vector<124x128xf32>
    tpu.vector_store %arg19[%c0_3, %c0_4], %1 {strides = array<i32>} : memref<124x1920xf32, #tpu.memory_space<vmem>>, vector<124x128xf32>,
    %c0_5 = arith.constant 0 : index
    %c0_6 = arith.constant 0 : index
    %c1 = arith.constant 1 : index
    %c0_7 = arith.constant 0 : index
    %3 = vector.load %arg1[%c0_5, %c0_6, %c1, %c0_7] : memref<1x3x128x128xf32, #tpu.memory_space<vmem>>, vector<1x1x124x128xf32>
    %4 = vector.shape_cast %3 : vector<1x1x124x128xf32> to vector<124x128xf32>
    %c0_8 = arith.constant 0 : index
    %c128 = arith.constant 128 : index
    %5 = vector.load %arg19[%c0_8, %c128] : memref<124x1920xf32, #tpu.memory_space<vmem>>, vector<124x128xf32>
    tpu.vector_store %arg19[%c0_8, %c128], %4 {strides = array<i32>} : memref<124x1920xf32, #tpu.memory_space<vmem>>, vector<124x128xf32>,
    %c0_9 = arith.constant 0 : index
    %c0_10 = arith.constant 0 : index
    %c2 = arith.constant 2 : index
    %c0_11 = arith.constant 0 : index
    %6 = vector.load %arg1[%c0_9, %c0_10, %c2, %c0_11] : memref<1x3x128x128xf32, #tpu.memory_space<vmem>>, vector<1x1x124x128xf32>
    %7 = vector.shape_cast %6 : vector<1x1x124x128xf32> to vector<124x128xf32>
    %c0_12 = arith.constant 0 : index
    %c256 = arith.constant 256 : index
    %8 = vector.load %arg19[%c0_12, %c256] : memref<124x1920xf32, #tpu.memory_space<vmem>>, vector<124x128xf32>
    tpu.vector_store %arg19[%c0_12, %c256], %7 {strides = array<i32>} : memref<124x1920xf32, #tpu.memory_space<vmem>>, vector<124x128xf32>,
    %c0_13 = arith.constant 0 : index
    %c0_14 = arith.constant 0 : index
    %c3 = arith.constant 3 : index
    %c0_15 = arith.constant 0 : index
    %9 = vector.load %arg1[%c0_13, %c0_14, %c3, %c0_15] : memref<1x3x128x128xf32, #tpu.memory_space<vmem>>, vector<1x1x124x128xf32>
    %10 = vector.shape_cast %9 : vector<1x1x124x128xf32> to vector<124x128xf32>
    %c0_16 = arith.constant 0 : index
    %c384 = arith.constant 384 : index
    %11 = vector.load %arg19[%c0_16, %c384] : memref<124x1920xf32, #tpu.memory_space<vmem>>, vector<124x128xf32>
    tpu.vector_store %arg19[%c0_16, %c384], %10 {strides = array<i32>} : memref<124x1920xf32, #tpu.memory_space<vmem>>, vector<124x128xf32>,
    %c0_17 = arith.constant 0 : index
    %c0_18 = arith.constant 0 : index
    %c4 = arith.constant 4 : index
    %c0_19 = arith.constant 0 : index
    %12 = vector.load %arg1[%c0_17, %c0_18, %c4, %c0_19] : memref<1x3x128x128xf32, #tpu.memory_space<vmem>>, vector<1x1x124x128xf32>
    %13 = vector.shape_cast %12 : vector<1x1x124x128xf32> to vector<124x128xf32>
    %c0_20 = arith.constant 0 : index
    %c512 = arith.constant 512 : index
    %14 = vector.load %arg19[%c0_20, %c512] : memref<124x1920xf32, #tpu.memory_space<vmem>>, vector<124x128xf32>
    tpu.vector_store %arg19[%c0_20, %c512], %13 {strides = array<i32>} : memref<124x1920xf32, #tpu.memory_space<vmem>>, vector<124x128xf32>,
    %c0_21 = arith.constant 0 : index
    %c1_22 = arith.constant 1 : index
    %c0_23 = arith.constant 0 : index
    %c0_24 = arith.constant 0 : index
    %15 = vector.load %arg1[%c0_21, %c1_22, %c0_23, %c0_24] : memref<1x3x128x128xf32, #tpu.memory_space<vmem>>, vector<1x1x124x128xf32>
    %16 = vector.shape_cast %15 : vector<1x1x124x128xf32> to vector<124x128xf32>
    %c0_25 = arith.constant 0 : index
    %c640 = arith.constant 640 : index
    %17 = vector.load %arg19[%c0_25, %c640] : memref<124x1920xf32, #tpu.memory_space<vmem>>, vector<124x128xf32>
    tpu.vector_store %arg19[%c0_25, %c640], %16 {strides = array<i32>} : memref<124x1920xf32, #tpu.memory_space<vmem>>, vector<124x128xf32>,
    %c0_26 = arith.constant 0 : index
    %c1_27 = arith.constant 1 : index
    %c1_28 = arith.constant 1 : index
    %c0_29 = arith.constant 0 : index
    %18 = vector.load %arg1[%c0_26, %c1_27, %c1_28, %c0_29] : memref<1x3x128x128xf32, #tpu.memory_space<vmem>>, vector<1x1x124x128xf32>
    %19 = vector.shape_cast %18 : vector<1x1x124x128xf32> to vector<124x128xf32>
    %c0_30 = arith.constant 0 : index
    %c768 = arith.constant 768 : index
    %20 = vector.load %arg19[%c0_30, %c768] : memref<124x1920xf32, #tpu.memory_space<vmem>>, vector<124x128xf32>
    tpu.vector_store %arg19[%c0_30, %c768], %19 {strides = array<i32>} : memref<124x1920xf32, #tpu.memory_space<vmem>>, vector<124x128xf32>,
    %c0_31 = arith.constant 0 : index
    %c1_32 = arith.constant 1 : index
    %c2_33 = arith.constant 2 : index
    %c0_34 = arith.constant 0 : index
    %21 = vector.load %arg1[%c0_31, %c1_32, %c2_33, %c0_34] : memref<1x3x128x128xf32, #tpu.memory_space<vmem>>, vector<1x1x124x128xf32>
    %22 = vector.shape_cast %21 : vector<1x1x124x128xf32> to vector<124x128xf32>
    %c0_35 = arith.constant 0 : index
    %c896 = arith.constant 896 : index
    %23 = vector.load %arg19[%c0_35, %c896] : memref<124x1920xf32, #tpu.memory_space<vmem>>, vector<124x128xf32>
    tpu.vector_store %arg19[%c0_35, %c896], %22 {strides = array<i32>} : memref<124x1920xf32, #tpu.memory_space<vmem>>, vector<124x128xf32>,
    %c0_36 = arith.constant 0 : index
    %c1_37 = arith.constant 1 : index
    %c3_38 = arith.constant 3 : index
    %c0_39 = arith.constant 0 : index
    %24 = vector.load %arg1[%c0_36, %c1_37, %c3_38, %c0_39] : memref<1x3x128x128xf32, #tpu.memory_space<vmem>>, vector<1x1x124x128xf32>
    %25 = vector.shape_cast %24 : vector<1x1x124x128xf32> to vector<124x128xf32>
    %c0_40 = arith.constant 0 : index
    %c1024 = arith.constant 1024 : index
    %26 = vector.load %arg19[%c0_40, %c1024] : memref<124x1920xf32, #tpu.memory_space<vmem>>, vector<124x128xf32>
    tpu.vector_store %arg19[%c0_40, %c1024], %25 {strides = array<i32>} : memref<124x1920xf32, #tpu.memory_space<vmem>>, vector<124x128xf32>,
    %c0_41 = arith.constant 0 : index
    %c1_42 = arith.constant 1 : index
    %c4_43 = arith.constant 4 : index
    %c0_44 = arith.constant 0 : index
    %27 = vector.load %arg1[%c0_41, %c1_42, %c4_43, %c0_44] : memref<1x3x128x128xf32, #tpu.memory_space<vmem>>, vector<1x1x124x128xf32>
    %28 = vector.shape_cast %27 : vector<1x1x124x128xf32> to vector<124x128xf32>
    %c0_45 = arith.constant 0 : index
    %c1152 = arith.constant 1152 : index
    %29 = vector.load %arg19[%c0_45, %c1152] : memref<124x1920xf32, #tpu.memory_space<vmem>>, vector<124x128xf32>
    tpu.vector_store %arg19[%c0_45, %c1152], %28 {strides = array<i32>} : memref<124x1920xf32, #tpu.memory_space<vmem>>, vector<124x128xf32>,
    %c0_46 = arith.constant 0 : index
    %c2_47 = arith.constant 2 : index
    %c0_48 = arith.constant 0 : index
    %c0_49 = arith.constant 0 : index
    %30 = vector.load %arg1[%c0_46, %c2_47, %c0_48, %c0_49] : memref<1x3x128x128xf32, #tpu.memory_space<vmem>>, vector<1x1x124x128xf32>
    %31 = vector.shape_cast %30 : vector<1x1x124x128xf32> to vector<124x128xf32>
    %c0_50 = arith.constant 0 : index
    %c1280 = arith.constant 1280 : index
    %32 = vector.load %arg19[%c0_50, %c1280] : memref<124x1920xf32, #tpu.memory_space<vmem>>, vector<124x128xf32>
    tpu.vector_store %arg19[%c0_50, %c1280], %31 {strides = array<i32>} : memref<124x1920xf32, #tpu.memory_space<vmem>>, vector<124x128xf32>,
    %c0_51 = arith.constant 0 : index
    %c2_52 = arith.constant 2 : index
    %c1_53 = arith.constant 1 : index
    %c0_54 = arith.constant 0 : index
    %33 = vector.load %arg1[%c0_51, %c2_52, %c1_53, %c0_54] : memref<1x3x128x128xf32, #tpu.memory_space<vmem>>, vector<1x1x124x128xf32>
    %34 = vector.shape_cast %33 : vector<1x1x124x128xf32> to vector<124x128xf32>
    %c0_55 = arith.constant 0 : index
    %c1408 = arith.constant 1408 : index
    %35 = vector.load %arg19[%c0_55, %c1408] : memref<124x1920xf32, #tpu.memory_space<vmem>>, vector<124x128xf32>
    tpu.vector_store %arg19[%c0_55, %c1408], %34 {strides = array<i32>} : memref<124x1920xf32, #tpu.memory_space<vmem>>, vector<124x128xf32>,
    %c0_56 = arith.constant 0 : index
    %c2_57 = arith.constant 2 : index
    %c2_58 = arith.constant 2 : index
    %c0_59 = arith.constant 0 : index
    %36 = vector.load %arg1[%c0_56, %c2_57, %c2_58, %c0_59] : memref<1x3x128x128xf32, #tpu.memory_space<vmem>>, vector<1x1x124x128xf32>
    %37 = vector.shape_cast %36 : vector<1x1x124x128xf32> to vector<124x128xf32>
    %c0_60 = arith.constant 0 : index
    %c1536 = arith.constant 1536 : index
    %38 = vector.load %arg19[%c0_60, %c1536] : memref<124x1920xf32, #tpu.memory_space<vmem>>, vector<124x128xf32>
    tpu.vector_store %arg19[%c0_60, %c1536], %37 {strides = array<i32>} : memref<124x1920xf32, #tpu.memory_space<vmem>>, vector<124x128xf32>,
    %c0_61 = arith.constant 0 : index
    %c2_62 = arith.constant 2 : index
    %c3_63 = arith.constant 3 : index
    %c0_64 = arith.constant 0 : index
    %39 = vector.load %arg1[%c0_61, %c2_62, %c3_63, %c0_64] : memref<1x3x128x128xf32, #tpu.memory_space<vmem>>, vector<1x1x124x128xf32>
    %40 = vector.shape_cast %39 : vector<1x1x124x128xf32> to vector<124x128xf32>
    %c0_65 = arith.constant 0 : index
    %c1664 = arith.constant 1664 : index
    %41 = vector.load %arg19[%c0_65, %c1664] : memref<124x1920xf32, #tpu.memory_space<vmem>>, vector<124x128xf32>
    tpu.vector_store %arg19[%c0_65, %c1664], %40 {strides = array<i32>} : memref<124x1920xf32, #tpu.memory_space<vmem>>, vector<124x128xf32>,
    %c0_66 = arith.constant 0 : index
    %c2_67 = arith.constant 2 : index
    %c4_68 = arith.constant 4 : index
    %c0_69 = arith.constant 0 : index
    %42 = vector.load %arg1[%c0_66, %c2_67, %c4_68, %c0_69] : memref<1x3x128x128xf32, #tpu.memory_space<vmem>>, vector<1x1x124x128xf32>
    %43 = vector.shape_cast %42 : vector<1x1x124x128xf32> to vector<124x128xf32>
    %c0_70 = arith.constant 0 : index
    %c1792 = arith.constant 1792 : index
    %44 = vector.load %arg19[%c0_70, %c1792] : memref<124x1920xf32, #tpu.memory_space<vmem>>, vector<124x128xf32>
    tpu.vector_store %arg19[%c0_70, %c1792], %43 {strides = array<i32>} : memref<124x1920xf32, #tpu.memory_space<vmem>>, vector<124x128xf32>,
    %c0_71 = arith.constant 0 : index
    %c0_72 = arith.constant 0 : index
    %45 = vector.load %arg19[%c0_71, %c0_72] : memref<124x1920xf32, #tpu.memory_space<vmem>>, vector<124x1920xf32>
    %c0_73 = arith.constant 0 : index
    %c0_74 = arith.constant 0 : index
    %46 = vector.load %arg2[%c0_73, %c0_74] : memref<1920x300xf32, #tpu.memory_space<vmem>>, vector<1920x300xf32>
    %cst = arith.constant dense<0.000000e+00> : vector<124x300xf32>
    %47 = tpu.matmul %45, %46, %cst {dimension_numbers = #tpu.dot_dimension_numbers<[1], [0], [0], [1], [0, 0, 1, 1], [], []>} : vector<124x1920xf32>, vector<1920x300xf32>, vector<124x300xf32> -> vector<124x300xf32>
    %c0_75 = arith.constant 0 : index
    %c0_76 = arith.constant 0 : index
    %48 = vector.load %arg3[%c0_75, %c0_76] : memref<50x124xf32, #tpu.memory_space<vmem>>, vector<50x124xf32>
    %cst_77 = arith.constant dense<0.000000e+00> : vector<50x300xf32>
    %49 = tpu.matmul %48, %47, %cst_77 {dimension_numbers = #tpu.dot_dimension_numbers<[1], [0], [0], [1], [0, 0, 1, 1], [], []>} : vector<50x124xf32>, vector<124x300xf32>, vector<50x300xf32> -> vector<50x300xf32>
    %c0_78 = arith.constant 0 : index
    %c0_79 = arith.constant 0 : index
    %50 = vector.load %arg4[%c0_78, %c0_79] : memref<1x300xf32, #tpu.memory_space<vmem>>, vector<1x300xf32>
    %51 = vector.broadcast %50 : vector<1x300xf32> to vector<50x300xf32>
    %52 = arith.addf %49, %51 : vector<50x300xf32>
    %53 = math.tanh %52 : vector<50x300xf32>
    %c0_80 = arith.constant 0 : index
    %c0_81 = arith.constant 0 : index
    %54 = vector.load %arg5[%c0_80, %c0_81] : memref<25x50xf32, #tpu.memory_space<vmem>>, vector<25x50xf32>
    %cst_82 = arith.constant dense<0.000000e+00> : vector<25x300xf32>
    %55 = tpu.matmul %54, %53, %cst_82 {dimension_numbers = #tpu.dot_dimension_numbers<[1], [0], [0], [1], [0, 0, 1, 1], [], []>} : vector<25x50xf32>, vector<50x300xf32>, vector<25x300xf32> -> vector<25x300xf32>
    %c0_83 = arith.constant 0 : index
    %c0_84 = arith.constant 0 : index
    %56 = vector.load %arg6[%c0_83, %c0_84] : memref<300x768xf32, #tpu.memory_space<vmem>>, vector<300x768xf32>
    %cst_85 = arith.constant dense<0.000000e+00> : vector<25x768xf32>
    %57 = tpu.matmul %55, %56, %cst_85 {dimension_numbers = #tpu.dot_dimension_numbers<[1], [0], [0], [1], [0, 0, 1, 1], [], []>} : vector<25x300xf32>, vector<300x768xf32>, vector<25x768xf32> -> vector<25x768xf32>
    %c0_86 = arith.constant 0 : index
    %c0_87 = arith.constant 0 : index
    %58 = vector.load %arg20[%c0_86, %c0_87] : memref<25x768xf32, #tpu.memory_space<vmem>>, vector<25x768xf32>
    tpu.vector_store %arg20[%c0_86, %c0_87], %57 {strides = array<i32>} : memref<25x768xf32, #tpu.memory_space<vmem>>, vector<25x768xf32>,
    %cst_88 = arith.constant 0.000000e+00 : f32
    %59 = vector.broadcast %cst_88 : f32 to vector<21x3840xf32>
    %c0_89 = arith.constant 0 : index
    %c0_90 = arith.constant 0 : index
    %60 = vector.load %arg21[%c0_89, %c0_90] : memref<21x3840xf32, #tpu.memory_space<vmem>>, vector<21x3840xf32>
    tpu.vector_store %arg21[%c0_89, %c0_90], %59 {strides = array<i32>} : memref<21x3840xf32, #tpu.memory_space<vmem>>, vector<21x3840xf32>,
    %c0_91 = arith.constant 0 : index
    %c0_92 = arith.constant 0 : index
    %61 = vector.load %arg20[%c0_91, %c0_92] : memref<25x768xf32, #tpu.memory_space<vmem>>, vector<21x25xf32>
    %c0_93 = arith.constant 0 : index
    %c0_94 = arith.constant 0 : index
    %62 = vector.load %arg21[%c0_93, %c0_94] : memref<21x3840xf32, #tpu.memory_space<vmem>>, vector<21x25xf32>
    tpu.vector_store %arg21[%c0_93, %c0_94], %61 {strides = array<i32>} : memref<21x3840xf32, #tpu.memory_space<vmem>>, vector<21x25xf32>,
    %c1_95 = arith.constant 1 : index
    %c0_96 = arith.constant 0 : index
    %63 = vector.load %arg20[%c1_95, %c0_96] : memref<25x768xf32, #tpu.memory_space<vmem>>, vector<21x25xf32>
    %c0_97 = arith.constant 0 : index
    %c128_98 = arith.constant 128 : index
    %64 = vector.load %arg21[%c0_97, %c128_98] : memref<21x3840xf32, #tpu.memory_space<vmem>>, vector<21x25xf32>
    tpu.vector_store %arg21[%c0_97, %c128_98], %63 {strides = array<i32>} : memref<21x3840xf32, #tpu.memory_space<vmem>>, vector<21x25xf32>,
    %c2_99 = arith.constant 2 : index
    %c0_100 = arith.constant 0 : index
    %65 = vector.load %arg20[%c2_99, %c0_100] : memref<25x768xf32, #tpu.memory_space<vmem>>, vector<21x25xf32>
    %c0_101 = arith.constant 0 : index
    %c256_102 = arith.constant 256 : index
    %66 = vector.load %arg21[%c0_101, %c256_102] : memref<21x3840xf32, #tpu.memory_space<vmem>>, vector<21x25xf32>
    tpu.vector_store %arg21[%c0_101, %c256_102], %65 {strides = array<i32>} : memref<21x3840xf32, #tpu.memory_space<vmem>>, vector<21x25xf32>,
    %c3_103 = arith.constant 3 : index
    %c0_104 = arith.constant 0 : index
    %67 = vector.load %arg20[%c3_103, %c0_104] : memref<25x768xf32, #tpu.memory_space<vmem>>, vector<21x25xf32>
    %c0_105 = arith.constant 0 : index
    %c384_106 = arith.constant 384 : index
    %68 = vector.load %arg21[%c0_105, %c384_106] : memref<21x3840xf32, #tpu.memory_space<vmem>>, vector<21x25xf32>
    tpu.vector_store %arg21[%c0_105, %c384_106], %67 {strides = array<i32>} : memref<21x3840xf32, #tpu.memory_space<vmem>>, vector<21x25xf32>,
    %c4_107 = arith.constant 4 : index
    %c0_108 = arith.constant 0 : index
    %69 = vector.load %arg20[%c4_107, %c0_108] : memref<25x768xf32, #tpu.memory_space<vmem>>, vector<21x25xf32>
    %c0_109 = arith.constant 0 : index
    %c512_110 = arith.constant 512 : index
    %70 = vector.load %arg21[%c0_109, %c512_110] : memref<21x3840xf32, #tpu.memory_space<vmem>>, vector<21x25xf32>
    tpu.vector_store %arg21[%c0_109, %c512_110], %69 {strides = array<i32>} : memref<21x3840xf32, #tpu.memory_space<vmem>>, vector<21x25xf32>,
    %c0_111 = arith.constant 0 : index
    %c128_112 = arith.constant 128 : index
    %71 = vector.load %arg20[%c0_111, %c128_112] : memref<25x768xf32, #tpu.memory_space<vmem>>, vector<21x25xf32>
    %c0_113 = arith.constant 0 : index
    %c640_114 = arith.constant 640 : index
    %72 = vector.load %arg21[%c0_113, %c640_114] : memref<21x3840xf32, #tpu.memory_space<vmem>>, vector<21x25xf32>
    tpu.vector_store %arg21[%c0_113, %c640_114], %71 {strides = array<i32>} : memref<21x3840xf32, #tpu.memory_space<vmem>>, vector<21x25xf32>,
    %c1_115 = arith.constant 1 : index
    %c128_116 = arith.constant 128 : index
    %73 = vector.load %arg20[%c1_115, %c128_116] : memref<25x768xf32, #tpu.memory_space<vmem>>, vector<21x25xf32>
    %c0_117 = arith.constant 0 : index
    %c768_118 = arith.constant 768 : index
    %74 = vector.load %arg21[%c0_117, %c768_118] : memref<21x3840xf32, #tpu.memory_space<vmem>>, vector<21x25xf32>
    tpu.vector_store %arg21[%c0_117, %c768_118], %73 {strides = array<i32>} : memref<21x3840xf32, #tpu.memory_space<vmem>>, vector<21x25xf32>,
    %c2_119 = arith.constant 2 : index
    %c128_120 = arith.constant 128 : index
    %75 = vector.load %arg20[%c2_119, %c128_120] : memref<25x768xf32, #tpu.memory_space<vmem>>, vector<21x25xf32>
    %c0_121 = arith.constant 0 : index
    %c896_122 = arith.constant 896 : index
    %76 = vector.load %arg21[%c0_121, %c896_122] : memref<21x3840xf32, #tpu.memory_space<vmem>>, vector<21x25xf32>
    tpu.vector_store %arg21[%c0_121, %c896_122], %75 {strides = array<i32>} : memref<21x3840xf32, #tpu.memory_space<vmem>>, vector<21x25xf32>,
    %c3_123 = arith.constant 3 : index
    %c128_124 = arith.constant 128 : index
    %77 = vector.load %arg20[%c3_123, %c128_124] : memref<25x768xf32, #tpu.memory_space<vmem>>, vector<21x25xf32>
    %c0_125 = arith.constant 0 : index
    %c1024_126 = arith.constant 1024 : index
    %78 = vector.load %arg21[%c0_125, %c1024_126] : memref<21x3840xf32, #tpu.memory_space<vmem>>, vector<21x25xf32>
    tpu.vector_store %arg21[%c0_125, %c1024_126], %77 {strides = array<i32>} : memref<21x3840xf32, #tpu.memory_space<vmem>>, vector<21x25xf32>,
    %c4_127 = arith.constant 4 : index
    %c128_128 = arith.constant 128 : index
    %79 = vector.load %arg20[%c4_127, %c128_128] : memref<25x768xf32, #tpu.memory_space<vmem>>, vector<21x25xf32>
    %c0_129 = arith.constant 0 : index
    %c1152_130 = arith.constant 1152 : index
    %80 = vector.load %arg21[%c0_129, %c1152_130] : memref<21x3840xf32, #tpu.memory_space<vmem>>, vector<21x25xf32>
    tpu.vector_store %arg21[%c0_129, %c1152_130], %79 {strides = array<i32>} : memref<21x3840xf32, #tpu.memory_space<vmem>>, vector<21x25xf32>,
    %c0_131 = arith.constant 0 : index
    %c256_132 = arith.constant 256 : index
    %81 = vector.load %arg20[%c0_131, %c256_132] : memref<25x768xf32, #tpu.memory_space<vmem>>, vector<21x25xf32>
    %c0_133 = arith.constant 0 : index
    %c1280_134 = arith.constant 1280 : index
    %82 = vector.load %arg21[%c0_133, %c1280_134] : memref<21x3840xf32, #tpu.memory_space<vmem>>, vector<21x25xf32>
    tpu.vector_store %arg21[%c0_133, %c1280_134], %81 {strides = array<i32>} : memref<21x3840xf32, #tpu.memory_space<vmem>>, vector<21x25xf32>,
    %c1_135 = arith.constant 1 : index
    %c256_136 = arith.constant 256 : index
    %83 = vector.load %arg20[%c1_135, %c256_136] : memref<25x768xf32, #tpu.memory_space<vmem>>, vector<21x25xf32>
    %c0_137 = arith.constant 0 : index
    %c1408_138 = arith.constant 1408 : index
    %84 = vector.load %arg21[%c0_137, %c1408_138] : memref<21x3840xf32, #tpu.memory_space<vmem>>, vector<21x25xf32>
    tpu.vector_store %arg21[%c0_137, %c1408_138], %83 {strides = array<i32>} : memref<21x3840xf32, #tpu.memory_space<vmem>>, vector<21x25xf32>,
    %c2_139 = arith.constant 2 : index
    %c256_140 = arith.constant 256 : index
    %85 = vector.load %arg20[%c2_139, %c256_140] : memref<25x768xf32, #tpu.memory_space<vmem>>, vector<21x25xf32>
    %c0_141 = arith.constant 0 : index
    %c1536_142 = arith.constant 1536 : index
    %86 = vector.load %arg21[%c0_141, %c1536_142] : memref<21x3840xf32, #tpu.memory_space<vmem>>, vector<21x25xf32>
    tpu.vector_store %arg21[%c0_141, %c1536_142], %85 {strides = array<i32>} : memref<21x3840xf32, #tpu.memory_space<vmem>>, vector<21x25xf32>,
    %c3_143 = arith.constant 3 : index
    %c256_144 = arith.constant 256 : index
    %87 = vector.load %arg20[%c3_143, %c256_144] : memref<25x768xf32, #tpu.memory_space<vmem>>, vector<21x25xf32>
    %c0_145 = arith.constant 0 : index
    %c1664_146 = arith.constant 1664 : index
    %88 = vector.load %arg21[%c0_145, %c1664_146] : memref<21x3840xf32, #tpu.memory_space<vmem>>, vector<21x25xf32>
    tpu.vector_store %arg21[%c0_145, %c1664_146], %87 {strides = array<i32>} : memref<21x3840xf32, #tpu.memory_space<vmem>>, vector<21x25xf32>,
    %c4_147 = arith.constant 4 : index
    %c256_148 = arith.constant 256 : index
    %89 = vector.load %arg20[%c4_147, %c256_148] : memref<25x768xf32, #tpu.memory_space<vmem>>, vector<21x25xf32>
    %c0_149 = arith.constant 0 : index
    %c1792_150 = arith.constant 1792 : index
    %90 = vector.load %arg21[%c0_149, %c1792_150] : memref<21x3840xf32, #tpu.memory_space<vmem>>, vector<21x25xf32>
    tpu.vector_store %arg21[%c0_149, %c1792_150], %89 {strides = array<i32>} : memref<21x3840xf32, #tpu.memory_space<vmem>>, vector<21x25xf32>,
    %c0_151 = arith.constant 0 : index
    %c384_152 = arith.constant 384 : index
    %91 = vector.load %arg20[%c0_151, %c384_152] : memref<25x768xf32, #tpu.memory_space<vmem>>, vector<21x25xf32>
    %c0_153 = arith.constant 0 : index
    %c1920 = arith.constant 1920 : index
    %92 = vector.load %arg21[%c0_153, %c1920] : memref<21x3840xf32, #tpu.memory_space<vmem>>, vector<21x25xf32>
    tpu.vector_store %arg21[%c0_153, %c1920], %91 {strides = array<i32>} : memref<21x3840xf32, #tpu.memory_space<vmem>>, vector<21x25xf32>,
    %c1_154 = arith.constant 1 : index
    %c384_155 = arith.constant 384 : index
    %93 = vector.load %arg20[%c1_154, %c384_155] : memref<25x768xf32, #tpu.memory_space<vmem>>, vector<21x25xf32>
    %c0_156 = arith.constant 0 : index
    %c2048 = arith.constant 2048 : index
    %94 = vector.load %arg21[%c0_156, %c2048] : memref<21x3840xf32, #tpu.memory_space<vmem>>, vector<21x25xf32>
    tpu.vector_store %arg21[%c0_156, %c2048], %93 {strides = array<i32>} : memref<21x3840xf32, #tpu.memory_space<vmem>>, vector<21x25xf32>,
    %c2_157 = arith.constant 2 : index
    %c384_158 = arith.constant 384 : index
    %95 = vector.load %arg20[%c2_157, %c384_158] : memref<25x768xf32, #tpu.memory_space<vmem>>, vector<21x25xf32>
    %c0_159 = arith.constant 0 : index
    %c2176 = arith.constant 2176 : index
    %96 = vector.load %arg21[%c0_159, %c2176] : memref<21x3840xf32, #tpu.memory_space<vmem>>, vector<21x25xf32>
    tpu.vector_store %arg21[%c0_159, %c2176], %95 {strides = array<i32>} : memref<21x3840xf32, #tpu.memory_space<vmem>>, vector<21x25xf32>,
    %c3_160 = arith.constant 3 : index
    %c384_161 = arith.constant 384 : index
    %97 = vector.load %arg20[%c3_160, %c384_161] : memref<25x768xf32, #tpu.memory_space<vmem>>, vector<21x25xf32>
    %c0_162 = arith.constant 0 : index
    %c2304 = arith.constant 2304 : index
    %98 = vector.load %arg21[%c0_162, %c2304] : memref<21x3840xf32, #tpu.memory_space<vmem>>, vector<21x25xf32>
    tpu.vector_store %arg21[%c0_162, %c2304], %97 {strides = array<i32>} : memref<21x3840xf32, #tpu.memory_space<vmem>>, vector<21x25xf32>,
    %c4_163 = arith.constant 4 : index
    %c384_164 = arith.constant 384 : index
    %99 = vector.load %arg20[%c4_163, %c384_164] : memref<25x768xf32, #tpu.memory_space<vmem>>, vector<21x25xf32>
    %c0_165 = arith.constant 0 : index
    %c2432 = arith.constant 2432 : index
    %100 = vector.load %arg21[%c0_165, %c2432] : memref<21x3840xf32, #tpu.memory_space<vmem>>, vector<21x25xf32>
    tpu.vector_store %arg21[%c0_165, %c2432], %99 {strides = array<i32>} : memref<21x3840xf32, #tpu.memory_space<vmem>>, vector<21x25xf32>,
    %c0_166 = arith.constant 0 : index
    %c512_167 = arith.constant 512 : index
    %101 = vector.load %arg20[%c0_166, %c512_167] : memref<25x768xf32, #tpu.memory_space<vmem>>, vector<21x25xf32>
    %c0_168 = arith.constant 0 : index
    %c2560 = arith.constant 2560 : index
    %102 = vector.load %arg21[%c0_168, %c2560] : memref<21x3840xf32, #tpu.memory_space<vmem>>, vector<21x25xf32>
    tpu.vector_store %arg21[%c0_168, %c2560], %101 {strides = array<i32>} : memref<21x3840xf32, #tpu.memory_space<vmem>>, vector<21x25xf32>,
    %c1_169 = arith.constant 1 : index
    %c512_170 = arith.constant 512 : index
    %103 = vector.load %arg20[%c1_169, %c512_170] : memref<25x768xf32, #tpu.memory_space<vmem>>, vector<21x25xf32>
    %c0_171 = arith.constant 0 : index
    %c2688 = arith.constant 2688 : index
    %104 = vector.load %arg21[%c0_171, %c2688] : memref<21x3840xf32, #tpu.memory_space<vmem>>, vector<21x25xf32>
    tpu.vector_store %arg21[%c0_171, %c2688], %103 {strides = array<i32>} : memref<21x3840xf32, #tpu.memory_space<vmem>>, vector<21x25xf32>,
    %c2_172 = arith.constant 2 : index
    %c512_173 = arith.constant 512 : index
    %105 = vector.load %arg20[%c2_172, %c512_173] : memref<25x768xf32, #tpu.memory_space<vmem>>, vector<21x25xf32>
    %c0_174 = arith.constant 0 : index
    %c2816 = arith.constant 2816 : index
    %106 = vector.load %arg21[%c0_174, %c2816] : memref<21x3840xf32, #tpu.memory_space<vmem>>, vector<21x25xf32>
    tpu.vector_store %arg21[%c0_174, %c2816], %105 {strides = array<i32>} : memref<21x3840xf32, #tpu.memory_space<vmem>>, vector<21x25xf32>,
    %c3_175 = arith.constant 3 : index
    %c512_176 = arith.constant 512 : index
    %107 = vector.load %arg20[%c3_175, %c512_176] : memref<25x768xf32, #tpu.memory_space<vmem>>, vector<21x25xf32>
    %c0_177 = arith.constant 0 : index
    %c2944 = arith.constant 2944 : index
    %108 = vector.load %arg21[%c0_177, %c2944] : memref<21x3840xf32, #tpu.memory_space<vmem>>, vector<21x25xf32>
    tpu.vector_store %arg21[%c0_177, %c2944], %107 {strides = array<i32>} : memref<21x3840xf32, #tpu.memory_space<vmem>>, vector<21x25xf32>,
    %c4_178 = arith.constant 4 : index
    %c512_179 = arith.constant 512 : index
    %109 = vector.load %arg20[%c4_178, %c512_179] : memref<25x768xf32, #tpu.memory_space<vmem>>, vector<21x25xf32>
    %c0_180 = arith.constant 0 : index
    %c3072 = arith.constant 3072 : index
    %110 = vector.load %arg21[%c0_180, %c3072] : memref<21x3840xf32, #tpu.memory_space<vmem>>, vector<21x25xf32>
    tpu.vector_store %arg21[%c0_180, %c3072], %109 {strides = array<i32>} : memref<21x3840xf32, #tpu.memory_space<vmem>>, vector<21x25xf32>,
    %c0_181 = arith.constant 0 : index
    %c640_182 = arith.constant 640 : index
    %111 = vector.load %arg20[%c0_181, %c640_182] : memref<25x768xf32, #tpu.memory_space<vmem>>, vector<21x25xf32>
    %c0_183 = arith.constant 0 : index
    %c3200 = arith.constant 3200 : index
    %112 = vector.load %arg21[%c0_183, %c3200] : memref<21x3840xf32, #tpu.memory_space<vmem>>, vector<21x25xf32>
    tpu.vector_store %arg21[%c0_183, %c3200], %111 {strides = array<i32>} : memref<21x3840xf32, #tpu.memory_space<vmem>>, vector<21x25xf32>,
    %c1_184 = arith.constant 1 : index
    %c640_185 = arith.constant 640 : index
    %113 = vector.load %arg20[%c1_184, %c640_185] : memref<25x768xf32, #tpu.memory_space<vmem>>, vector<21x25xf32>
    %c0_186 = arith.constant 0 : index
    %c3328 = arith.constant 3328 : index
    %114 = vector.load %arg21[%c0_186, %c3328] : memref<21x3840xf32, #tpu.memory_space<vmem>>, vector<21x25xf32>
    tpu.vector_store %arg21[%c0_186, %c3328], %113 {strides = array<i32>} : memref<21x3840xf32, #tpu.memory_space<vmem>>, vector<21x25xf32>,
    %c2_187 = arith.constant 2 : index
    %c640_188 = arith.constant 640 : index
    %115 = vector.load %arg20[%c2_187, %c640_188] : memref<25x768xf32, #tpu.memory_space<vmem>>, vector<21x25xf32>
    %c0_189 = arith.constant 0 : index
    %c3456 = arith.constant 3456 : index
    %116 = vector.load %arg21[%c0_189, %c3456] : memref<21x3840xf32, #tpu.memory_space<vmem>>, vector<21x25xf32>
    tpu.vector_store %arg21[%c0_189, %c3456], %115 {strides = array<i32>} : memref<21x3840xf32, #tpu.memory_space<vmem>>, vector<21x25xf32>,
    %c3_190 = arith.constant 3 : index
    %c640_191 = arith.constant 640 : index
    %117 = vector.load %arg20[%c3_190, %c640_191] : memref<25x768xf32, #tpu.memory_space<vmem>>, vector<21x25xf32>
    %c0_192 = arith.constant 0 : index
    %c3584 = arith.constant 3584 : index
    %118 = vector.load %arg21[%c0_192, %c3584] : memref<21x3840xf32, #tpu.memory_space<vmem>>, vector<21x25xf32>
    tpu.vector_store %arg21[%c0_192, %c3584], %117 {strides = array<i32>} : memref<21x3840xf32, #tpu.memory_space<vmem>>, vector<21x25xf32>,
    %c4_193 = arith.constant 4 : index
    %c640_194 = arith.constant 640 : index
    %119 = vector.load %arg20[%c4_193, %c640_194] : memref<25x768xf32, #tpu.memory_space<vmem>>, vector<21x25xf32>
    %c0_195 = arith.constant 0 : index
    %c3712 = arith.constant 3712 : index
    %120 = vector.load %arg21[%c0_195, %c3712] : memref<21x3840xf32, #tpu.memory_space<vmem>>, vector<21x25xf32>
    tpu.vector_store %arg21[%c0_195, %c3712], %119 {strides = array<i32>} : memref<21x3840xf32, #tpu.memory_space<vmem>>, vector<21x25xf32>,
    %c0_196 = arith.constant 0 : index
    %c0_197 = arith.constant 0 : index
    %121 = vector.load %arg21[%c0_196, %c0_197] : memref<21x3840xf32, #tpu.memory_space<vmem>>, vector<21x3840xf32>
    %c0_198 = arith.constant 0 : index
    %c0_199 = arith.constant 0 : index
    %122 = vector.load %arg7[%c0_198, %c0_199] : memref<3840x128xf32, #tpu.memory_space<vmem>>, vector<3840x128xf32>
    %cst_200 = arith.constant dense<0.000000e+00> : vector<21x128xf32>
    %123 = tpu.matmul %121, %122, %cst_200 {dimension_numbers = #tpu.dot_dimension_numbers<[1], [0], [0], [1], [0, 0, 1, 1], [], []>} : vector<21x3840xf32>, vector<3840x128xf32>, vector<21x128xf32> -> vector<21x128xf32>
    %c0_201 = arith.constant 0 : index
    %c0_202 = arith.constant 0 : index
    %124 = vector.load %arg8[%c0_201, %c0_202] : memref<8x21xf32, #tpu.memory_space<vmem>>, vector<8x21xf32>
    %cst_203 = arith.constant dense<0.000000e+00> : vector<8x128xf32>
    %125 = tpu.matmul %124, %123, %cst_203 {dimension_numbers = #tpu.dot_dimension_numbers<[1], [0], [0], [1], [0, 0, 1, 1], [], []>} : vector<8x21xf32>, vector<21x128xf32>, vector<8x128xf32> -> vector<8x128xf32>
    %c0_204 = arith.constant 0 : index
    %c0_205 = arith.constant 0 : index
    %126 = vector.load %arg9[%c0_204, %c0_205] : memref<1x128xf32, #tpu.memory_space<vmem>>, vector<1x128xf32>
    %127 = vector.broadcast %126 : vector<1x128xf32> to vector<8x128xf32>
    %128 = arith.addf %125, %127 : vector<8x128xf32>
    %129 = math.tanh %128 : vector<8x128xf32>
    %c0_206 = arith.constant 0 : index
    %c0_207 = arith.constant 0 : index
    %130 = vector.load %arg10[%c0_206, %c0_207] : memref<4x8xf32, #tpu.memory_space<vmem>>, vector<4x8xf32>
    %cst_208 = arith.constant dense<0.000000e+00> : vector<4x128xf32>
    %131 = tpu.matmul %130, %129, %cst_208 {dimension_numbers = #tpu.dot_dimension_numbers<[1], [0], [0], [1], [0, 0, 1, 1], [], []>} : vector<4x8xf32>, vector<8x128xf32>, vector<4x128xf32> -> vector<4x128xf32>
    %c0_209 = arith.constant 0 : index
    %c0_210 = arith.constant 0 : index
    %132 = vector.load %arg11[%c0_209, %c0_210] : memref<128x64xf32, #tpu.memory_space<vmem>>, vector<128x64xf32>
    %cst_211 = arith.constant dense<0.000000e+00> : vector<4x64xf32>
    %133 = tpu.matmul %131, %132, %cst_211 {dimension_numbers = #tpu.dot_dimension_numbers<[1], [0], [0], [1], [0, 0, 1, 1], [], []>} : vector<4x128xf32>, vector<128x64xf32>, vector<4x64xf32> -> vector<4x64xf32>
    %c0_212 = arith.constant 0 : index
    %c0_213 = arith.constant 0 : index
    %134 = vector.load %arg13[%c0_212, %c0_213] : memref<1x120xf32, #tpu.memory_space<vmem>>, vector<1x120xf32>
    %135 = vector.extract_strided_slice %133 {offsets = [0, 0], sizes = [1, 64], strides = [1, 1]} : vector<4x64xf32> to vector<1x64xf32>
    %c0_214 = arith.constant 0 : index
    %c0_215 = arith.constant 0 : index
    %c0_216 = arith.constant 0 : index
    %136 = vector.load %arg12[%c0_214, %c0_215, %c0_216] : memref<4x64x120xf32, #tpu.memory_space<vmem>>, vector<1x64x120xf32>
    %137 = vector.shape_cast %136 : vector<1x64x120xf32> to vector<64x120xf32>
    %cst_217 = arith.constant dense<0.000000e+00> : vector<1x120xf32>
    %138 = tpu.matmul %135, %137, %cst_217 {dimension_numbers = #tpu.dot_dimension_numbers<[1], [0], [0], [1], [0, 0, 1, 1], [], []>} : vector<1x64xf32>, vector<64x120xf32>, vector<1x120xf32> -> vector<1x120xf32>
    %139 = arith.addf %134, %138 : vector<1x120xf32>
    %140 = vector.extract_strided_slice %133 {offsets = [1, 0], sizes = [1, 64], strides = [1, 1]} : vector<4x64xf32> to vector<1x64xf32>
    %c1_218 = arith.constant 1 : index
    %c0_219 = arith.constant 0 : index
    %c0_220 = arith.constant 0 : index
    %141 = vector.load %arg12[%c1_218, %c0_219, %c0_220] : memref<4x64x120xf32, #tpu.memory_space<vmem>>, vector<1x64x120xf32>
    %142 = vector.shape_cast %141 : vector<1x64x120xf32> to vector<64x120xf32>
    %cst_221 = arith.constant dense<0.000000e+00> : vector<1x120xf32>
    %143 = tpu.matmul %140, %142, %cst_221 {dimension_numbers = #tpu.dot_dimension_numbers<[1], [0], [0], [1], [0, 0, 1, 1], [], []>} : vector<1x64xf32>, vector<64x120xf32>, vector<1x120xf32> -> vector<1x120xf32>
    %144 = arith.addf %139, %143 : vector<1x120xf32>
    %145 = vector.extract_strided_slice %133 {offsets = [2, 0], sizes = [1, 64], strides = [1, 1]} : vector<4x64xf32> to vector<1x64xf32>
    %c2_222 = arith.constant 2 : index
    %c0_223 = arith.constant 0 : index
    %c0_224 = arith.constant 0 : index
    %146 = vector.load %arg12[%c2_222, %c0_223, %c0_224] : memref<4x64x120xf32, #tpu.memory_space<vmem>>, vector<1x64x120xf32>
    %147 = vector.shape_cast %146 : vector<1x64x120xf32> to vector<64x120xf32>
    %cst_225 = arith.constant dense<0.000000e+00> : vector<1x120xf32>
    %148 = tpu.matmul %145, %147, %cst_225 {dimension_numbers = #tpu.dot_dimension_numbers<[1], [0], [0], [1], [0, 0, 1, 1], [], []>} : vector<1x64xf32>, vector<64x120xf32>, vector<1x120xf32> -> vector<1x120xf32>
    %149 = arith.addf %144, %148 : vector<1x120xf32>
    %150 = vector.extract_strided_slice %133 {offsets = [3, 0], sizes = [1, 64], strides = [1, 1]} : vector<4x64xf32> to vector<1x64xf32>
    %c3_226 = arith.constant 3 : index
    %c0_227 = arith.constant 0 : index
    %c0_228 = arith.constant 0 : index
    %151 = vector.load %arg12[%c3_226, %c0_227, %c0_228] : memref<4x64x120xf32, #tpu.memory_space<vmem>>, vector<1x64x120xf32>
    %152 = vector.shape_cast %151 : vector<1x64x120xf32> to vector<64x120xf32>
    %cst_229 = arith.constant dense<0.000000e+00> : vector<1x120xf32>
    %153 = tpu.matmul %150, %152, %cst_229 {dimension_numbers = #tpu.dot_dimension_numbers<[1], [0], [0], [1], [0, 0, 1, 1], [], []>} : vector<1x64xf32>, vector<64x120xf32>, vector<1x120xf32> -> vector<1x120xf32>
    %154 = arith.addf %149, %153 : vector<1x120xf32>
    %155 = math.tanh %154 : vector<1x120xf32>
    %c0_230 = arith.constant 0 : index
    %c0_231 = arith.constant 0 : index
    %156 = vector.load %arg14[%c0_230, %c0_231] : memref<120x84xf32, #tpu.memory_space<vmem>>, vector<120x84xf32>
    %cst_232 = arith.constant dense<0.000000e+00> : vector<1x84xf32>
    %157 = tpu.matmul %155, %156, %cst_232 {dimension_numbers = #tpu.dot_dimension_numbers<[1], [0], [0], [1], [0, 0, 1, 1], [], []>} : vector<1x120xf32>, vector<120x84xf32>, vector<1x84xf32> -> vector<1x84xf32>
    %c0_233 = arith.constant 0 : index
    %c0_234 = arith.constant 0 : index
    %158 = vector.load %arg15[%c0_233, %c0_234] : memref<1x84xf32, #tpu.memory_space<vmem>>, vector<1x84xf32>
    %159 = arith.addf %157, %158 : vector<1x84xf32>
    %160 = math.tanh %159 : vector<1x84xf32>
    %c0_235 = arith.constant 0 : index
    %c0_236 = arith.constant 0 : index
    %161 = vector.load %arg16[%c0_235, %c0_236] : memref<84x1xf32, #tpu.memory_space<vmem>>, vector<84x1xf32>
    %cst_237 = arith.constant dense<0.000000e+00> : vector<1x1xf32>
    %162 = tpu.matmul %160, %161, %cst_237 {dimension_numbers = #tpu.dot_dimension_numbers<[1], [0], [0], [1], [0, 0, 1, 1], [], []>} : vector<1x84xf32>, vector<84x1xf32>, vector<1x1xf32> -> vector<1x1xf32>
    %c0_238 = arith.constant 0 : index
    %c0_239 = arith.constant 0 : index
    %163 = vector.load %arg17[%c0_238, %c0_239] : memref<1x1xf32, #tpu.memory_space<vmem>>, vector<1x1xf32>
    %164 = arith.addf %162, %163 : vector<1x1xf32>
    %165 = arith.negf %164 : vector<1x1xf32>
    %166 = math.exp %165 : vector<1x1xf32>
    %cst_240 = arith.constant 1.000000e+00 : f32
    %167 = vector.broadcast %cst_240 : f32 to vector<1x1xf32>
    %168 = arith.addf %167, %166 : vector<1x1xf32>
    %169 = arith.divf %167, %168 : vector<1x1xf32>
    %c0_241 = arith.constant 0 : index
    %c0_242 = arith.constant 0 : index
    %c0_243 = arith.constant 0 : index
    %170 = vector.load %arg18[%c0_241, %c0_242, %c0_243] : memref<1x1x1xf32, #tpu.memory_space<vmem>>, vector<1x1x1xf32>
    %171 = vector.shape_cast %170 : vector<1x1x1xf32> to vector<1x1xf32>
    %172 = vector.shape_cast %169 : vector<1x1xf32> to vector<1x1x1xf32>
    tpu.vector_store %arg18[%c0_241, %c0_242, %c0_243], %172 {strides = array<i32>} : memref<1x1x1xf32, #tpu.memory_space<vmem>>, vector<1x1x1xf32>,
    return
  }
  func.func @transform_0(%arg0: i32) -> (i32, i32, i32, i32) {
    %c0_i32 = arith.constant 0 : i32
    %c0_i32_0 = arith.constant 0 : i32
    %c0_i32_1 = arith.constant 0 : i32
    %c0_i32_2 = arith.constant 0 : i32
    return %arg0, %c0_i32, %c0_i32_0, %c0_i32_1 : i32, i32, i32, i32
  }
  func.func @transform_1(%arg0: i32) -> (i32, i32) {
    %c0_i32 = arith.constant 0 : i32
    %c0_i32_0 = arith.constant 0 : i32
    %c0_i32_1 = arith.constant 0 : i32
    return %c0_i32, %c0_i32_0 : i32, i32
  }
  func.func @transform_2(%arg0: i32) -> (i32, i32) {
    %c0_i32 = arith.constant 0 : i32
    %c0_i32_0 = arith.constant 0 : i32
    %c0_i32_1 = arith.constant 0 : i32
    return %c0_i32, %c0_i32_0 : i32, i32
  }
  func.func @transform_3(%arg0: i32) -> (i32, i32) {
    %c0_i32 = arith.constant 0 : i32
    %c0_i32_0 = arith.constant 0 : i32
    %c0_i32_1 = arith.constant 0 : i32
    return %c0_i32, %c0_i32_0 : i32, i32
  }
  func.func @transform_4(%arg0: i32) -> (i32, i32) {
    %c0_i32 = arith.constant 0 : i32
    %c0_i32_0 = arith.constant 0 : i32
    %c0_i32_1 = arith.constant 0 : i32
    return %c0_i32, %c0_i32_0 : i32, i32
  }
  func.func @transform_5(%arg0: i32) -> (i32, i32) {
    %c0_i32 = arith.constant 0 : i32
    %c0_i32_0 = arith.constant 0 : i32
    %c0_i32_1 = arith.constant 0 : i32
    return %c0_i32, %c0_i32_0 : i32, i32
  }
  func.func @transform_6(%arg0: i32) -> (i32, i32) {
    %c0_i32 = arith.constant 0 : i32
    %c0_i32_0 = arith.constant 0 : i32
    %c0_i32_1 = arith.constant 0 : i32
    return %c0_i32, %c0_i32_0 : i32, i32
  }
  func.func @transform_7(%arg0: i32) -> (i32, i32) {
    %c0_i32 = arith.constant 0 : i32
    %c0_i32_0 = arith.constant 0 : i32
    %c0_i32_1 = arith.constant 0 : i32
    return %c0_i32, %c0_i32_0 : i32, i32
  }
  func.func @transform_8(%arg0: i32) -> (i32, i32) {
    %c0_i32 = arith.constant 0 : i32
    %c0_i32_0 = arith.constant 0 : i32
    %c0_i32_1 = arith.constant 0 : i32
    return %c0_i32, %c0_i32_0 : i32, i32
  }
  func.func @transform_9(%arg0: i32) -> (i32, i32) {
    %c0_i32 = arith.constant 0 : i32
    %c0_i32_0 = arith.constant 0 : i32
    %c0_i32_1 = arith.constant 0 : i32
    return %c0_i32, %c0_i32_0 : i32, i32
  }
  func.func @transform_10(%arg0: i32) -> (i32, i32) {
    %c0_i32 = arith.constant 0 : i32
    %c0_i32_0 = arith.constant 0 : i32
    %c0_i32_1 = arith.constant 0 : i32
    return %c0_i32, %c0_i32_0 : i32, i32
  }
  func.func @transform_11(%arg0: i32) -> (i32, i32, i32) {
    %c0_i32 = arith.constant 0 : i32
    %c0_i32_0 = arith.constant 0 : i32
    %c0_i32_1 = arith.constant 0 : i32
    %c0_i32_2 = arith.constant 0 : i32
    return %c0_i32, %c0_i32_0, %c0_i32_1 : i32, i32, i32
  }
  func.func @transform_12(%arg0: i32) -> (i32, i32) {
    %c0_i32 = arith.constant 0 : i32
    %c0_i32_0 = arith.constant 0 : i32
    %c0_i32_1 = arith.constant 0 : i32
    return %c0_i32, %c0_i32_0 : i32, i32
  }
  func.func @transform_13(%arg0: i32) -> (i32, i32) {
    %c0_i32 = arith.constant 0 : i32
    %c0_i32_0 = arith.constant 0 : i32
    %c0_i32_1 = arith.constant 0 : i32
    return %c0_i32, %c0_i32_0 : i32, i32
  }
  func.func @transform_14(%arg0: i32) -> (i32, i32) {
    %c0_i32 = arith.constant 0 : i32
    %c0_i32_0 = arith.constant 0 : i32
    %c0_i32_1 = arith.constant 0 : i32
    return %c0_i32, %c0_i32_0 : i32, i32
  }
  func.func @transform_15(%arg0: i32) -> (i32, i32) {
    %c0_i32 = arith.constant 0 : i32
    %c0_i32_0 = arith.constant 0 : i32
    %c0_i32_1 = arith.constant 0 : i32
    return %c0_i32, %c0_i32_0 : i32, i32
  }
  func.func @transform_16(%arg0: i32) -> (i32, i32) {
    %c0_i32 = arith.constant 0 : i32
    %c0_i32_0 = arith.constant 0 : i32
    %c0_i32_1 = arith.constant 0 : i32
    return %c0_i32, %c0_i32_0 : i32, i32
  }
  func.func @transform_17(%arg0: i32) -> (i32, i32, i32) {
    %c0_i32 = arith.constant 0 : i32
    %c0_i32_0 = arith.constant 0 : i32
    %c0_i32_1 = arith.constant 0 : i32
    return %arg0, %c0_i32, %c0_i32_0 : i32, i32, i32
  }
}

</mosaic_0001>

<bundles_post_ra>
// kernel: tpu_custom_call.1
= control target key start
LH: loop header
LB: loop body
LE: loop exit
PB: predicated region body
PF: predicated region fallthrough
CT: control target
= control target key end

     0   :  { %s13000_s26 = smov 0   ;;  %s19976_s0 = inlined_call_operand.vmem [shape: f32[2,3,128,128], index: 0, kind: input, shape index: {}]   ;;  %s19977_s1 = inlined_call_operand.vmem [shape: f32[1920,300], index: 1, kind: input, shape index: {}]   ;;  %s19978_s2 = inlined_call_operand.vmem [shape: f32[50,124], index: 2, kind: input, shape index: {}]   ;;  %s19979_s3 = inlined_call_operand.vmem [shape: f32[1,300], index: 3, kind: input, shape index: {}]   ;;  %s19980_s4 = inlined_call_operand.vmem [shape: f32[25,50], index: 4, kind: input, shape index: {}]   ;;  %s19981_s5 = inlined_call_operand.vmem [shape: f32[300,768], index: 5, kind: input, shape index: {}]   ;;  %s19982_s6 = inlined_call_operand.vmem [shape: f32[3840,128], index: 6, kind: input, shape index: {}]   ;;  %s19983_s7 = inlined_call_operand.vmem [shape: f32[8,21], index: 7, kind: input, shape index: {}]   ;;  %s19984_s8 = inlined_call_operand.vmem [shape: f32[1,128], index: 8, kind: input, shape index: {}]   ;;  %s19985_s9 = inlined_call_operand.vmem [shape: f32[4,8], index: 9, kind: input, shape index: {}]   ;;  %s19986_s10 = inlined_call_operand.vmem [shape: f32[128,64], index: 10, kind: input, shape index: {}]   ;;  %s19987_s11 = inlined_call_operand.vmem [shape: f32[4,64,120], index: 11, kind: input, shape index: {}]   ;;  %s19988_s12 = inlined_call_operand.vmem [shape: f32[1,120], index: 12, kind: input, shape index: {}]   ;;  %s19989_s13 = inlined_call_operand.vmem [shape: f32[120,84], index: 13, kind: input, shape index: {}]   ;;  %s19990_s14 = inlined_call_operand.vmem [shape: f32[1,84], index: 14, kind: input, shape index: {}]   ;;  %s19991_s15 = inlined_call_operand.vmem [shape: f32[84,1], index: 15, kind: input, shape index: {}]   ;;  %s19992_s16 = inlined_call_operand.<no memory space> [shape: f32[1,1], index: 16, kind: input, shape index: {}]   ;;  %s19993_s17 = inlined_call_operand.vmem [shape: f32[2,1,1], index: 17, kind: output, shape index: {}]  }
   0x1   :  { %20008 = sst [smem:[#allocation19_spill]] %s19976_s0  ;;  %v22_v0 = vstv %s19992_s16 }
   0x2   :  { %20009 = sst [smem:[#allocation20_spill]] %s19977_s1  ;;  %23 = vst [vmem:[#allocation5] sm:$0x1] %v22_v0 }
   0x3 LB: > { %s8888_s27 = sadd.s32 4294967295, %s12901_s26   ;;  %p8892_p0 = scmp.ge.s32.totalorder %s12901_s26, 1  ;;  %s12901_s26 = sphi %s13000_s26, %s29_s26  }
   0x4   : > { %p489_p1 = scmp.lt.s32.totalorder %s12901_s26, 3 }
   0x6   : > { %p490_p2 = pnand %p8892_p0, %p489_p1 }
   0x8   : > { %493 = sbr.rel (%p490_p2) target bundleno = 3445 (0xd75), region = 88 }
   0xf   : > { %s20010_s0 = sld [smem:[#allocation20_spill]]  ;;  %p13073_p3 = scmp.lt.s32.totalorder %s8888_s27, 1  ;;  %vm4483_vm0 = vcmask 1043456   ;;  %vm12904_vm1 = vmmov 1   ;;  %vm4461_vm3 = vcmask 1014784   ;;  %vm12906_vm4 = vmmov 0  }
  0x10   : > { %s20012_s16 = sld [smem:[#allocation19_spill]]  ;;  %vm16868_vm2 = vmpackc.low %vm4483_vm0, %vm12904_vm1  ;;  %vm4725_vm5 = vcmask 408576   ;;  %vm4738_vm6 = vcmask 1041408   ;;  %vm5150_vm7 = vcmask 359424   ;;  %vm5832_vm8 = vcmask 203776  }
  0x11   : > { %s20042_s27 = smov (!%p13073_p3, %s8888_s27), 1  ;;  %vm5861_vm9 = vcmask 1045504   ;;  %vm5843_vm10 = vcmask 1046528   ;;  %vm5879_vm11 = vcmask 1044480   ;;  %vm5835_vm12 = vcmask 200704  }
  0x12   : > { %s12677_s22 = smul.u32 384, %s20042_s27  ;;  %vm8080_vm13 = vcmask 171008   ;;  %vm8159_vm14 = vcmask 64512   ;;  %vm8328_vm15 = vcmask 523264   ;;  %vm8669_vm1 = vcmask 982016   ;;  %s546_s30 = scalar_lea.vmem %s19993_s17, %s20042_s27 }
  0x15   : > { %v1270_v1 = vld [vmem:[%s20010_s0 + $0x8] sm:$0xff]  ;;  %v1273_v2 = vld [vmem:[%s20010_s0 + $0x20] sm:$0xff]  ;;  %v1319_v3 = vld [vmem:[%s20010_s0 + $0x190] sm:$0xff] }
  0x16   : > { %v10778_v4 = vpack.c.bf16 %v1273_v2, %v1270_v1  ;;  %v1322_v5 = vld [vmem:[%s20010_s0 + $0x1a8] sm:$0xff]  ;;  %v1269_v6 = vld [vmem:[%s20010_s0] sm:$0xff]  ;;  %v1272_v7 = vld [vmem:[%s20010_s0 + $0x18] sm:$0xff]  ;;  %s13174_s18 = scalar_lea.vmem %s20012_s16, %s12677_s22 }
  0x17   : > { %v11258_v8 = vpack.c.bf16 %v1322_v5, %v1319_v3  ;;  %v10780_v9 = vpack.c.bf16 %v1272_v7, %v1269_v6  ;;  %v1271_v10 = vld [vmem:[%s20010_s0 + $0x10] sm:$0xff]  ;;  %v1274_v11 = vld [vmem:[%s20010_s0 + $0x28] sm:$0xff]  ;;  %v1276_v12 = vld [vmem:[%s20010_s0 + $0x38] sm:$0xff] }
  0x18   : > { %10779 = vmatprep.subr.bf16.mxu0 %v10778_v4  ;;  %v11260_v13 = vpack.c.bf16 %v1274_v11, %v1271_v10  ;;  %v1279_v14 = vld [vmem:[%s20010_s0 + $0x50] sm:$0xff]  ;;  %v1325_v15 = vld [vmem:[%s20010_s0 + $0x1c0] sm:$0xff]  ;;  %v1328_v16 = vld [vmem:[%s20010_s0 + $0x1d8] sm:$0xff] }
  0x19   : > { %11259 = vmatprep.subr.bf16.mxu1 %v11258_v8  ;;  %10781 = vmatpush1.bf16.msra.mxu0 %v10780_v9  ;;  %v10782_v17 = vpack.c.bf16 %v1279_v14, %v1276_v12  ;;  %v11262_v18 = vpack.c.bf16 %v1328_v16, %v1325_v15  ;;  %v1275_v19 = vld [vmem:[%s20010_s0 + $0x30] sm:$0xff]  ;;  %v1278_v20 = vld [vmem:[%s20010_s0 + $0x48] sm:$0xff]  ;;  %v1277_v21 = vld [vmem:[%s20010_s0 + $0x40] sm:$0xff] }
  0x1a   : > { %11261 = vmatpush3.bf16.msra.mxu1 %v11260_v13  ;;  %v10784_v22 = vpack.c.bf16 %v1278_v20, %v1275_v19  ;;  %v1280_v23 = vld [vmem:[%s20010_s0 + $0x58] sm:$0xff]  ;;  %v1282_v24 = vld [vmem:[%s20010_s0 + $0x68] sm:$0xff]  ;;  %v1285_v25 = vld [vmem:[%s20010_s0 + $0x80] sm:$0xff] }
  0x1b   : > { %10783 = vmatprep.subr.bf16.mxu0 %v10782_v17  ;;  %11263 = vmatprep.subr.bf16.mxu1 %v11262_v18  ;;  %v11264_v26 = vpack.c.bf16 %v1280_v23, %v1277_v21  ;;  %v10786_v27 = vpack.c.bf16 %v1285_v25, %v1282_v24  ;;  %v1331_v28 = vld [vmem:[%s20010_s0 + $0x1f0] sm:$0xff]  ;;  %v1334_v29 = vld [vmem:[%s20010_s0 + $0x208] sm:$0xff]  ;;  %v1281_v30 = vld [vmem:[%s20010_s0 + $0x60] sm:$0xff] }
  0x1c   : > { %v11266_v31 = vpack.c.bf16 %v1334_v29, %v1331_v28  ;;  %v1284_v32 = vld [vmem:[%s20010_s0 + $0x78] sm:$0xff]  ;;  %v1283_v33 = vld [vmem:[%s20010_s0 + $0x70] sm:$0xff]  ;;  %v1286_v34 = vld [vmem:[%s20010_s0 + $0x88] sm:$0xff] }
  0x1d   : > { %10785 = vmatpush1.bf16.msra.mxu0 %v10784_v22  ;;  %v10788_v35 = vpack.c.bf16 %v1284_v32, %v1281_v30  ;;  %v1288_v36 = vld [vmem:[%s20010_s0 + $0x98] sm:$0xff]  ;;  %v1291_v37 = vld [vmem:[%s20010_s0 + $0xb0] sm:$0xff]  ;;  %v1337_v38 = vld [vmem:[%s20010_s0 + $0x220] sm:$0xff]  ;;  %v11268_v39 = vpack.c.bf16 %v1286_v34, %v1283_v33 }
  0x1e   : > { %11265 = vmatpush3.bf16.msra.mxu1 %v11264_v26  ;;  %10787 = vmatprep.subr.bf16.mxu0 %v10786_v27  ;;  %v10790_v40 = vpack.c.bf16 %v1291_v37, %v1288_v36  ;;  %v1340_v41 = vld [vmem:[%s20010_s0 + $0x238] sm:$0xff]  ;;  %v1287_v42 = vld [vmem:[%s20010_s0 + $0x90] sm:$0xff]  ;;  %v1290_v43 = vld [vmem:[%s20010_s0 + $0xa8] sm:$0xff] }
  0x1f   : > { %11267 = vmatprep.subr.bf16.mxu1 %v11266_v31  ;;  %v11270_v44 = vpack.c.bf16 %v1340_v41, %v1337_v38  ;;  %v1289_v45 = vld [vmem:[%s20010_s0 + $0xa0] sm:$0xff]  ;;  %v1292_v46 = vld [vmem:[%s20010_s0 + $0xb8] sm:$0xff]  ;;  %v1294_v47 = vld [vmem:[%s20010_s0 + $0xc8] sm:$0xff]  ;;  %v10792_v51 = vpack.c.bf16 %v1290_v43, %v1287_v42 }
  0x20   : > { %v1297_v48 = vld [vmem:[%s20010_s0 + $0xe0] sm:$0xff]  ;;  %v1343_v49 = vld [vmem:[%s20010_s0 + $0x250] sm:$0xff]  ;;  %v1346_v50 = vld [vmem:[%s20010_s0 + $0x268] sm:$0xff]  ;;  %v11272_v52 = vpack.c.bf16 %v1292_v46, %v1289_v45 }
  0x21   : > { %10789 = vmatpush1.bf16.msra.mxu0 %v10788_v35  ;;  %v10794_v53 = vpack.c.bf16 %v1297_v48, %v1294_v47  ;;  %v1293_v54 = vld [vmem:[%s20010_s0 + $0xc0] sm:$0xff]  ;;  %v1296_v55 = vld [vmem:[%s20010_s0 + $0xd8] sm:$0xff]  ;;  %v1295_v56 = vld [vmem:[%s20010_s0 + $0xd0] sm:$0xff]  ;;  %v11274_v57 = vpack.c.bf16 %v1346_v50, %v1343_v49 }
  0x22   : > { %11269 = vmatpush3.bf16.msra.mxu1 %v11268_v39  ;;  %10791 = vmatprep.subr.bf16.mxu0 %v10790_v40  ;;  %v1298_v58 = vld [vmem:[%s20010_s0 + $0xe8] sm:$0xff]  ;;  %v1300_v59 = vld [vmem:[%s20010_s0 + $0xf8] sm:$0xff]  ;;  %v1303_v60 = vld [vmem:[%s20010_s0 + $0x110] sm:$0xff]  ;;  %v10796_v63 = vpack.c.bf16 %v1296_v55, %v1293_v54 }
  0x23   : > { %11271 = vmatprep.subr.bf16.mxu1 %v11270_v44  ;;  %v1349_v61 = vld [vmem:[%s20010_s0 + $0x280] sm:$0xff]  ;;  %v1352_v62 = vld [vmem:[%s20010_s0 + $0x298] sm:$0xff]  ;;  %v11276_v0 = vpack.c.bf16 %v1298_v58, %v1295_v56  ;;  %v10798_v1 = vpack.c.bf16 %v1303_v60, %v1300_v59  ;;  %v1299_v2 = vld [vmem:[%s20010_s0 + $0xf0] sm:$0xff] }
  0x24   : > { %v1302_v3 = vld [vmem:[%s20010_s0 + $0x108] sm:$0xff]  ;;  %v1301_v4 = vld [vmem:[%s20010_s0 + $0x100] sm:$0xff]  ;;  %v11278_v5 = vpack.c.bf16 %v1352_v62, %v1349_v61  ;;  %v1304_v6 = vld [vmem:[%s20010_s0 + $0x118] sm:$0xff] }
  0x25   : > { %10793 = vmatpush1.bf16.msra.mxu0 %v10792_v51  ;;  %v1306_v7 = vld [vmem:[%s20010_s0 + $0x128] sm:$0xff]  ;;  %v1309_v8 = vld [vmem:[%s20010_s0 + $0x140] sm:$0xff]  ;;  %v1355_v9 = vld [vmem:[%s20010_s0 + $0x2b0] sm:$0xff]  ;;  %v10800_v11 = vpack.c.bf16 %v1302_v3, %v1299_v2  ;;  %v11280_v14 = vpack.c.bf16 %v1304_v6, %v1301_v4 }
  0x26   : > { %11273 = vmatpush3.bf16.msra.mxu1 %v11272_v52  ;;  %10795 = vmatprep.subr.bf16.mxu0 %v10794_v53  ;;  %v1358_v10 = vld [vmem:[%s20010_s0 + $0x2c8] sm:$0xff]  ;;  %v1305_v12 = vld [vmem:[%s20010_s0 + $0x120] sm:$0xff]  ;;  %v1308_v13 = vld [vmem:[%s20010_s0 + $0x138] sm:$0xff]  ;;  %v10802_v15 = vpack.c.bf16 %v1309_v8, %v1306_v7 }
  0x27   : > { %11275 = vmatprep.subr.bf16.mxu1 %v11274_v57  ;;  %v1307_v16 = vld [vmem:[%s20010_s0 + $0x130] sm:$0xff]  ;;  %v1310_v17 = vld [vmem:[%s20010_s0 + $0x148] sm:$0xff]  ;;  %v11282_v19 = vpack.c.bf16 %v1358_v10, %v1355_v9  ;;  %v1312_v20 = vld [vmem:[%s20010_s0 + $0x158] sm:$0xff]  ;;  %v10804_v26 = vpack.c.bf16 %v1308_v13, %v1305_v12 }
  0x28   : > { %v579_v18 = vld [vmem:[%s13174_s18 + $0x1] sm:$0xff]  ;;  %v1315_v21 = vld [vmem:[%s20010_s0 + $0x170] sm:$0xff]  ;;  %v1364_v24 = vld [vmem:[%s20010_s0 + $0x2f8] sm:$0xff]  ;;  %v11284_v30 = vpack.c.bf16 %v1310_v17, %v1307_v16 }
  0x29   : > { %10797 = vmatpush1.bf16.msra.mxu0 %v10796_v63  ;;  %3341 = vmatprep.mubr.f32.mxu1 %v579_v18  ;;  %v13202_v22 = vld [vmem:[%s13174_s18] sm:$0xff]  ;;  %v13211_v25 = vld [vmem:[%s13174_s18 + $0x9] sm:$0xff]  ;;  %v10806_v31 = vpack.c.bf16 %v1315_v21, %v1312_v20  ;;  %v1316_v33 = vld [vmem:[%s20010_s0 + $0x178] sm:$0xff] }
  0x2a   : > { %11277 = vmatpush3.bf16.msra.mxu1 %v11276_v0  ;;  %10799 = vmatprep.subr.bf16.mxu0 %v10798_v1  ;;  %v1361_v23 = vld [vmem:[%s20010_s0 + $0x2e0] sm:$0xff]  ;;  %v1311_v27 = vld [vmem:[%s20010_s0 + $0x150] sm:$0xff]  ;;  %v1314_v28 = vld [vmem:[%s20010_s0 + $0x168] sm:$0xff] }
  0x2b   : > { %11279 = vmatprep.subr.bf16.mxu1 %v11278_v5  ;;  %2053 = vmatprep.mubr.f32.mxu0 %v579_v18  ;;  %v13220_v29 = vld [vmem:[%s13174_s18 + $0x8] sm:$0xff]  ;;  %v1313_v32 = vld [vmem:[%s20010_s0 + $0x160] sm:$0xff]  ;;  %v13229_v34 = vld [vmem:[%s13174_s18 + $0x11] sm:$0xff]  ;;  %v11286_v35 = vpack.c.bf16 %v1364_v24, %v1361_v23  ;;  %v10808_v40 = vpack.c.bf16 %v1314_v28, %v1311_v27 }
  0x2c   : > { %v1318_v36 = vld [vmem:[%s20010_s0 + $0x188] sm:$0xff]  ;;  %v1321_v37 = vld [vmem:[%s20010_s0 + $0x1a0] sm:$0xff]  ;;  %v13238_v38 = vld [vmem:[%s13174_s18 + $0x10] sm:$0xff]  ;;  %v11288_v42 = vpack.c.bf16 %v1316_v33, %v1313_v32 }
  0x2d   : > { %10801 = vmatpush1.bf16.msra.mxu0 %v10800_v11  ;;  %v13241_v39 = vld [vmem:[%s13174_s18 + $0x19] sm:$0xff]  ;;  %v10810_v43 = vpack.c.bf16 %v1321_v37, %v1318_v36  ;;  %v13253_v46 = vld [vmem:[%s13174_s18 + $0x21] sm:$0xff]  ;;  %v1327_v48 = vld [vmem:[%s20010_s0 + $0x1d0] sm:$0xff] }
  0x2e   : > { %11281 = vmatpush3.bf16.msra.mxu1 %v11280_v14  ;;  %10803 = vmatprep.subr.bf16.mxu0 %v10802_v15  ;;  %v13244_v41 = vld [vmem:[%s13174_s18 + $0x18] sm:$0xff]  ;;  %v1317_v44 = vld [vmem:[%s20010_s0 + $0x180] sm:$0xff]  ;;  %v13265_v50 = vld [vmem:[%s13174_s18 + $0x29] sm:$0xff] }
  0x2f   : > { %11283 = vmatprep.subr.bf16.mxu1 %v11282_v19  ;;  %v1320_v45 = vld [vmem:[%s20010_s0 + $0x198] sm:$0xff]  ;;  %v13262_v49 = vld [vmem:[%s13174_s18 + $0x20] sm:$0xff]  ;;  %v13268_v52 = vld [vmem:[%s13174_s18 + $0x28] sm:$0xff] }
  0x30   : > { %v1324_v47 = vld [vmem:[%s20010_s0 + $0x1b8] sm:$0xff]  ;;  %v10812_v51 = vpack.c.bf16 %v1320_v45, %v1317_v44  ;;  %v1323_v54 = vld [vmem:[%s20010_s0 + $0x1b0] sm:$0xff]  ;;  %v1326_v55 = vld [vmem:[%s20010_s0 + $0x1c8] sm:$0xff] }
  0x31   : > { %10805 = vmatpush1.bf16.msra.mxu0 %v10804_v26  ;;  %v10814_v53 = vpack.c.bf16 %v1327_v48, %v1324_v47  ;;  %v13277_v56 = vld [vmem:[%s13174_s18 + $0x31] sm:$0xff]  ;;  %v1330_v57 = vld [vmem:[%s20010_s0 + $0x1e8] sm:$0xff]  ;;  %v1333_v58 = vld [vmem:[%s20010_s0 + $0x200] sm:$0xff]  ;;  %v10816_v61 = vpack.c.bf16 %v1326_v55, %v1323_v54 }
  0x32   : > { %11285 = vmatpush3.bf16.msra.mxu1 %v11284_v30  ;;  %10807 = vmatprep.subr.bf16.mxu0 %v10806_v31  ;;  %v13286_v59 = vld [vmem:[%s13174_s18 + $0x30] sm:$0xff]  ;;  %v13289_v60 = vld [vmem:[%s13174_s18 + $0x39] sm:$0xff]  ;;  %v10818_v0 = vpack.c.bf16 %v1333_v58, %v1330_v57  ;;  %v13306_v3 = vld [vmem:[%s13174_s18 + $0x41] sm:$0xff] }
  0x33   : > { %11287 = vmatprep.subr.bf16.mxu1 %v11286_v35  ;;  %v1329_v62 = vld [vmem:[%s20010_s0 + $0x1e0] sm:$0xff]  ;;  %v13296_v63 = vld [vmem:[%s13174_s18 + $0x38] sm:$0xff]  ;;  %v1339_v4 = vld [vmem:[%s20010_s0 + $0x230] sm:$0xff] }
  0x34   : > { %v1332_v1 = vld [vmem:[%s20010_s0 + $0x1f8] sm:$0xff]  ;;  %v13312_v5 = vld [vmem:[%s13174_s18 + $0x40] sm:$0xff]  ;;  %v1415_v6 = vld [vmem:[%s20010_s0 + $0x490] sm:$0xff] }
  0x35   : > { %10809 = vmatpush1.bf16.msra.mxu0 %v10808_v40  ;;  %v1336_v2 = vld [vmem:[%s20010_s0 + $0x218] sm:$0xff]  ;;  %v1335_v7 = vld [vmem:[%s20010_s0 + $0x210] sm:$0xff]  ;;  %v1418_v8 = vld [vmem:[%s20010_s0 + $0x4a8] sm:$0xff]  ;;  %v10820_v9 = vpack.c.bf16 %v1332_v1, %v1329_v62 }
  0x36   : > { %11289 = vmatpush3.bf16.msra.mxu1 %v11288_v42  ;;  %10811 = vmatprep.subr.bf16.mxu0 %v10810_v43  ;;  %v11290_v10 = vpack.c.bf16 %v1418_v8, %v1415_v6  ;;  %v1367_v11 = vld [vmem:[%s20010_s0 + $0x310] sm:$0xff]  ;;  %v1370_v12 = vld [vmem:[%s20010_s0 + $0x328] sm:$0xff]  ;;  %v10822_v14 = vpack.c.bf16 %v1339_v4, %v1336_v2  ;;  %v1345_v19 = vld [vmem:[%s20010_s0 + $0x260] sm:$0xff] }
  0x37   : > { %v13331_v13 = vld [vmem:[%s13174_s18 + $0x49] sm:$0xff]  ;;  %v11292_v17 = vpack.c.bf16 %v1370_v12, %v1367_v11  ;;  %v1421_v20 = vld [vmem:[%s20010_s0 + $0x4c0] sm:$0xff]  ;;  %v1424_v21 = vld [vmem:[%s20010_s0 + $0x4d8] sm:$0xff] }
  0x38   : > { %v1338_v15 = vld [vmem:[%s20010_s0 + $0x228] sm:$0xff]  ;;  %11291 = vmatprep.subr.bf16.mxu1 %v11290_v10  ;;  %v11294_v23 = vpack.c.bf16 %v1424_v21, %v1421_v20  ;;  %v1373_v24 = vld [vmem:[%s20010_s0 + $0x340] sm:$0xff]  ;;  %v1376_v26 = vld [vmem:[%s20010_s0 + $0x358] sm:$0xff] }
  0x39   : > { %3342 = vmatmul.mubr.f32.vlgmr.msra.gmra.mrb[0].mxu1 %v13202_v22  ;;  %10813 = vmatpush1.bf16.msra.mxu0 %v10812_v51  ;;  %v1342_v16 = vld [vmem:[%s20010_s0 + $0x248] sm:$0xff]  ;;  %v10824_v27 = vpack.c.bf16 %v1338_v15, %v1335_v7  ;;  %v1341_v28 = vld [vmem:[%s20010_s0 + $0x240] sm:$0xff]  ;;  %v1344_v30 = vld [vmem:[%s20010_s0 + $0x258] sm:$0xff]  ;;  %v11296_v31 = vpack.c.bf16 %v1376_v26, %v1373_v24 }
  0x3a   : > { %3346 = vmatprep.mubr.f32.mxu1 %v13211_v25  ;;  %10815 = vmatprep.subr.bf16.mxu0 %v10814_v53  ;;  %v13341_v18 = vld [vmem:[%s13174_s18 + $0x48] sm:$0xff]  ;;  %v13366_v32 = vld [vmem:[%s13174_s18 + $0x51] sm:$0xff]  ;;  %v10826_v33 = vpack.c.bf16 %v1345_v19, %v1342_v16  ;;  %v13394_v48 = vld [vmem:[%s13174_s18 + $0x59] sm:$0xff]  ;;  %v10828_v51 = vpack.c.bf16 %v1344_v30, %v1341_v28 }
  0x3b   : > { %11293 = vmatpush3.bf16.msra.mxu1 %v11292_v17  ;;  %v13370_v35 = vld [vmem:[%s13174_s18 + $0x50] sm:$0xff]  ;;  %v1430_v37 = vld [vmem:[%s20010_s0 + $0x508] sm:$0xff]  ;;  %v1348_v40 = vld [vmem:[%s20010_s0 + $0x278] sm:$0xff] }
  0x3c   : > { %v1427_v36 = vld [vmem:[%s20010_s0 + $0x4f0] sm:$0xff]  ;;  %11295 = vmatprep.subr.bf16.mxu1 %v11294_v23  ;;  %v1382_v47 = vld [vmem:[%s20010_s0 + $0x388] sm:$0xff]  ;;  %v13401_v55 = vld [vmem:[%s13174_s18 + $0x58] sm:$0xff] }
  0x3d   : > { %3347 = vmatmul.mubr.f32.gmra.mrb[2].mxu1 %v13220_v29  ;;  %10817 = vmatpush1.bf16.msra.mxu0 %v10816_v61  ;;  %v1351_v42 = vld [vmem:[%s20010_s0 + $0x290] sm:$0xff]  ;;  %v11298_v43 = vpack.c.bf16 %v1430_v37, %v1427_v36  ;;  %v1350_v53 = vld [vmem:[%s20010_s0 + $0x288] sm:$0xff]  ;;  %v1433_v57 = vld [vmem:[%s20010_s0 + $0x520] sm:$0xff] }
  0x3e   : > { %3351 = vmatprep.mubr.f32.mxu1 %v13229_v34  ;;  %10819 = vmatprep.subr.bf16.mxu0 %v10818_v0  ;;  %v1379_v44 = vld [vmem:[%s20010_s0 + $0x370] sm:$0xff]  ;;  %v10830_v58 = vpack.c.bf16 %v1351_v42, %v1348_v40  ;;  %v1354_v61 = vld [vmem:[%s20010_s0 + $0x2a8] sm:$0xff]  ;;  %v1357_v62 = vld [vmem:[%s20010_s0 + $0x2c0] sm:$0xff] }
  0x3f   : > { %v1347_v45 = vld [vmem:[%s20010_s0 + $0x270] sm:$0xff]  ;;  %11297 = vmatpush3.bf16.msra.mxu1 %v11296_v31  ;;  %v11300_v54 = vpack.c.bf16 %v1382_v47, %v1379_v44  ;;  %v1436_v0 = vld [vmem:[%s20010_s0 + $0x538] sm:$0xff]  ;;  %v1385_v2 = vld [vmem:[%s20010_s0 + $0x3a0] sm:$0xff] }
  0x40   : > { %11299 = vmatprep.subr.bf16.mxu1 %v11298_v43  ;;  %v11302_v1 = vpack.c.bf16 %v1436_v0, %v1433_v57  ;;  %v1388_v4 = vld [vmem:[%s20010_s0 + $0x3b8] sm:$0xff]  ;;  %v13423_v6 = vld [vmem:[%s13174_s18 + $0x61] sm:$0xff]  ;;  %v1439_v11 = vld [vmem:[%s20010_s0 + $0x550] sm:$0xff] }
  0x41   : > { %3352 = vmatmul.mubr.f32.gmra.mrb[4].mxu1 %v13238_v38  ;;  %10821 = vmatpush1.bf16.msra.mxu0 %v10820_v9  ;;  %v11304_v7 = vpack.c.bf16 %v1388_v4, %v1385_v2  ;;  %v13426_v8 = vld [vmem:[%s13174_s18 + $0x60] sm:$0xff]  ;;  %v10832_v9 = vpack.c.bf16 %v1350_v53, %v1347_v45  ;;  %v1442_v12 = vld [vmem:[%s20010_s0 + $0x568] sm:$0xff]  ;;  %v1356_v15 = vld [vmem:[%s20010_s0 + $0x2b8] sm:$0xff] }
  0x42   : > { %3356 = vmatprep.mubr.f32.mxu1 %v13241_v39  ;;  %10823 = vmatprep.subr.bf16.mxu0 %v10822_v14  ;;  %v1353_v10 = vld [vmem:[%s20010_s0 + $0x2a0] sm:$0xff]  ;;  %v10834_v14 = vpack.c.bf16 %v1357_v62, %v1354_v61  ;;  %v1391_v16 = vld [vmem:[%s20010_s0 + $0x3d0] sm:$0xff]  ;;  %v1394_v17 = vld [vmem:[%s20010_s0 + $0x3e8] sm:$0xff]  ;;  %v11306_v21 = vpack.c.bf16 %v1442_v12, %v1439_v11 }
  0x43   : > { %11301 = vmatpush3.bf16.msra.mxu1 %v11300_v54  ;;  %v1360_v19 = vld [vmem:[%s20010_s0 + $0x2d8] sm:$0xff]  ;;  %v1363_v20 = vld [vmem:[%s20010_s0 + $0x2f0] sm:$0xff]  ;;  %v11308_v24 = vpack.c.bf16 %v1394_v17, %v1391_v16  ;;  %v13458_v26 = vld [vmem:[%s13174_s18 + $0x68] sm:$0xff]  ;;  %v10836_v30 = vpack.c.bf16 %v1356_v15, %v1353_v10 }
  0x44   : > { %11303 = vmatprep.subr.bf16.mxu1 %v11302_v1  ;;  %v13455_v23 = vld [vmem:[%s13174_s18 + $0x69] sm:$0xff]  ;;  %v1448_v28 = vld [vmem:[%s20010_s0 + $0x598] sm:$0xff]  ;;  %v10838_v36 = vpack.c.bf16 %v1363_v20, %v1360_v19  ;;  %v1369_v44 = vld [vmem:[%s20010_s0 + $0x320] sm:$0xff] }
  0x45   : > { %3357 = vmatmul.mubr.f32.gmra.mrb[6].mxu1 %v13244_v41  ;;  %10825 = vmatpush1.bf16.msra.mxu0 %v10824_v27  ;;  %v1445_v27 = vld [vmem:[%s20010_s0 + $0x580] sm:$0xff]  ;;  %v1359_v31 = vld [vmem:[%s20010_s0 + $0x2d0] sm:$0xff]  ;;  %v1362_v37 = vld [vmem:[%s20010_s0 + $0x2e8] sm:$0xff] }
  0x46   : > { %3361 = vmatprep.mubr.f32.mxu1 %v13253_v46  ;;  %10827 = vmatprep.subr.bf16.mxu0 %v10826_v33  ;;  %v1397_v33 = vld [vmem:[%s20010_s0 + $0x400] sm:$0xff]  ;;  %v1400_v40 = vld [vmem:[%s20010_s0 + $0x418] sm:$0xff]  ;;  %v1366_v43 = vld [vmem:[%s20010_s0 + $0x308] sm:$0xff]  ;;  %v11310_v45 = vpack.c.bf16 %v1448_v28, %v1445_v27  ;;  %v10840_v57 = vpack.c.bf16 %v1362_v37, %v1359_v31 }
  0x47   : > { %11305 = vmatpush3.bf16.msra.mxu1 %v11304_v7  ;;  %v13481_v42 = vld [vmem:[%s13174_s18 + $0x71] sm:$0xff]  ;;  %v1454_v54 = vld [vmem:[%s20010_s0 + $0x5c8] sm:$0xff]  ;;  %v594_v62 = vld [vmem:[%s13174_s18 + $0x79] sm:$0xf]  ;;  %v10842_v0 = vpack.c.bf16 %v1369_v44, %v1366_v43 }
  0x48   : > { %11307 = vmatprep.subr.bf16.mxu1 %v11306_v21  ;;  %v13490_v47 = vld [vmem:[%s13174_s18 + $0x70] sm:$0xff]  ;;  %v1406_v61 = vld [vmem:[%s20010_s0 + $0x448] sm:$0xff]  ;;  %v1365_v1 = vld [vmem:[%s20010_s0 + $0x300] sm:$0xff]  ;;  %610 = vst [vmem:[#allocation2 + $0x710] sm:$0xf] %v594_v62 }
  0x49   : > { %3362 = vmatmul.mubr.f32.gmra.mrb[8].mxu1 %v13262_v49  ;;  %10829 = vmatpush1.bf16.msra.mxu0 %v10828_v51  ;;  %v11312_v51 = vpack.c.bf16 %v1400_v40, %v1397_v33  ;;  %v1451_v53 = vld [vmem:[%s20010_s0 + $0x5b0] sm:$0xff]  ;;  %v1368_v2 = vld [vmem:[%s20010_s0 + $0x318] sm:$0xff]  ;;  %v1457_v12 = vld [vmem:[%s20010_s0 + $0x5e0] sm:$0xff] }
  0x4a   : > { %3366 = vmatprep.mubr.f32.mxu1 %v13265_v50  ;;  %10831 = vmatprep.subr.bf16.mxu0 %v10830_v58  ;;  %v1403_v58 = vld [vmem:[%s20010_s0 + $0x430] sm:$0xff]  ;;  %v562_v4 = vld [vmem:[%s13174_s18 + $0x78] sm:$0xf]  ;;  %v10844_v15 = vpack.c.bf16 %v1368_v2, %v1365_v1  ;;  %v1409_v16 = vld [vmem:[%s20010_s0 + $0x460] sm:$0xff] }
  0x4b   : > { %11309 = vmatpush3.bf16.msra.mxu1 %v11308_v24  ;;  %v1372_v7 = vld [vmem:[%s20010_s0 + $0x338] sm:$0xff]  ;;  %578 = vst [vmem:[#allocation2 + $0x708] sm:$0xf] %v562_v4  ;;  %v1375_v10 = vld [vmem:[%s20010_s0 + $0x350] sm:$0xff]  ;;  %v11316_v11 = vpack.c.bf16 %v1406_v61, %v1403_v58  ;;  %v13534_v19 = vld [vmem:[%s13174_s18 + $0x3] sm:$0xff] }
  0x4c   : > { %11311 = vmatprep.subr.bf16.mxu1 %v11310_v45  ;;  %v1412_v17 = vld [vmem:[%s20010_s0 + $0x478] sm:$0xff]  ;;  %v1371_v20 = vld [vmem:[%s20010_s0 + $0x330] sm:$0xff]  ;;  %v1374_v21 = vld [vmem:[%s20010_s0 + $0x348] sm:$0xff]  ;;  %v10846_v27 = vpack.c.bf16 %v1375_v10, %v1372_v7 }
  0x4d   : > { %3367 = vmatmul.mubr.f32.gmra.mrb[10].mxu1 %v13268_v52  ;;  %10833 = vmatpush1.bf16.msra.mxu0 %v10832_v9  ;;  %v11314_v9 = vpack.c.bf16 %v1454_v54, %v1451_v53  ;;  %v13544_v24 = vld [vmem:[%s13174_s18 + $0x2] sm:$0xff]  ;;  %v13557_v37 = vld [vmem:[%s13174_s18 + $0xa] sm:$0xff]  ;;  %v10848_v40 = vpack.c.bf16 %v1374_v21, %v1371_v20  ;;  %v13561_v43 = vld [vmem:[%s13174_s18 + $0x13] sm:$0xff] }
  0x4e   : > { %3371 = vmatprep.mubr.f32.mxu1 %v13277_v56  ;;  %10835 = vmatprep.subr.bf16.mxu0 %v10834_v14  ;;  %v1460_v14 = vld [vmem:[%s20010_s0 + $0x5f8] sm:$0xff]  ;;  %v1378_v31 = vld [vmem:[%s20010_s0 + $0x368] sm:$0xff]  ;;  %v1381_v33 = vld [vmem:[%s20010_s0 + $0x380] sm:$0xff] }
  0x4f   : > { %11313 = vmatpush3.bf16.msra.mxu1 %v11312_v51  ;;  %v11318_v28 = vpack.c.bf16 %v1460_v14, %v1457_v12  ;;  %v1380_v44 = vld [vmem:[%s20010_s0 + $0x378] sm:$0xff]  ;;  %v10850_v51 = vpack.c.bf16 %v1381_v33, %v1378_v31  ;;  %v1387_v54 = vld [vmem:[%s20010_s0 + $0x3b0] sm:$0xff]  ;;  %v13589_v61 = vld [vmem:[%s13174_s18 + $0x23] sm:$0xff] }
  0x50   : > { %11315 = vmatprep.subr.bf16.mxu1 %v11314_v9  ;;  %v13572_v45 = vld [vmem:[%s13174_s18 + $0x12] sm:$0xff]  ;;  %v13575_v53 = vld [vmem:[%s13174_s18 + $0x1b] sm:$0xff]  ;;  %v1386_v62 = vld [vmem:[%s20010_s0 + $0x3a8] sm:$0xff] }
  0x51   : > { %3372 = vmatmul.mubr.f32.gmra.mrb[12].mxu1 %v13286_v59  ;;  %10837 = vmatpush1.bf16.msra.mxu0 %v10836_v30  ;;  %v13547_v30 = vld [vmem:[%s13174_s18 + $0xb] sm:$0xff]  ;;  %v1393_v4 = vld [vmem:[%s20010_s0 + $0x3e0] sm:$0xff]  ;;  %v13617_v10 = vld [vmem:[%s13174_s18 + $0x33] sm:$0xff] }
  0x52   : > { %3376 = vmatprep.mubr.f32.mxu1 %v13289_v60  ;;  %10839 = vmatprep.subr.bf16.mxu0 %v10838_v36  ;;  %v11320_v36 = vpack.c.bf16 %v1412_v17, %v1409_v16  ;;  %v13603_v2 = vld [vmem:[%s13174_s18 + $0x2b] sm:$0xff]  ;;  %v13641_v17 = vld [vmem:[%s13174_s18 + $0x3a] sm:$0xff]  ;;  %v13645_v21 = vld [vmem:[%s13174_s18 + $0x43] sm:$0xff] }
  0x53   : > { %11317 = vmatpush3.bf16.msra.mxu1 %v11316_v11  ;;  %v13613_v7 = vld [vmem:[%s13174_s18 + $0x2a] sm:$0xff]  ;;  %v1392_v11 = vld [vmem:[%s20010_s0 + $0x3d8] sm:$0xff] }
  0x54   : > { %11319 = vmatprep.subr.bf16.mxu1 %v11318_v28  ;;  %v13628_v12 = vld [vmem:[%s13174_s18 + $0x32] sm:$0xff]  ;;  %v13656_v28 = vld [vmem:[%s13174_s18 + $0x42] sm:$0xff] }
  0x55   : > { %3377 = vmatmul.mubr.f32.gmra.mrb[14].mxu1 %v13296_v63  ;;  %10841 = vmatpush1.bf16.msra.mxu0 %v10840_v57  ;;  %v13585_v57 = vld [vmem:[%s13174_s18 + $0x1a] sm:$0xff]  ;;  %v1399_v16 = vld [vmem:[%s20010_s0 + $0x410] sm:$0xff]  ;;  %v1514_v33 = vld [vmem:[%s20010_s0 + $0x7a8] sm:$0xff] }
  0x56   : > { %3381 = vmatprep.mubr.f32.mxu1 %v13306_v3  ;;  %10843 = vmatprep.subr.bf16.mxu0 %v10842_v0  ;;  %v13600_v0 = vld [vmem:[%s13174_s18 + $0x22] sm:$0xff] }
  0x57   : > { %11321 = vmatpush3.bf16.msra.mxu1 %v11320_v36  ;;  %v1402_v36 = vld [vmem:[%s20010_s0 + $0x428] sm:$0xff] }
  0x58   : > { %2054 = vmatmul.mubr.f32.vlgmr.msra.gmra.mrb[0].mxu0 %v13202_v22  ;;  %v1377_v22 = vld [vmem:[%s20010_s0 + $0x360] sm:$0xff] }
  0x59   : > { %3382 = vmatmul.mubr.f32.gmra.mrb[16].mxu1 %v13312_v5  ;;  %10845 = vmatpush1.bf16.msra.mxu0 %v10844_v15  ;;  %v10852_v58 = vpack.c.bf16 %v1380_v44, %v1377_v22  ;;  %v13631_v15 = vld [vmem:[%s13174_s18 + $0x3b] sm:$0xff] }
  0x5a   : > { %2059 = vmatprep.mubr.f32.mxu0 %v13211_v25  ;;  %3386 = vmatprep.mubr.f32.mxu1 %v13331_v13  ;;  %v1384_v25 = vld [vmem:[%s20010_s0 + $0x398] sm:$0xff] }
  0x5b   : > { %10847 = vmatprep.subr.bf16.mxu0 %v10846_v27  ;;  %v10854_v1 = vpack.c.bf16 %v1387_v54, %v1384_v25  ;;  %v1398_v27 = vld [vmem:[%s20010_s0 + $0x408] sm:$0xff]  ;;  %v1404_v25 = vld [vmem:[%s20010_s0 + $0x438] sm:$0xff] }
  0x5c   : > { %2060 = vmatmul.mubr.f32.gmra.mrb[2].mxu0 %v13220_v29  ;;  %v1383_v29 = vld [vmem:[%s20010_s0 + $0x390] sm:$0xff] }
  0x5d   : > { %3387 = vmatmul.mubr.f32.gmra.mrb[18].mxu1 %v13341_v18  ;;  %10849 = vmatpush1.bf16.msra.mxu0 %v10848_v40  ;;  %v10856_v9 = vpack.c.bf16 %v1386_v62, %v1383_v29  ;;  %v1405_v40 = vld [vmem:[%s20010_s0 + $0x440] sm:$0xff]  ;;  %v13684_v54 = vld [vmem:[%s13174_s18 + $0x4a] sm:$0xff]  ;;  %v13694_v62 = vld [vmem:[%s13174_s18 + $0x53] sm:$0xff] }
  0x5e   : > { %2065 = vmatprep.mubr.f32.mxu0 %v13229_v34  ;;  %3391 = vmatprep.mubr.f32.mxu1 %v13366_v32  ;;  %v1390_v34 = vld [vmem:[%s20010_s0 + $0x3c8] sm:$0xff]  ;;  %v1411_v29 = vld [vmem:[%s20010_s0 + $0x470] sm:$0xff] }
  0x5f   : > { %10851 = vmatprep.subr.bf16.mxu0 %v10850_v51  ;;  %v10858_v14 = vpack.c.bf16 %v1393_v4, %v1390_v34  ;;  %v13673_v51 = vld [vmem:[%s13174_s18 + $0x4b] sm:$0xff] }
  0x60   : > { %2066 = vmatmul.mubr.f32.gmra.mrb[4].mxu0 %v13238_v38  ;;  %v1389_v38 = vld [vmem:[%s20010_s0 + $0x3c0] sm:$0xff]  ;;  %v13698_v34 = vld [vmem:[%s13174_s18 + $0x52] sm:$0xff]  ;;  %v1410_v4 = vld [vmem:[%s20010_s0 + $0x468] sm:$0xff] }
  0x61   : > { %3392 = vmatmul.mubr.f32.gmra.mrb[20].mxu1 %v13370_v35  ;;  %10853 = vmatpush1.bf16.msra.mxu0 %v10852_v58  ;;  %v10860_v20 = vpack.c.bf16 %v1392_v11, %v1389_v38  ;;  %v10866_v58 = vpack.c.bf16 %v1405_v40, %v1402_v36  ;;  %v13711_v11 = vld [vmem:[%s13174_s18 + $0x5b] sm:$0xff]  ;;  %v1466_v36 = vld [vmem:[%s20010_s0 + $0x628] sm:$0xff] }
  0x62   : > { %2071 = vmatprep.mubr.f32.mxu0 %v13241_v39  ;;  %3396 = vmatprep.mubr.f32.mxu1 %v13394_v48  ;;  %v1396_v39 = vld [vmem:[%s20010_s0 + $0x3f8] sm:$0xff]  ;;  %v13751_v40 = vld [vmem:[%s13174_s18 + $0x62] sm:$0xff] }
  0x63   : > { %10855 = vmatprep.subr.bf16.mxu0 %v10854_v1  ;;  %v10862_v31 = vpack.c.bf16 %v1399_v16, %v1396_v39  ;;  %v13721_v39 = vld [vmem:[%s13174_s18 + $0x5a] sm:$0xff] }
  0x64   : > { %2072 = vmatmul.mubr.f32.gmra.mrb[6].mxu0 %v13244_v41  ;;  %v1395_v41 = vld [vmem:[%s20010_s0 + $0x3f0] sm:$0xff] }
  0x65   : > { %3397 = vmatmul.mubr.f32.gmra.mrb[22].mxu1 %v13401_v55  ;;  %10857 = vmatpush1.bf16.msra.mxu0 %v10856_v9  ;;  %v10864_v44 = vpack.c.bf16 %v1398_v27, %v1395_v41  ;;  %v13708_v9 = vld [vmem:[#allocation2 + $0x710] sm:$0xf]  ;;  %v1416_v41 = vld [vmem:[%s20010_s0 + $0x498] sm:$0xff] }
  0x66   : > { %2077 = vmatprep.mubr.f32.mxu0 %v13253_v46  ;;  %3401 = vmatprep.mubr.f32.mxu1 %v13423_v6  ;;  %v1511_v46 = vld [vmem:[%s20010_s0 + $0x790] sm:$0xff] }
  0x67   : > { %10859 = vmatprep.subr.bf16.mxu0 %v10858_v14  ;;  %v11322_v22 = vpack.c.bf16 %v1514_v33, %v1511_v46  ;;  %v1417_v14 = vld [vmem:[%s20010_s0 + $0x4a0] sm:$0xff]  ;;  %v1463_v33 = vld [vmem:[%s20010_s0 + $0x610] sm:$0xff] }
  0x68   : > { %2078 = vmatmul.mubr.f32.gmra.mrb[8].mxu0 %v13262_v49  ;;  %v1401_v49 = vld [vmem:[%s20010_s0 + $0x420] sm:$0xff] }
  0x69   : > { %3402 = vmatmul.mubr.f32.gmra.mrb[24].mxu1 %v13426_v8  ;;  %10861 = vmatpush1.bf16.msra.mxu0 %v10860_v20  ;;  %v10868_v1 = vpack.c.bf16 %v1404_v25, %v1401_v49  ;;  %v1413_v20 = vld [vmem:[%s20010_s0 + $0x480] sm:$0xff]  ;;  %v1419_v49 = vld [vmem:[%s20010_s0 + $0x4b0] sm:$0xff]  ;;  %v1422_v25 = vld [vmem:[%s20010_s0 + $0x4c8] sm:$0xff] }
  0x6a   : > { %2083 = vmatprep.mubr.f32.mxu0 %v13265_v50  ;;  %3406 = vmatprep.mubr.f32.mxu1 %v13455_v23  ;;  %v1408_v50 = vld [vmem:[%s20010_s0 + $0x458] sm:$0xff]  ;;  %v13741_v46 = vld [vmem:[%s13174_s18 + $0x63] sm:$0xff] }
  0x6b   : > { %10863 = vmatprep.subr.bf16.mxu0 %v10862_v31  ;;  %11323 = vmatprep.subr.bf16.mxu1 %v11322_v22  ;;  %v10870_v38 = vpack.c.bf16 %v1411_v29, %v1408_v50  ;;  %v1420_v31 = vld [vmem:[%s20010_s0 + $0x4b8] sm:$0xff]  ;;  %v10876_v22 = vpack.c.bf16 %v1416_v41, %v1413_v20  ;;  %v1426_v29 = vld [vmem:[%s20010_s0 + $0x4e8] sm:$0xff]  ;;  %v1425_v41 = vld [vmem:[%s20010_s0 + $0x4e0] sm:$0xff] }
  0x6c   : > { %2084 = vmatmul.mubr.f32.gmra.mrb[10].mxu0 %v13268_v52  ;;  %v1407_v52 = vld [vmem:[%s20010_s0 + $0x450] sm:$0xff] }
  0x6d   : > { %3407 = vmatmul.mubr.f32.gmra.mrb[26].mxu1 %v13458_v26  ;;  %10865 = vmatpush1.bf16.msra.mxu0 %v10864_v44  ;;  %v10872_v16 = vpack.c.bf16 %v1410_v4, %v1407_v52  ;;  %v1517_v44 = vld [vmem:[%s20010_s0 + $0x7c0] sm:$0xff]  ;;  %v13795_v20 = vld [vmem:[%s13174_s18 + $0x73] sm:$0xff] }
  0x6e   : > { %2089 = vmatprep.mubr.f32.mxu0 %v13277_v56  ;;  %3411 = vmatprep.mubr.f32.mxu1 %v13481_v42  ;;  %v1414_v56 = vld [vmem:[%s20010_s0 + $0x488] sm:$0xff]  ;;  %v1429_v52 = vld [vmem:[%s20010_s0 + $0x500] sm:$0xff] }
  0x6f   : > { %10867 = vmatprep.subr.bf16.mxu0 %v10866_v58  ;;  %v10874_v27 = vpack.c.bf16 %v1417_v14, %v1414_v56  ;;  %v13769_v58 = vld [vmem:[%s13174_s18 + $0x6b] sm:$0xff]  ;;  %v1472_v56 = vld [vmem:[%s20010_s0 + $0x658] sm:$0xff]  ;;  %v10880_v14 = vpack.c.bf16 %v1422_v25, %v1419_v49 }
  0x70   : > { %2090 = vmatmul.mubr.f32.gmra.mrb[12].mxu0 %v13286_v59  ;;  %v13726_v59 = vld [vmem:[#allocation2 + $0x708] sm:$0xf]  ;;  %v1532_v25 = vld [vmem:[%s20010_s0 + $0x838] sm:$0xff] }
  0x71   : > { %3412 = vmatmul.mubr.f32.gmra.mrb[28].mxu1 %v13490_v47  ;;  %10869 = vmatpush1.bf16.msra.mxu0 %v10868_v1  ;;  %v13775_v1 = vld [vmem:[%s13174_s18 + $0x6a] sm:$0xff] }
  0x72   : > { %2095 = vmatprep.mubr.f32.mxu0 %v13289_v60  ;;  %3416 = vmatprep.mubr.f32.mxu1 %v13708_v9  ;;  %v1423_v60 = vld [vmem:[%s20010_s0 + $0x4d0] sm:$0xff] }
  0x73   : > { %10871 = vmatprep.subr.bf16.mxu0 %v10870_v38  ;;  %v10878_v50 = vpack.c.bf16 %v1423_v60, %v1420_v31  ;;  %v1469_v38 = vld [vmem:[%s20010_s0 + $0x640] sm:$0xff]  ;;  %v13806_v31 = vld [vmem:[%s13174_s18 + $0x72] sm:$0xff]  ;;  %v10882_v60 = vpack.c.bf16 %v1429_v52, %v1426_v29  ;;  %v626_v52 = vld [vmem:[%s13174_s18 + $0x7a] sm:$0xf] }
  0x74   : > { %2096 = vmatmul.mubr.f32.gmra.mrb[14].mxu0 %v13296_v63  ;;  %v1520_v63 = vld [vmem:[%s20010_s0 + $0x7d8] sm:$0xff]  ;;  %v1431_v29 = vld [vmem:[%s20010_s0 + $0x510] sm:$0xff]  ;;  %642 = vst [vmem:[#allocation2 + $0x718] sm:$0xf] %v626_v52 }
  0x75   : > { %3417 = vmatmul.mubr.f32.gmra.mrb[30].mxu1 %v13726_v59  ;;  %10873 = vmatpush1.bf16.msra.mxu0 %v10872_v16  ;;  %v11326_v4 = vpack.c.bf16 %v1520_v63, %v1517_v44  ;;  %v1526_v16 = vld [vmem:[%s20010_s0 + $0x808] sm:$0xff]  ;;  %v1475_v44 = vld [vmem:[%s20010_s0 + $0x670] sm:$0xff] }
  0x76   : > { %2101 = vmatprep.mubr.f32.mxu0 %v13306_v3  ;;  %3486 = vmatprep.mubr.f32.mxu1 %v13534_v19  ;;  %v11324_v3 = vpack.c.bf16 %v1466_v36, %v1463_v33  ;;  %v1432_v33 = vld [vmem:[%s20010_s0 + $0x518] sm:$0xff]  ;;  %v1435_v36 = vld [vmem:[%s20010_s0 + $0x530] sm:$0xff]  ;;  %v1478_v63 = vld [vmem:[%s20010_s0 + $0x688] sm:$0xff] }
  0x77   : > { %10875 = vmatprep.subr.bf16.mxu0 %v10874_v27  ;;  %v1428_v27 = vld [vmem:[%s20010_s0 + $0x4f8] sm:$0xff] }
  0x78   : > { %2102 = vmatmul.mubr.f32.gmra.mrb[16].mxu0 %v13312_v5  ;;  %v1523_v5 = vld [vmem:[%s20010_s0 + $0x7f0] sm:$0xff]  ;;  %v10884_v49 = vpack.c.bf16 %v1428_v27, %v1425_v41  ;;  %v13852_v41 = vld [vmem:[%s13174_s18 + $0x80] sm:$0xff] }
  0x79   : > { %3487 = vmatmul.mubr.f32.vlgmr.msra.gmra.mrb[32].mxu1 %v13544_v24  ;;  %10877 = vmatpush1.bf16.msra.mxu0 %v10876_v22  ;;  %v11330_v22 = vpack.c.bf16 %v1526_v16, %v1523_v5  ;;  %v1481_v5 = vld [vmem:[%s20010_s0 + $0x6a0] sm:$0xff]  ;;  %v1484_v16 = vld [vmem:[%s20010_s0 + $0x6b8] sm:$0xff] }
  0x7a   : > { %2107 = vmatprep.mubr.f32.mxu0 %v13331_v13  ;;  %3491 = vmatprep.mubr.f32.mxu1 %v13547_v30  ;;  %v11328_v13 = vpack.c.bf16 %v1472_v56, %v1469_v38  ;;  %v1438_v38 = vld [vmem:[%s20010_s0 + $0x548] sm:$0xff]  ;;  %v11332_v56 = vpack.c.bf16 %v1478_v63, %v1475_v44  ;;  %v1444_v63 = vld [vmem:[%s20010_s0 + $0x578] sm:$0xff] }
  0x7b   : > { %10879 = vmatprep.subr.bf16.mxu0 %v10878_v50  ;;  %11325 = vmatpush3.bf16.msra.mxu1 %v11324_v3  ;;  %v658_v50 = vld [vmem:[%s13174_s18 + $0x7b] sm:$0xf]  ;;  %v1434_v3 = vld [vmem:[%s20010_s0 + $0x528] sm:$0xff] }
  0x7c   : > { %2108 = vmatmul.mubr.f32.gmra.mrb[18].mxu0 %v13341_v18  ;;  %11327 = vmatprep.subr.bf16.mxu1 %v11326_v4  ;;  %v1529_v18 = vld [vmem:[%s20010_s0 + $0x820] sm:$0xff]  ;;  %674 = vst [vmem:[#allocation2 + $0x720] sm:$0xf] %v658_v50  ;;  %v10886_v4 = vpack.c.bf16 %v1435_v36, %v1432_v33  ;;  %v10888_v27 = vpack.c.bf16 %v1434_v3, %v1431_v29  ;;  %v1440_v36 = vld [vmem:[%s20010_s0 + $0x558] sm:$0xff]  ;;  %v1487_v50 = vld [vmem:[%s20010_s0 + $0x6d0] sm:$0xff] }
  0x7d   : > { %3492 = vmatmul.mubr.f32.gmra.mrb[34].mxu1 %v13557_v37  ;;  %10881 = vmatpush1.bf16.msra.mxu0 %v10880_v14  ;;  %v11334_v14 = vpack.c.bf16 %v1532_v25, %v1529_v18  ;;  %v13862_v33 = vld [vmem:[%s13174_s18 + $0x4] sm:$0xff]  ;;  %v13882_v18 = vld [vmem:[%s13174_s18 + $0xc] sm:$0xff] }
  0x7e   : > { %2113 = vmatprep.mubr.f32.mxu0 %v13366_v32  ;;  %3496 = vmatprep.mubr.f32.mxu1 %v13561_v43  ;;  %v1441_v32 = vld [vmem:[%s20010_s0 + $0x560] sm:$0xff]  ;;  %v1490_v29 = vld [vmem:[%s20010_s0 + $0x6e8] sm:$0xff]  ;;  %v13892_v3 = vld [vmem:[%s13174_s18 + $0x90] sm:$0xff] }
  0x7f   : > { %10883 = vmatprep.subr.bf16.mxu0 %v10882_v60  ;;  %11329 = vmatpush3.bf16.msra.mxu1 %v11328_v13  ;;  %v1538_v60 = vld [vmem:[%s20010_s0 + $0x868] sm:$0xff]  ;;  %v1437_v13 = vld [vmem:[%s20010_s0 + $0x540] sm:$0xff]  ;;  %v10890_v44 = vpack.c.bf16 %v1441_v32, %v1438_v38  ;;  %v13902_v38 = vld [vmem:[%s13174_s18 + $0x14] sm:$0xff] }
  0x80   : > { %2114 = vmatmul.mubr.f32.gmra.mrb[20].mxu0 %v13370_v35  ;;  %11331 = vmatprep.subr.bf16.mxu1 %v11330_v22  ;;  %v1535_v35 = vld [vmem:[%s20010_s0 + $0x850] sm:$0xff]  ;;  %v13873_v22 = vld [vmem:[%s13174_s18 + $0x88] sm:$0xff]  ;;  %v10892_v52 = vpack.c.bf16 %v1440_v36, %v1437_v13  ;;  %v1496_v13 = vld [vmem:[%s20010_s0 + $0x718] sm:$0xff] }
  0x81   : > { %3497 = vmatmul.mubr.f32.gmra.mrb[36].mxu1 %v13572_v45  ;;  %10885 = vmatpush1.bf16.msra.mxu0 %v10884_v49  ;;  %v11336_v49 = vpack.c.bf16 %v1484_v16, %v1481_v5  ;;  %v11338_v25 = vpack.c.bf16 %v1538_v60, %v1535_v35  ;;  %v1443_v32 = vld [vmem:[%s20010_s0 + $0x570] sm:$0xff]  ;;  %v1450_v5 = vld [vmem:[%s20010_s0 + $0x5a8] sm:$0xff]  ;;  %v11340_v16 = vpack.c.bf16 %v1490_v29, %v1487_v50  ;;  %v1493_v60 = vld [vmem:[%s20010_s0 + $0x700] sm:$0xff] }
  0x82   : > { %2119 = vmatprep.mubr.f32.mxu0 %v13394_v48  ;;  %3501 = vmatprep.mubr.f32.mxu1 %v13575_v53  ;;  %v1447_v48 = vld [vmem:[%s20010_s0 + $0x590] sm:$0xff]  ;;  %v13929_v36 = vld [vmem:[%s13174_s18 + $0x1c] sm:$0xff]  ;;  %v13950_v50 = vld [vmem:[%s13174_s18 + $0x24] sm:$0xff] }
  0x83   : > { %10887 = vmatprep.subr.bf16.mxu0 %v10886_v4  ;;  %11333 = vmatpush3.bf16.msra.mxu1 %v11332_v56  ;;  %v1544_v4 = vld [vmem:[%s20010_s0 + $0x898] sm:$0xff]  ;;  %v1446_v56 = vld [vmem:[%s20010_s0 + $0x588] sm:$0xff] }
  0x84   : > { %2120 = vmatmul.mubr.f32.gmra.mrb[22].mxu0 %v13401_v55  ;;  %11335 = vmatprep.subr.bf16.mxu1 %v11334_v14  ;;  %v1541_v55 = vld [vmem:[%s20010_s0 + $0x880] sm:$0xff]  ;;  %v10894_v14 = vpack.c.bf16 %v1447_v48, %v1444_v63  ;;  %v1550_v63 = vld [vmem:[%s20010_s0 + $0x8c8] sm:$0xff] }
  0x85   : > { %3502 = vmatmul.mubr.f32.gmra.mrb[38].mxu1 %v13585_v57  ;;  %10889 = vmatpush1.bf16.msra.mxu0 %v10888_v27  ;;  %v13919_v27 = vld [vmem:[%s13174_s18 + $0x98] sm:$0xff]  ;;  %v11342_v35 = vpack.c.bf16 %v1544_v4, %v1541_v55  ;;  %v13939_v48 = vld [vmem:[%s13174_s18 + $0xa0] sm:$0xff]  ;;  %v11344_v55 = vpack.c.bf16 %v1496_v13, %v1493_v60  ;;  %v13959_v4 = vld [vmem:[%s13174_s18 + $0xa8] sm:$0xff] }
  0x86   : > { %2125 = vmatprep.mubr.f32.mxu0 %v13423_v6  ;;  %3506 = vmatprep.mubr.f32.mxu1 %v13589_v61  ;;  %v1453_v6 = vld [vmem:[%s20010_s0 + $0x5c0] sm:$0xff]  ;;  %v1455_v60 = vld [vmem:[%s20010_s0 + $0x5d0] sm:$0xff]  ;;  %v1458_v13 = vld [vmem:[%s20010_s0 + $0x5e8] sm:$0xff] }
  0x87   : > { %10891 = vmatprep.subr.bf16.mxu0 %v10890_v44  ;;  %11337 = vmatpush3.bf16.msra.mxu1 %v11336_v49  ;;  %v10896_v44 = vpack.c.bf16 %v1446_v56, %v1443_v32  ;;  %v1449_v49 = vld [vmem:[%s20010_s0 + $0x5a0] sm:$0xff]  ;;  %v10898_v29 = vpack.c.bf16 %v1453_v6, %v1450_v5  ;;  %v1499_v56 = vld [vmem:[%s20010_s0 + $0x730] sm:$0xff] }
  0x88   : > { %2126 = vmatmul.mubr.f32.gmra.mrb[24].mxu0 %v13426_v8  ;;  %11339 = vmatprep.subr.bf16.mxu1 %v11338_v25  ;;  %v1547_v8 = vld [vmem:[%s20010_s0 + $0x8b0] sm:$0xff]  ;;  %v1452_v25 = vld [vmem:[%s20010_s0 + $0x5b8] sm:$0xff] }
  0x89   : > { %3507 = vmatmul.mubr.f32.gmra.mrb[40].mxu1 %v13600_v0  ;;  %10893 = vmatpush1.bf16.msra.mxu0 %v10892_v52  ;;  %v1456_v52 = vld [vmem:[%s20010_s0 + $0x5d8] sm:$0xff]  ;;  %v11346_v32 = vpack.c.bf16 %v1550_v63, %v1547_v8  ;;  %v13969_v5 = vld [vmem:[%s13174_s18 + $0x2c] sm:$0xff]  ;;  %v10900_v6 = vpack.c.bf16 %v1452_v25, %v1449_v49 }
  0x8a   : > { %2131 = vmatprep.mubr.f32.mxu0 %v13455_v23  ;;  %3511 = vmatprep.mubr.f32.mxu1 %v13603_v2  ;;  %v1459_v23 = vld [vmem:[%s20010_s0 + $0x5f0] sm:$0xff]  ;;  %v1462_v63 = vld [vmem:[%s20010_s0 + $0x608] sm:$0xff]  ;;  %v13999_v25 = vld [vmem:[%s13174_s18 + $0xb8] sm:$0xff] }
  0x8b   : > { %10895 = vmatprep.subr.bf16.mxu0 %v10894_v14  ;;  %11341 = vmatpush3.bf16.msra.mxu1 %v11340_v16  ;;  %v1502_v14 = vld [vmem:[%s20010_s0 + $0x748] sm:$0xff]  ;;  %v1556_v16 = vld [vmem:[%s20010_s0 + $0x8f8] sm:$0xff]  ;;  %v10902_v8 = vpack.c.bf16 %v1459_v23, %v1456_v52 }
  0x8c   : > { %2132 = vmatmul.mubr.f32.gmra.mrb[26].mxu0 %v13458_v26  ;;  %11343 = vmatprep.subr.bf16.mxu1 %v11342_v35  ;;  %v1553_v26 = vld [vmem:[%s20010_s0 + $0x8e0] sm:$0xff]  ;;  %v13979_v35 = vld [vmem:[%s13174_s18 + $0xb0] sm:$0xff]  ;;  %v11348_v49 = vpack.c.bf16 %v1502_v14, %v1499_v56  ;;  %v1508_v52 = vld [vmem:[%s20010_s0 + $0x778] sm:$0xff] }
  0x8d   : > { %3512 = vmatmul.mubr.f32.gmra.mrb[42].mxu1 %v13613_v7  ;;  %10897 = vmatpush1.bf16.msra.mxu0 %v10896_v44  ;;  %v13990_v44 = vld [vmem:[%s13174_s18 + $0x34] sm:$0xff]  ;;  %v14009_v23 = vld [vmem:[%s13174_s18 + $0x3c] sm:$0xff]  ;;  %v14026_v14 = vld [vmem:[%s13174_s18 + $0x44] sm:$0xff] }
  0x8e   : > { %2137 = vmatprep.mubr.f32.mxu0 %v13481_v42  ;;  %3516 = vmatprep.mubr.f32.mxu1 %v13617_v10  ;;  %20013 = vst [vmem:[#allocation6_spill] sm:$0xff] %v13990_v44  ;;  %v1465_v42 = vld [vmem:[%s20010_s0 + $0x620] sm:$0xff]  ;;  %v11350_v44 = vpack.c.bf16 %v1556_v16, %v1553_v26  ;;  %20014 = vst [vmem:[#allocation7_spill] sm:$0xff] %v14009_v23  ;;  %v1610_v26 = vld [vmem:[%s20010_s0 + $0xaa8] sm:$0xff] }
  0x8f   : > { %10899 = vmatprep.subr.bf16.mxu0 %v10898_v29  ;;  %11345 = vmatpush3.bf16.msra.mxu1 %v11344_v55  ;;  %v1505_v29 = vld [vmem:[%s20010_s0 + $0x760] sm:$0xff]  ;;  %v10904_v55 = vpack.c.bf16 %v1458_v13, %v1455_v60  ;;  %698 = vst [vmem:[#allocation2 + $0x368] sm:$0xff] %v14009_v23  ;;  %v10906_v16 = vpack.c.bf16 %v1465_v42, %v1462_v63  ;;  %699 = vst [vmem:[#allocation2 + $0x3e0] sm:$0xff] %v14026_v14  ;;  %v1468_v60 = vld [vmem:[%s20010_s0 + $0x638] sm:$0xff] }
  0x90   : > { %2138 = vmatmul.mubr.f32.gmra.mrb[28].mxu0 %v13490_v47  ;;  %11347 = vmatprep.subr.bf16.mxu1 %v11346_v32  ;;  %v1461_v47 = vld [vmem:[%s20010_s0 + $0x600] sm:$0xff]  ;;  %v1464_v32 = vld [vmem:[%s20010_s0 + $0x618] sm:$0xff]  ;;  %v1471_v13 = vld [vmem:[%s20010_s0 + $0x650] sm:$0xff] }
  0x91   : > { %3517 = vmatmul.mubr.f32.gmra.mrb[44].mxu1 %v13628_v12  ;;  %10901 = vmatpush1.bf16.msra.mxu0 %v10900_v6  ;;  %v14020_v56 = vld [vmem:[%s13174_s18 + $0xc0] sm:$0xff]  ;;  %v1607_v6 = vld [vmem:[%s20010_s0 + $0xa90] sm:$0xff]  ;;  %v14043_v23 = vld [vmem:[%s13174_s18 + $0xc8] sm:$0xff]  ;;  %v10910_v42 = vpack.c.bf16 %v1471_v13, %v1468_v60 }
  0x92   : > { %20015 = vst [vmem:[#allocation8_spill] sm:$0xff] %v14020_v56  ;;  %2143 = vmatprep.mubr.f32.mxu0 %v13708_v9  ;;  %3521 = vmatprep.mubr.f32.mxu1 %v13631_v15  ;;  %732 = vst [vmem:[#allocation2 + $0x3e8] sm:$0xff] %v14020_v56  ;;  %v11352_v9 = vpack.c.bf16 %v1508_v52, %v1505_v29  ;;  %v11354_v56 = vpack.c.bf16 %v1610_v26, %v1607_v6  ;;  %v1470_v63 = vld [vmem:[%s20010_s0 + $0x648] sm:$0xff]  ;;  %v1477_v29 = vld [vmem:[%s20010_s0 + $0x680] sm:$0xff] }
  0x93   : > { %10903 = vmatprep.subr.bf16.mxu0 %v10902_v8  ;;  %11349 = vmatpush3.bf16.msra.mxu1 %v11348_v49  ;;  %v10908_v8 = vpack.c.bf16 %v1464_v32, %v1461_v47  ;;  %733 = vst [vmem:[#allocation2 + $0x460] sm:$0xff] %v14043_v23  ;;  %v14060_v49 = vld [vmem:[%s13174_s18 + $0xd0] sm:$0xff]  ;;  %v1476_v47 = vld [vmem:[%s20010_s0 + $0x678] sm:$0xff]  ;;  %v14108_v60 = vld [vmem:[%s13174_s18 + $0xe0] sm:$0xff] }
  0x94   : > { %2144 = vmatmul.mubr.f32.gmra.mrb[30].mxu0 %v13726_v59  ;;  %11351 = vmatprep.subr.bf16.mxu1 %v11350_v44  ;;  %v14048_v59 = vld [vmem:[%s13174_s18 + $0x4c] sm:$0xff]  ;;  %734 = vst [vmem:[#allocation2 + $0x4d8] sm:$0xff] %v14060_v49  ;;  %v14071_v52 = vld [vmem:[%s13174_s18 + $0x54] sm:$0xff]  ;;  %v14095_v26 = vld [vmem:[%s13174_s18 + $0x5c] sm:$0xff] }
  0x95   : > { %3522 = vmatmul.mubr.f32.gmra.mrb[46].mxu1 %v13641_v17  ;;  %10905 = vmatpush1.bf16.msra.mxu0 %v10904_v55  ;;  %v1467_v44 = vld [vmem:[%s20010_s0 + $0x630] sm:$0xff]  ;;  %700 = vst [vmem:[#allocation2 + $0x458] sm:$0xff] %v14048_v59  ;;  %701 = vst [vmem:[#allocation2 + $0x4d0] sm:$0xff] %v14071_v52 }
  0x96   : > { %2214 = vmatprep.mubr.f32.mxu0 %v13534_v19  ;;  %3526 = vmatprep.mubr.f32.mxu1 %v13645_v21  ;;  %v1474_v19 = vld [vmem:[%s20010_s0 + $0x668] sm:$0xff]  ;;  %v10912_v55 = vpack.c.bf16 %v1470_v63, %v1467_v44  ;;  %v1483_v6 = vld [vmem:[%s20010_s0 + $0x6b0] sm:$0xff]  ;;  %702 = vst [vmem:[#allocation2 + $0x548] sm:$0xff] %v14095_v26  ;;  %736 = vst [vmem:[#allocation2 + $0x5c8] sm:$0xff] %v14108_v60 }
  0x97   : > { %10907 = vmatprep.subr.bf16.mxu0 %v10906_v16  ;;  %11353 = vmatpush3.bf16.msra.mxu1 %v11352_v9  ;;  %v10914_v32 = vpack.c.bf16 %v1477_v29, %v1474_v19  ;;  %v1482_v9 = vld [vmem:[%s20010_s0 + $0x6a8] sm:$0xff]  ;;  %v1489_v44 = vld [vmem:[%s20010_s0 + $0x6e0] sm:$0xff]  ;;  %v1488_v19 = vld [vmem:[%s20010_s0 + $0x6d8] sm:$0xff] }
  0x98   : > { %2215 = vmatmul.mubr.f32.vlgmr.msra.gmra.mrb[0].mxu0 %v13544_v24  ;;  %11355 = vmatprep.subr.bf16.mxu1 %v11354_v56  ;;  %v1473_v24 = vld [vmem:[%s20010_s0 + $0x660] sm:$0xff]  ;;  %v14084_v56 = vld [vmem:[%s13174_s18 + $0xd8] sm:$0xff]  ;;  %v14136_v29 = vld [vmem:[%s13174_s18 + $0x6c] sm:$0xff] }
  0x99   : > { %3527 = vmatmul.mubr.f32.gmra.mrb[48].mxu1 %v13656_v28  ;;  %10909 = vmatpush1.bf16.msra.mxu0 %v10908_v8  ;;  %735 = vst [vmem:[#allocation2 + $0x550] sm:$0xff] %v14084_v56  ;;  %v10916_v16 = vpack.c.bf16 %v1476_v47, %v1473_v24  ;;  %v14112_v8 = vld [vmem:[%s13174_s18 + $0x64] sm:$0xff]  ;;  %704 = vst [vmem:[#allocation2 + $0x638] sm:$0xff] %v14136_v29  ;;  %v1495_v24 = vld [vmem:[%s20010_s0 + $0x710] sm:$0xff] }
  0x9a   : > { %2220 = vmatprep.mubr.f32.mxu0 %v13547_v30  ;;  %3531 = vmatprep.mubr.f32.mxu1 %v13673_v51  ;;  %v1480_v30 = vld [vmem:[%s20010_s0 + $0x698] sm:$0xff]  ;;  %703 = vst [vmem:[#allocation2 + $0x5c0] sm:$0xff] %v14112_v8 }
  0x9b   : > { %10911 = vmatprep.subr.bf16.mxu0 %v10910_v42  ;;  %v10918_v13 = vpack.c.bf16 %v1483_v6, %v1480_v30  ;;  %v14124_v42 = vld [vmem:[%s13174_s18 + $0xe8] sm:$0xff]  ;;  %v14160_v6 = vld [vmem:[%s13174_s18 + $0x74] sm:$0xff] }
  0x9c   : > { %2221 = vmatmul.mubr.f32.gmra.mrb[2].mxu0 %v13557_v37  ;;  %v1479_v37 = vld [vmem:[%s20010_s0 + $0x690] sm:$0xff]  ;;  %737 = vst [vmem:[#allocation2 + $0x640] sm:$0xff] %v14124_v42  ;;  %v1494_v30 = vld [vmem:[%s20010_s0 + $0x708] sm:$0xff]  ;;  %705 = vst [vmem:[#allocation2 + $0x6b0] sm:$0xff] %v14160_v6 }
  0x9d   : > { %3532 = vmatmul.mubr.f32.gmra.mrb[50].mxu1 %v13684_v54  ;;  %10913 = vmatpush1.bf16.msra.mxu0 %v10912_v55  ;;  %v10920_v63 = vpack.c.bf16 %v1482_v9, %v1479_v37  ;;  %v1501_v37 = vld [vmem:[%s20010_s0 + $0x740] sm:$0xff]  ;;  %v8909_v9 = vld [vmem:[%s13174_s18 + $0xf8] sm:$0xf] }
  0x9e   : > { %2226 = vmatprep.mubr.f32.mxu0 %v13561_v43  ;;  %3536 = vmatprep.mubr.f32.mxu1 %v13694_v62  ;;  %v1486_v43 = vld [vmem:[%s20010_s0 + $0x6c8] sm:$0xff]  ;;  %739 = vst [vmem:[#allocation2 + $0x730] sm:$0xf] %v8909_v9 }
  0x9f   : > { %10915 = vmatprep.subr.bf16.mxu0 %v10914_v32  ;;  %v10922_v55 = vpack.c.bf16 %v1489_v44, %v1486_v43  ;;  %v14148_v32 = vld [vmem:[%s13174_s18 + $0xf0] sm:$0xff]  ;;  %v690_v43 = vld [vmem:[%s13174_s18 + $0x7c] sm:$0xf] }
  0xa0   : > { %2227 = vmatmul.mubr.f32.gmra.mrb[4].mxu0 %v13572_v45  ;;  %v1485_v45 = vld [vmem:[%s20010_s0 + $0x6c0] sm:$0xff]  ;;  %738 = vst [vmem:[#allocation2 + $0x6b8] sm:$0xff] %v14148_v32  ;;  %v1500_v44 = vld [vmem:[%s20010_s0 + $0x738] sm:$0xff]  ;;  %706 = vst [vmem:[#allocation2 + $0x728] sm:$0xf] %v690_v43 }
  0xa1   : > { %3537 = vmatmul.mubr.f32.gmra.mrb[52].mxu1 %v13698_v34  ;;  %10917 = vmatpush1.bf16.msra.mxu0 %v10916_v16  ;;  %v10924_v47 = vpack.c.bf16 %v1488_v19, %v1485_v45  ;;  %v14182_v45 = vld [vmem:[%s13174_s18 + $0x82] sm:$0xff]  ;;  %v1507_v19 = vld [vmem:[%s20010_s0 + $0x770] sm:$0xff]  ;;  %v14235_v43 = vld [vmem:[#allocation2 + $0x718] sm:$0xf] }
  0xa2   : > { %2232 = vmatprep.mubr.f32.mxu0 %v13575_v53  ;;  %3541 = vmatprep.mubr.f32.mxu1 %v13711_v11  ;;  %v1492_v53 = vld [vmem:[%s20010_s0 + $0x6f8] sm:$0xff]  ;;  %788 = vst [vmem:[#allocation2 + $0x38] sm:$0xff] %v14182_v45 }
  0xa3   : > { %10919 = vmatprep.subr.bf16.mxu0 %v10918_v13  ;;  %v10926_v16 = vpack.c.bf16 %v1495_v24, %v1492_v53  ;;  %v1503_v24 = vld [vmem:[%s20010_s0 + $0x750] sm:$0xff] }
  0xa4   : > { %2233 = vmatmul.mubr.f32.gmra.mrb[6].mxu0 %v13585_v57  ;;  %v1491_v57 = vld [vmem:[%s20010_s0 + $0x6f0] sm:$0xff] }
  0xa5   : > { %3542 = vmatmul.mubr.f32.gmra.mrb[54].mxu1 %v13721_v39  ;;  %10921 = vmatpush1.bf16.msra.mxu0 %v10920_v63  ;;  %v10928_v13 = vpack.c.bf16 %v1494_v30, %v1491_v57  ;;  %v14210_v57 = vld [vmem:[%s13174_s18 + $0x89] sm:$0xff]  ;;  %v14212_v30 = vld [vmem:[#allocation2 + $0x720] sm:$0xf] }
  0xa6   : > { %2238 = vmatprep.mubr.f32.mxu0 %v13589_v61  ;;  %3546 = vmatprep.mubr.f32.mxu1 %v13741_v46  ;;  %v1498_v61 = vld [vmem:[%s20010_s0 + $0x728] sm:$0xff]  ;;  %757 = vst [vmem:[#allocation2 + $0xa8] sm:$0xff] %v14210_v57 }
  0xa7   : > { %10923 = vmatprep.subr.bf16.mxu0 %v10922_v55  ;;  %v10930_v63 = vpack.c.bf16 %v1501_v37, %v1498_v61  ;;  %v14193_v55 = vld [vmem:[%s13174_s18 + $0x81] sm:$0xff] }
  0xa8   : > { %2239 = vmatmul.mubr.f32.gmra.mrb[8].mxu0 %v13600_v0  ;;  %v1497_v0 = vld [vmem:[%s20010_s0 + $0x720] sm:$0xff]  ;;  %756 = vst [vmem:[#allocation2 + $0x30] sm:$0xff] %v14193_v55  ;;  %v1510_v61 = vld [vmem:[%s20010_s0 + $0x788] sm:$0xff] }
  0xa9   : > { %3547 = vmatmul.mubr.f32.gmra.mrb[56].mxu1 %v13751_v40  ;;  %10925 = vmatpush1.bf16.msra.mxu0 %v10924_v47  ;;  %v10932_v53 = vpack.c.bf16 %v1500_v44, %v1497_v0  ;;  %v1506_v47 = vld [vmem:[%s20010_s0 + $0x768] sm:$0xff]  ;;  %v1513_v37 = vld [vmem:[%s20010_s0 + $0x7a0] sm:$0xff]  ;;  %v1512_v0 = vld [vmem:[%s20010_s0 + $0x798] sm:$0xff] }
  0xaa   : > { %2244 = vmatprep.mubr.f32.mxu0 %v13603_v2  ;;  %3551 = vmatprep.mubr.f32.mxu1 %v13769_v58  ;;  %v1504_v2 = vld [vmem:[%s20010_s0 + $0x758] sm:$0xff]  ;;  %v10936_v9 = vpack.c.bf16 %v1506_v47, %v1503_v24  ;;  %v1562_v24 = vld [vmem:[%s20010_s0 + $0x928] sm:$0xff] }
  0xab   : > { %10927 = vmatprep.subr.bf16.mxu0 %v10926_v16  ;;  %v10934_v16 = vpack.c.bf16 %v1507_v19, %v1504_v2  ;;  %v14242_v44 = vld [vmem:[%s13174_s18 + $0x9a] sm:$0xff]  ;;  %v1519_v2 = vld [vmem:[%s20010_s0 + $0x7d0] sm:$0xff]  ;;  %v14263_v47 = vld [vmem:[%s13174_s18 + $0xa2] sm:$0xff] }
  0xac   : > { %2245 = vmatmul.mubr.f32.gmra.mrb[10].mxu0 %v13613_v7  ;;  %v14198_v7 = vld [vmem:[%s13174_s18 + $0x8a] sm:$0xff]  ;;  %20017 = vst [vmem:[#allocation10_spill] sm:$0xff] %v14242_v44  ;;  %791 = vst [vmem:[#allocation2 + $0x1a0] sm:$0xff] %v14242_v44  ;;  %v14252_v19 = vld [vmem:[%s13174_s18 + $0x99] sm:$0xff] }
  0xad   : > { %3552 = vmatmul.mubr.f32.gmra.mrb[58].mxu1 %v13775_v1  ;;  %10929 = vmatpush1.bf16.msra.mxu0 %v10928_v13  ;;  %789 = vst [vmem:[#allocation2 + $0xb0] sm:$0xff] %v14198_v7  ;;  %v1509_v13 = vld [vmem:[%s20010_s0 + $0x780] sm:$0xff]  ;;  %20018 = vst [vmem:[#allocation11_spill] sm:$0xff] %v14252_v19 }
  0xae   : > { %2250 = vmatprep.mubr.f32.mxu0 %v13617_v10  ;;  %3556 = vmatprep.mubr.f32.mxu1 %v13795_v20  ;;  %v14216_v10 = vld [vmem:[%s13174_s18 + $0x92] sm:$0xff]  ;;  %759 = vst [vmem:[#allocation2 + $0x198] sm:$0xff] %v14252_v19  ;;  %20019 = vst [vmem:[#allocation12_spill] sm:$0xff] %v14263_v47  ;;  %v1525_v19 = vld [vmem:[%s20010_s0 + $0x800] sm:$0xff] }
  0xaf   : > { %10931 = vmatprep.subr.bf16.mxu0 %v10930_v63  ;;  %790 = vst [vmem:[#allocation2 + $0x128] sm:$0xff] %v14216_v10  ;;  %v10938_v63 = vpack.c.bf16 %v1513_v37, %v1510_v61  ;;  %v1616_v61 = vld [vmem:[%s20010_s0 + $0xad8] sm:$0xff]  ;;  %792 = vst [vmem:[#allocation2 + $0x218] sm:$0xff] %v14263_v47  ;;  %v14274_v37 = vld [vmem:[%s13174_s18 + $0xa1] sm:$0xff] }
  0xb0   : > { %2251 = vmatmul.mubr.f32.gmra.mrb[12].mxu0 %v13628_v12  ;;  %v14231_v12 = vld [vmem:[%s13174_s18 + $0x91] sm:$0xff]  ;;  %20020 = vst [vmem:[#allocation13_spill] sm:$0xff] %v14274_v37  ;;  %760 = vst [vmem:[#allocation2 + $0x210] sm:$0xff] %v14274_v37 }
  0xb1   : > { %3557 = vmatmul.mubr.f32.gmra.mrb[60].mxu1 %v13806_v31  ;;  %10933 = vmatpush1.bf16.msra.mxu0 %v10932_v53  ;;  %20016 = vst [vmem:[#allocation9_spill] sm:$0xff] %v14231_v12  ;;  %758 = vst [vmem:[#allocation2 + $0x120] sm:$0xff] %v14231_v12  ;;  %v1559_v53 = vld [vmem:[%s20010_s0 + $0x910] sm:$0xff] }
  0xb2   : > { %2256 = vmatprep.mubr.f32.mxu0 %v13631_v15  ;;  %3561 = vmatprep.mubr.f32.mxu1 %v14212_v30  ;;  %v1516_v15 = vld [vmem:[%s20010_s0 + $0x7b8] sm:$0xff]  ;;  %v11356_v44 = vpack.c.bf16 %v1562_v24, %v1559_v53  ;;  %v14296_v12 = vld [vmem:[%s13174_s18 + $0xa9] sm:$0xff] }
  0xb3   : > { %10935 = vmatprep.subr.bf16.mxu0 %v10934_v16  ;;  %v10940_v16 = vpack.c.bf16 %v1512_v0, %v1509_v13  ;;  %v1518_v13 = vld [vmem:[%s20010_s0 + $0x7c8] sm:$0xff]  ;;  %v10942_v47 = vpack.c.bf16 %v1519_v2, %v1516_v15  ;;  %20022 = vst [vmem:[#allocation15_spill] sm:$0xff] %v14296_v12  ;;  %v1568_v15 = vld [vmem:[%s20010_s0 + $0x958] sm:$0xff]  ;;  %761 = vst [vmem:[#allocation2 + $0x288] sm:$0xff] %v14296_v12 }
  0xb4   : > { %2257 = vmatmul.mubr.f32.gmra.mrb[14].mxu0 %v13641_v17  ;;  %v1613_v17 = vld [vmem:[%s20010_s0 + $0xac0] sm:$0xff]  ;;  %v14286_v0 = vld [vmem:[%s13174_s18 + $0xaa] sm:$0xff]  ;;  %v14307_v2 = vld [vmem:[%s13174_s18 + $0xb2] sm:$0xff] }
  0xb5   : > { %3562 = vmatmul.mubr.f32.gmra.mrb[62].mxu1 %v14235_v43  ;;  %10937 = vmatpush1.bf16.msra.mxu0 %v10936_v9  ;;  %v1515_v9 = vld [vmem:[%s20010_s0 + $0x7b0] sm:$0xff]  ;;  %20021 = vst [vmem:[#allocation14_spill] sm:$0xff] %v14286_v0  ;;  %793 = vst [vmem:[#allocation2 + $0x290] sm:$0xff] %v14286_v0  ;;  %v11358_v37 = vpack.c.bf16 %v1616_v61, %v1613_v17  ;;  %v1622_v24 = vld [vmem:[%s20010_s0 + $0xb08] sm:$0xff] }
  0xb6   : > { %2262 = vmatprep.mubr.f32.mxu0 %v13645_v21  ;;  %3631 = vmatprep.mubr.f32.mxu1 %v13852_v41  ;;  %v1522_v21 = vld [vmem:[%s20010_s0 + $0x7e8] sm:$0xff]  ;;  %20023 = vst [vmem:[#allocation16_spill] sm:$0xff] %v14307_v2  ;;  %v10944_v53 = vpack.c.bf16 %v1518_v13, %v1515_v9  ;;  %794 = vst [vmem:[#allocation2 + $0x308] sm:$0xff] %v14307_v2  ;;  %v14318_v17 = vld [vmem:[%s13174_s18 + $0xb1] sm:$0xff] }
  0xb7   : > { %10939 = vmatprep.subr.bf16.mxu0 %v10938_v63  ;;  %v1565_v63 = vld [vmem:[%s20010_s0 + $0x940] sm:$0xff]  ;;  %v1524_v61 = vld [vmem:[%s20010_s0 + $0x7f8] sm:$0xff]  ;;  %762 = vst [vmem:[#allocation2 + $0x300] sm:$0xff] %v14318_v17  ;;  %v10946_v13 = vpack.c.bf16 %v1525_v19, %v1522_v21  ;;  %v1531_v2 = vld [vmem:[%s20010_s0 + $0x830] sm:$0xff] }
  0xb8   : > { %2263 = vmatmul.mubr.f32.gmra.mrb[16].mxu0 %v13656_v28  ;;  %v1619_v28 = vld [vmem:[%s20010_s0 + $0xaf0] sm:$0xff]  ;;  %v14330_v9 = vld [vmem:[%s13174_s18 + $0xba] sm:$0xff]  ;;  %v11360_v12 = vpack.c.bf16 %v1568_v15, %v1565_v63  ;;  %v1574_v21 = vld [vmem:[%s20010_s0 + $0x988] sm:$0xff] }
  0xb9   : > { %3632 = vmatmul.mubr.f32.vlgmr.msra.gmra.mrb[64].mxu1 %v13862_v33  ;;  %10941 = vmatpush1.bf16.msra.mxu0 %v10940_v16  ;;  %v1521_v16 = vld [vmem:[%s20010_s0 + $0x7e0] sm:$0xff]  ;;  %795 = vst [vmem:[#allocation2 + $0x380] sm:$0xff] %v14330_v9  ;;  %v1571_v19 = vld [vmem:[%s20010_s0 + $0x970] sm:$0xff] }
  0xba   : > { %2268 = vmatprep.mubr.f32.mxu0 %v13673_v51  ;;  %3636 = vmatprep.mubr.f32.mxu1 %v13873_v22  ;;  %v1528_v51 = vld [vmem:[%s20010_s0 + $0x818] sm:$0xff]  ;;  %v10948_v63 = vpack.c.bf16 %v1524_v61, %v1521_v16  ;;  %v8918_v15 = vld [vmem:[%s13174_s18 + $0xc1] sm:$0xff]  ;;  %v11364_v61 = vpack.c.bf16 %v1574_v21, %v1571_v19 }
  0xbb   : > { %10943 = vmatprep.subr.bf16.mxu0 %v10942_v47  ;;  %11357 = vmatpush3.bf16.msra.mxu1 %v11356_v44  ;;  %v14340_v0 = vld [vmem:[%s13174_s18 + $0xb9] sm:$0xff]  ;;  %v11362_v47 = vpack.c.bf16 %v1622_v24, %v1619_v28  ;;  %v14351_v44 = vld [vmem:[%s13174_s18 + $0xc2] sm:$0xff]  ;;  %764 = vst [vmem:[#allocation2 + $0x3f0] sm:$0xff] %v8918_v15  ;;  %v10950_v24 = vpack.c.bf16 %v1531_v2, %v1528_v51 }
  0xbc   : > { %20024 = vst [vmem:[#allocation17_spill] sm:$0xff] %v14340_v0  ;;  %2269 = vmatmul.mubr.f32.gmra.mrb[18].mxu0 %v13684_v54  ;;  %11359 = vmatprep.subr.bf16.mxu1 %v11358_v37  ;;  %763 = vst [vmem:[#allocation2 + $0x378] sm:$0xff] %v14340_v0  ;;  %v1625_v54 = vld [vmem:[%s20010_s0 + $0xb20] sm:$0xff]  ;;  %v1628_v37 = vld [vmem:[%s20010_s0 + $0xb38] sm:$0xff] }
  0xbd   : > { %20025 = vst [vmem:[#allocation18_spill] sm:$0xff] %v14351_v44  ;;  %3637 = vmatmul.mubr.f32.gmra.mrb[66].mxu1 %v13882_v18  ;;  %10945 = vmatpush1.bf16.msra.mxu0 %v10944_v53  ;;  %796 = vst [vmem:[#allocation2 + $0x3f8] sm:$0xff] %v14351_v44  ;;  %v1527_v53 = vld [vmem:[%s20010_s0 + $0x810] sm:$0xff]  ;;  %v1530_v28 = vld [vmem:[%s20010_s0 + $0x828] sm:$0xff]  ;;  %v11366_v0 = vpack.c.bf16 %v1628_v37, %v1625_v54 }
  0xbe   : > { %2274 = vmatprep.mubr.f32.mxu0 %v13694_v62  ;;  %3641 = vmatprep.mubr.f32.mxu1 %v13892_v3  ;;  %v1534_v16 = vld [vmem:[%s20010_s0 + $0x848] sm:$0xff]  ;;  %v1537_v62 = vld [vmem:[%s20010_s0 + $0x860] sm:$0xff]  ;;  %v1580_v2 = vld [vmem:[%s20010_s0 + $0x9b8] sm:$0xff] }
  0xbf   : > { %10947 = vmatprep.subr.bf16.mxu0 %v10946_v13  ;;  %11361 = vmatpush3.bf16.msra.mxu1 %v11360_v12  ;;  %v8935_v44 = vld [vmem:[%s13174_s18 + $0xca] sm:$0xff]  ;;  %v1577_v13 = vld [vmem:[%s20010_s0 + $0x9a0] sm:$0xff]  ;;  %v10952_v12 = vpack.c.bf16 %v1530_v28, %v1527_v53  ;;  %v1536_v21 = vld [vmem:[%s20010_s0 + $0x858] sm:$0xff] }
  0xc0   : > { %2275 = vmatmul.mubr.f32.gmra.mrb[20].mxu0 %v13698_v34  ;;  %11363 = vmatprep.subr.bf16.mxu1 %v11362_v47  ;;  %797 = vst [vmem:[#allocation2 + $0x470] sm:$0xff] %v8935_v44  ;;  %v8919_v51 = vld [vmem:[%s13174_s18 + $0xc9] sm:$0xff]  ;;  %v1533_v19 = vld [vmem:[%s20010_s0 + $0x840] sm:$0xff]  ;;  %v10954_v44 = vpack.c.bf16 %v1537_v62, %v1534_v16  ;;  %v11368_v54 = vpack.c.bf16 %v1580_v2, %v1577_v13  ;;  %v14407_v37 = vld [vmem:[%s13174_s18 + $0xd2] sm:$0xff] }
  0xc1   : > { %3642 = vmatmul.mubr.f32.gmra.mrb[68].mxu1 %v13902_v38  ;;  %10949 = vmatpush1.bf16.msra.mxu0 %v10948_v63  ;;  %v1631_v34 = vld [vmem:[%s20010_s0 + $0xb50] sm:$0xff]  ;;  %v1634_v47 = vld [vmem:[%s20010_s0 + $0xb68] sm:$0xff]  ;;  %765 = vst [vmem:[#allocation2 + $0x468] sm:$0xff] %v8919_v51  ;;  %v1540_v63 = vld [vmem:[%s20010_s0 + $0x878] sm:$0xff]  ;;  %v10956_v16 = vpack.c.bf16 %v1536_v21, %v1533_v19 }
  0xc2   : > { %2280 = vmatprep.mubr.f32.mxu0 %v13711_v11  ;;  %3646 = vmatprep.mubr.f32.mxu1 %v13919_v27  ;;  %v1543_v11 = vld [vmem:[%s20010_s0 + $0x890] sm:$0xff]  ;;  %v11370_v15 = vpack.c.bf16 %v1634_v47, %v1631_v34  ;;  %v1586_v28 = vld [vmem:[%s20010_s0 + $0x9e8] sm:$0xff]  ;;  %798 = vst [vmem:[#allocation2 + $0x4e8] sm:$0xff] %v14407_v37  ;;  %v14434_v13 = vld [vmem:[%s13174_s18 + $0xda] sm:$0xff] }
  0xc3   : > { %10951 = vmatprep.subr.bf16.mxu0 %v10950_v24  ;;  %11365 = vmatpush3.bf16.msra.mxu1 %v11364_v61  ;;  %v1583_v53 = vld [vmem:[%s20010_s0 + $0x9d0] sm:$0xff]  ;;  %v1542_v61 = vld [vmem:[%s20010_s0 + $0x888] sm:$0xff]  ;;  %v10958_v2 = vpack.c.bf16 %v1543_v11, %v1540_v63  ;;  %799 = vst [vmem:[#allocation2 + $0x560] sm:$0xff] %v14434_v13  ;;  %v1549_v34 = vld [vmem:[%s20010_s0 + $0x8c0] sm:$0xff] }
  0xc4   : > { %2281 = vmatmul.mubr.f32.gmra.mrb[22].mxu0 %v13721_v39  ;;  %11367 = vmatprep.subr.bf16.mxu1 %v11366_v0  ;;  %v8920_v24 = vld [vmem:[%s13174_s18 + $0xd1] sm:$0xff]  ;;  %v1637_v39 = vld [vmem:[%s20010_s0 + $0xb80] sm:$0xff]  ;;  %v1546_v51 = vld [vmem:[%s20010_s0 + $0x8a8] sm:$0xff] }
  0xc5   : > { %3647 = vmatmul.mubr.f32.gmra.mrb[70].mxu1 %v13929_v36  ;;  %10953 = vmatpush1.bf16.msra.mxu0 %v10952_v12  ;;  %v1640_v0 = vld [vmem:[%s20010_s0 + $0xb98] sm:$0xff]  ;;  %766 = vst [vmem:[#allocation2 + $0x4e0] sm:$0xff] %v8920_v24  ;;  %v1539_v62 = vld [vmem:[%s20010_s0 + $0x870] sm:$0xff]  ;;  %v1589_v19 = vld [vmem:[%s20010_s0 + $0xa00] sm:$0xff] }
  0xc6   : > { %2286 = vmatprep.mubr.f32.mxu0 %v13741_v46  ;;  %3651 = vmatprep.mubr.f32.mxu1 %v13939_v48  ;;  %v11372_v46 = vpack.c.bf16 %v1586_v28, %v1583_v53  ;;  %v8921_v12 = vld [vmem:[%s13174_s18 + $0xd9] sm:$0xff]  ;;  %v11374_v47 = vpack.c.bf16 %v1640_v0, %v1637_v39  ;;  %v1646_v63 = vld [vmem:[%s20010_s0 + $0xbc8] sm:$0xff]  ;;  %v10962_v28 = vpack.c.bf16 %v1549_v34, %v1546_v51  ;;  %v1595_v0 = vld [vmem:[%s20010_s0 + $0xa30] sm:$0xff] }
  0xc7   : > { %10955 = vmatprep.subr.bf16.mxu0 %v10954_v44  ;;  %11369 = vmatpush3.bf16.msra.mxu1 %v11368_v54  ;;  %v1592_v21 = vld [vmem:[%s20010_s0 + $0xa18] sm:$0xff]  ;;  %767 = vst [vmem:[#allocation2 + $0x558] sm:$0xff] %v8921_v12  ;;  %v1643_v44 = vld [vmem:[%s20010_s0 + $0xbb0] sm:$0xff]  ;;  %v14459_v11 = vld [vmem:[%s13174_s18 + $0xe2] sm:$0xff] }
  0xc8   : > { %2287 = vmatmul.mubr.f32.gmra.mrb[24].mxu0 %v13751_v40  ;;  %11371 = vmatprep.subr.bf16.mxu1 %v11370_v15  ;;  %v10960_v40 = vpack.c.bf16 %v1542_v61, %v1539_v62  ;;  %v1545_v54 = vld [vmem:[%s20010_s0 + $0x8a0] sm:$0xff]  ;;  %v1548_v15 = vld [vmem:[%s20010_s0 + $0x8b8] sm:$0xff]  ;;  %800 = vst [vmem:[#allocation2 + $0x5d8] sm:$0xff] %v14459_v11  ;;  %v11376_v24 = vpack.c.bf16 %v1592_v21, %v1589_v19  ;;  %v1598_v62 = vld [vmem:[%s20010_s0 + $0xa48] sm:$0xff] }
  0xc9   : > { %3652 = vmatmul.mubr.f32.gmra.mrb[72].mxu1 %v13950_v50  ;;  %10957 = vmatpush1.bf16.msra.mxu0 %v10956_v16  ;;  %v8922_v53 = vld [vmem:[%s13174_s18 + $0xe1] sm:$0xff]  ;;  %v1555_v16 = vld [vmem:[%s20010_s0 + $0x8f0] sm:$0xff]  ;;  %v11378_v39 = vpack.c.bf16 %v1646_v63, %v1643_v44  ;;  %v10964_v61 = vpack.c.bf16 %v1548_v15, %v1545_v54  ;;  %v11380_v21 = vpack.c.bf16 %v1598_v62, %v1595_v0  ;;  %v1604_v63 = vld [vmem:[%s20010_s0 + $0xa78] sm:$0xff] }
  0xca   : > { %2292 = vmatprep.mubr.f32.mxu0 %v13769_v58  ;;  %3656 = vmatprep.mubr.f32.mxu1 %v13959_v4  ;;  %v1552_v58 = vld [vmem:[%s20010_s0 + $0x8d8] sm:$0xff]  ;;  %768 = vst [vmem:[#allocation2 + $0x5d0] sm:$0xff] %v8922_v53  ;;  %v14492_v51 = vld [vmem:[%s13174_s18 + $0xea] sm:$0xff]  ;;  %v1561_v19 = vld [vmem:[%s20010_s0 + $0x920] sm:$0xff] }
  0xcb   : > { %10959 = vmatprep.subr.bf16.mxu0 %v10958_v2  ;;  %11373 = vmatpush3.bf16.msra.mxu1 %v11372_v46  ;;  %v1652_v2 = vld [vmem:[%s20010_s0 + $0xbf8] sm:$0xff]  ;;  %v1551_v46 = vld [vmem:[%s20010_s0 + $0x8d0] sm:$0xff]  ;;  %v1554_v12 = vld [vmem:[%s20010_s0 + $0x8e8] sm:$0xff]  ;;  %801 = vst [vmem:[#allocation2 + $0x650] sm:$0xff] %v14492_v51 }
  0xcc   : > { %2293 = vmatmul.mubr.f32.gmra.mrb[26].mxu0 %v13775_v1  ;;  %11375 = vmatprep.subr.bf16.mxu1 %v11374_v47  ;;  %v1649_v1 = vld [vmem:[%s20010_s0 + $0xbe0] sm:$0xff]  ;;  %v14504_v34 = vld [vmem:[%s13174_s18 + $0xe9] sm:$0xff]  ;;  %v10966_v47 = vpack.c.bf16 %v1555_v16, %v1552_v58  ;;  %v14521_v54 = vld [vmem:[%s13174_s18 + $0xf2] sm:$0xff]  ;;  %v10968_v53 = vpack.c.bf16 %v1554_v12, %v1551_v46 }
  0xcd   : > { %3657 = vmatmul.mubr.f32.gmra.mrb[74].mxu1 %v13969_v5  ;;  %10961 = vmatpush1.bf16.msra.mxu0 %v10960_v40  ;;  %769 = vst [vmem:[#allocation2 + $0x648] sm:$0xff] %v14504_v34  ;;  %v11382_v40 = vpack.c.bf16 %v1652_v2, %v1649_v1  ;;  %v1601_v44 = vld [vmem:[%s20010_s0 + $0xa60] sm:$0xff]  ;;  %v20026_v15 = vld [vmem:[#allocation6_spill] sm:$0xff]  ;;  %802 = vst [vmem:[#allocation2 + $0x6c8] sm:$0xff] %v14521_v54 }
  0xce   : > { %2298 = vmatprep.mubr.f32.mxu0 %v13795_v20  ;;  %3661 = vmatprep.mubr.f32.mxu1 %v13979_v35  ;;  %v1558_v20 = vld [vmem:[%s20010_s0 + $0x908] sm:$0xff]  ;;  %v8924_v58 = vld [vmem:[%s13174_s18 + $0xf1] sm:$0xff]  ;;  %v11384_v0 = vpack.c.bf16 %v1604_v63, %v1601_v44  ;;  %v8941_v62 = vld [vmem:[%s13174_s18 + $0xfa] sm:$0xf] }
  0xcf   : > { %10963 = vmatprep.subr.bf16.mxu0 %v10962_v28  ;;  %11377 = vmatpush3.bf16.msra.mxu1 %v11376_v24  ;;  %v1706_v28 = vld [vmem:[%s20010_s0 + $0xda8] sm:$0xff]  ;;  %v1557_v24 = vld [vmem:[%s20010_s0 + $0x900] sm:$0xff]  ;;  %v1560_v16 = vld [vmem:[%s20010_s0 + $0x918] sm:$0xff]  ;;  %770 = vst [vmem:[#allocation2 + $0x6c0] sm:$0xff] %v8924_v58 }
  0xd0   : > { %2299 = vmatmul.mubr.f32.gmra.mrb[28].mxu0 %v13806_v31  ;;  %11379 = vmatprep.subr.bf16.mxu1 %v11378_v39  ;;  %v1703_v31 = vld [vmem:[%s20010_s0 + $0xd90] sm:$0xff]  ;;  %v10970_v39 = vpack.c.bf16 %v1561_v19, %v1558_v20  ;;  %803 = vst [vmem:[#allocation2 + $0x740] sm:$0xf] %v8941_v62  ;;  %v8925_v2 = vld [vmem:[%s13174_s18 + $0xf9] sm:$0xf]  ;;  %v10972_v12 = vpack.c.bf16 %v1560_v16, %v1557_v24  ;;  %v1566_v20 = vld [vmem:[%s20010_s0 + $0x948] sm:$0xff] }
  0xd1   : > { %3662 = vmatmul.mubr.f32.gmra.mrb[76].mxu1 %v20026_v15  ;;  %10965 = vmatpush1.bf16.msra.mxu0 %v10964_v61  ;;  %v1567_v61 = vld [vmem:[%s20010_s0 + $0x950] sm:$0xff]  ;;  %v11386_v1 = vpack.c.bf16 %v1706_v28, %v1703_v31  ;;  %v20027_v46 = vld [vmem:[#allocation7_spill] sm:$0xff]  ;;  %771 = vst [vmem:[#allocation2 + $0x738] sm:$0xf] %v8925_v2  ;;  %v8942_v44 = vld [vmem:[%s13174_s18 + $0x83] sm:$0xff] }
  0xd2   : > { %2304 = vmatprep.mubr.f32.mxu0 %v14212_v30  ;;  %3666 = vmatprep.mubr.f32.mxu1 %v13999_v25  ;;  %v1564_v30 = vld [vmem:[%s20010_s0 + $0x938] sm:$0xff]  ;;  %820 = vst [vmem:[#allocation2 + $0x40] sm:$0xff] %v8942_v44  ;;  %v8963_v2 = vld [vmem:[%s13174_s18 + $0xac] sm:$0xff]  ;;  %v8966_v44 = vld [vmem:[%s13174_s18 + $0xc4] sm:$0xff] }
  0xd3   : > { %10967 = vmatprep.subr.bf16.mxu0 %v10966_v47  ;;  %11381 = vmatpush3.bf16.msra.mxu1 %v11380_v21  ;;  %v1563_v47 = vld [vmem:[%s20010_s0 + $0x930] sm:$0xff]  ;;  %v10974_v19 = vpack.c.bf16 %v1567_v61, %v1564_v30  ;;  %v14559_v21 = vld [vmem:[%s13174_s18 + $0x84] sm:$0xff]  ;;  %v1572_v31 = vld [vmem:[%s20010_s0 + $0x978] sm:$0xff]  ;;  %857 = vst [vmem:[#allocation2 + $0x2a0] sm:$0xff] %v8963_v2 }
  0xd4   : > { %2305 = vmatmul.mubr.f32.gmra.mrb[30].mxu0 %v14235_v43  ;;  %11383 = vmatprep.subr.bf16.mxu1 %v11382_v40  ;;  %v20028_v43 = vld [vmem:[#allocation8_spill] sm:$0xff]  ;;  %852 = vst [vmem:[#allocation2 + $0x48] sm:$0xff] %v14559_v21  ;;  %v10976_v63 = vpack.c.bf16 %v1566_v20, %v1563_v47  ;;  %v8960_v58 = vld [vmem:[%s13174_s18 + $0x94] sm:$0xff]  ;;  %860 = vst [vmem:[#allocation2 + $0x408] sm:$0xff] %v8966_v44 }
  0xd5   : > { %3667 = vmatmul.mubr.f32.gmra.mrb[78].mxu1 %v20027_v46  ;;  %10969 = vmatpush1.bf16.msra.mxu0 %v10968_v53  ;;  %v1573_v40 = vld [vmem:[%s20010_s0 + $0x980] sm:$0xff]  ;;  %854 = vst [vmem:[#allocation2 + $0x138] sm:$0xff] %v8960_v58  ;;  %v8944_v24 = vld [vmem:[%s13174_s18 + $0x93] sm:$0xff]  ;;  %v1602_v58 = vld [vmem:[%s20010_s0 + $0xa68] sm:$0xff] }
  0xd6   : > { %2375 = vmatprep.mubr.f32.mxu0 %v13852_v41  ;;  %3671 = vmatprep.mubr.f32.mxu1 %v20028_v43  ;;  %v1570_v41 = vld [vmem:[%s20010_s0 + $0x968] sm:$0xff]  ;;  %v1569_v53 = vld [vmem:[%s20010_s0 + $0x960] sm:$0xff]  ;;  %822 = vst [vmem:[#allocation2 + $0x130] sm:$0xff] %v8944_v24  ;;  %v1584_v46 = vld [vmem:[%s20010_s0 + $0x9d8] sm:$0xff] }
  0xd7   : > { %10971 = vmatprep.subr.bf16.mxu0 %v10970_v39  ;;  %11385 = vmatpush3.bf16.msra.mxu1 %v11384_v0  ;;  %v10978_v28 = vpack.c.bf16 %v1573_v40, %v1570_v41  ;;  %v10980_v16 = vpack.c.bf16 %v1572_v31, %v1569_v53  ;;  %v8961_v39 = vld [vmem:[%s13174_s18 + $0x9c] sm:$0xff]  ;;  %v1578_v0 = vld [vmem:[%s20010_s0 + $0x9a8] sm:$0xff]  ;;  %v8964_v43 = vld [vmem:[%s13174_s18 + $0xb4] sm:$0xff] }
  0xd8   : > { %2376 = vmatmul.mubr.f32.vlgmr.msra.gmra.mrb[0].mxu0 %v13862_v33  ;;  %11387 = vmatprep.subr.bf16.mxu1 %v11386_v1  ;;  %v8959_v33 = vld [vmem:[%s13174_s18 + $0x8c] sm:$0xff]  ;;  %855 = vst [vmem:[#allocation2 + $0x1b0] sm:$0xff] %v8961_v39  ;;  %v8962_v30 = vld [vmem:[%s13174_s18 + $0xa4] sm:$0xff]  ;;  %858 = vst [vmem:[#allocation2 + $0x318] sm:$0xff] %v8964_v43 }
  0xd9   : > { %3672 = vmatmul.mubr.f32.gmra.mrb[80].mxu1 %v14026_v14  ;;  %10973 = vmatpush1.bf16.msra.mxu0 %v10972_v12  ;;  %853 = vst [vmem:[#allocation2 + $0xc0] sm:$0xff] %v8959_v33  ;;  %v8943_v14 = vld [vmem:[%s13174_s18 + $0x8b] sm:$0xff]  ;;  %856 = vst [vmem:[#allocation2 + $0x228] sm:$0xff] %v8962_v30  ;;  %v8946_v61 = vld [vmem:[%s13174_s18 + $0xa3] sm:$0xff] }
  0xda   : > { %2381 = vmatprep.mubr.f32.mxu0 %v13873_v22  ;;  %3676 = vmatprep.mubr.f32.mxu1 %v14043_v23  ;;  %821 = vst [vmem:[#allocation2 + $0xb8] sm:$0xff] %v8943_v14  ;;  %v1576_v22 = vld [vmem:[%s20010_s0 + $0x998] sm:$0xff]  ;;  %v1579_v23 = vld [vmem:[%s20010_s0 + $0x9b0] sm:$0xff]  ;;  %824 = vst [vmem:[#allocation2 + $0x220] sm:$0xff] %v8946_v61 }
  0xdb   : > { %10975 = vmatprep.subr.bf16.mxu0 %v10974_v19  ;;  %v10982_v62 = vpack.c.bf16 %v1579_v23, %v1576_v22  ;;  %v8948_v47 = vld [vmem:[%s13174_s18 + $0xb3] sm:$0xff]  ;;  %v8965_v19 = vld [vmem:[%s13174_s18 + $0xbc] sm:$0xff]  ;;  %v1590_v41 = vld [vmem:[%s20010_s0 + $0xa08] sm:$0xff] }
  0xdc   : > { %2382 = vmatmul.mubr.f32.gmra.mrb[2].mxu0 %v13882_v18  ;;  %v1575_v18 = vld [vmem:[%s20010_s0 + $0x990] sm:$0xff]  ;;  %826 = vst [vmem:[#allocation2 + $0x310] sm:$0xff] %v8948_v47  ;;  %859 = vst [vmem:[#allocation2 + $0x390] sm:$0xff] %v8965_v19  ;;  %v8949_v40 = vld [vmem:[%s13174_s18 + $0xbb] sm:$0xff] }
  0xdd   : > { %3677 = vmatmul.mubr.f32.gmra.mrb[82].mxu1 %v14048_v59  ;;  %10977 = vmatpush1.bf16.msra.mxu0 %v10976_v63  ;;  %v8945_v59 = vld [vmem:[%s13174_s18 + $0x9b] sm:$0xff]  ;;  %v10984_v1 = vpack.c.bf16 %v1578_v0, %v1575_v18  ;;  %827 = vst [vmem:[#allocation2 + $0x388] sm:$0xff] %v8949_v40  ;;  %v8950_v63 = vld [vmem:[%s13174_s18 + $0xc3] sm:$0xff]  ;;  %v8967_v14 = vld [vmem:[%s13174_s18 + $0xcc] sm:$0xff] }
  0xde   : > { %2387 = vmatprep.mubr.f32.mxu0 %v13892_v3  ;;  %3681 = vmatprep.mubr.f32.mxu1 %v14060_v49  ;;  %823 = vst [vmem:[#allocation2 + $0x1a8] sm:$0xff] %v8945_v59  ;;  %v1582_v3 = vld [vmem:[%s20010_s0 + $0x9c8] sm:$0xff]  ;;  %v1585_v49 = vld [vmem:[%s20010_s0 + $0x9e0] sm:$0xff]  ;;  %828 = vst [vmem:[#allocation2 + $0x400] sm:$0xff] %v8950_v63 }
  0xdf   : > { %10979 = vmatprep.subr.bf16.mxu0 %v10978_v28  ;;  %v10986_v12 = vpack.c.bf16 %v1585_v49, %v1582_v3  ;;  %v1596_v53 = vld [vmem:[%s20010_s0 + $0xa38] sm:$0xff]  ;;  %861 = vst [vmem:[#allocation2 + $0x480] sm:$0xff] %v8967_v14  ;;  %v14678_v23 = vld [vmem:[#allocation2 + $0x730] sm:$0xf]  ;;  %v1605_v39 = vld [vmem:[%s20010_s0 + $0xa80] sm:$0xff] }
  0xe0   : > { %2388 = vmatmul.mubr.f32.gmra.mrb[4].mxu0 %v13902_v38  ;;  %v1581_v38 = vld [vmem:[%s20010_s0 + $0x9c0] sm:$0xff]  ;;  %v8968_v22 = vld [vmem:[%s13174_s18 + $0xd4] sm:$0xff]  ;;  %v12742_v30 = vld [vmem:[#allocation2 + $0x368] sm:$0xff] }
  0xe1   : > { %3682 = vmatmul.mubr.f32.gmra.mrb[84].mxu1 %v14071_v52  ;;  %10981 = vmatpush1.bf16.msra.mxu0 %v10980_v16  ;;  %v8947_v52 = vld [vmem:[%s13174_s18 + $0xab] sm:$0xff]  ;;  %v10988_v20 = vpack.c.bf16 %v1584_v46, %v1581_v38  ;;  %862 = vst [vmem:[#allocation2 + $0x4f8] sm:$0xff] %v8968_v22  ;;  %v8952_v24 = vld [vmem:[%s13174_s18 + $0xd3] sm:$0xff]  ;;  %v8969_v18 = vld [vmem:[%s13174_s18 + $0xdc] sm:$0xff] }
  0xe2   : > { %2393 = vmatprep.mubr.f32.mxu0 %v13919_v27  ;;  %3686 = vmatprep.mubr.f32.mxu1 %v14084_v56  ;;  %825 = vst [vmem:[#allocation2 + $0x298] sm:$0xff] %v8947_v52  ;;  %v1588_v27 = vld [vmem:[%s20010_s0 + $0x9f8] sm:$0xff]  ;;  %v1591_v56 = vld [vmem:[%s20010_s0 + $0xa10] sm:$0xff]  ;;  %830 = vst [vmem:[#allocation2 + $0x4f0] sm:$0xff] %v8952_v24 }
  0xe3   : > { %10983 = vmatprep.subr.bf16.mxu0 %v10982_v62  ;;  %v1608_v0 = vld [vmem:[%s20010_s0 + $0xa98] sm:$0xff]  ;;  %863 = vst [vmem:[#allocation2 + $0x570] sm:$0xff] %v8969_v18  ;;  %v1655_v3 = vld [vmem:[%s20010_s0 + $0xc10] sm:$0xff]  ;;  %v1658_v49 = vld [vmem:[%s20010_s0 + $0xc28] sm:$0xff] }
  0xe4   : > { %2394 = vmatmul.mubr.f32.gmra.mrb[6].mxu0 %v13929_v36  ;;  %v1587_v36 = vld [vmem:[%s20010_s0 + $0x9f0] sm:$0xff]  ;;  %v1612_v62 = vld [vmem:[%s20010_s0 + $0xab8] sm:$0xff]  ;;  %v11004_v61 = vpack.c.bf16 %v1608_v0, %v1605_v39  ;;  %v8970_v38 = vld [vmem:[%s13174_s18 + $0xe4] sm:$0xff]  ;;  %v11388_v47 = vpack.c.bf16 %v1658_v49, %v1655_v3 }
  0xe5   : > { %3687 = vmatmul.mubr.f32.gmra.mrb[86].mxu1 %v14095_v26  ;;  %10985 = vmatpush1.bf16.msra.mxu0 %v10984_v1  ;;  %v10990_v26 = vpack.c.bf16 %v1591_v56, %v1588_v27  ;;  %v10992_v33 = vpack.c.bf16 %v1590_v41, %v1587_v36  ;;  %v1709_v1 = vld [vmem:[%s20010_s0 + $0xdc0] sm:$0xff]  ;;  %v1712_v2 = vld [vmem:[%s20010_s0 + $0xdd8] sm:$0xff]  ;;  %v12743_v46 = vld [vmem:[#allocation2 + $0x3e8] sm:$0xff]  ;;  %864 = vst [vmem:[#allocation2 + $0x5e8] sm:$0xff] %v8970_v38 }
  0xe6   : > { %2399 = vmatprep.mubr.f32.mxu0 %v13939_v48  ;;  %3691 = vmatprep.mubr.f32.mxu1 %v14108_v60  ;;  %v1594_v48 = vld [vmem:[%s20010_s0 + $0xa28] sm:$0xff]  ;;  %v1597_v60 = vld [vmem:[%s20010_s0 + $0xa40] sm:$0xff]  ;;  %v1611_v52 = vld [vmem:[%s20010_s0 + $0xab0] sm:$0xff]  ;;  %v11390_v19 = vpack.c.bf16 %v1712_v2, %v1709_v1 }
  0xe7   : > { %10987 = vmatprep.subr.bf16.mxu0 %v10986_v12  ;;  %v10994_v31 = vpack.c.bf16 %v1597_v60, %v1594_v48  ;;  %v1614_v12 = vld [vmem:[%s20010_s0 + $0xac8] sm:$0xff]  ;;  %v1661_v36 = vld [vmem:[%s20010_s0 + $0xc40] sm:$0xff]  ;;  %v1664_v41 = vld [vmem:[%s20010_s0 + $0xc58] sm:$0xff] }
  0xe8   : > { %2400 = vmatmul.mubr.f32.gmra.mrb[8].mxu0 %v13950_v50  ;;  %v1593_v50 = vld [vmem:[%s20010_s0 + $0xa20] sm:$0xff]  ;;  %v1618_v56 = vld [vmem:[%s20010_s0 + $0xae8] sm:$0xff]  ;;  %v1715_v44 = vld [vmem:[%s20010_s0 + $0xdf0] sm:$0xff] }
  0xe9   : > { %3692 = vmatmul.mubr.f32.gmra.mrb[88].mxu1 %v14112_v8  ;;  %10989 = vmatpush1.bf16.msra.mxu0 %v10988_v20  ;;  %v1603_v8 = vld [vmem:[%s20010_s0 + $0xa70] sm:$0xff]  ;;  %v10996_v28 = vpack.c.bf16 %v1596_v53, %v1593_v50  ;;  %v8954_v43 = vld [vmem:[%s13174_s18 + $0xe3] sm:$0xff]  ;;  %v1624_v53 = vld [vmem:[%s20010_s0 + $0xb18] sm:$0xff] }
  0xea   : > { %2405 = vmatprep.mubr.f32.mxu0 %v13959_v4  ;;  %3696 = vmatprep.mubr.f32.mxu1 %v14124_v42  ;;  %v1600_v4 = vld [vmem:[%s20010_s0 + $0xa58] sm:$0xff]  ;;  %v8951_v42 = vld [vmem:[%s13174_s18 + $0xcb] sm:$0xff]  ;;  %832 = vst [vmem:[#allocation2 + $0x5e0] sm:$0xff] %v8954_v43  ;;  %v12744_v20 = vld [vmem:[#allocation2 + $0x3e0] sm:$0xff] }
  0xeb   : > { %10991 = vmatprep.subr.bf16.mxu0 %v10990_v26  ;;  %829 = vst [vmem:[#allocation2 + $0x478] sm:$0xff] %v8951_v42  ;;  %v8971_v40 = vld [vmem:[%s13174_s18 + $0xec] sm:$0xff]  ;;  %v11008_v26 = vpack.c.bf16 %v1614_v12, %v1611_v52  ;;  %v12745_v63 = vld [vmem:[#allocation2 + $0x460] sm:$0xff]  ;;  %v8972_v14 = vld [vmem:[%s13174_s18 + $0xf4] sm:$0xff] }
  0xec   : > { %2406 = vmatmul.mubr.f32.gmra.mrb[10].mxu0 %v13969_v5  ;;  %v1599_v5 = vld [vmem:[%s20010_s0 + $0xa50] sm:$0xff]  ;;  %v1718_v48 = vld [vmem:[%s20010_s0 + $0xe08] sm:$0xff]  ;;  %865 = vst [vmem:[#allocation2 + $0x660] sm:$0xff] %v8971_v40  ;;  %866 = vst [vmem:[#allocation2 + $0x6d8] sm:$0xff] %v8972_v14 }
  0xed   : > { %3697 = vmatmul.mubr.f32.gmra.mrb[90].mxu1 %v14136_v29  ;;  %10993 = vmatpush1.bf16.msra.mxu0 %v10992_v33  ;;  %v10998_v29 = vpack.c.bf16 %v1603_v8, %v1600_v4  ;;  %v11000_v16 = vpack.c.bf16 %v1602_v58, %v1599_v5  ;;  %v8955_v60 = vld [vmem:[%s13174_s18 + $0xeb] sm:$0xff]  ;;  %v1620_v33 = vld [vmem:[%s20010_s0 + $0xaf8] sm:$0xff]  ;;  %v11394_v8 = vpack.c.bf16 %v1718_v48, %v1715_v44  ;;  %v1721_v22 = vld [vmem:[%s20010_s0 + $0xe20] sm:$0xff] }
  0xee   : > { %2411 = vmatprep.mubr.f32.mxu0 %v13979_v35  ;;  %3701 = vmatprep.mubr.f32.mxu1 %v14148_v32  ;;  %v1606_v35 = vld [vmem:[%s20010_s0 + $0xa88] sm:$0xff]  ;;  %v1609_v32 = vld [vmem:[%s20010_s0 + $0xaa0] sm:$0xff]  ;;  %833 = vst [vmem:[#allocation2 + $0x658] sm:$0xff] %v8955_v60  ;;  %v12746_v4 = vld [vmem:[#allocation2 + $0x458] sm:$0xff] }
  0xef   : > { %10995 = vmatprep.subr.bf16.mxu0 %v10994_v31  ;;  %v11002_v59 = vpack.c.bf16 %v1609_v32, %v1606_v35  ;;  %v11392_v31 = vpack.c.bf16 %v1664_v41, %v1661_v36  ;;  %v1667_v42 = vld [vmem:[%s20010_s0 + $0xc70] sm:$0xff]  ;;  %v12747_v24 = vld [vmem:[#allocation2 + $0x4d8] sm:$0xff]  ;;  %v1626_v35 = vld [vmem:[%s20010_s0 + $0xb28] sm:$0xff] }
  0xf0   : > { %2412 = vmatmul.mubr.f32.gmra.mrb[12].mxu0 %v20026_v15  ;;  %v14695_v15 = vld [vmem:[#allocation2 + $0x728] sm:$0xf]  ;;  %v8956_v5 = vld [vmem:[%s13174_s18 + $0xf3] sm:$0xff]  ;;  %v1633_v39 = vld [vmem:[%s20010_s0 + $0xb60] sm:$0xff] }
  0xf1   : > { %3702 = vmatmul.mubr.f32.gmra.mrb[92].mxu1 %v14160_v6  ;;  %10997 = vmatpush1.bf16.msra.mxu0 %v10996_v28  ;;  %v8953_v6 = vld [vmem:[%s13174_s18 + $0xdb] sm:$0xff]  ;;  %v1670_v28 = vld [vmem:[%s20010_s0 + $0xc88] sm:$0xff]  ;;  %834 = vst [vmem:[#allocation2 + $0x6d0] sm:$0xff] %v8956_v5  ;;  %v12748_v0 = vld [vmem:[#allocation2 + $0x4d0] sm:$0xff] }
  0xf2   : > { %2417 = vmatprep.mubr.f32.mxu0 %v13999_v25  ;;  %3706 = vmatprep.mubr.f32.mxu1 %v14678_v23  ;;  %831 = vst [vmem:[#allocation2 + $0x568] sm:$0xff] %v8953_v6  ;;  %v1615_v25 = vld [vmem:[%s20010_s0 + $0xad0] sm:$0xff]  ;;  %v8973_v18 = vld [vmem:[%s13174_s18 + $0xfc] sm:$0xf]  ;;  %v1629_v38 = vld [vmem:[%s20010_s0 + $0xb40] sm:$0xff] }
  0xf3   : > { %10999 = vmatprep.subr.bf16.mxu0 %v10998_v29  ;;  %v11006_v27 = vpack.c.bf16 %v1615_v25, %v1612_v62  ;;  %v1724_v29 = vld [vmem:[%s20010_s0 + $0xe38] sm:$0xff]  ;;  %867 = vst [vmem:[#allocation2 + $0x750] sm:$0xf] %v8973_v18  ;;  %v20029_v25 = vld [vmem:[#allocation9_spill] sm:$0xff]  ;;  %v8990_v52 = vld [vmem:[%s13174_s18 + $0x101] sm:$0xff] }
  0xf4   : > { %2418 = vmatmul.mubr.f32.gmra.mrb[14].mxu0 %v12742_v30  ;;  %v11398_v6 = vpack.c.bf16 %v1724_v29, %v1721_v22  ;;  %v1676_v62 = vld [vmem:[%s20010_s0 + $0xcb8] sm:$0xff]  ;;  %v1727_v49 = vld [vmem:[%s20010_s0 + $0xe50] sm:$0xff]  ;;  %917 = vst [vmem:[#allocation2 + $0x58] sm:$0xff] %v8990_v52  ;;  %v1682_v36 = vld [vmem:[%s20010_s0 + $0xce8] sm:$0xff] }
  0xf5   : > { %3707 = vmatmul.mubr.f32.gmra.mrb[94].mxu1 %v14695_v15  ;;  %11001 = vmatpush1.bf16.msra.mxu0 %v11000_v16  ;;  %v1630_v16 = vld [vmem:[%s20010_s0 + $0xb48] sm:$0xff]  ;;  %v8957_v30 = vld [vmem:[%s13174_s18 + $0xfb] sm:$0xf]  ;;  %v12749_v1 = vld [vmem:[#allocation2 + $0x550] sm:$0xff] }
  0xf6   : > { %2423 = vmatprep.mubr.f32.mxu0 %v12743_v46  ;;  %3776 = vmatprep.mubr.f32.mxu1 %v14182_v45  ;;  %v1621_v45 = vld [vmem:[%s20010_s0 + $0xb00] sm:$0xff]  ;;  %835 = vst [vmem:[#allocation2 + $0x748] sm:$0xf] %v8957_v30  ;;  %v20030_v2 = vld [vmem:[#allocation10_spill] sm:$0xff]  ;;  %v11018_v12 = vpack.c.bf16 %v1633_v39, %v1630_v16  ;;  %v8991_v41 = vld [vmem:[%s13174_s18 + $0x109] sm:$0xff] }
  0xf7   : > { %11003 = vmatprep.subr.bf16.mxu0 %v11002_v59  ;;  %v11010_v50 = vpack.c.bf16 %v1621_v45, %v1618_v56  ;;  %v1673_v59 = vld [vmem:[%s20010_s0 + $0xca0] sm:$0xff]  ;;  %v1632_v46 = vld [vmem:[%s20010_s0 + $0xb58] sm:$0xff]  ;;  %918 = vst [vmem:[#allocation2 + $0xd0] sm:$0xff] %v8991_v41  ;;  %v8975_v60 = vld [vmem:[%s13174_s18 + $0x108] sm:$0xff] }
  0xf8   : > { %2424 = vmatmul.mubr.f32.gmra.mrb[16].mxu0 %v12744_v20  ;;  %v1636_v43 = vld [vmem:[%s20010_s0 + $0xb78] sm:$0xff]  ;;  %v11400_v56 = vpack.c.bf16 %v1676_v62, %v1673_v59  ;;  %v8974_v45 = vld [vmem:[%s13174_s18 + $0x100] sm:$0xff]  ;;  %886 = vst [vmem:[#allocation2 + $0xc8] sm:$0xff] %v8975_v60  ;;  %v20033_v22 = vld [vmem:[#allocation13_spill] sm:$0xff] }
  0xf9   : > { %3777 = vmatmul.mubr.f32.vlgmr.msra.gmra.mrb[96].mxu1 %v14193_v55  ;;  %11005 = vmatpush1.bf16.msra.mxu0 %v11004_v61  ;;  %v1617_v55 = vld [vmem:[%s20010_s0 + $0xae0] sm:$0xff]  ;;  %v1730_v61 = vld [vmem:[%s20010_s0 + $0xe68] sm:$0xff]  ;;  %885 = vst [vmem:[#allocation2 + $0x50] sm:$0xff] %v8974_v45  ;;  %v1736_v48 = vld [vmem:[%s20010_s0 + $0xe98] sm:$0xff] }
  0xfa   : > { %2429 = vmatprep.mubr.f32.mxu0 %v12745_v63  ;;  %3781 = vmatprep.mubr.f32.mxu1 %v14198_v7  ;;  %v1627_v7 = vld [vmem:[%s20010_s0 + $0xb30] sm:$0xff]  ;;  %v11012_v58 = vpack.c.bf16 %v1620_v33, %v1617_v55  ;;  %v11402_v20 = vpack.c.bf16 %v1730_v61, %v1727_v49  ;;  %v20031_v40 = vld [vmem:[#allocation11_spill] sm:$0xff]  ;;  %v12751_v63 = vld [vmem:[#allocation2 + $0x5c8] sm:$0xff] }
  0xfb   : > { %11007 = vmatprep.subr.bf16.mxu0 %v11006_v27  ;;  %11389 = vmatpush3.bf16.msra.mxu1 %v11388_v47  ;;  %v11014_v32 = vpack.c.bf16 %v1627_v7, %v1624_v53  ;;  %v1639_v27 = vld [vmem:[%s20010_s0 + $0xb90] sm:$0xff]  ;;  %v12750_v47 = vld [vmem:[#allocation2 + $0x548] sm:$0xff]  ;;  %v1733_v44 = vld [vmem:[%s20010_s0 + $0xe80] sm:$0xff] }
  0xfc   : > { %2430 = vmatmul.mubr.f32.gmra.mrb[18].mxu0 %v12746_v4  ;;  %11391 = vmatprep.subr.bf16.mxu1 %v11390_v19  ;;  %v1679_v19 = vld [vmem:[%s20010_s0 + $0xcd0] sm:$0xff]  ;;  %v20032_v55 = vld [vmem:[#allocation12_spill] sm:$0xff]  ;;  %v11022_v7 = vpack.c.bf16 %v1639_v27, %v1636_v43  ;;  %v8977_v18 = vld [vmem:[%s13174_s18 + $0x118] sm:$0xff] }
  0xfd   : > { %3782 = vmatmul.mubr.f32.gmra.mrb[98].mxu1 %v14210_v57  ;;  %11009 = vmatpush1.bf16.msra.mxu0 %v11008_v26  ;;  %v1623_v57 = vld [vmem:[%s20010_s0 + $0xb10] sm:$0xff]  ;;  %v11020_v26 = vpack.c.bf16 %v1632_v46, %v1629_v38  ;;  %v11404_v14 = vpack.c.bf16 %v1682_v36, %v1679_v19  ;;  %v1685_v5 = vld [vmem:[%s20010_s0 + $0xd00] sm:$0xff]  ;;  %888 = vst [vmem:[#allocation2 + $0x1b8] sm:$0xff] %v8977_v18  ;;  %v1694_v61 = vld [vmem:[%s20010_s0 + $0xd48] sm:$0xff] }
  0xfe   : > { %2435 = vmatprep.mubr.f32.mxu0 %v12747_v24  ;;  %3786 = vmatprep.mubr.f32.mxu1 %v14216_v10  ;;  %v11396_v10 = vpack.c.bf16 %v1670_v28, %v1667_v42  ;;  %v11016_v3 = vpack.c.bf16 %v1626_v35, %v1623_v57  ;;  %v1635_v33 = vld [vmem:[%s20010_s0 + $0xb70] sm:$0xff]  ;;  %v1645_v42 = vld [vmem:[%s20010_s0 + $0xbc0] sm:$0xff]  ;;  %v11406_v28 = vpack.c.bf16 %v1736_v48, %v1733_v44  ;;  %v1742_v57 = vld [vmem:[%s20010_s0 + $0xec8] sm:$0xff] }
  0xff   : > { %11011 = vmatprep.subr.bf16.mxu0 %v11010_v50  ;;  %11393 = vmatpush3.bf16.msra.mxu1 %v11392_v31  ;;  %v1638_v50 = vld [vmem:[%s20010_s0 + $0xb88] sm:$0xff]  ;;  %v8992_v53 = vld [vmem:[%s13174_s18 + $0x111] sm:$0xff]  ;;  %v8993_v35 = vld [vmem:[%s13174_s18 + $0x119] sm:$0xff] }
 0x100   : > { %2436 = vmatmul.mubr.f32.gmra.mrb[20].mxu0 %v12748_v0  ;;  %11395 = vmatprep.subr.bf16.mxu1 %v11394_v8  ;;  %v1642_v31 = vld [vmem:[%s20010_s0 + $0xba8] sm:$0xff]  ;;  %919 = vst [vmem:[#allocation2 + $0x148] sm:$0xff] %v8992_v53  ;;  %v8976_v4 = vld [vmem:[%s13174_s18 + $0x110] sm:$0xff]  ;;  %v12752_v8 = vld [vmem:[#allocation2 + $0x5c0] sm:$0xff]  ;;  %v11024_v29 = vpack.c.bf16 %v1638_v50, %v1635_v33 }
 0x101   : > { %3787 = vmatmul.mubr.f32.gmra.mrb[100].mxu1 %v20029_v25  ;;  %11013 = vmatpush1.bf16.msra.mxu0 %v11012_v58  ;;  %v1688_v58 = vld [vmem:[%s20010_s0 + $0xd18] sm:$0xff]  ;;  %887 = vst [vmem:[#allocation2 + $0x140] sm:$0xff] %v8976_v4  ;;  %v1739_v24 = vld [vmem:[%s20010_s0 + $0xeb0] sm:$0xff]  ;;  %v1641_v39 = vld [vmem:[%s20010_s0 + $0xba0] sm:$0xff]  ;;  %v11026_v0 = vpack.c.bf16 %v1645_v42, %v1642_v31 }
 0x102   : > { %2441 = vmatprep.mubr.f32.mxu0 %v12749_v1  ;;  %3791 = vmatprep.mubr.f32.mxu1 %v20030_v2  ;;  %v20034_v16 = vld [vmem:[#allocation14_spill] sm:$0xff]  ;;  %920 = vst [vmem:[#allocation2 + $0x1c0] sm:$0xff] %v8993_v35  ;;  %v11408_v62 = vpack.c.bf16 %v1688_v58, %v1685_v5  ;;  %v8994_v30 = vld [vmem:[%s13174_s18 + $0x121] sm:$0xff]  ;;  %v20035_v38 = vld [vmem:[#allocation15_spill] sm:$0xff] }
 0x103   : > { %11015 = vmatprep.subr.bf16.mxu0 %v11014_v32  ;;  %11397 = vmatpush3.bf16.msra.mxu1 %v11396_v10  ;;  %v12753_v32 = vld [vmem:[#allocation2 + $0x640] sm:$0xff]  ;;  %v1644_v10 = vld [vmem:[%s20010_s0 + $0xbb8] sm:$0xff]  ;;  %v1651_v59 = vld [vmem:[%s20010_s0 + $0xbf0] sm:$0xff]  ;;  %921 = vst [vmem:[#allocation2 + $0x238] sm:$0xff] %v8994_v30 }
 0x104   : > { %2442 = vmatmul.mubr.f32.gmra.mrb[22].mxu0 %v12750_v47  ;;  %11399 = vmatprep.subr.bf16.mxu1 %v11398_v6  ;;  %v1648_v6 = vld [vmem:[%s20010_s0 + $0xbd8] sm:$0xff]  ;;  %v1691_v49 = vld [vmem:[%s20010_s0 + $0xd30] sm:$0xff]  ;;  %v8978_v2 = vld [vmem:[%s13174_s18 + $0x120] sm:$0xff]  ;;  %v11028_v46 = vpack.c.bf16 %v1644_v10, %v1641_v39 }
 0x105   : > { %3792 = vmatmul.mubr.f32.gmra.mrb[102].mxu1 %v20031_v40  ;;  %11017 = vmatpush1.bf16.msra.mxu0 %v11016_v3  ;;  %v12754_v25 = vld [vmem:[#allocation2 + $0x638] sm:$0xff]  ;;  %v11410_v3 = vpack.c.bf16 %v1742_v57, %v1739_v24  ;;  %v1745_v52 = vld [vmem:[%s20010_s0 + $0xee0] sm:$0xff]  ;;  %889 = vst [vmem:[#allocation2 + $0x230] sm:$0xff] %v8978_v2  ;;  %v8995_v27 = vld [vmem:[%s13174_s18 + $0x129] sm:$0xff]  ;;  %v11030_v41 = vpack.c.bf16 %v1651_v59, %v1648_v6 }
 0x106   : > { %2447 = vmatprep.mubr.f32.mxu0 %v12751_v63  ;;  %3796 = vmatprep.mubr.f32.mxu1 %v20032_v55  ;;  %v20036_v45 = vld [vmem:[#allocation16_spill] sm:$0xff]  ;;  %v1647_v47 = vld [vmem:[%s20010_s0 + $0xbd0] sm:$0xff]  ;;  %922 = vst [vmem:[#allocation2 + $0x2b0] sm:$0xff] %v8995_v27  ;;  %v11412_v44 = vpack.c.bf16 %v1694_v61, %v1691_v49  ;;  %v1700_v33 = vld [vmem:[%s20010_s0 + $0xd78] sm:$0xff] }
 0x107   : > { %11019 = vmatprep.subr.bf16.mxu0 %v11018_v12  ;;  %11401 = vmatpush3.bf16.msra.mxu1 %v11400_v56  ;;  %v1748_v12 = vld [vmem:[%s20010_s0 + $0xef8] sm:$0xff]  ;;  %v8979_v36 = vld [vmem:[%s13174_s18 + $0x128] sm:$0xff]  ;;  %v12756_v60 = vld [vmem:[#allocation2 + $0x6b0] sm:$0xff] }
 0x108   : > { %2448 = vmatmul.mubr.f32.gmra.mrb[24].mxu0 %v12752_v8  ;;  %11403 = vmatprep.subr.bf16.mxu1 %v11402_v20  ;;  %v12755_v56 = vld [vmem:[#allocation2 + $0x6b8] sm:$0xff]  ;;  %v1650_v20 = vld [vmem:[%s20010_s0 + $0xbe8] sm:$0xff]  ;;  %890 = vst [vmem:[#allocation2 + $0x2a8] sm:$0xff] %v8979_v36  ;;  %v11414_v63 = vpack.c.bf16 %v1748_v12, %v1745_v52  ;;  %v1697_v55 = vld [vmem:[%s20010_s0 + $0xd60] sm:$0xff] }
 0x109   : > { %3797 = vmatmul.mubr.f32.gmra.mrb[104].mxu1 %v20033_v22  ;;  %11021 = vmatpush1.bf16.msra.mxu0 %v11020_v26  ;;  %v1654_v40 = vld [vmem:[%s20010_s0 + $0xc08] sm:$0xff]  ;;  %v1657_v26 = vld [vmem:[%s20010_s0 + $0xc20] sm:$0xff]  ;;  %v8996_v48 = vld [vmem:[%s13174_s18 + $0x131] sm:$0xff]  ;;  %v11416_v5 = vpack.c.bf16 %v1700_v33, %v1697_v55 }
 0x10a   : > { %2453 = vmatprep.mubr.f32.mxu0 %v12753_v32  ;;  %3801 = vmatprep.mubr.f32.mxu1 %v20034_v16  ;;  %923 = vst [vmem:[#allocation2 + $0x328] sm:$0xff] %v8996_v48  ;;  %v8980_v53 = vld [vmem:[%s13174_s18 + $0x130] sm:$0xff]  ;;  %v1802_v4 = vld [vmem:[%s20010_s0 + $0x10a8] sm:$0xff]  ;;  %v1656_v8 = vld [vmem:[%s20010_s0 + $0xc18] sm:$0xff] }
 0x10b   : > { %11023 = vmatprep.subr.bf16.mxu0 %v11022_v7  ;;  %11405 = vmatpush3.bf16.msra.mxu1 %v11404_v14  ;;  %v11032_v7 = vpack.c.bf16 %v1650_v20, %v1647_v47  ;;  %v1799_v14 = vld [vmem:[%s20010_s0 + $0x1090] sm:$0xff]  ;;  %891 = vst [vmem:[#allocation2 + $0x320] sm:$0xff] %v8980_v53  ;;  %v8997_v58 = vld [vmem:[%s13174_s18 + $0x139] sm:$0xff]  ;;  %v1662_v10 = vld [vmem:[%s20010_s0 + $0xc48] sm:$0xff] }
 0x10c   : > { %2454 = vmatmul.mubr.f32.gmra.mrb[26].mxu0 %v12754_v25  ;;  %11407 = vmatprep.subr.bf16.mxu1 %v11406_v28  ;;  %v9170_v1 = vpop.f32.mrb[0].mxu1  ;;  %v11034_v28 = vpack.c.bf16 %v1657_v26, %v1654_v40  ;;  %924 = vst [vmem:[#allocation2 + $0x3a0] sm:$0xff] %v8997_v58  ;;  %v8981_v24 = vld [vmem:[%s13174_s18 + $0x138] sm:$0xff]  ;;  %v20037_v57 = vld [vmem:[#allocation17_spill] sm:$0xff]  ;;  %v8998_v6 = vld [vmem:[%s13174_s18 + $0x141] sm:$0xff] }
 0x10d   : > { %3802 = vmatmul.mubr.f32.gmra.mrb[106].mxu1 %v20035_v38  ;;  %11025 = vmatpush1.bf16.msra.mxu0 %v11024_v29  ;;  %v9171_v43 = vpop.f32.mrb[1].mxu1  ;;  %v11418_v29 = vpack.c.bf16 %v1802_v4, %v1799_v14  ;;  %892 = vst [vmem:[#allocation2 + $0x398] sm:$0xff] %v8981_v24  ;;  %v20038_v16 = vld [vmem:[#allocation18_spill] sm:$0xff]  ;;  %v1669_v30 = vld [vmem:[%s20010_s0 + $0xc80] sm:$0xff]  ;;  %925 = vst [vmem:[#allocation2 + $0x418] sm:$0xff] %v8998_v6 }
 0x10e   : > { %2459 = vmatprep.mubr.f32.mxu0 %v12755_v56  ;;  %3806 = vmatprep.mubr.f32.mxu1 %v20036_v45  ;;  %v14902_v19 = vadd.f32 %v9171_v43, %v9170_v1  ;;  %v1659_v39 = vld [vmem:[%s20010_s0 + $0xc30] sm:$0xff]  ;;  %v1668_v52 = vld [vmem:[%s20010_s0 + $0xc78] sm:$0xff]  ;;  %v12762_v56 = vld [vmem:[#allocation2 + $0xa8] sm:$0xff] }
 0x10f   : > { %11027 = vmatprep.subr.bf16.mxu0 %v11026_v0  ;;  %11409 = vmatpush3.bf16.msra.mxu1 %v11408_v62  ;;  %v12758_v59 = vld [vmem:[#allocation2 + $0x30] sm:$0xff]  ;;  %v1666_v62 = vld [vmem:[%s20010_s0 + $0xc68] sm:$0xff]  ;;  %v11040_v61 = vpack.c.bf16 %v1662_v10, %v1659_v39  ;;  %v1672_v45 = vld [vmem:[%s20010_s0 + $0xc98] sm:$0xff] }
 0x110   : > { %2460 = vmatmul.mubr.f32.gmra.mrb[28].mxu0 %v12756_v60  ;;  %11411 = vmatprep.subr.bf16.mxu1 %v11410_v3  ;;  %v9173_v50 = vpop.f32.mrb[2].mxu1  ;;  %v8982_v3 = vld [vmem:[%s13174_s18 + $0x140] sm:$0xff]  ;;  %v14963_v49 = vld [vmem:[#allocation2 + $0x3f0] sm:$0xff]  ;;  %v11042_v43 = vpack.c.bf16 %v1669_v30, %v1666_v62  ;;  %v8983_v36 = vld [vmem:[%s13174_s18 + $0x148] sm:$0xff] }
 0x111   : > { %3807 = vmatmul.mubr.f32.gmra.mrb[108].mxu1 %v14318_v17  ;;  %11029 = vmatpush1.bf16.msra.mxu0 %v11028_v46  ;;  %v9174_v31 = vpop.f32.mrb[3].mxu1  ;;  %v1653_v17 = vld [vmem:[%s20010_s0 + $0xc00] sm:$0xff]  ;;  %893 = vst [vmem:[#allocation2 + $0x410] sm:$0xff] %v8982_v3  ;;  %v12760_v2 = vld [vmem:[#allocation2 + $0xb0] sm:$0xff]  ;;  %894 = vst [vmem:[#allocation2 + $0x488] sm:$0xff] %v8983_v36 }
 0x112   : > { %2465 = vmatprep.mubr.f32.mxu0 %v14678_v23  ;;  %3811 = vmatprep.mubr.f32.mxu1 %v14330_v9  ;;  %v14934_v42 = vadd.f32 %v9174_v31, %v9173_v50  ;;  %v1660_v9 = vld [vmem:[%s20010_s0 + $0xc38] sm:$0xff]  ;;  %v1663_v23 = vld [vmem:[%s20010_s0 + $0xc50] sm:$0xff]  ;;  %v11036_v35 = vpack.c.bf16 %v1656_v8, %v1653_v17  ;;  %v1665_v46 = vld [vmem:[%s20010_s0 + $0xc60] sm:$0xff] }
 0x113   : > { %11031 = vmatprep.subr.bf16.mxu0 %v11030_v41  ;;  %11413 = vmatpush3.bf16.msra.mxu1 %v11412_v44  ;;  %v11038_v0 = vpack.c.bf16 %v1663_v23, %v1660_v9  ;;  %v14966_v38 = vld [vmem:[#allocation2 + $0x470] sm:$0xff]  ;;  %v14985_v41 = vld [vmem:[#allocation2 + $0x468] sm:$0xff]  ;;  %v11044_v40 = vpack.c.bf16 %v1668_v52, %v1665_v46  ;;  %v12765_v50 = vld [vmem:[#allocation2 + $0x120] sm:$0xff] }
 0x114   : > { %2466 = vmatmul.mubr.f32.gmra.mrb[30].mxu0 %v14695_v15  ;;  %11415 = vmatprep.subr.bf16.mxu1 %v11414_v63  ;;  %v9176_v22 = vpop.f32.mrb[4].mxu1  ;;  %v12757_v15 = vld [vmem:[#allocation2 + $0x38] sm:$0xff]  ;;  %v8999_v27 = vld [vmem:[%s13174_s18 + $0x149] sm:$0xff]  ;;  %v15005_v14 = vld [vmem:[#allocation2 + $0x4e0] sm:$0xff] }
 0x115   : > { %3812 = vmatmul.mubr.f32.gmra.mrb[110].mxu1 %v20037_v57  ;;  %11033 = vmatpush1.bf16.msra.mxu0 %v11032_v7  ;;  %v9177_v32 = vpop.f32.mrb[5].mxu1  ;;  %v1675_v47 = vld [vmem:[%s20010_s0 + $0xcb0] sm:$0xff]  ;;  %926 = vst [vmem:[#allocation2 + $0x490] sm:$0xff] %v8999_v27  ;;  %v12764_v44 = vld [vmem:[#allocation2 + $0x128] sm:$0xff]  ;;  %v12767_v8 = vld [vmem:[#allocation2 + $0x1a0] sm:$0xff] }
 0x116   : > { %2536 = vmatprep.mubr.f32.mxu0 %v12757_v15  ;;  %3816 = vmatprep.mubr.f32.mxu1 %v20038_v16  ;;  %v14953_v18 = vadd.f32 %v9177_v32, %v9176_v22  ;;  %v1671_v48 = vld [vmem:[%s20010_s0 + $0xc90] sm:$0xff]  ;;  %v1674_v60 = vld [vmem:[%s20010_s0 + $0xca8] sm:$0xff]  ;;  %v11046_v55 = vpack.c.bf16 %v1675_v47, %v1672_v45  ;;  %v9001_v23 = vld [vmem:[%s13174_s18 + $0x159] sm:$0xff] }
 0x117   : > { %11035 = vmatprep.subr.bf16.mxu0 %v11034_v28  ;;  %11417 = vmatpush3.bf16.msra.mxu1 %v11416_v5  ;;  %v9000_v33 = vld [vmem:[%s13174_s18 + $0x151] sm:$0xff]  ;;  %v1678_v53 = vld [vmem:[%s20010_s0 + $0xcc8] sm:$0xff]  ;;  %v11048_v4 = vpack.c.bf16 %v1674_v60, %v1671_v48  ;;  %v1677_v28 = vld [vmem:[%s20010_s0 + $0xcc0] sm:$0xff]  ;;  %928 = vst [vmem:[#allocation2 + $0x580] sm:$0xff] %v9001_v23 }
 0x118   : > { %2537 = vmatmul.mubr.f32.vlgmr.msra.gmra.mrb[0].mxu0 %v12758_v59  ;;  %v9179_v25 = vpop.f32.mrb[6].mxu1  ;;  %11419 = vmatprep.subr.bf16.mxu1 %v11418_v29  ;;  %927 = vst [vmem:[#allocation2 + $0x508] sm:$0xff] %v9000_v33  ;;  %v8984_v31 = vld [vmem:[%s13174_s18 + $0x150] sm:$0xff]  ;;  %v1680_v5 = vld [vmem:[%s20010_s0 + $0xcd8] sm:$0xff]  ;;  %v1686_v10 = vld [vmem:[%s20010_s0 + $0xd08] sm:$0xff] }
 0x119   : > { %3817 = vmatmul.mubr.f32.gmra.mrb[112].mxu1 %v14963_v49  ;;  %11037 = vmatpush1.bf16.msra.mxu0 %v11036_v35  ;;  %v9180_v1 = vpop.f32.mrb[7].mxu1  ;;  %895 = vst [vmem:[#allocation2 + $0x500] sm:$0xff] %v8984_v31  ;;  %v12768_v22 = vld [vmem:[#allocation2 + $0x198] sm:$0xff]  ;;  %v11052_v32 = vpack.c.bf16 %v1680_v5, %v1677_v28  ;;  %v1683_v39 = vld [vmem:[%s20010_s0 + $0xcf0] sm:$0xff]  ;;  %v9002_v59 = vld [vmem:[%s13174_s18 + $0x161] sm:$0xff] }
 0x11a   : > { %2542 = vmatprep.mubr.f32.mxu0 %v12760_v2  ;;  %3821 = vmatprep.mubr.f32.mxu1 %v14966_v38  ;;  %v14975_v12 = vadd.f32 %v9180_v1, %v9179_v25  ;;  %v1684_v29 = vld [vmem:[%s20010_s0 + $0xcf8] sm:$0xff]  ;;  %v12771_v62 = vld [vmem:[#allocation2 + $0x210] sm:$0xff]  ;;  %v1690_v30 = vld [vmem:[%s20010_s0 + $0xd28] sm:$0xff]  ;;  %929 = vst [vmem:[#allocation2 + $0x5f8] sm:$0xff] %v9002_v59  ;;  %v11056_v1 = vpack.c.bf16 %v1686_v10, %v1683_v39 }
 0x11b   : > { %11039 = vmatprep.subr.bf16.mxu0 %v11038_v0  ;;  %v8985_v57 = vld [vmem:[%s13174_s18 + $0x158] sm:$0xff]  ;;  %v8986_v3 = vld [vmem:[%s13174_s18 + $0x160] sm:$0xff]  ;;  %v12773_v46 = vld [vmem:[#allocation2 + $0x290] sm:$0xff] }
 0x11c   : > { %2543 = vmatmul.mubr.f32.gmra.mrb[2].mxu0 %v12762_v56  ;;  %v9182_v20 = vpop.f32.mrb[8].mxu1  ;;  %v15025_v35 = vld [vmem:[#allocation2 + $0x558] sm:$0xff]  ;;  %896 = vst [vmem:[#allocation2 + $0x578] sm:$0xff] %v8985_v57  ;;  %897 = vst [vmem:[#allocation2 + $0x5f0] sm:$0xff] %v8986_v3  ;;  %v1689_v52 = vld [vmem:[%s20010_s0 + $0xd20] sm:$0xff] }
 0x11d   : > { %3822 = vmatmul.mubr.f32.gmra.mrb[114].mxu1 %v14985_v41  ;;  %11041 = vmatpush1.bf16.msra.mxu0 %v11040_v61  ;;  %v9183_v26 = vpop.f32.mrb[9].mxu1  ;;  %v12770_v16 = vld [vmem:[#allocation2 + $0x218] sm:$0xff]  ;;  %v15045_v61 = vld [vmem:[#allocation2 + $0x5d0] sm:$0xff]  ;;  %v12774_v47 = vld [vmem:[#allocation2 + $0x288] sm:$0xff] }
 0x11e   : > { %2548 = vmatprep.mubr.f32.mxu0 %v12764_v44  ;;  %3826 = vmatprep.mubr.f32.mxu1 %v14407_v37  ;;  %v14995_v63 = vadd.f32 %v9183_v26, %v9182_v20  ;;  %v1681_v37 = vld [vmem:[%s20010_s0 + $0xce0] sm:$0xff]  ;;  %v9003_v45 = vld [vmem:[%s13174_s18 + $0x169] sm:$0xff]  ;;  %v9005_v48 = vld [vmem:[%s13174_s18 + $0x179] sm:$0xf] }
 0x11f   : > { %11043 = vmatprep.subr.bf16.mxu0 %v11042_v43  ;;  %v11050_v9 = vpack.c.bf16 %v1681_v37, %v1678_v53  ;;  %v1692_v43 = vld [vmem:[%s20010_s0 + $0xd38] sm:$0xff]  ;;  %v1699_v20 = vld [vmem:[%s20010_s0 + $0xd70] sm:$0xff]  ;;  %930 = vst [vmem:[#allocation2 + $0x670] sm:$0xff] %v9003_v45  ;;  %932 = vst [vmem:[#allocation2 + $0x760] sm:$0xf] %v9005_v48 }
 0x120   : > { %2549 = vmatmul.mubr.f32.gmra.mrb[4].mxu0 %v12765_v50  ;;  %v9185_v7 = vpop.f32.mrb[10].mxu1  ;;  %v11060_v26 = vpack.c.bf16 %v1692_v43, %v1689_v52  ;;  %v8989_v60 = vld [vmem:[%s13174_s18 + $0x178] sm:$0xf]  ;;  %v1695_v33 = vld [vmem:[%s20010_s0 + $0xd50] sm:$0xff]  ;;  %v15077_v53 = vld [vmem:[#allocation2 + $0x740] sm:$0xf] }
 0x121   : > { %3827 = vmatmul.mubr.f32.gmra.mrb[116].mxu1 %v15005_v14  ;;  %11045 = vmatpush1.bf16.msra.mxu0 %v11044_v40  ;;  %v9186_v17 = vpop.f32.mrb[11].mxu1  ;;  %v8987_v40 = vld [vmem:[%s13174_s18 + $0x168] sm:$0xff]  ;;  %900 = vst [vmem:[#allocation2 + $0x758] sm:$0xf] %v8989_v60  ;;  %v12776_v31 = vld [vmem:[#allocation2 + $0x300] sm:$0xff]  ;;  %v1751_v39 = vld [vmem:[%s20010_s0 + $0xf10] sm:$0xff] }
 0x122   : > { %2554 = vmatprep.mubr.f32.mxu0 %v12767_v8  ;;  %3831 = vmatprep.mubr.f32.mxu1 %v14434_v13  ;;  %v15015_v58 = vadd.f32 %v9186_v17, %v9185_v7  ;;  %v1687_v13 = vld [vmem:[%s20010_s0 + $0xd10] sm:$0xff]  ;;  %898 = vst [vmem:[#allocation2 + $0x668] sm:$0xff] %v8987_v40  ;;  %v15087_v28 = vld [vmem:[#allocation2 + $0x6c0] sm:$0xff]  ;;  %v1754_v10 = vld [vmem:[%s20010_s0 + $0xf28] sm:$0xff] }
 0x123   : > { %11047 = vmatprep.subr.bf16.mxu0 %v11046_v55  ;;  %v11054_v6 = vpack.c.bf16 %v1687_v13, %v1684_v29  ;;  %v12775_v55 = vld [vmem:[#allocation2 + $0x308] sm:$0xff]  ;;  %v9004_v7 = vld [vmem:[%s13174_s18 + $0x171] sm:$0xff]  ;;  %v12778_v23 = vld [vmem:[#allocation2 + $0x380] sm:$0xff]  ;;  %v11420_v43 = vpack.c.bf16 %v1754_v10, %v1751_v39 }
 0x124   : > { %2555 = vmatmul.mubr.f32.gmra.mrb[6].mxu0 %v12768_v22  ;;  %v9188_v24 = vpop.f32.mrb[12].mxu1  ;;  %931 = vst [vmem:[#allocation2 + $0x6e8] sm:$0xff] %v9004_v7  ;;  %v8988_v8 = vld [vmem:[%s13174_s18 + $0x170] sm:$0xff]  ;;  %v15091_v22 = vld [vmem:[#allocation2 + $0x738] sm:$0xf]  ;;  %v1701_v29 = vld [vmem:[%s20010_s0 + $0xd80] sm:$0xff] }
 0x125   : > { %3832 = vmatmul.mubr.f32.gmra.mrb[118].mxu1 %v15025_v35  ;;  %11049 = vmatpush1.bf16.msra.mxu0 %v11048_v4  ;;  %v9189_v15 = vpop.f32.mrb[13].mxu1  ;;  %v1705_v4 = vld [vmem:[%s20010_s0 + $0xda0] sm:$0xff]  ;;  %899 = vst [vmem:[#allocation2 + $0x6e0] sm:$0xff] %v8988_v8  ;;  %v1704_v13 = vld [vmem:[%s20010_s0 + $0xd98] sm:$0xff]  ;;  %v1707_v3 = vld [vmem:[%s20010_s0 + $0xdb0] sm:$0xff] }
 0x126   : > { %2560 = vmatprep.mubr.f32.mxu0 %v12770_v16  ;;  %3836 = vmatprep.mubr.f32.mxu1 %v14459_v11  ;;  %v15035_v0 = vadd.f32 %v9189_v15, %v9188_v24  ;;  %v1693_v11 = vld [vmem:[%s20010_s0 + $0xd40] sm:$0xff]  ;;  %v12779_v15 = vld [vmem:[#allocation2 + $0x378] sm:$0xff]  ;;  %v1711_v16 = vld [vmem:[%s20010_s0 + $0xdd0] sm:$0xff]  ;;  %v11068_v59 = vpack.c.bf16 %v1704_v13, %v1701_v29 }
 0x127   : > { %11051 = vmatprep.subr.bf16.mxu0 %v11050_v9  ;;  %v11058_v56 = vpack.c.bf16 %v1693_v11, %v1690_v30  ;;  %v1808_v30 = vld [vmem:[%s20010_s0 + $0x10d8] sm:$0xff]  ;;  %v1714_v52 = vld [vmem:[%s20010_s0 + $0xde8] sm:$0xff]  ;;  %v15144_v40 = vld [vmem:[#allocation2 + $0x40] sm:$0xff] }
 0x128   : > { %2561 = vmatmul.mubr.f32.gmra.mrb[8].mxu0 %v12771_v62  ;;  %v9191_v25 = vpop.f32.mrb[14].mxu1  ;;  %v1805_v62 = vld [vmem:[%s20010_s0 + $0x10c0] sm:$0xff]  ;;  %v1814_v48 = vld [vmem:[%s20010_s0 + $0x1108] sm:$0xff]  ;;  %v1723_v7 = vld [vmem:[%s20010_s0 + $0xe30] sm:$0xff] }
 0x129   : > { %3837 = vmatmul.mubr.f32.gmra.mrb[120].mxu1 %v15045_v61  ;;  %11053 = vmatpush1.bf16.msra.mxu0 %v11052_v32  ;;  %v9192_v2 = vpop.f32.mrb[15].mxu1  ;;  %v1708_v32 = vld [vmem:[%s20010_s0 + $0xdb8] sm:$0xff]  ;;  %v11422_v45 = vpack.c.bf16 %v1808_v30, %v1805_v62  ;;  %v15154_v60 = vld [vmem:[#allocation2 + $0xc0] sm:$0xff]  ;;  %v1763_v8 = vld [vmem:[%s20010_s0 + $0xf70] sm:$0xff] }
 0x12a   : > { %2566 = vmatprep.mubr.f32.mxu0 %v12773_v46  ;;  %3841 = vmatprep.mubr.f32.mxu1 %v14492_v51  ;;  %v15055_v27 = vadd.f32 %v9192_v2, %v9191_v25  ;;  %v1696_v51 = vld [vmem:[%s20010_s0 + $0xd58] sm:$0xff]  ;;  %v11070_v46 = vpack.c.bf16 %v1711_v16, %v1708_v32  ;;  %v1817_v13 = vld [vmem:[%s20010_s0 + $0x1120] sm:$0xff]  ;;  %v12784_v32 = vld [vmem:[#allocation2 + $0x4e8] sm:$0xff] }
 0x12b   : > { %11055 = vmatprep.subr.bf16.mxu0 %v11054_v6  ;;  %v11062_v37 = vpack.c.bf16 %v1699_v20, %v1696_v51  ;;  %v12780_v25 = vld [vmem:[#allocation2 + $0x3f8] sm:$0xff]  ;;  %v1719_v16 = vld [vmem:[%s20010_s0 + $0xe10] sm:$0xff]  ;;  %v1722_v39 = vld [vmem:[%s20010_s0 + $0xe28] sm:$0xff] }
 0x12c   : > { %2567 = vmatmul.mubr.f32.gmra.mrb[10].mxu0 %v12774_v47  ;;  %v9194_v36 = vpop.f32.mrb[16].mxu1  ;;  %v1757_v47 = vld [vmem:[%s20010_s0 + $0xf40] sm:$0xff]  ;;  %v1760_v51 = vld [vmem:[%s20010_s0 + $0xf58] sm:$0xff] }
 0x12d   : > { %3842 = vmatmul.mubr.f32.gmra.mrb[122].mxu1 %v14504_v34  ;;  %11057 = vmatpush1.bf16.msra.mxu0 %v11056_v1  ;;  %v9195_v44 = vpop.f32.mrb[17].mxu1  ;;  %v1698_v34 = vld [vmem:[%s20010_s0 + $0xd68] sm:$0xff]  ;;  %v1729_v62 = vld [vmem:[%s20010_s0 + $0xe60] sm:$0xff] }
 0x12e   : > { %2572 = vmatprep.mubr.f32.mxu0 %v12775_v55  ;;  %3846 = vmatprep.mubr.f32.mxu1 %v14521_v54  ;;  %v15075_v50 = vadd.f32 %v9195_v44, %v9194_v36  ;;  %v1702_v54 = vld [vmem:[%s20010_s0 + $0xd88] sm:$0xff]  ;;  %v11064_v5 = vpack.c.bf16 %v1698_v34, %v1695_v33  ;;  %v1713_v55 = vld [vmem:[%s20010_s0 + $0xde0] sm:$0xff]  ;;  %v1716_v33 = vld [vmem:[%s20010_s0 + $0xdf8] sm:$0xff] }
 0x12f   : > { %11059 = vmatprep.subr.bf16.mxu0 %v11058_v56  ;;  %v11066_v57 = vpack.c.bf16 %v1705_v4, %v1702_v54  ;;  %v1710_v1 = vld [vmem:[%s20010_s0 + $0xdc8] sm:$0xff]  ;;  %v11076_v29 = vpack.c.bf16 %v1716_v33, %v1713_v55  ;;  %v9025_v33 = vld [vmem:[%s13174_s18 + $0x11b] sm:$0xff] }
 0x130   : > { %2573 = vmatmul.mubr.f32.gmra.mrb[12].mxu0 %v12776_v31  ;;  %v9197_v17 = vpop.f32.mrb[18].mxu1  ;;  %v9022_v56 = vld [vmem:[%s13174_s18 + $0x103] sm:$0xff]  ;;  %v11424_v31 = vpack.c.bf16 %v1760_v51, %v1757_v47  ;;  %v9023_v54 = vld [vmem:[%s13174_s18 + $0x10b] sm:$0xff]  ;;  %984 = vst [vmem:[#allocation2 + $0x1d0] sm:$0xff] %v9025_v33 }
 0x131   : > { %3847 = vmatmul.mubr.f32.gmra.mrb[124].mxu1 %v15087_v28  ;;  %11061 = vmatpush1.bf16.msra.mxu0 %v11060_v26  ;;  %v9198_v9 = vpop.f32.mrb[19].mxu1  ;;  %981 = vst [vmem:[#allocation2 + $0x68] sm:$0xff] %v9022_v56  ;;  %v9006_v36 = vld [vmem:[%s13174_s18 + $0x102] sm:$0xff]  ;;  %v11072_v26 = vpack.c.bf16 %v1710_v1, %v1707_v3  ;;  %982 = vst [vmem:[#allocation2 + $0xe0] sm:$0xff] %v9023_v54  ;;  %v1823_v56 = vld [vmem:[%s20010_s0 + $0x1150] sm:$0xff] }
 0x132   : > { %2578 = vmatprep.mubr.f32.mxu0 %v12778_v23  ;;  %3851 = vmatprep.mubr.f32.mxu1 %v15077_v53  ;;  %v15099_v24 = vadd.f32 %v9198_v9, %v9197_v17  ;;  %949 = vst [vmem:[#allocation2 + $0x60] sm:$0xff] %v9006_v36  ;;  %v9007_v9 = vld [vmem:[%s13174_s18 + $0x10a] sm:$0xff]  ;;  %v15180_v23 = vld [vmem:[#allocation2 + $0xb8] sm:$0xff]  ;;  %v1769_v1 = vld [vmem:[%s20010_s0 + $0xfa0] sm:$0xff] }
 0x133   : > { %11063 = vmatprep.subr.bf16.mxu0 %v11062_v37  ;;  %950 = vst [vmem:[#allocation2 + $0xd8] sm:$0xff] %v9007_v9  ;;  %v12787_v47 = vld [vmem:[#allocation2 + $0x560] sm:$0xff]  ;;  %v15224_v51 = vld [vmem:[#allocation2 + $0x1b0] sm:$0xff]  ;;  %v1728_v36 = vld [vmem:[%s20010_s0 + $0xe58] sm:$0xff] }
 0x134   : > { %2579 = vmatmul.mubr.f32.gmra.mrb[14].mxu0 %v12779_v15  ;;  %v9200_v6 = vpop.f32.mrb[20].mxu1  ;;  %v15189_v15 = vld [vmem:[#allocation2 + $0x138] sm:$0xff]  ;;  %v12795_v33 = vld [vmem:[#allocation2 + $0x648] sm:$0xff] }
 0x135   : > { %3852 = vmatmul.mubr.f32.gmra.mrb[126].mxu1 %v15091_v22  ;;  %11065 = vmatpush1.bf16.msra.mxu0 %v11064_v5  ;;  %v9201_v11 = vpop.f32.mrb[21].mxu1  ;;  %v1766_v5 = vld [vmem:[%s20010_s0 + $0xf88] sm:$0xff]  ;;  %v9009_v54 = vld [vmem:[%s13174_s18 + $0x11a] sm:$0xff] }
 0x136   : > { %2584 = vmatprep.mubr.f32.mxu0 %v12780_v25  ;;  %3921 = vmatprep.mubr.f32.mxu1 %v14559_v21  ;;  %v15127_v2 = vadd.f32 %v9201_v11, %v9200_v6  ;;  %v1717_v21 = vld [vmem:[%s20010_s0 + $0xe00] sm:$0xff]  ;;  %v11428_v30 = vpack.c.bf16 %v1766_v5, %v1763_v8  ;;  %v9024_v11 = vld [vmem:[%s13174_s18 + $0x113] sm:$0xff]  ;;  %952 = vst [vmem:[#allocation2 + $0x1c8] sm:$0xff] %v9009_v54  ;;  %v9011_v54 = vld [vmem:[%s13174_s18 + $0x12a] sm:$0xff] }
 0x137   : > { %11067 = vmatprep.subr.bf16.mxu0 %v11066_v57  ;;  %v11074_v37 = vpack.c.bf16 %v1717_v21, %v1714_v52  ;;  %v1820_v57 = vld [vmem:[%s20010_s0 + $0x1138] sm:$0xff]  ;;  %983 = vst [vmem:[#allocation2 + $0x158] sm:$0xff] %v9024_v11  ;;  %v15215_v21 = vld [vmem:[#allocation2 + $0x130] sm:$0xff]  ;;  %v1829_v8 = vld [vmem:[%s20010_s0 + $0x1180] sm:$0xff] }
 0x138   : > { %2585 = vmatmul.mubr.f32.gmra.mrb[16].mxu0 %v14963_v49  ;;  %v9203_v20 = vpop.f32.mrb[22].mxu1  ;;  %v1811_v49 = vld [vmem:[%s20010_s0 + $0x10f0] sm:$0xff]  ;;  %v11430_v3 = vpack.c.bf16 %v1820_v57, %v1817_v13  ;;  %v1832_v5 = vld [vmem:[%s20010_s0 + $0x1198] sm:$0xff]  ;;  %v1734_v13 = vld [vmem:[%s20010_s0 + $0xe88] sm:$0xff]  ;;  %954 = vst [vmem:[#allocation2 + $0x2b8] sm:$0xff] %v9011_v54 }
 0x139   : > { %3922 = vmatmul.mubr.f32.vlgmr.msra.gmra.mrb[128].mxu1 %v15144_v40  ;;  %11069 = vmatpush1.bf16.msra.mxu0 %v11068_v59  ;;  %v9204_v44 = vpop.f32.mrb[23].mxu1  ;;  %v11426_v4 = vpack.c.bf16 %v1814_v48, %v1811_v49  ;;  %v1726_v59 = vld [vmem:[%s20010_s0 + $0xe48] sm:$0xff]  ;;  %v9008_v52 = vld [vmem:[%s13174_s18 + $0x112] sm:$0xff]  ;;  %v1781_v11 = vld [vmem:[%s20010_s0 + $0x1000] sm:$0xff] }
 0x13a   : > { %2590 = vmatprep.mubr.f32.mxu0 %v14966_v38  ;;  %3926 = vmatprep.mubr.f32.mxu1 %v15154_v60  ;;  %v15163_v34 = vadd.f32 %v9204_v44, %v9203_v20  ;;  %v1720_v38 = vld [vmem:[%s20010_s0 + $0xe18] sm:$0xff]  ;;  %951 = vst [vmem:[#allocation2 + $0x150] sm:$0xff] %v9008_v52  ;;  %v1725_v20 = vld [vmem:[%s20010_s0 + $0xe40] sm:$0xff]  ;;  %v11082_v44 = vpack.c.bf16 %v1729_v62, %v1726_v59  ;;  %v1735_v48 = vld [vmem:[%s20010_s0 + $0xe90] sm:$0xff] }
 0x13b   : > { %11071 = vmatprep.subr.bf16.mxu0 %v11070_v46  ;;  %11421 = vmatpush3.bf16.msra.mxu1 %v11420_v43  ;;  %v11078_v6 = vpack.c.bf16 %v1723_v7, %v1720_v38  ;;  %v1772_v46 = vld [vmem:[%s20010_s0 + $0xfb8] sm:$0xff]  ;;  %v11080_v43 = vpack.c.bf16 %v1722_v39, %v1719_v16  ;;  %v1775_v7 = vld [vmem:[%s20010_s0 + $0xfd0] sm:$0xff]  ;;  %v1738_v16 = vld [vmem:[%s20010_s0 + $0xea8] sm:$0xff] }
 0x13c   : > { %2591 = vmatmul.mubr.f32.gmra.mrb[18].mxu0 %v14985_v41  ;;  %11423 = vmatprep.subr.bf16.mxu1 %v11422_v45  ;;  %v9206_v17 = vpop.f32.mrb[24].mxu1  ;;  %v1826_v45 = vld [vmem:[%s20010_s0 + $0x1168] sm:$0xff]  ;;  %v1732_v49 = vld [vmem:[%s20010_s0 + $0xe78] sm:$0xff]  ;;  %v11432_v55 = vpack.c.bf16 %v1772_v46, %v1769_v1  ;;  %v1741_v39 = vld [vmem:[%s20010_s0 + $0xec0] sm:$0xff] }
 0x13d   : > { %3927 = vmatmul.mubr.f32.gmra.mrb[130].mxu1 %v15180_v23  ;;  %11073 = vmatpush1.bf16.msra.mxu0 %v11072_v26  ;;  %v9207_v41 = vpop.f32.mrb[25].mxu1  ;;  %v11434_v38 = vpack.c.bf16 %v1826_v45, %v1823_v56  ;;  %v12790_v9 = vld [vmem:[#allocation2 + $0x5d8] sm:$0xff]  ;;  %v9026_v59 = vld [vmem:[%s13174_s18 + $0x123] sm:$0xff]  ;;  %v1835_v52 = vld [vmem:[%s20010_s0 + $0x11b0] sm:$0xff] }
 0x13e   : > { %2596 = vmatprep.mubr.f32.mxu0 %v12784_v32  ;;  %3931 = vmatprep.mubr.f32.mxu1 %v15189_v15  ;;  %v15198_v10 = vadd.f32 %v9207_v41, %v9206_v17  ;;  %v11084_v17 = vpack.c.bf16 %v1728_v36, %v1725_v20  ;;  %v1731_v41 = vld [vmem:[%s20010_s0 + $0xe70] sm:$0xff]  ;;  %v11086_v32 = vpack.c.bf16 %v1735_v48, %v1732_v49  ;;  %v15285_v1 = vld [vmem:[#allocation2 + $0x220] sm:$0xff] }
 0x13f   : > { %11075 = vmatprep.subr.bf16.mxu0 %v11074_v37  ;;  %11425 = vmatpush3.bf16.msra.mxu1 %v11424_v31  ;;  %v1778_v31 = vld [vmem:[%s20010_s0 + $0xfe8] sm:$0xff]  ;;  %985 = vst [vmem:[#allocation2 + $0x248] sm:$0xff] %v9026_v59  ;;  %v11088_v46 = vpack.c.bf16 %v1734_v13, %v1731_v41  ;;  %v15294_v56 = vld [vmem:[#allocation2 + $0x2a0] sm:$0xff]  ;;  %v11090_v36 = vpack.c.bf16 %v1741_v39, %v1738_v16  ;;  %v1747_v49 = vld [vmem:[%s20010_s0 + $0xef0] sm:$0xff] }
 0x140   : > { %2597 = vmatmul.mubr.f32.gmra.mrb[20].mxu0 %v15005_v14  ;;  %11427 = vmatprep.subr.bf16.mxu1 %v11426_v4  ;;  %v9209_v25 = vpop.f32.mrb[26].mxu1  ;;  %v15250_v4 = vld [vmem:[#allocation2 + $0x1a8] sm:$0xff]  ;;  %v1737_v45 = vld [vmem:[%s20010_s0 + $0xea0] sm:$0xff]  ;;  %v15328_v13 = vld [vmem:[#allocation2 + $0x318] sm:$0xff] }
 0x141   : > { %3932 = vmatmul.mubr.f32.gmra.mrb[132].mxu1 %v15215_v21  ;;  %11077 = vmatpush1.bf16.msra.mxu0 %v11076_v29  ;;  %v9210_v14 = vpop.f32.mrb[27].mxu1  ;;  %v15259_v29 = vld [vmem:[#allocation2 + $0x228] sm:$0xff] }
 0x142   : > { %2602 = vmatprep.mubr.f32.mxu0 %v12787_v47  ;;  %3936 = vmatprep.mubr.f32.mxu1 %v15224_v51  ;;  %v15233_v26 = vadd.f32 %v9210_v14, %v9209_v25  ;;  %v1784_v25 = vld [vmem:[%s20010_s0 + $0x1018] sm:$0xff]  ;;  %v12793_v14 = vld [vmem:[#allocation2 + $0x650] sm:$0xff]  ;;  %v12797_v41 = vld [vmem:[#allocation2 + $0x6c8] sm:$0xff] }
 0x143   : > { %11079 = vmatprep.subr.bf16.mxu0 %v11078_v6  ;;  %11429 = vmatpush3.bf16.msra.mxu1 %v11428_v30  ;;  %v11436_v6 = vpack.c.bf16 %v1778_v31, %v1775_v7  ;;  %v11438_v30 = vpack.c.bf16 %v1832_v5, %v1829_v8  ;;  %v1740_v47 = vld [vmem:[%s20010_s0 + $0xeb8] sm:$0xff]  ;;  %v11440_v48 = vpack.c.bf16 %v1784_v25, %v1781_v11  ;;  %v1787_v7 = vld [vmem:[%s20010_s0 + $0x1030] sm:$0xff]  ;;  %v1790_v31 = vld [vmem:[%s20010_s0 + $0x1048] sm:$0xff] }
 0x144   : > { %2603 = vmatmul.mubr.f32.gmra.mrb[22].mxu0 %v15025_v35  ;;  %11431 = vmatprep.subr.bf16.mxu1 %v11430_v3  ;;  %v9212_v37 = vpop.f32.mrb[28].mxu1  ;;  %v9010_v3 = vld [vmem:[%s13174_s18 + $0x122] sm:$0xff]  ;;  %v9028_v11 = vld [vmem:[%s13174_s18 + $0x133] sm:$0xff] }
 0x145   : > { %3937 = vmatmul.mubr.f32.gmra.mrb[134].mxu1 %v15250_v4  ;;  %11081 = vmatpush1.bf16.msra.mxu0 %v11080_v43  ;;  %v9213_v35 = vpop.f32.mrb[29].mxu1  ;;  %v1838_v43 = vld [vmem:[%s20010_s0 + $0x11c8] sm:$0xff]  ;;  %953 = vst [vmem:[#allocation2 + $0x240] sm:$0xff] %v9010_v3  ;;  %v1841_v5 = vld [vmem:[%s20010_s0 + $0x11e0] sm:$0xff]  ;;  %987 = vst [vmem:[#allocation2 + $0x338] sm:$0xff] %v9028_v11 }
 0x146   : > { %2608 = vmatprep.mubr.f32.mxu0 %v12790_v9  ;;  %3941 = vmatprep.mubr.f32.mxu1 %v15259_v29  ;;  %v15268_v57 = vadd.f32 %v9213_v35, %v9212_v37  ;;  %v11092_v35 = vpack.c.bf16 %v1740_v47, %v1737_v45  ;;  %v1844_v9 = vld [vmem:[%s20010_s0 + $0x11f8] sm:$0xff]  ;;  %v1746_v16 = vld [vmem:[%s20010_s0 + $0xee8] sm:$0xff]  ;;  %v1895_v47 = vld [vmem:[%s20010_s0 + $0x1390] sm:$0xff] }
 0x147   : > { %11083 = vmatprep.subr.bf16.mxu0 %v11082_v44  ;;  %11433 = vmatpush3.bf16.msra.mxu1 %v11432_v55  ;;  %v1744_v44 = vld [vmem:[%s20010_s0 + $0xed8] sm:$0xff]  ;;  %v9027_v55 = vld [vmem:[%s13174_s18 + $0x12b] sm:$0xff]  ;;  %v11446_v3 = vpack.c.bf16 %v1844_v9, %v1841_v5 }
 0x148   : > { %2609 = vmatmul.mubr.f32.gmra.mrb[24].mxu0 %v15045_v61  ;;  %v9215_v62 = vpop.f32.mrb[30].mxu1  ;;  %11435 = vmatprep.subr.bf16.mxu1 %v11434_v38  ;;  %v11442_v38 = vpack.c.bf16 %v1838_v43, %v1835_v52  ;;  %986 = vst [vmem:[#allocation2 + $0x2c0] sm:$0xff] %v9027_v55  ;;  %v1750_v59 = vld [vmem:[%s20010_s0 + $0xf08] sm:$0xff]  ;;  %v9012_v43 = vld [vmem:[%s13174_s18 + $0x132] sm:$0xff] }
 0x149   : > { %3942 = vmatmul.mubr.f32.gmra.mrb[136].mxu1 %v15285_v1  ;;  %11085 = vmatpush1.bf16.msra.mxu0 %v11084_v17  ;;  %v9216_v61 = vpop.f32.mrb[31].mxu1  ;;  %v15319_v17 = vld [vmem:[#allocation2 + $0x298] sm:$0xff]  ;;  %955 = vst [vmem:[#allocation2 + $0x330] sm:$0xff] %v9012_v43  ;;  %v12802_v9 = vld [vmem:[#allocation2 + $0x48] sm:$0xff] }
 0x14a   : > { %2614 = vmatprep.mubr.f32.mxu0 %v12793_v14  ;;  %3946 = vmatprep.mubr.f32.mxu1 %v15294_v56  ;;  %v15303_v20 = vadd.f32 %v9216_v61, %v9215_v62  ;;  %v1753_v62 = vld [vmem:[%s20010_s0 + $0xf20] sm:$0xff]  ;;  %v1796_v61 = vld [vmem:[%s20010_s0 + $0x1078] sm:$0xff]  ;;  %v15355_v14 = vld [vmem:[#allocation2 + $0x310] sm:$0xff] }
 0x14b   : > { %11087 = vmatprep.subr.bf16.mxu0 %v11086_v32  ;;  %11437 = vmatpush3.bf16.msra.mxu1 %v11436_v6  ;;  %v1743_v32 = vld [vmem:[%s20010_s0 + $0xed0] sm:$0xff]  ;;  %v11094_v6 = vpack.c.bf16 %v1747_v49, %v1744_v44  ;;  %v1749_v44 = vld [vmem:[%s20010_s0 + $0xf00] sm:$0xff]  ;;  %v1752_v49 = vld [vmem:[%s20010_s0 + $0xf18] sm:$0xff]  ;;  %v11098_v55 = vpack.c.bf16 %v1753_v62, %v1750_v59 }
 0x14c   : > { %2615 = vmatmul.mubr.f32.gmra.mrb[26].mxu0 %v12795_v33  ;;  %v9250_v37 = vpop.f32.mrb[32].mxu1  ;;  %11439 = vmatprep.subr.bf16.mxu1 %v11438_v30  ;;  %v11444_v30 = vpack.c.bf16 %v1790_v31, %v1787_v7  ;;  %v1762_v59 = vld [vmem:[%s20010_s0 + $0xf68] sm:$0xff]  ;;  %v1765_v62 = vld [vmem:[%s20010_s0 + $0xf80] sm:$0xff]  ;;  %v1764_v43 = vld [vmem:[%s20010_s0 + $0xf78] sm:$0xff] }
 0x14d   : > { %3947 = vmatmul.mubr.f32.gmra.mrb[138].mxu1 %v15319_v17  ;;  %11089 = vmatpush1.bf16.msra.mxu0 %v11088_v46  ;;  %v9251_v8 = vpop.f32.mrb[33].mxu1  ;;  %v1793_v46 = vld [vmem:[%s20010_s0 + $0x1060] sm:$0xff] }
 0x14e   : > { %2620 = vmatprep.mubr.f32.mxu0 %v12797_v41  ;;  %3951 = vmatprep.mubr.f32.mxu1 %v15328_v13  ;;  %v9252_v39 = vadd.f32 %v9251_v8, %v9250_v37  ;;  %v11448_v33 = vpack.c.bf16 %v1796_v61, %v1793_v46  ;;  %v9029_v37 = vld [vmem:[%s13174_s18 + $0x13b] sm:$0xff]  ;;  %v15386_v8 = vld [vmem:[#allocation2 + $0x388] sm:$0xff] }
 0x14f   : > { %11091 = vmatprep.subr.bf16.mxu0 %v11090_v36  ;;  %11441 = vmatpush3.bf16.msra.mxu1 %v11440_v48  ;;  %v1898_v36 = vld [vmem:[%s20010_s0 + $0x13a8] sm:$0xff]  ;;  %988 = vst [vmem:[#allocation2 + $0x3b0] sm:$0xff] %v9029_v37  ;;  %v15414_v61 = vld [vmem:[#allocation2 + $0x480] sm:$0xff]  ;;  %v15439_v37 = vld [vmem:[#allocation2 + $0x4f8] sm:$0xff] }
 0x150   : > { %2621 = vmatmul.mubr.f32.gmra.mrb[28].mxu0 %v15087_v28  ;;  %v9253_v25 = vpop.f32.mrb[34].mxu1  ;;  %11443 = vmatprep.subr.bf16.mxu1 %v11442_v38  ;;  %v15352_v52 = vadd.f32 %v9252_v39, %v14902_v19  ;;  %v11096_v28 = vpack.c.bf16 %v1746_v16, %v1743_v32  ;;  %v15365_v19 = vld [vmem:[#allocation2 + $0x390] sm:$0xff]  ;;  %v11450_v31 = vpack.c.bf16 %v1898_v36, %v1895_v47  ;;  %v15389_v41 = vld [vmem:[#allocation2 + $0x408] sm:$0xff] }
 0x151   : > { %3952 = vmatmul.mubr.f32.gmra.mrb[140].mxu1 %v15355_v14  ;;  %11093 = vmatpush1.bf16.msra.mxu0 %v11092_v35  ;;  %v9254_v45 = vpop.f32.mrb[35].mxu1  ;;  %v1759_v38 = vld [vmem:[%s20010_s0 + $0xf50] sm:$0xff]  ;;  %v9013_v35 = vld [vmem:[%s13174_s18 + $0x13a] sm:$0xff]  ;;  %v1758_v32 = vld [vmem:[%s20010_s0 + $0xf48] sm:$0xff] }
 0x152   : > { %2626 = vmatprep.mubr.f32.mxu0 %v15077_v53  ;;  %3956 = vmatprep.mubr.f32.mxu1 %v15365_v19  ;;  %v9255_v48 = vadd.f32 %v9254_v45, %v9253_v25  ;;  %v1756_v53 = vld [vmem:[%s20010_s0 + $0xf38] sm:$0xff]  ;;  %956 = vst [vmem:[#allocation2 + $0x3a8] sm:$0xff] %v9013_v35  ;;  %v9014_v25 = vld [vmem:[%s13174_s18 + $0x142] sm:$0xff]  ;;  %v11106_v45 = vpack.c.bf16 %v1765_v62, %v1762_v59  ;;  %v9031_v47 = vld [vmem:[%s13174_s18 + $0x14b] sm:$0xff] }
 0x153   : > { %11095 = vmatprep.subr.bf16.mxu0 %v11094_v6  ;;  %11445 = vmatpush3.bf16.msra.mxu1 %v11444_v30  ;;  %v11102_v39 = vpack.c.bf16 %v1759_v38, %v1756_v53  ;;  %v9030_v6 = vld [vmem:[%s13174_s18 + $0x143] sm:$0xff]  ;;  %957 = vst [vmem:[#allocation2 + $0x420] sm:$0xff] %v9014_v25  ;;  %v1771_v36 = vld [vmem:[%s20010_s0 + $0xfb0] sm:$0xff]  ;;  %990 = vst [vmem:[#allocation2 + $0x4a0] sm:$0xff] %v9031_v47 }
 0x154   : > { %2627 = vmatmul.mubr.f32.gmra.mrb[30].mxu0 %v15091_v22  ;;  %v9256_v7 = vpop.f32.mrb[36].mxu1  ;;  %11447 = vmatprep.subr.bf16.mxu1 %v11446_v3  ;;  %v15383_v54 = vadd.f32 %v9255_v48, %v14934_v42  ;;  %v11100_v22 = vpack.c.bf16 %v1752_v49, %v1749_v44  ;;  %v1755_v42 = vld [vmem:[%s20010_s0 + $0xf30] sm:$0xff]  ;;  %989 = vst [vmem:[#allocation2 + $0x428] sm:$0xff] %v9030_v6  ;;  %v15410_v3 = vld [vmem:[#allocation2 + $0x400] sm:$0xff]  ;;  %v1770_v53 = vld [vmem:[%s20010_s0 + $0xfa8] sm:$0xff] }
 0x155   : > { %3957 = vmatmul.mubr.f32.gmra.mrb[142].mxu1 %v15386_v8  ;;  %11097 = vmatpush1.bf16.msra.mxu0 %v11096_v28  ;;  %v9257_v5 = vpop.f32.mrb[37].mxu1  ;;  %v9015_v48 = vld [vmem:[%s13174_s18 + $0x14a] sm:$0xff]  ;;  %v1777_v35 = vld [vmem:[%s20010_s0 + $0xfe0] sm:$0xff] }
 0x156   : > { %2697 = vmatprep.mubr.f32.mxu0 %v12802_v9  ;;  %3961 = vmatprep.mubr.f32.mxu1 %v15389_v41  ;;  %v9258_v16 = vadd.f32 %v9257_v5, %v9256_v7  ;;  %958 = vst [vmem:[#allocation2 + $0x498] sm:$0xff] %v9015_v48  ;;  %v9016_v9 = vld [vmem:[%s13174_s18 + $0x152] sm:$0xff]  ;;  %v9033_v62 = vld [vmem:[%s13174_s18 + $0x15b] sm:$0xff] }
 0x157   : > { %11099 = vmatprep.subr.bf16.mxu0 %v11098_v55  ;;  %11449 = vmatpush3.bf16.msra.mxu1 %v11448_v33  ;;  %v15435_v55 = vld [vmem:[#allocation2 + $0x478] sm:$0xff]  ;;  %959 = vst [vmem:[#allocation2 + $0x510] sm:$0xff] %v9016_v9  ;;  %992 = vst [vmem:[#allocation2 + $0x590] sm:$0xff] %v9033_v62  ;;  %v1795_v9 = vld [vmem:[%s20010_s0 + $0x1070] sm:$0xff] }
 0x158   : > { %2698 = vmatmul.mubr.f32.vlgmr.msra.gmra.mrb[0].mxu0 %v15144_v40  ;;  %v15407_v30 = vadd.f32 %v9258_v16, %v14953_v18  ;;  %v9259_v11 = vpop.f32.mrb[38].mxu1  ;;  %11451 = vmatprep.subr.bf16.mxu1 %v11450_v31  ;;  %v11104_v40 = vpack.c.bf16 %v1758_v32, %v1755_v42  ;;  %v1761_v18 = vld [vmem:[%s20010_s0 + $0xf60] sm:$0xff]  ;;  %v9032_v31 = vld [vmem:[%s13174_s18 + $0x153] sm:$0xff] }
 0x159   : > { %3962 = vmatmul.mubr.f32.gmra.mrb[144].mxu1 %v15410_v3  ;;  %11101 = vmatpush1.bf16.msra.mxu0 %v11100_v22  ;;  %v9260_v46 = vpop.f32.mrb[39].mxu1  ;;  %991 = vst [vmem:[#allocation2 + $0x518] sm:$0xff] %v9032_v31  ;;  %v15460_v42 = vld [vmem:[#allocation2 + $0x4f0] sm:$0xff] }
 0x15a   : > { %2703 = vmatprep.mubr.f32.mxu0 %v15154_v60  ;;  %3966 = vmatprep.mubr.f32.mxu1 %v15414_v61  ;;  %v9261_v28 = vadd.f32 %v9260_v46, %v9259_v11  ;;  %v1768_v60 = vld [vmem:[%s20010_s0 + $0xf98] sm:$0xff]  ;;  %v15464_v16 = vld [vmem:[#allocation2 + $0x570] sm:$0xff] }
 0x15b   : > { %11103 = vmatprep.subr.bf16.mxu0 %v11102_v39  ;;  %v11110_v7 = vpack.c.bf16 %v1771_v36, %v1768_v60  ;;  %v1776_v39 = vld [vmem:[%s20010_s0 + $0xfd8] sm:$0xff]  ;;  %v1783_v11 = vld [vmem:[%s20010_s0 + $0x1010] sm:$0xff]  ;;  %v9034_v36 = vld [vmem:[%s13174_s18 + $0x163] sm:$0xff] }
 0x15c   : > { %2704 = vmatmul.mubr.f32.gmra.mrb[2].mxu0 %v15180_v23  ;;  %v15432_v44 = vadd.f32 %v9261_v28, %v14975_v12  ;;  %v9262_v49 = vpop.f32.mrb[40].mxu1  ;;  %v11108_v23 = vpack.c.bf16 %v1764_v43, %v1761_v18  ;;  %v1767_v12 = vld [vmem:[%s20010_s0 + $0xf90] sm:$0xff]  ;;  %v9017_v46 = vld [vmem:[%s13174_s18 + $0x15a] sm:$0xff]  ;;  %v15485_v18 = vld [vmem:[#allocation2 + $0x568] sm:$0xff]  ;;  %993 = vst [vmem:[#allocation2 + $0x608] sm:$0xff] %v9034_v36 }
 0x15d   : > { %3967 = vmatmul.mubr.f32.gmra.mrb[146].mxu1 %v15435_v55  ;;  %11105 = vmatpush1.bf16.msra.mxu0 %v11104_v40  ;;  %v9263_v33 = vpop.f32.mrb[41].mxu1  ;;  %960 = vst [vmem:[#allocation2 + $0x588] sm:$0xff] %v9017_v46  ;;  %v15489_v28 = vld [vmem:[#allocation2 + $0x5e8] sm:$0xff]  ;;  %v1791_v62 = vld [vmem:[%s20010_s0 + $0x1050] sm:$0xff] }
 0x15e   : > { %2709 = vmatprep.mubr.f32.mxu0 %v15189_v15  ;;  %3971 = vmatprep.mubr.f32.mxu1 %v15439_v37  ;;  %v9264_v38 = vadd.f32 %v9263_v33, %v9262_v49  ;;  %v1774_v15 = vld [vmem:[%s20010_s0 + $0xfc8] sm:$0xff]  ;;  %v1789_v49 = vld [vmem:[%s20010_s0 + $0x1040] sm:$0xff] }
 0x15f   : > { %11107 = vmatprep.subr.bf16.mxu0 %v11106_v45  ;;  %v11114_v59 = vpack.c.bf16 %v1777_v35, %v1774_v15  ;;  %v1782_v45 = vld [vmem:[%s20010_s0 + $0x1008] sm:$0xff] }
 0x160   : > { %2710 = vmatmul.mubr.f32.gmra.mrb[4].mxu0 %v15215_v21  ;;  %v15457_v22 = vadd.f32 %v9264_v38, %v14995_v63  ;;  %v9265_v5 = vpop.f32.mrb[42].mxu1  ;;  %v11112_v21 = vpack.c.bf16 %v1770_v53, %v1767_v12  ;;  %v1773_v63 = vld [vmem:[%s20010_s0 + $0xfc0] sm:$0xff]  ;;  %v9035_v35 = vld [vmem:[%s13174_s18 + $0x16b] sm:$0xff] }
 0x161   : > { %3972 = vmatmul.mubr.f32.gmra.mrb[148].mxu1 %v15460_v42  ;;  %11109 = vmatpush1.bf16.msra.mxu0 %v11108_v23  ;;  %v9266_v32 = vpop.f32.mrb[43].mxu1  ;;  %v9018_v33 = vld [vmem:[%s13174_s18 + $0x162] sm:$0xff]  ;;  %994 = vst [vmem:[#allocation2 + $0x680] sm:$0xff] %v9035_v35  ;;  %v1904_v35 = vld [vmem:[%s20010_s0 + $0x13d8] sm:$0xff] }
 0x162   : > { %2715 = vmatprep.mubr.f32.mxu0 %v15224_v51  ;;  %3976 = vmatprep.mubr.f32.mxu1 %v15464_v16  ;;  %v9267_v6 = vadd.f32 %v9266_v32, %v9265_v5  ;;  %v1780_v51 = vld [vmem:[%s20010_s0 + $0xff8] sm:$0xff]  ;;  %v15510_v12 = vld [vmem:[#allocation2 + $0x5e0] sm:$0xff]  ;;  %961 = vst [vmem:[#allocation2 + $0x600] sm:$0xff] %v9018_v33 }
 0x163   : > { %11111 = vmatprep.subr.bf16.mxu0 %v11110_v7  ;;  %v11118_v60 = vpack.c.bf16 %v1783_v11, %v1780_v51  ;;  %v15514_v38 = vld [vmem:[#allocation2 + $0x660] sm:$0xff]  ;;  %v1788_v7 = vld [vmem:[%s20010_s0 + $0x1038] sm:$0xff]  ;;  %v1794_v51 = vld [vmem:[%s20010_s0 + $0x1068] sm:$0xff] }
 0x164   : > { %2716 = vmatmul.mubr.f32.gmra.mrb[6].mxu0 %v15250_v4  ;;  %v15482_v25 = vadd.f32 %v9267_v6, %v15015_v58  ;;  %v9268_v40 = vpop.f32.mrb[44].mxu1  ;;  %v11116_v4 = vpack.c.bf16 %v1776_v39, %v1773_v63  ;;  %v1779_v58 = vld [vmem:[%s20010_s0 + $0xff0] sm:$0xff]  ;;  %v9037_v5 = vld [vmem:[%s13174_s18 + $0x17b] sm:$0xf] }
 0x165   : > { %3977 = vmatmul.mubr.f32.gmra.mrb[150].mxu1 %v15485_v18  ;;  %11113 = vmatpush1.bf16.msra.mxu0 %v11112_v21  ;;  %v9269_v43 = vpop.f32.mrb[45].mxu1  ;;  %v9019_v63 = vld [vmem:[%s13174_s18 + $0x16a] sm:$0xff]  ;;  %996 = vst [vmem:[#allocation2 + $0x770] sm:$0xf] %v9037_v5  ;;  %v9021_v39 = vld [vmem:[%s13174_s18 + $0x17a] sm:$0xf] }
 0x166   : > { %2721 = vmatprep.mubr.f32.mxu0 %v15259_v29  ;;  %3981 = vmatprep.mubr.f32.mxu1 %v15489_v28  ;;  %v9270_v47 = vadd.f32 %v9269_v43, %v9268_v40  ;;  %v1786_v29 = vld [vmem:[%s20010_s0 + $0x1028] sm:$0xff]  ;;  %v15537_v6 = vld [vmem:[#allocation2 + $0x658] sm:$0xff]  ;;  %962 = vst [vmem:[#allocation2 + $0x678] sm:$0xff] %v9019_v63  ;;  %964 = vst [vmem:[#allocation2 + $0x768] sm:$0xf] %v9021_v39 }
 0x167   : > { %11115 = vmatprep.subr.bf16.mxu0 %v11114_v59  ;;  %v11122_v15 = vpack.c.bf16 %v1789_v49, %v1786_v29  ;;  %v15550_v40 = vld [vmem:[#allocation2 + $0x750] sm:$0xf]  ;;  %v1801_v43 = vld [vmem:[%s20010_s0 + $0x10a0] sm:$0xff]  ;;  %v15569_v29 = vld [vmem:[#allocation2 + $0x748] sm:$0xf] }
 0x168   : > { %2722 = vmatmul.mubr.f32.gmra.mrb[8].mxu0 %v15285_v1  ;;  %v15507_v48 = vadd.f32 %v9270_v47, %v15035_v0  ;;  %v9271_v23 = vpop.f32.mrb[46].mxu1  ;;  %v11120_v1 = vpack.c.bf16 %v1782_v45, %v1779_v58  ;;  %v1785_v0 = vld [vmem:[%s20010_s0 + $0x1020] sm:$0xff]  ;;  %v9020_v47 = vld [vmem:[%s13174_s18 + $0x172] sm:$0xff] }
 0x169   : > { %3982 = vmatmul.mubr.f32.gmra.mrb[152].mxu1 %v15510_v12  ;;  %11117 = vmatpush1.bf16.msra.mxu0 %v11116_v4  ;;  %v9272_v53 = vpop.f32.mrb[47].mxu1  ;;  %v11124_v59 = vpack.c.bf16 %v1788_v7, %v1785_v0  ;;  %v9036_v4 = vld [vmem:[%s13174_s18 + $0x173] sm:$0xff]  ;;  %963 = vst [vmem:[#allocation2 + $0x6f0] sm:$0xff] %v9020_v47  ;;  %v1850_v7 = vld [vmem:[%s20010_s0 + $0x1228] sm:$0xff]  ;;  %v1813_v39 = vld [vmem:[%s20010_s0 + $0x1100] sm:$0xff] }
 0x16a   : > { %2727 = vmatprep.mubr.f32.mxu0 %v15294_v56  ;;  %3986 = vmatprep.mubr.f32.mxu1 %v15514_v38  ;;  %v9273_v31 = vadd.f32 %v9272_v53, %v9271_v23  ;;  %v1792_v56 = vld [vmem:[%s20010_s0 + $0x1058] sm:$0xff]  ;;  %995 = vst [vmem:[#allocation2 + $0x6f8] sm:$0xff] %v9036_v4  ;;  %v1847_v0 = vld [vmem:[%s20010_s0 + $0x1210] sm:$0xff] }
 0x16b   : > { %11119 = vmatprep.subr.bf16.mxu0 %v11118_v60  ;;  %v11126_v46 = vpack.c.bf16 %v1795_v9, %v1792_v56  ;;  %v15564_v60 = vld [vmem:[#allocation2 + $0x6d0] sm:$0xff]  ;;  %v1800_v49 = vld [vmem:[%s20010_s0 + $0x1098] sm:$0xff]  ;;  %v1901_v56 = vld [vmem:[%s20010_s0 + $0x13c0] sm:$0xff] }
 0x16c   : > { %2728 = vmatmul.mubr.f32.gmra.mrb[10].mxu0 %v15319_v17  ;;  %v15533_v21 = vadd.f32 %v9273_v31, %v15055_v27  ;;  %v9274_v32 = vpop.f32.mrb[48].mxu1  ;;  %v15541_v27 = vld [vmem:[#allocation2 + $0x6d8] sm:$0xff]  ;;  %v1806_v9 = vld [vmem:[%s20010_s0 + $0x10c8] sm:$0xff]  ;;  %v1907_v47 = vld [vmem:[%s20010_s0 + $0x13f0] sm:$0xff] }
 0x16d   : > { %3987 = vmatmul.mubr.f32.gmra.mrb[154].mxu1 %v15537_v6  ;;  %11121 = vmatpush1.bf16.msra.mxu0 %v11120_v1  ;;  %v9275_v17 = vpop.f32.mrb[49].mxu1  ;;  %v1804_v1 = vld [vmem:[%s20010_s0 + $0x10b8] sm:$0xff] }
 0x16e   : > { %2733 = vmatprep.mubr.f32.mxu0 %v15328_v13  ;;  %3991 = vmatprep.mubr.f32.mxu1 %v15541_v27  ;;  %v9276_v11 = vadd.f32 %v9275_v17, %v9274_v32  ;;  %v1798_v13 = vld [vmem:[%s20010_s0 + $0x1088] sm:$0xff]  ;;  %v15601_v5 = vld [vmem:[#allocation2 + $0x58] sm:$0xff] }
 0x16f   : > { %11123 = vmatprep.subr.bf16.mxu0 %v11122_v15  ;;  %v11130_v33 = vpack.c.bf16 %v1801_v43, %v1798_v13  ;;  %v9038_v17 = vld [vmem:[%s13174_s18 + $0x104] sm:$0xff]  ;;  %v9039_v13 = vld [vmem:[%s13174_s18 + $0x10c] sm:$0xff] }
 0x170   : > { %2734 = vmatmul.mubr.f32.gmra.mrb[12].mxu0 %v15355_v14  ;;  %v15561_v58 = vadd.f32 %v9276_v11, %v15075_v50  ;;  %v9277_v45 = vpop.f32.mrb[50].mxu1  ;;  %v11128_v14 = vpack.c.bf16 %v1794_v51, %v1791_v62  ;;  %v1797_v50 = vld [vmem:[%s20010_s0 + $0x1080] sm:$0xff]  ;;  %v11454_v51 = vpack.c.bf16 %v1904_v35, %v1901_v56  ;;  %1013 = vst [vmem:[#allocation2 + $0x70] sm:$0xff] %v9038_v17  ;;  %v15628_v43 = vld [vmem:[#allocation2 + $0x50] sm:$0xff]  ;;  %1014 = vst [vmem:[#allocation2 + $0xe8] sm:$0xff] %v9039_v13 }
 0x171   : > { %3992 = vmatmul.mubr.f32.gmra.mrb[156].mxu1 %v15564_v60  ;;  %11125 = vmatpush1.bf16.msra.mxu0 %v11124_v59  ;;  %v9278_v36 = vpop.f32.mrb[51].mxu1  ;;  %v11452_v59 = vpack.c.bf16 %v1850_v7, %v1847_v0  ;;  %v1853_v11 = vld [vmem:[%s20010_s0 + $0x1240] sm:$0xff]  ;;  %v1859_v7 = vld [vmem:[%s20010_s0 + $0x1270] sm:$0xff]  ;;  %v15665_v35 = vld [vmem:[#allocation2 + $0xc8] sm:$0xff] }
 0x172   : > { %2739 = vmatprep.mubr.f32.mxu0 %v15365_v19  ;;  %3996 = vmatprep.mubr.f32.mxu1 %v15550_v40  ;;  %v9279_v23 = vadd.f32 %v9278_v36, %v9277_v45  ;;  %v1807_v19 = vld [vmem:[%s20010_s0 + $0x10d0] sm:$0xff]  ;;  %v1809_v36 = vld [vmem:[%s20010_s0 + $0x10e0] sm:$0xff] }
 0x173   : > { %11127 = vmatprep.subr.bf16.mxu0 %v11126_v46  ;;  %v11134_v63 = vpack.c.bf16 %v1807_v19, %v1804_v1  ;;  %v1856_v46 = vld [vmem:[%s20010_s0 + $0x1258] sm:$0xff]  ;;  %v1825_v17 = vld [vmem:[%s20010_s0 + $0x1160] sm:$0xff] }
 0x174   : > { %2740 = vmatmul.mubr.f32.gmra.mrb[14].mxu0 %v15386_v8  ;;  %v9280_v53 = vpop.f32.mrb[52].mxu1  ;;  %v15591_v31 = vadd.f32 %v9279_v23, %v15099_v24  ;;  %v11132_v8 = vpack.c.bf16 %v1800_v49, %v1797_v50  ;;  %v1803_v24 = vld [vmem:[%s20010_s0 + $0x10b0] sm:$0xff]  ;;  %v1812_v50 = vld [vmem:[%s20010_s0 + $0x10f8] sm:$0xff]  ;;  %v11456_v1 = vpack.c.bf16 %v1856_v46, %v1853_v11  ;;  %v1865_v13 = vld [vmem:[%s20010_s0 + $0x12a0] sm:$0xff] }
 0x175   : > { %3997 = vmatmul.mubr.f32.gmra.mrb[158].mxu1 %v15569_v29  ;;  %11129 = vmatpush1.bf16.msra.mxu0 %v11128_v14  ;;  %v9281_v15 = vpop.f32.mrb[53].mxu1  ;;  %v1910_v14 = vld [vmem:[%s20010_s0 + $0x1408] sm:$0xff]  ;;  %v9040_v19 = vld [vmem:[%s13174_s18 + $0x114] sm:$0xff]  ;;  %v9041_v56 = vld [vmem:[%s13174_s18 + $0x11c] sm:$0xff] }
 0x176   : > { %2745 = vmatprep.mubr.f32.mxu0 %v15389_v41  ;;  %4066 = vmatprep.mubr.f32.mxu1 %v15601_v5  ;;  %v9282_v32 = vadd.f32 %v9281_v15, %v9280_v53  ;;  %v1810_v41 = vld [vmem:[%s20010_s0 + $0x10e8] sm:$0xff]  ;;  %v11458_v0 = vpack.c.bf16 %v1910_v14, %v1907_v47  ;;  %1015 = vst [vmem:[#allocation2 + $0x160] sm:$0xff] %v9040_v19  ;;  %1016 = vst [vmem:[#allocation2 + $0x1d8] sm:$0xff] %v9041_v56  ;;  %v15702_v14 = vld [vmem:[#allocation2 + $0x140] sm:$0xff] }
 0x177   : > { %11131 = vmatprep.subr.bf16.mxu0 %v11130_v33  ;;  %v11138_v23 = vpack.c.bf16 %v1813_v39, %v1810_v41  ;;  %v1819_v33 = vld [vmem:[%s20010_s0 + $0x1130] sm:$0xff]  ;;  %v1818_v39 = vld [vmem:[%s20010_s0 + $0x1128] sm:$0xff] }
 0x178   : > { %2746 = vmatmul.mubr.f32.gmra.mrb[16].mxu0 %v15410_v3  ;;  %v9283_v62 = vpop.f32.mrb[54].mxu1  ;;  %v15625_v4 = vadd.f32 %v9282_v32, %v15127_v2  ;;  %v11136_v3 = vpack.c.bf16 %v1806_v9, %v1803_v24  ;;  %v15638_v2 = vld [vmem:[#allocation2 + $0xd0] sm:$0xff]  ;;  %v1913_v9 = vld [vmem:[%s20010_s0 + $0x1420] sm:$0xff]  ;;  %v1916_v32 = vld [vmem:[%s20010_s0 + $0x1438] sm:$0xff] }
 0x179   : > { %4067 = vmatmul.mubr.f32.vlgmr.msra.gmra.mrb[160].mxu1 %v15628_v43  ;;  %11133 = vmatpush1.bf16.msra.mxu0 %v11132_v8  ;;  %v9284_v45 = vpop.f32.mrb[55].mxu1  ;;  %v1862_v8 = vld [vmem:[%s20010_s0 + $0x1288] sm:$0xff]  ;;  %v1815_v41 = vld [vmem:[%s20010_s0 + $0x1110] sm:$0xff]  ;;  %v11462_v46 = vpack.c.bf16 %v1916_v32, %v1913_v9  ;;  %v9045_v9 = vld [vmem:[%s13174_s18 + $0x13c] sm:$0xff] }
 0x17a   : > { %2751 = vmatprep.mubr.f32.mxu0 %v15414_v61  ;;  %4071 = vmatprep.mubr.f32.mxu1 %v15638_v2  ;;  %v9285_v49 = vadd.f32 %v9284_v45, %v9283_v62  ;;  %v1816_v61 = vld [vmem:[%s20010_s0 + $0x1118] sm:$0xff]  ;;  %v11460_v62 = vpack.c.bf16 %v1862_v8, %v1859_v7  ;;  %v9043_v47 = vld [vmem:[%s13174_s18 + $0x12c] sm:$0xff]  ;;  %1020 = vst [vmem:[#allocation2 + $0x3b8] sm:$0xff] %v9045_v9 }
 0x17b   : > { %11135 = vmatprep.subr.bf16.mxu0 %v11134_v63  ;;  %11453 = vmatpush3.bf16.msra.mxu1 %v11452_v59  ;;  %v11142_v59 = vpack.c.bf16 %v1819_v33, %v1816_v61  ;;  %1018 = vst [vmem:[#allocation2 + $0x2c8] sm:$0xff] %v9043_v47  ;;  %v1821_v61 = vld [vmem:[%s20010_s0 + $0x1140] sm:$0xff]  ;;  %v1824_v33 = vld [vmem:[%s20010_s0 + $0x1158] sm:$0xff]  ;;  %v1831_v19 = vld [vmem:[%s20010_s0 + $0x1190] sm:$0xff] }
 0x17c   : > { %2752 = vmatmul.mubr.f32.gmra.mrb[18].mxu0 %v15435_v55  ;;  %v9286_v53 = vpop.f32.mrb[56].mxu1  ;;  %11455 = vmatprep.subr.bf16.mxu1 %v11454_v51  ;;  %v15662_v15 = vadd.f32 %v9285_v49, %v15163_v34  ;;  %v11140_v55 = vpack.c.bf16 %v1812_v50, %v1809_v36  ;;  %v15675_v34 = vld [vmem:[#allocation2 + $0x148] sm:$0xff]  ;;  %v1919_v50 = vld [vmem:[%s20010_s0 + $0x1450] sm:$0xff]  ;;  %v15739_v32 = vld [vmem:[#allocation2 + $0x1b8] sm:$0xff] }
 0x17d   : > { %4072 = vmatmul.mubr.f32.gmra.mrb[162].mxu1 %v15665_v35  ;;  %11137 = vmatpush1.bf16.msra.mxu0 %v11136_v3  ;;  %v9287_v24 = vpop.f32.mrb[57].mxu1  ;;  %v9042_v51 = vld [vmem:[%s13174_s18 + $0x124] sm:$0xff]  ;;  %v1868_v3 = vld [vmem:[%s20010_s0 + $0x12b8] sm:$0xff]  ;;  %v1871_v56 = vld [vmem:[%s20010_s0 + $0x12d0] sm:$0xff] }
 0x17e   : > { %2757 = vmatprep.mubr.f32.mxu0 %v15439_v37  ;;  %4076 = vmatprep.mubr.f32.mxu1 %v15675_v34  ;;  %v9288_v63 = vadd.f32 %v9287_v24, %v9286_v53  ;;  %v1822_v37 = vld [vmem:[%s20010_s0 + $0x1148] sm:$0xff]  ;;  %1017 = vst [vmem:[#allocation2 + $0x250] sm:$0xff] %v9042_v51  ;;  %v11464_v53 = vpack.c.bf16 %v1868_v3, %v1865_v13  ;;  %v1837_v51 = vld [vmem:[%s20010_s0 + $0x11c0] sm:$0xff] }
 0x17f   : > { %11139 = vmatprep.subr.bf16.mxu0 %v11138_v23  ;;  %11457 = vmatpush3.bf16.msra.mxu1 %v11456_v1  ;;  %v1922_v49 = vld [vmem:[%s20010_s0 + $0x1468] sm:$0xff]  ;;  %v11146_v1 = vpack.c.bf16 %v1825_v17, %v1822_v37  ;;  %v1827_v37 = vld [vmem:[%s20010_s0 + $0x1170] sm:$0xff]  ;;  %v1877_v47 = vld [vmem:[%s20010_s0 + $0x1300] sm:$0xff] }
 0x180   : > { %2758 = vmatmul.mubr.f32.gmra.mrb[20].mxu0 %v15460_v42  ;;  %v9289_v11 = vpop.f32.mrb[58].mxu1  ;;  %11459 = vmatprep.subr.bf16.mxu1 %v11458_v0  ;;  %v15699_v45 = vadd.f32 %v9288_v63, %v15198_v10  ;;  %v11144_v42 = vpack.c.bf16 %v1818_v39, %v1815_v41  ;;  %v15712_v10 = vld [vmem:[#allocation2 + $0x1c0] sm:$0xff]  ;;  %v9044_v0 = vld [vmem:[%s13174_s18 + $0x134] sm:$0xff]  ;;  %v11466_v8 = vpack.c.bf16 %v1922_v49, %v1919_v50  ;;  %v1830_v17 = vld [vmem:[%s20010_s0 + $0x1188] sm:$0xff] }
 0x181   : > { %4077 = vmatmul.mubr.f32.gmra.mrb[164].mxu1 %v15702_v14  ;;  %11141 = vmatpush1.bf16.msra.mxu0 %v11140_v55  ;;  %v9290_v36 = vpop.f32.mrb[59].mxu1  ;;  %v1874_v55 = vld [vmem:[%s20010_s0 + $0x12e8] sm:$0xff]  ;;  %1019 = vst [vmem:[#allocation2 + $0x340] sm:$0xff] %v9044_v0  ;;  %v11148_v63 = vpack.c.bf16 %v1824_v33, %v1821_v61  ;;  %v1925_v41 = vld [vmem:[%s20010_s0 + $0x1480] sm:$0xff]  ;;  %v1928_v39 = vld [vmem:[%s20010_s0 + $0x1498] sm:$0xff] }
 0x182   : > { %2763 = vmatprep.mubr.f32.mxu0 %v15464_v16  ;;  %4081 = vmatprep.mubr.f32.mxu1 %v15712_v10  ;;  %v9291_v23 = vadd.f32 %v9290_v36, %v9289_v11  ;;  %v1828_v16 = vld [vmem:[%s20010_s0 + $0x1178] sm:$0xff]  ;;  %v11468_v11 = vpack.c.bf16 %v1874_v55, %v1871_v56  ;;  %v11470_v3 = vpack.c.bf16 %v1928_v39, %v1925_v41  ;;  %v9047_v50 = vld [vmem:[%s13174_s18 + $0x14c] sm:$0xff] }
 0x183   : > { %11143 = vmatprep.subr.bf16.mxu0 %v11142_v59  ;;  %11461 = vmatpush3.bf16.msra.mxu1 %v11460_v62  ;;  %v11150_v62 = vpack.c.bf16 %v1831_v19, %v1828_v16  ;;  %v15776_v49 = vld [vmem:[#allocation2 + $0x230] sm:$0xff]  ;;  %v1934_v33 = vld [vmem:[%s20010_s0 + $0x14c8] sm:$0xff]  ;;  %1022 = vst [vmem:[#allocation2 + $0x4a8] sm:$0xff] %v9047_v50  ;;  %v1833_v16 = vld [vmem:[%s20010_s0 + $0x11a0] sm:$0xff] }
 0x184   : > { %2764 = vmatmul.mubr.f32.gmra.mrb[22].mxu0 %v15485_v18  ;;  %v9292_v7 = vpop.f32.mrb[60].mxu1  ;;  %11463 = vmatprep.subr.bf16.mxu1 %v11462_v46  ;;  %v15736_v24 = vadd.f32 %v9291_v23, %v15233_v26  ;;  %v15749_v26 = vld [vmem:[#allocation2 + $0x238] sm:$0xff]  ;;  %v9046_v46 = vld [vmem:[%s13174_s18 + $0x144] sm:$0xff]  ;;  %v11152_v23 = vpack.c.bf16 %v1830_v17, %v1827_v37  ;;  %v1931_v61 = vld [vmem:[%s20010_s0 + $0x14b0] sm:$0xff] }
 0x185   : > { %4082 = vmatmul.mubr.f32.gmra.mrb[166].mxu1 %v15739_v32  ;;  %11145 = vmatpush1.bf16.msra.mxu0 %v11144_v42  ;;  %v9293_v18 = vpop.f32.mrb[61].mxu1  ;;  %v1880_v42 = vld [vmem:[%s20010_s0 + $0x1318] sm:$0xff]  ;;  %1021 = vst [vmem:[#allocation2 + $0x430] sm:$0xff] %v9046_v46  ;;  %v1843_v0 = vld [vmem:[%s20010_s0 + $0x11f0] sm:$0xff]  ;;  %v11474_v9 = vpack.c.bf16 %v1934_v33, %v1931_v61  ;;  %v15814_v37 = vld [vmem:[#allocation2 + $0x2a8] sm:$0xff] }
 0x186   : > { %2769 = vmatprep.mubr.f32.mxu0 %v15489_v28  ;;  %4086 = vmatprep.mubr.f32.mxu1 %v15749_v26  ;;  %v9294_v59 = vadd.f32 %v9293_v18, %v9292_v7  ;;  %v1834_v28 = vld [vmem:[%s20010_s0 + $0x11a8] sm:$0xff]  ;;  %v1836_v19 = vld [vmem:[%s20010_s0 + $0x11b8] sm:$0xff]  ;;  %v11472_v7 = vpack.c.bf16 %v1880_v42, %v1877_v47 }
 0x187   : > { %11147 = vmatprep.subr.bf16.mxu0 %v11146_v1  ;;  %11465 = vmatpush3.bf16.msra.mxu1 %v11464_v53  ;;  %v15786_v1 = vld [vmem:[#allocation2 + $0x2b0] sm:$0xff]  ;;  %v1840_v53 = vld [vmem:[%s20010_s0 + $0x11d8] sm:$0xff]  ;;  %v1886_v18 = vld [vmem:[%s20010_s0 + $0x1348] sm:$0xff]  ;;  %v11156_v17 = vpack.c.bf16 %v1836_v19, %v1833_v16 }
 0x188   : > { %2770 = vmatmul.mubr.f32.gmra.mrb[24].mxu0 %v15510_v12  ;;  %v9295_v13 = vpop.f32.mrb[62].mxu1  ;;  %11467 = vmatprep.subr.bf16.mxu1 %v11466_v8  ;;  %v15773_v36 = vadd.f32 %v9294_v59, %v15268_v57  ;;  %v1883_v8 = vld [vmem:[%s20010_s0 + $0x1330] sm:$0xff]  ;;  %v9049_v41 = vld [vmem:[%s13174_s18 + $0x15c] sm:$0xff]  ;;  %v11158_v46 = vpack.c.bf16 %v1843_v0, %v1840_v53  ;;  %v9050_v47 = vld [vmem:[%s13174_s18 + $0x164] sm:$0xff] }
 0x189   : > { %4087 = vmatmul.mubr.f32.gmra.mrb[168].mxu1 %v15776_v49  ;;  %11149 = vmatpush1.bf16.msra.mxu0 %v11148_v63  ;;  %v9296_v12 = vpop.f32.mrb[63].mxu1  ;;  %v9048_v56 = vld [vmem:[%s13174_s18 + $0x154] sm:$0xff]  ;;  %v9053_v39 = vld [vmem:[%s13174_s18 + $0x17c] sm:$0xf]  ;;  %1024 = vst [vmem:[#allocation2 + $0x598] sm:$0xff] %v9049_v41  ;;  %1025 = vst [vmem:[#allocation2 + $0x610] sm:$0xff] %v9050_v47 }
 0x18a   : > { %v9297_v57 = vadd.f32 %v9296_v12, %v9295_v13  ;;  %2775 = vmatprep.mubr.f32.mxu0 %v15514_v38  ;;  %4091 = vmatprep.mubr.f32.mxu1 %v15786_v1  ;;  %v11154_v38 = vpack.c.bf16 %v1837_v51, %v1834_v28  ;;  %1023 = vst [vmem:[#allocation2 + $0x520] sm:$0xff] %v9048_v56  ;;  %1028 = vst [vmem:[#allocation2 + $0x778] sm:$0xf] %v9053_v39  ;;  %v15824_v28 = vld [vmem:[#allocation2 + $0x328] sm:$0xff]  ;;  %v1839_v51 = vld [vmem:[%s20010_s0 + $0x11d0] sm:$0xff] }
 0x18b   : > { %11151 = vmatprep.subr.bf16.mxu0 %v11150_v62  ;;  %11469 = vmatpush3.bf16.msra.mxu1 %v11468_v11  ;;  %v1842_v11 = vld [vmem:[%s20010_s0 + $0x11e8] sm:$0xff]  ;;  %v1889_v12 = vld [vmem:[%s20010_s0 + $0x1360] sm:$0xff]  ;;  %v1943_v19 = vld [vmem:[%s20010_s0 + $0x1510] sm:$0xff] }
 0x18c   : > { %v9330_v55 = vpop.f32.mrb[64].mxu1  ;;  %2776 = vmatmul.mubr.f32.gmra.mrb[26].mxu0 %v15537_v6  ;;  %11471 = vmatprep.subr.bf16.mxu1 %v11470_v3  ;;  %v15810_v63 = vadd.f32 %v9297_v57, %v15303_v20  ;;  %v1937_v6 = vld [vmem:[%s20010_s0 + $0x14e0] sm:$0xff]  ;;  %v1940_v20 = vld [vmem:[%s20010_s0 + $0x14f8] sm:$0xff]  ;;  %v1846_v13 = vld [vmem:[%s20010_s0 + $0x1208] sm:$0xff]  ;;  %v11476_v3 = vpack.c.bf16 %v1886_v18, %v1883_v8 }
 0x18d   : > { %v9331_v59 = vpop.f32.mrb[65].mxu1  ;;  %4092 = vmatmul.mubr.f32.gmra.mrb[170].mxu1 %v15814_v37  ;;  %11153 = vmatpush1.bf16.msra.mxu0 %v11152_v23  ;;  %v11478_v50 = vpack.c.bf16 %v1940_v20, %v1937_v6  ;;  %v1892_v23 = vld [vmem:[%s20010_s0 + $0x1378] sm:$0xff]  ;;  %v9051_v33 = vld [vmem:[%s13174_s18 + $0x16c] sm:$0xff]  ;;  %v15851_v16 = vld [vmem:[#allocation2 + $0x320] sm:$0xff] }
 0x18e   : > { %v9332_v62 = vadd.f32 %v9331_v59, %v9330_v55  ;;  %2781 = vmatprep.mubr.f32.mxu0 %v15541_v27  ;;  %4096 = vmatprep.mubr.f32.mxu1 %v15824_v28  ;;  %v1849_v27 = vld [vmem:[%s20010_s0 + $0x1220] sm:$0xff]  ;;  %v1946_v53 = vld [vmem:[%s20010_s0 + $0x1528] sm:$0xff]  ;;  %1026 = vst [vmem:[#allocation2 + $0x688] sm:$0xff] %v9051_v33  ;;  %v11480_v56 = vpack.c.bf16 %v1892_v23, %v1889_v12  ;;  %v9052_v55 = vld [vmem:[%s13174_s18 + $0x174] sm:$0xff] }
 0x18f   : > { %11155 = vmatprep.subr.bf16.mxu0 %v11154_v38  ;;  %11473 = vmatpush3.bf16.msra.mxu1 %v11472_v7  ;;  %v15861_v38 = vld [vmem:[#allocation2 + $0x3a0] sm:$0xff]  ;;  %v15872_v7 = vld [vmem:[%s20010_s0 + $0x1218] sm:$0xff]  ;;  %v11162_v8 = vpack.c.bf16 %v1849_v27, %v1846_v13  ;;  %v15884_v18 = vld [vmem:[%s20010_s0 + $0x1250] sm:$0xff]  ;;  %v15889_v39 = vpack.c.bf16 %v1946_v53, %v1943_v19  ;;  %1027 = vst [vmem:[#allocation2 + $0x700] sm:$0xff] %v9052_v55  ;;  %v12903_v27 = vmov 0.0  }
 0x190   : > { %v9333_v42 = vpop.f32.mrb[66].mxu1  ;;  %2782 = vmatmul.mubr.f32.gmra.mrb[28].mxu0 %v15564_v60  ;;  %11475 = vmatprep.subr.bf16.mxu1 %v11474_v9  ;;  %v15848_v61 = vadd.f32 %v9332_v62, %v15352_v52  ;;  %v11160_v60 = vpack.c.bf16 %v1842_v11, %v1839_v51  ;;  %v15867_v0 = vld [vmem:[%s20010_s0 + $0x1200] sm:$0xff]  ;;  %v15879_v9 = vld [vmem:[%s20010_s0 + $0x1238] sm:$0xff]  ;;  %v15908_v62 = vld [vmem:[%s20010_s0 + $0x1248] sm:$0xff]  ;;  %5739 = vst [vmem:[#allocation4] sm:$0xff] %v12903_v27 }
 0x191   : > { %v9334_v57 = vpop.f32.mrb[67].mxu1  ;;  %4097 = vmatmul.mubr.f32.gmra.mrb[172].mxu1 %v15851_v16  ;;  %11157 = vmatpush1.bf16.msra.mxu0 %v11156_v17  ;;  %v15891_v17 = vld [vmem:[#allocation2 + $0x398] sm:$0xff]  ;;  %v11166_v51 = vpack.c.bf16 %v15884_v18, %v15879_v9  ;;  %v15918_v11 = vld [vmem:[%s20010_s0 + $0x1268] sm:$0xff]  ;;  %5740 = vst [vmem:[#allocation4 + $0x8] sm:$0xff] %v12903_v27  ;;  %5741 = vst [vmem:[#allocation4 + $0x10] sm:$0xff] %v12903_v27 }
 0x192   : > { %v9335_v52 = vadd.f32 %v9334_v57, %v9333_v42  ;;  %2787 = vmatprep.mubr.f32.mxu0 %v15550_v40  ;;  %4101 = vmatprep.mubr.f32.mxu1 %v15861_v38  ;;  %v15897_v20 = vld [vmem:[#allocation2 + $0x418] sm:$0xff]  ;;  %5742 = vst [vmem:[#allocation4 + $0x18] sm:$0xff] %v12903_v27  ;;  %5743 = vst [vmem:[#allocation4 + $0x20] sm:$0xff] %v12903_v27  ;;  %v16029_v42 = vld [vmem:[#allocation2 + $0x490] sm:$0xff] }
 0x193   : > { %11159 = vmatprep.subr.bf16.mxu0 %v11158_v46  ;;  %11477 = vmatpush3.bf16.msra.mxu1 %v11476_v3  ;;  %v15923_v46 = vld [vmem:[%s20010_s0 + $0x1280] sm:$0xff]  ;;  %5744 = vst [vmem:[#allocation4 + $0x28] sm:$0xff] %v12903_v27  ;;  %5745 = vst [vmem:[#allocation4 + $0x30] sm:$0xff] %v12903_v27  ;;  %v1860_v12 = vld [vmem:[%s20010_s0 + $0x1278] sm:$0xff] }
 0x194   : > { %v9336_v40 = vpop.f32.mrb[68].mxu1  ;;  %2788 = vmatmul.mubr.f32.gmra.mrb[30].mxu0 %v15569_v29  ;;  %11479 = vmatprep.subr.bf16.mxu1 %v11478_v50  ;;  %v15887_v41 = vadd.f32 %v9335_v52, %v15383_v54  ;;  %v11164_v29 = vpack.c.bf16 %v15872_v7, %v15867_v0  ;;  %v15903_v54 = vld [vmem:[%s20010_s0 + $0x1230] sm:$0xff]  ;;  %5746 = vst [vmem:[#allocation4 + $0x38] sm:$0xff] %v12903_v27  ;;  %5747 = vst [vmem:[#allocation4 + $0x40] sm:$0xff] %v12903_v27  ;;  %v1857_v50 = vld [vmem:[%s20010_s0 + $0x1260] sm:$0xff] }
 0x195   : > { %v9337_v59 = vpop.f32.mrb[69].mxu1  ;;  %4102 = vmatmul.mubr.f32.gmra.mrb[174].mxu1 %v15891_v17  ;;  %11161 = vmatpush1.bf16.msra.mxu0 %v11160_v60  ;;  %5748 = vst [vmem:[#allocation4 + $0x48] sm:$0xff] %v12903_v27  ;;  %5749 = vst [vmem:[#allocation4 + $0x50] sm:$0xff] %v12903_v27  ;;  %v11168_v3 = vpack.c.bf16 %v15908_v62, %v15903_v54  ;;  %v11170_v23 = vpack.c.bf16 %v15923_v46, %v15918_v11  ;;  %v1864_v33 = vld [vmem:[%s20010_s0 + $0x1298] sm:$0xff]  ;;  %v1867_v57 = vld [vmem:[%s20010_s0 + $0x12b0] sm:$0xff] }
 0x196   : > { %v9338_v6 = vadd.f32 %v9337_v59, %v9336_v40  ;;  %2858 = vmatprep.mubr.f32.mxu0 %v15601_v5  ;;  %4106 = vmatprep.mubr.f32.mxu1 %v15897_v20  ;;  %5750 = vst [vmem:[#allocation4 + $0x58] sm:$0xff] %v12903_v27  ;;  %5751 = vst [vmem:[#allocation4 + $0x60] sm:$0xff] %v12903_v27  ;;  %v16053_v53 = vld [vmem:[#allocation2 + $0x488] sm:$0xff]  ;;  %v11172_v52 = vpack.c.bf16 %v1860_v12, %v1857_v50  ;;  %v1863_v7 = vld [vmem:[%s20010_s0 + $0x1290] sm:$0xff] }
 0x197   : > { %11163 = vmatprep.subr.bf16.mxu0 %v11162_v8  ;;  %11481 = vmatpush3.bf16.msra.mxu1 %v11480_v56  ;;  %5752 = vst [vmem:[#allocation4 + $0x68] sm:$0xff] %v12903_v27  ;;  %5753 = vst [vmem:[#allocation4 + $0x70] sm:$0xff] %v12903_v27  ;;  %v11174_v8 = vpack.c.bf16 %v1867_v57, %v1864_v33  ;;  %v1873_v55 = vld [vmem:[%s20010_s0 + $0x12e0] sm:$0xff]  ;;  %v16099_v46 = vld [vmem:[#allocation2 + $0x578] sm:$0xff] }
 0x198   : > { %v15912_v5 = vpop.f32.mrb[70].mxu1  ;;  %2859 = vmatmul.mubr.f32.vlgmr.msra.gmra.mrb[0].mxu0 %v15628_v43  ;;  %v15926_v13 = vadd.f32 %v9338_v6, %v15407_v30  ;;  %11483 = vmatprep.subr.bf16.mxu1 %v15889_v39  ;;  %5754 = vst [vmem:[#allocation4 + $0x78] sm:$0xff] %v12903_v27  ;;  %5755 = vst [vmem:[#allocation4 + $0x80] sm:$0xff] %v12903_v27  ;;  %v16019_v43 = vld [vmem:[#allocation2 + $0x410] sm:$0xff]  ;;  %v16076_v18 = vld [vmem:[#allocation2 + $0x500] sm:$0xff] }
 0x199   : > { %5756 = vst [vmem:[#allocation4 + $0x88] sm:$0xff] %v12903_v27  ;;  %5757 = vst [vmem:[#allocation4 + $0x90] sm:$0xff] %v12903_v27  ;;  %v9340_v30 = vpop.f32.mrb[71].mxu1  ;;  %4107 = vmatmul.mubr.f32.gmra.mrb[176].mxu1 %v16019_v43  ;;  %11165 = vmatpush1.bf16.msra.mxu0 %v11164_v29  ;;  %v1869_v6 = vld [vmem:[%s20010_s0 + $0x12c0] sm:$0xff]  ;;  %v16122_v33 = vld [vmem:[#allocation2 + $0x5f0] sm:$0xff] }
 0x19a   : > { %5758 = vst [vmem:[#allocation4 + $0x98] sm:$0xff] %v12903_v27  ;;  %5759 = vst [vmem:[#allocation4 + $0xa0] sm:$0xff] %v12903_v27  ;;  %v9341_v47 = vadd.f32 %v9340_v30, %v15912_v5  ;;  %2864 = vmatprep.mubr.f32.mxu0 %v15638_v2  ;;  %4111 = vmatprep.mubr.f32.mxu1 %v16029_v42  ;;  %v1885_v12 = vld [vmem:[%s20010_s0 + $0x1340] sm:$0xff] }
 0x19b   : > { %5760 = vst [vmem:[#allocation4 + $0xa8] sm:$0xff] %v12903_v27  ;;  %5761 = vst [vmem:[#allocation4 + $0xb0] sm:$0xff] %v12903_v27  ;;  %11167 = vmatprep.subr.bf16.mxu0 %v11166_v51  ;;  %v1879_v51 = vld [vmem:[%s20010_s0 + $0x1310] sm:$0xff] }
 0x19c   : > { %5762 = vst [vmem:[#allocation4 + $0xb8] sm:$0xff] %v12903_v27  ;;  %5763 = vst [vmem:[#allocation4 + $0xc0] sm:$0xff] %v12903_v27  ;;  %v9342_v2 = vpop.f32.mrb[72].mxu1  ;;  %2865 = vmatmul.mubr.f32.gmra.mrb[2].mxu0 %v15665_v35  ;;  %v16051_v60 = vadd.f32 %v9341_v47, %v15432_v44  ;;  %v16057_v35 = vld [vmem:[#allocation2 + $0x508] sm:$0xff] }
 0x19d   : > { %5764 = vst [vmem:[#allocation4 + $0xc8] sm:$0xff] %v12903_v27  ;;  %5765 = vst [vmem:[#allocation4 + $0xd0] sm:$0xff] %v12903_v27  ;;  %v9343_v19 = vpop.f32.mrb[73].mxu1  ;;  %4112 = vmatmul.mubr.f32.gmra.mrb[178].mxu1 %v16053_v53  ;;  %11169 = vmatpush1.bf16.msra.mxu0 %v11168_v3  ;;  %v1866_v44 = vld [vmem:[%s20010_s0 + $0x12a8] sm:$0xff]  ;;  %v1875_v3 = vld [vmem:[%s20010_s0 + $0x12f0] sm:$0xff] }
 0x19e   : > { %5766 = vst [vmem:[#allocation4 + $0xd8] sm:$0xff] %v12903_v27  ;;  %5767 = vst [vmem:[#allocation4 + $0xe0] sm:$0xff] %v12903_v27  ;;  %v9344_v0 = vadd.f32 %v9343_v19, %v9342_v2  ;;  %2870 = vmatprep.mubr.f32.mxu0 %v15675_v34  ;;  %4116 = vmatprep.mubr.f32.mxu1 %v16057_v35  ;;  %v1870_v34 = vld [vmem:[%s20010_s0 + $0x12c8] sm:$0xff]  ;;  %v11176_v59 = vpack.c.bf16 %v1866_v44, %v1863_v7  ;;  %v1891_v44 = vld [vmem:[%s20010_s0 + $0x1370] sm:$0xff] }
 0x19f   : > { %5768 = vst [vmem:[#allocation4 + $0xe8] sm:$0xff] %v12903_v27  ;;  %5769 = vst [vmem:[#allocation4 + $0xf0] sm:$0xff] %v12903_v27  ;;  %11171 = vmatprep.subr.bf16.mxu0 %v11170_v23  ;;  %v11178_v54 = vpack.c.bf16 %v1873_v55, %v1870_v34  ;;  %v16145_v34 = vld [vmem:[#allocation2 + $0x668] sm:$0xff] }
 0x1a0   : > { %5770 = vst [vmem:[#allocation4 + $0xf8] sm:$0xff] %v12903_v27  ;;  %5771 = vst [vmem:[#allocation4 + $0x100] sm:$0xff] %v12903_v27  ;;  %v9345_v56 = vpop.f32.mrb[74].mxu1  ;;  %2871 = vmatmul.mubr.f32.gmra.mrb[4].mxu0 %v15702_v14  ;;  %v16074_v40 = vadd.f32 %v9344_v0, %v15457_v22  ;;  %v16080_v14 = vld [vmem:[#allocation2 + $0x580] sm:$0xff]  ;;  %v1872_v22 = vld [vmem:[%s20010_s0 + $0x12d8] sm:$0xff] }
 0x1a1   : > { %5772 = vst [vmem:[#allocation4 + $0x108] sm:$0xff] %v12903_v27  ;;  %5773 = vst [vmem:[#allocation4 + $0x110] sm:$0xff] %v12903_v27  ;;  %v9346_v9 = vpop.f32.mrb[75].mxu1  ;;  %4117 = vmatmul.mubr.f32.gmra.mrb[180].mxu1 %v16076_v18  ;;  %11173 = vmatpush1.bf16.msra.mxu0 %v11172_v52  ;;  %v1881_v52 = vld [vmem:[%s20010_s0 + $0x1320] sm:$0xff] }
 0x1a2   : > { %5774 = vst [vmem:[#allocation4 + $0x118] sm:$0xff] %v12903_v27  ;;  %5775 = vst [vmem:[#allocation4 + $0x120] sm:$0xff] %v12903_v27  ;;  %v9347_v29 = vadd.f32 %v9346_v9, %v9345_v56  ;;  %2876 = vmatprep.mubr.f32.mxu0 %v15712_v10  ;;  %4121 = vmatprep.mubr.f32.mxu1 %v16080_v14  ;;  %v1876_v10 = vld [vmem:[%s20010_s0 + $0x12f8] sm:$0xff] }
 0x1a3   : > { %5776 = vst [vmem:[#allocation4 + $0x128] sm:$0xff] %v12903_v27  ;;  %5777 = vst [vmem:[#allocation4 + $0x130] sm:$0xff] %v12903_v27  ;;  %11175 = vmatprep.subr.bf16.mxu0 %v11174_v8  ;;  %v11182_v47 = vpack.c.bf16 %v1879_v51, %v1876_v10  ;;  %v16170_v51 = vld [vmem:[#allocation2 + $0x6e0] sm:$0xff] }
 0x1a4   : > { %5778 = vst [vmem:[#allocation4 + $0x138] sm:$0xff] %v12903_v27  ;;  %5779 = vst [vmem:[#allocation4 + $0x140] sm:$0xff] %v12903_v27  ;;  %v9348_v62 = vpop.f32.mrb[76].mxu1  ;;  %2877 = vmatmul.mubr.f32.gmra.mrb[6].mxu0 %v15739_v32  ;;  %v16097_v5 = vadd.f32 %v9347_v29, %v15482_v25  ;;  %v16103_v32 = vld [vmem:[#allocation2 + $0x5f8] sm:$0xff]  ;;  %v1878_v25 = vld [vmem:[%s20010_s0 + $0x1308] sm:$0xff] }
 0x1a5   : > { %5780 = vst [vmem:[#allocation4 + $0x148] sm:$0xff] %v12903_v27  ;;  %5781 = vst [vmem:[#allocation4 + $0x150] sm:$0xff] %v12903_v27  ;;  %v9349_v11 = vpop.f32.mrb[77].mxu1  ;;  %4122 = vmatmul.mubr.f32.gmra.mrb[182].mxu1 %v16099_v46  ;;  %11177 = vmatpush1.bf16.msra.mxu0 %v11176_v59  ;;  %v11184_v57 = vpack.c.bf16 %v1878_v25, %v1875_v3  ;;  %v1887_v59 = vld [vmem:[%s20010_s0 + $0x1350] sm:$0xff]  ;;  %v16158_v29 = vld [vmem:[#allocation2 + $0x760] sm:$0xf] }
 0x1a6   : > { %5782 = vst [vmem:[#allocation4 + $0x158] sm:$0xff] %v12903_v27  ;;  %5783 = vst [vmem:[#allocation4 + $0x160] sm:$0xff] %v12903_v27  ;;  %v9350_v30 = vadd.f32 %v9349_v11, %v9348_v62  ;;  %2882 = vmatprep.mubr.f32.mxu0 %v15749_v26  ;;  %4126 = vmatprep.mubr.f32.mxu1 %v16103_v32  ;;  %v1882_v26 = vld [vmem:[%s20010_s0 + $0x1328] sm:$0xff] }
 0x1a7   : > { %5784 = vst [vmem:[#allocation4 + $0x168] sm:$0xff] %v12903_v27  ;;  %5785 = vst [vmem:[#allocation4 + $0x170] sm:$0xff] %v12903_v27  ;;  %11179 = vmatprep.subr.bf16.mxu0 %v11178_v54  ;;  %v11186_v0 = vpack.c.bf16 %v1885_v12, %v1882_v26  ;;  %v1897_v54 = vld [vmem:[%s20010_s0 + $0x13a0] sm:$0xff] }
 0x1a8   : > { %5786 = vst [vmem:[#allocation4 + $0x178] sm:$0xff] %v12903_v27  ;;  %5787 = vst [vmem:[#allocation4 + $0x180] sm:$0xff] %v12903_v27  ;;  %v9351_v50 = vpop.f32.mrb[78].mxu1  ;;  %2883 = vmatmul.mubr.f32.gmra.mrb[8].mxu0 %v15776_v49  ;;  %v16120_v23 = vadd.f32 %v9350_v30, %v15507_v48  ;;  %v16126_v49 = vld [vmem:[#allocation2 + $0x670] sm:$0xff]  ;;  %v1884_v48 = vld [vmem:[%s20010_s0 + $0x1338] sm:$0xff] }
 0x1a9   : > { %5788 = vst [vmem:[#allocation4 + $0x188] sm:$0xff] %v12903_v27  ;;  %5789 = vst [vmem:[#allocation4 + $0x190] sm:$0xff] %v12903_v27  ;;  %v9352_v2 = vpop.f32.mrb[79].mxu1  ;;  %4127 = vmatmul.mubr.f32.gmra.mrb[184].mxu1 %v16122_v33  ;;  %2888 = vmatprep.mubr.f32.mxu0 %v15786_v1  ;;  %v1888_v1 = vld [vmem:[%s20010_s0 + $0x1358] sm:$0xff]  ;;  %v11188_v55 = vpack.c.bf16 %v1884_v48, %v1881_v52  ;;  %v1893_v30 = vld [vmem:[%s20010_s0 + $0x1380] sm:$0xff] }
 0x1aa   : > { %5790 = vst [vmem:[#allocation4 + $0x198] sm:$0xff] %v12903_v27  ;;  %5791 = vst [vmem:[#allocation4 + $0x1a0] sm:$0xff] %v12903_v27  ;;  %v9353_v19 = vadd.f32 %v9352_v2, %v9351_v50  ;;  %4131 = vmatprep.mubr.f32.mxu1 %v16126_v49  ;;  %v1903_v50 = vld [vmem:[%s20010_s0 + $0x13d0] sm:$0xff]  ;;  %v1902_v52 = vld [vmem:[%s20010_s0 + $0x13c8] sm:$0xff] }
 0x1ab   : > { %5792 = vst [vmem:[#allocation4 + $0x1a8] sm:$0xff] %v12903_v27  ;;  %5793 = vst [vmem:[#allocation4 + $0x1b0] sm:$0xff] %v12903_v27 }
 0x1ac   : > { %5794 = vst [vmem:[#allocation4 + $0x1b8] sm:$0xff] %v12903_v27  ;;  %5795 = vst [vmem:[#allocation4 + $0x1c0] sm:$0xff] %v12903_v27  ;;  %v9354_v7 = vpop.f32.mrb[80].mxu1  ;;  %2889 = vmatmul.mubr.f32.gmra.mrb[10].mxu0 %v15814_v37  ;;  %v16143_v8 = vadd.f32 %v9353_v19, %v15533_v21  ;;  %v16149_v37 = vld [vmem:[#allocation2 + $0x6e8] sm:$0xff]  ;;  %v1899_v19 = vld [vmem:[%s20010_s0 + $0x13b0] sm:$0xff] }
 0x1ad   : > { %5796 = vst [vmem:[#allocation4 + $0x1c8] sm:$0xff] %v12903_v27  ;;  %5797 = vst [vmem:[#allocation4 + $0x1d0] sm:$0xff] %v12903_v27  ;;  %v9355_v56 = vpop.f32.mrb[81].mxu1  ;;  %4132 = vmatmul.mubr.f32.gmra.mrb[186].mxu1 %v16145_v34  ;;  %2894 = vmatprep.mubr.f32.mxu0 %v15824_v28  ;;  %v1890_v21 = vld [vmem:[%s20010_s0 + $0x1368] sm:$0xff] }
 0x1ae   : > { %5798 = vst [vmem:[#allocation4 + $0x1d8] sm:$0xff] %v12903_v27  ;;  %5799 = vst [vmem:[#allocation4 + $0x1e0] sm:$0x1f] %v12903_v27  ;;  %v9356_v9 = vadd.f32 %v9355_v56, %v9354_v7  ;;  %4136 = vmatprep.mubr.f32.mxu1 %v16149_v37  ;;  %v1894_v28 = vld [vmem:[%s20010_s0 + $0x1388] sm:$0xff]  ;;  %v11192_v11 = vpack.c.bf16 %v1890_v21, %v1887_v59  ;;  %v16230_v21 = vld [vmem:[#allocation2 + $0xe0] sm:$0xff] }
 0x1af   : > { %5800 = vst [vmem:[#allocation4 + $0x1e8] sm:$0x1f] %v12903_v27  ;;  %5801 = vst [vmem:[#allocation4 + $0x1f0] sm:$0x1f] %v12903_v27  ;;  %v11194_v3 = vpack.c.bf16 %v1897_v54, %v1894_v28 }
 0x1b0   : > { %5802 = vst [vmem:[#allocation4 + $0x1f8] sm:$0x1f] %v12903_v27  ;;  %5803 = vst [vmem:[#allocation4 + $0x200] sm:$0x1f] %v12903_v27  ;;  %2895 = vmatmul.mubr.f32.gmra.mrb[12].mxu0 %v15851_v16  ;;  %v16168_v62 = vadd.f32 %v9356_v9, %v15561_v58  ;;  %v16175_v16 = vld [vmem:[#allocation2 + $0x758] sm:$0xf] }
 0x1b1   : > { %5804 = vst [vmem:[#allocation4 + $0x208] sm:$0x1f] %v12903_v27  ;;  %5805 = vst [vmem:[#allocation4 + $0x210] sm:$0x1f] %v12903_v27  ;;  %4137 = vmatmul.mubr.f32.gmra.mrb[188].mxu1 %v16170_v51  ;;  %2900 = vmatprep.mubr.f32.mxu0 %v15861_v38  ;;  %v1896_v58 = vld [vmem:[%s20010_s0 + $0x1398] sm:$0xff]  ;;  %v1958_v9 = vld [vmem:[%s20010_s0 + $0x1588] sm:$0xff] }
 0x1b2   : > { %5806 = vst [vmem:[#allocation4 + $0x218] sm:$0x1f] %v12903_v27  ;;  %5807 = vst [vmem:[#allocation4 + $0x220] sm:$0x1f] %v12903_v27  ;;  %4141 = vmatprep.mubr.f32.mxu1 %v16158_v29  ;;  %v1900_v38 = vld [vmem:[%s20010_s0 + $0x13b8] sm:$0xff]  ;;  %v11196_v12 = vpack.c.bf16 %v1896_v58, %v1893_v30 }
 0x1b3   : > { %5808 = vst [vmem:[#allocation4 + $0x228] sm:$0x1f] %v12903_v27  ;;  %5809 = vst [vmem:[#allocation4 + $0x230] sm:$0x1f] %v12903_v27  ;;  %v11198_v48 = vpack.c.bf16 %v1903_v50, %v1900_v38  ;;  %v16250_v58 = vld [vmem:[#allocation2 + $0xd8] sm:$0xff]  ;;  %v1911_v38 = vld [vmem:[%s20010_s0 + $0x1410] sm:$0xff] }
 0x1b4   : > { %5810 = vst [vmem:[#allocation4 + $0x238] sm:$0x1f] %v12903_v27  ;;  %5811 = vst [vmem:[#allocation4 + $0x240] sm:$0x1f] %v12903_v27  ;;  %2901 = vmatmul.mubr.f32.gmra.mrb[14].mxu0 %v15891_v17  ;;  %v1952_v17 = vld [vmem:[%s20010_s0 + $0x1558] sm:$0xff]  ;;  %v1914_v50 = vld [vmem:[%s20010_s0 + $0x1428] sm:$0xff] }
 0x1b5   : > { %5812 = vst [vmem:[#allocation4 + $0x248] sm:$0x1f] %v12903_v27  ;;  %5813 = vst [vmem:[#allocation4 + $0x250] sm:$0x1f] %v12903_v27  ;;  %4142 = vmatmul.mubr.f32.gmra.mrb[190].mxu1 %v16175_v16  ;;  %2906 = vmatprep.mubr.f32.mxu0 %v15897_v20  ;;  %v1906_v20 = vld [vmem:[%s20010_s0 + $0x13e8] sm:$0xff] }
 0x1b6   : > { %5814 = vst [vmem:[#allocation4 + $0x258] sm:$0x1f] %v12903_v27  ;;  %5815 = vst [vmem:[#allocation4 + $0x260] sm:$0x1f] %v12903_v27 }
 0x1b7   : > { %5816 = vst [vmem:[#allocation4 + $0x268] sm:$0x1f] %v12903_v27  ;;  %5817 = vst [vmem:[#allocation4 + $0x270] sm:$0x1f] %v12903_v27 }
 0x1b8   : > { %5818 = vst [vmem:[#allocation4 + $0x278] sm:$0x1f] %v12903_v27  ;;  %5819 = vst [vmem:[#allocation4 + $0x280] sm:$0x1f] %v12903_v27  ;;  %2907 = vmatmul.mubr.f32.gmra.mrb[16].mxu0 %v16019_v43  ;;  %v1955_v43 = vld [vmem:[%s20010_s0 + $0x1570] sm:$0xff] }
 0x1b9   : > { %5820 = vst [vmem:[#allocation4 + $0x288] sm:$0x1f] %v12903_v27  ;;  %5821 = vst [vmem:[#allocation4 + $0x290] sm:$0x1f] %v12903_v27  ;;  %2912 = vmatprep.mubr.f32.mxu0 %v16029_v42 }
 0x1ba   : > { %5822 = vst [vmem:[#allocation4 + $0x298] sm:$0x1f] %v12903_v27  ;;  %5823 = vst [vmem:[#allocation4 + $0x2a0] sm:$0x1f] %v12903_v27 }
 0x1bb   : > { %5824 = vst [vmem:[#allocation4 + $0x2a8] sm:$0x1f] %v12903_v27  ;;  %5825 = vst [vmem:[#allocation4 + $0x2b0] sm:$0x1f] %v12903_v27 }
 0x1bc   : > { %5826 = vst [vmem:[#allocation4 + $0x2b8] sm:$0x1f] %v12903_v27  ;;  %5827 = vst [vmem:[#allocation4 + $0x2c0] sm:$0x1f] %v12903_v27  ;;  %2913 = vmatmul.mubr.f32.gmra.mrb[18].mxu0 %v16053_v53  ;;  %v1964_v53 = vld [vmem:[%s20010_s0 + $0x15b8] sm:$0xff] }
 0x1bd   : > { %5828 = vst [vmem:[#allocation4 + $0x2c8] sm:$0x1f] %v12903_v27  ;;  %v11180_v27 = vpack.c.bf16 %v1872_v22, %v1869_v6  ;;  %v11190_v6 = vpack.c.bf16 %v1891_v44, %v1888_v1  ;;  %v9357_v22 = vpop.f32.mrb[82].mxu1  ;;  %v1909_v1 = vld [vmem:[%s20010_s0 + $0x1400] sm:$0xff]  ;;  %2918 = vmatprep.mubr.f32.mxu0 %v16057_v35  ;;  %v1918_v35 = vld [vmem:[%s20010_s0 + $0x1448] sm:$0xff] }
 0x1be   : > { %v9358_v10 = vpop.f32.mrb[83].mxu1  ;;  %v11202_v28 = vpack.c.bf16 %v1909_v1, %v1906_v20  ;;  %v16289_v20 = vld [vmem:[#allocation2 + $0x1d0] sm:$0xff]  ;;  %v1917_v1 = vld [vmem:[%s20010_s0 + $0x1440] sm:$0xff] }
 0x1bf   : > { %11181 = vmatpush1.bf16.msra.mxu0 %v11180_v27  ;;  %v9359_v27 = vadd.f32 %v9358_v10, %v9357_v22  ;;  %v1908_v22 = vld [vmem:[%s20010_s0 + $0x13f8] sm:$0xff] }
 0x1c0   : > { %11183 = vmatprep.subr.bf16.mxu0 %v11182_v47  ;;  %v9360_v47 = vpop.f32.mrb[84].mxu1  ;;  %v1912_v10 = vld [vmem:[%s20010_s0 + $0x1418] sm:$0xff]  ;;  %2919 = vmatmul.mubr.f32.gmra.mrb[20].mxu0 %v16076_v18  ;;  %v1967_v18 = vld [vmem:[%s20010_s0 + $0x15d0] sm:$0xff] }
 0x1c1   : > { %v16184_v25 = vadd.f32 %v9359_v27, %v15591_v31  ;;  %v9361_v26 = vpop.f32.mrb[85].mxu1  ;;  %v1949_v31 = vld [vmem:[%s20010_s0 + $0x1540] sm:$0xff]  ;;  %v11490_v27 = vpack.c.bf16 %v1958_v9, %v1955_v43  ;;  %2924 = vmatprep.mubr.f32.mxu0 %v16080_v14  ;;  %v1924_v14 = vld [vmem:[%s20010_s0 + $0x1478] sm:$0xff]  ;;  %v1927_v9 = vld [vmem:[%s20010_s0 + $0x1490] sm:$0xff] }
 0x1c2   : > { %v9362_v2 = vadd.f32 %v9361_v26, %v9360_v47  ;;  %v9363_v7 = vpop.f32.mrb[86].mxu1  ;;  %v11486_v44 = vpack.c.bf16 %v1952_v17, %v1949_v31  ;;  %v16260_v47 = vld [vmem:[#allocation2 + $0x158] sm:$0xff]  ;;  %v1921_v17 = vld [vmem:[%s20010_s0 + $0x1460] sm:$0xff] }
 0x1c3   : > { %11185 = vmatpush1.bf16.msra.mxu0 %v11184_v57  ;;  %v16201_v57 = vld [vmem:[#allocation2 + $0x68] sm:$0xff]  ;;  %v9364_v56 = vpop.f32.mrb[87].mxu1 }
 0x1c4   : > { %11187 = vmatprep.subr.bf16.mxu0 %v11186_v0  ;;  %4211 = vmatprep.mubr.f32.mxu1 %v16201_v57  ;;  %v16211_v0 = vadd.f32 %v9362_v2, %v15625_v4  ;;  %v11200_v4 = vpack.c.bf16 %v1902_v52, %v1899_v19  ;;  %v9365_v59 = vadd.f32 %v9364_v56, %v9363_v7  ;;  %v9366_v42 = vpop.f32.mrb[88].mxu1  ;;  %v16279_v52 = vld [vmem:[#allocation2 + $0x150] sm:$0xff] }
 0x1c5   : > { %v9367_v30 = vpop.f32.mrb[89].mxu1  ;;  %v11210_v56 = vpack.c.bf16 %v1921_v17, %v1918_v35  ;;  %2925 = vmatmul.mubr.f32.gmra.mrb[22].mxu0 %v16099_v46  ;;  %v1973_v46 = vld [vmem:[%s20010_s0 + $0x1600] sm:$0xff] }
 0x1c6   : > { %v16241_v54 = vadd.f32 %v9365_v59, %v15662_v15  ;;  %v9369_v31 = vpop.f32.mrb[90].mxu1  ;;  %2930 = vmatprep.mubr.f32.mxu0 %v16103_v32  ;;  %v1930_v32 = vld [vmem:[%s20010_s0 + $0x14a8] sm:$0xff]  ;;  %v16347_v35 = vld [vmem:[#allocation2 + $0x2c0] sm:$0xff] }
 0x1c7   : > { %11189 = vmatpush1.bf16.msra.mxu0 %v11188_v55  ;;  %v16220_v55 = vld [vmem:[#allocation2 + $0x60] sm:$0xff]  ;;  %v9370_v19 = vpop.f32.mrb[91].mxu1 }
 0x1c8   : > { %11191 = vmatprep.subr.bf16.mxu0 %v11190_v6  ;;  %4212 = vmatmul.mubr.f32.vlgmr.msra.gmra.mrb[192].mxu1 %v16220_v55  ;;  %v1905_v6 = vld [vmem:[%s20010_s0 + $0x13e0] sm:$0xff]  ;;  %v9371_v7 = vadd.f32 %v9370_v19, %v9369_v31  ;;  %v9372_v43 = vpop.f32.mrb[92].mxu1 }
 0x1c9   : > { %4216 = vmatprep.mubr.f32.mxu1 %v16230_v21  ;;  %11485 = vmatpush3.bf16.msra.mxu1 %v15889_v39  ;;  %v11204_v15 = vpack.c.bf16 %v1908_v22, %v1905_v6  ;;  %v1961_v39 = vld [vmem:[%s20010_s0 + $0x15a0] sm:$0xff]  ;;  %v9373_v6 = vpop.f32.mrb[93].mxu1  ;;  %v16308_v22 = vld [vmem:[#allocation2 + $0x1c8] sm:$0xff] }
 0x1ca   : > { %11487 = vmatprep.subr.bf16.mxu1 %v11486_v44  ;;  %v11494_v2 = vpack.c.bf16 %v1964_v53, %v1961_v39  ;;  %v9375_v39 = vpop.f32.mrb[94].mxu1  ;;  %2931 = vmatmul.mubr.f32.gmra.mrb[24].mxu0 %v16122_v33  ;;  %v1933_v53 = vld [vmem:[%s20010_s0 + $0x14c0] sm:$0xff]  ;;  %v1979_v33 = vld [vmem:[%s20010_s0 + $0x1630] sm:$0xff] }
 0x1cb   : > { %11193 = vmatpush1.bf16.msra.mxu0 %v11192_v11  ;;  %v1915_v11 = vld [vmem:[%s20010_s0 + $0x1430] sm:$0xff]  ;;  %2936 = vmatprep.mubr.f32.mxu0 %v16126_v49  ;;  %v1929_v17 = vld [vmem:[%s20010_s0 + $0x14a0] sm:$0xff]  ;;  %v11218_v19 = vpack.c.bf16 %v1933_v53, %v1930_v32  ;;  %v1936_v49 = vld [vmem:[%s20010_s0 + $0x14d8] sm:$0xff] }
 0x1cc   : > { %11195 = vmatprep.subr.bf16.mxu0 %v11194_v3  ;;  %4217 = vmatmul.mubr.f32.gmra.mrb[194].mxu1 %v16250_v58  ;;  %v9368_v3 = vadd.f32 %v9367_v30, %v9366_v42  ;;  %v11206_v26 = vpack.c.bf16 %v1915_v11, %v1912_v10  ;;  %v9374_v42 = vadd.f32 %v9373_v6, %v9372_v43  ;;  %v16318_v10 = vld [vmem:[#allocation2 + $0x248] sm:$0xff]  ;;  %v1923_v11 = vld [vmem:[%s20010_s0 + $0x1470] sm:$0xff]  ;;  %v1941_v32 = vld [vmem:[%s20010_s0 + $0x1500] sm:$0xff] }
 0x1cd   : > { %4221 = vmatprep.mubr.f32.mxu1 %v16260_v47  ;;  %11489 = vmatpush3.bf16.msra.mxu1 %v11486_v44  ;;  %v1920_v44 = vld [vmem:[%s20010_s0 + $0x1458] sm:$0xff]  ;;  %v11214_v30 = vpack.c.bf16 %v1927_v9, %v1924_v14  ;;  %v1935_v9 = vld [vmem:[%s20010_s0 + $0x14d0] sm:$0xff] }
 0x1ce   : > { %11491 = vmatprep.subr.bf16.mxu1 %v11490_v27  ;;  %2937 = vmatmul.mubr.f32.gmra.mrb[26].mxu0 %v16145_v34  ;;  %v1985_v34 = vld [vmem:[%s20010_s0 + $0x1660] sm:$0xff]  ;;  %v16376_v14 = vld [vmem:[#allocation2 + $0x338] sm:$0xff] }
 0x1cf   : > { %11197 = vmatpush1.bf16.msra.mxu0 %v11196_v12  ;;  %v16270_v12 = vadd.f32 %v9368_v3, %v15699_v45  ;;  %v11208_v45 = vpack.c.bf16 %v1914_v50, %v1911_v38  ;;  %v9376_v38 = vpop.f32.mrb[95].mxu1  ;;  %v16337_v50 = vld [vmem:[#allocation2 + $0x240] sm:$0xff]  ;;  %2942 = vmatprep.mubr.f32.mxu0 %v16149_v37  ;;  %v1944_v53 = vld [vmem:[%s20010_s0 + $0x1518] sm:$0xff] }
 0x1d0   : > { %11199 = vmatprep.subr.bf16.mxu0 %v11198_v48  ;;  %4222 = vmatmul.mubr.f32.gmra.mrb[196].mxu1 %v16279_v52  ;;  %v1970_v48 = vld [vmem:[%s20010_s0 + $0x15e8] sm:$0xff]  ;;  %v9377_v31 = vadd.f32 %v9376_v38, %v9375_v39 }
 0x1d1   : > { %4226 = vmatprep.mubr.f32.mxu1 %v16289_v20  ;;  %11493 = vmatpush3.bf16.msra.mxu1 %v11490_v27  ;;  %v11498_v59 = vpack.c.bf16 %v1970_v48, %v1967_v18  ;;  %v1926_v27 = vld [vmem:[%s20010_s0 + $0x1488] sm:$0xff]  ;;  %v9410_v18 = vpop.f32.mrb[96].mxu1  ;;  %v1939_v48 = vld [vmem:[%s20010_s0 + $0x14f0] sm:$0xff] }
 0x1d2   : > { %11495 = vmatprep.subr.bf16.mxu1 %v11494_v2  ;;  %v11222_v6 = vpack.c.bf16 %v1939_v48, %v1936_v49  ;;  %2943 = vmatmul.mubr.f32.gmra.mrb[28].mxu0 %v16170_v51  ;;  %v16399_v51 = vld [vmem:[#allocation2 + $0x3b0] sm:$0xff]  ;;  %v1954_v49 = vld [vmem:[%s20010_s0 + $0x1568] sm:$0xff]  ;;  %v1957_v48 = vld [vmem:[%s20010_s0 + $0x1580] sm:$0xff] }
 0x1d3   : > { %11201 = vmatpush1.bf16.msra.mxu0 %v11200_v4  ;;  %v16299_v4 = vadd.f32 %v9371_v7, %v15736_v24  ;;  %v11212_v24 = vpack.c.bf16 %v1920_v44, %v1917_v1  ;;  %v9411_v1 = vpop.f32.mrb[97].mxu1  ;;  %v16366_v44 = vld [vmem:[#allocation2 + $0x2b8] sm:$0xff]  ;;  %2948 = vmatprep.mubr.f32.mxu0 %v16158_v29 }
 0x1d4   : > { %11203 = vmatprep.subr.bf16.mxu0 %v11202_v28  ;;  %4227 = vmatmul.mubr.f32.gmra.mrb[198].mxu1 %v16308_v22  ;;  %v1976_v28 = vld [vmem:[%s20010_s0 + $0x1618] sm:$0xff]  ;;  %v9412_v43 = vadd.f32 %v9411_v1, %v9410_v18  ;;  %v16441_v1 = vld [vmem:[#allocation2 + $0x420] sm:$0xff] }
 0x1d5   : > { %4231 = vmatprep.mubr.f32.mxu1 %v16318_v10  ;;  %11497 = vmatpush3.bf16.msra.mxu1 %v11494_v2  ;;  %v11502_v3 = vpack.c.bf16 %v1976_v28, %v1973_v46  ;;  %v1932_v2 = vld [vmem:[%s20010_s0 + $0x14b8] sm:$0xff]  ;;  %v9413_v46 = vpop.f32.mrb[98].mxu1  ;;  %v1942_v28 = vld [vmem:[%s20010_s0 + $0x1508] sm:$0xff] }
 0x1d6   : > { %11499 = vmatprep.subr.bf16.mxu1 %v11498_v59  ;;  %2949 = vmatmul.mubr.f32.gmra.mrb[30].mxu0 %v16175_v16  ;;  %v1948_v29 = vld [vmem:[%s20010_s0 + $0x1538] sm:$0xff]  ;;  %v11228_v16 = vpack.c.bf16 %v1944_v53, %v1941_v32  ;;  %v1969_v32 = vld [vmem:[%s20010_s0 + $0x15e0] sm:$0xff] }
 0x1d7   : > { %11205 = vmatpush1.bf16.msra.mxu0 %v11204_v15  ;;  %v16328_v15 = vadd.f32 %v9374_v42, %v15773_v36  ;;  %v11216_v36 = vpack.c.bf16 %v1926_v27, %v1923_v11  ;;  %v1945_v42 = vld [vmem:[%s20010_s0 + $0x1520] sm:$0xff]  ;;  %v9414_v11 = vpop.f32.mrb[99].mxu1  ;;  %v16395_v27 = vld [vmem:[#allocation2 + $0x330] sm:$0xff]  ;;  %3019 = vmatprep.mubr.f32.mxu0 %v16201_v57 }
 0x1d8   : > { %11207 = vmatprep.subr.bf16.mxu0 %v11206_v26  ;;  %4232 = vmatmul.mubr.f32.gmra.mrb[200].mxu1 %v16337_v50  ;;  %v1982_v26 = vld [vmem:[%s20010_s0 + $0x1648] sm:$0xff]  ;;  %v11226_v39 = vpack.c.bf16 %v1945_v42, %v1942_v28  ;;  %v9416_v38 = vpop.f32.mrb[100].mxu1  ;;  %v16468_v28 = vld [vmem:[#allocation2 + $0x518] sm:$0xff] }
 0x1d9   : > { %4236 = vmatprep.mubr.f32.mxu1 %v16347_v35  ;;  %11501 = vmatpush3.bf16.msra.mxu1 %v11498_v59  ;;  %v11506_v7 = vpack.c.bf16 %v1982_v26, %v1979_v33  ;;  %v1938_v59 = vld [vmem:[%s20010_s0 + $0x14e8] sm:$0xff]  ;;  %v9417_v33 = vpop.f32.mrb[101].mxu1 }
 0x1da   : > { %11503 = vmatprep.subr.bf16.mxu1 %v11502_v3  ;;  %v16418_v26 = vld [vmem:[#allocation2 + $0x3a8] sm:$0xff]  ;;  %v9419_v57 = vpop.f32.mrb[102].mxu1 }
 0x1db   : > { %11209 = vmatpush1.bf16.msra.mxu0 %v11208_v45  ;;  %v16357_v45 = vadd.f32 %v9377_v31, %v15810_v63  ;;  %v11220_v63 = vpack.c.bf16 %v1932_v2, %v1929_v17  ;;  %v16422_v31 = vld [vmem:[#allocation2 + $0x428] sm:$0xff]  ;;  %v1947_v2 = vld [vmem:[%s20010_s0 + $0x1530] sm:$0xff] }
 0x1dc   : > { %11211 = vmatprep.subr.bf16.mxu0 %v11210_v56  ;;  %4237 = vmatmul.mubr.f32.gmra.mrb[202].mxu1 %v16366_v44  ;;  %v1988_v56 = vld [vmem:[%s20010_s0 + $0x1678] sm:$0xff] }
 0x1dd   : > { %4241 = vmatprep.mubr.f32.mxu1 %v16376_v14  ;;  %11505 = vmatpush3.bf16.msra.mxu1 %v11502_v3  ;;  %v11510_v37 = vpack.c.bf16 %v1988_v56, %v1985_v34  ;;  %v11234_v34 = vpack.c.bf16 %v1957_v48, %v1954_v49  ;;  %v1953_v56 = vld [vmem:[%s20010_s0 + $0x1560] sm:$0xff]  ;;  %v16514_v49 = vld [vmem:[#allocation2 + $0x608] sm:$0xff] }
 0x1de   : > { %11507 = vmatprep.subr.bf16.mxu1 %v11506_v7 }
 0x1df   : > { %11213 = vmatpush1.bf16.msra.mxu0 %v11212_v24  ;;  %v16386_v24 = vadd.f32 %v9412_v43, %v15848_v61  ;;  %v11224_v61 = vpack.c.bf16 %v1938_v59, %v1935_v9  ;;  %v1956_v43 = vld [vmem:[%s20010_s0 + $0x1578] sm:$0xff] }
 0x1e0   : > { %11215 = vmatprep.subr.bf16.mxu0 %v11214_v30  ;;  %4242 = vmatmul.mubr.f32.gmra.mrb[204].mxu1 %v16395_v27  ;;  %v9415_v30 = vadd.f32 %v9414_v11, %v9413_v46  ;;  %v1960_v59 = vld [vmem:[%s20010_s0 + $0x1598] sm:$0xff]  ;;  %v1959_v11 = vld [vmem:[%s20010_s0 + $0x1590] sm:$0xff] }
 0x1e1   : > { %4246 = vmatprep.mubr.f32.mxu1 %v16399_v51  ;;  %11509 = vmatpush3.bf16.msra.mxu1 %v11506_v7  ;;  %v9420_v7 = vpop.f32.mrb[103].mxu1 }
 0x1e2   : > { %v16409_v3 = vadd.f32 %v9415_v30, %v15887_v41  ;;  %11511 = vmatprep.subr.bf16.mxu1 %v11510_v37  ;;  %v9418_v41 = vadd.f32 %v9417_v33, %v9416_v38  ;;  %v16487_v38 = vld [vmem:[#allocation2 + $0x510] sm:$0xff]  ;;  %v1965_v33 = vld [vmem:[%s20010_s0 + $0x15c0] sm:$0xff] }
 0x1e3   : > { %11217 = vmatpush1.bf16.msra.mxu0 %v11216_v36  ;;  %v1951_v36 = vld [vmem:[%s20010_s0 + $0x1550] sm:$0xff] }
 0x1e4   : > { %11219 = vmatprep.subr.bf16.mxu0 %v11218_v19  ;;  %4247 = vmatmul.mubr.f32.gmra.mrb[206].mxu1 %v16418_v26  ;;  %v11230_v17 = vpack.c.bf16 %v1951_v36, %v1948_v29  ;;  %v1950_v19 = vld [vmem:[%s20010_s0 + $0x1548] sm:$0xff]  ;;  %v16432_v18 = vadd.f32 %v9418_v41, %v15926_v13  ;;  %v9421_v13 = vadd.f32 %v9420_v7, %v9419_v57  ;;  %v16491_v29 = vld [vmem:[#allocation2 + $0x590] sm:$0xff]  ;;  %v1968_v41 = vld [vmem:[%s20010_s0 + $0x15d8] sm:$0xff] }
 0x1e5   : > { %4251 = vmatprep.mubr.f32.mxu1 %v16422_v31  ;;  %11513 = vmatpush3.bf16.msra.mxu1 %v11510_v37  ;;  %v16464_v37 = vld [vmem:[#allocation2 + $0x498] sm:$0xff]  ;;  %v16510_v57 = vld [vmem:[#allocation2 + $0x588] sm:$0xff]  ;;  %v1971_v7 = vld [vmem:[%s20010_s0 + $0x15f0] sm:$0xff] }
 0x1e6   : > { %v16455_v9 = vadd.f32 %v9421_v13, %v16051_v60  ;;  %v1974_v13 = vld [vmem:[%s20010_s0 + $0x1608] sm:$0xff] }
 0x1e7   : > { %11221 = vmatpush1.bf16.msra.mxu0 %v11220_v63  ;;  %v16445_v63 = vld [vmem:[#allocation2 + $0x4a0] sm:$0xff] }
 0x1e8   : > { %11223 = vmatprep.subr.bf16.mxu0 %v11222_v6  ;;  %4252 = vmatmul.mubr.f32.gmra.mrb[208].mxu1 %v16441_v1  ;;  %v1963_v6 = vld [vmem:[%s20010_s0 + $0x15b0] sm:$0xff] }
 0x1e9   : > { %4256 = vmatprep.mubr.f32.mxu1 %v16445_v63  ;;  %v11238_v42 = vpack.c.bf16 %v1963_v6, %v1960_v59  ;;  %v16537_v59 = vld [vmem:[#allocation2 + $0x680] sm:$0xff] }
 0x1eb   : > { %11225 = vmatpush1.bf16.msra.mxu0 %v11224_v61  ;;  %v1962_v61 = vld [vmem:[%s20010_s0 + $0x15a8] sm:$0xff] }
 0x1ec   : > { %11227 = vmatprep.subr.bf16.mxu0 %v11226_v39  ;;  %4257 = vmatmul.mubr.f32.gmra.mrb[210].mxu1 %v16464_v37  ;;  %v1966_v39 = vld [vmem:[%s20010_s0 + $0x15c8] sm:$0xff] }
 0x1ed   : > { %4261 = vmatprep.mubr.f32.mxu1 %v16468_v28  ;;  %v11242_v36 = vpack.c.bf16 %v1969_v32, %v1966_v39  ;;  %v16560_v39 = vld [vmem:[#allocation2 + $0x6f8] sm:$0xff]  ;;  %v16563_v32 = vld [vmem:[#allocation2 + $0x770] sm:$0xf] }
 0x1ee   : > { %3020 = vmatmul.mubr.f32.vlgmr.msra.gmra.mrb[0].mxu0 %v16220_v55  ;;  %v11232_v55 = vpack.c.bf16 %v1950_v19, %v1947_v2  ;;  %v1975_v2 = vld [vmem:[%s20010_s0 + $0x1610] sm:$0xff] }
 0x1ef   : > { %3025 = vmatprep.mubr.f32.mxu0 %v16230_v21  ;;  %11229 = vmatpush1.bf16.msra.mxu0 %v11228_v16  ;;  %v9422_v21 = vpop.f32.mrb[104].mxu1 }
 0x1f0   : > { %11231 = vmatprep.subr.bf16.mxu0 %v11230_v17  ;;  %v9423_v46 = vpop.f32.mrb[105].mxu1  ;;  %4262 = vmatmul.mubr.f32.gmra.mrb[212].mxu1 %v16487_v38  ;;  %v1972_v17 = vld [vmem:[%s20010_s0 + $0x15f8] sm:$0xff] }
 0x1f1   : > { %v9424_v60 = vadd.f32 %v9423_v46, %v9422_v21  ;;  %4266 = vmatprep.mubr.f32.mxu1 %v16491_v29  ;;  %v11246_v48 = vpack.c.bf16 %v1975_v2, %v1972_v17  ;;  %v16533_v21 = vld [vmem:[#allocation2 + $0x600] sm:$0xff]  ;;  %v16580_v17 = vld [vmem:[#allocation2 + $0x768] sm:$0xf] }
 0x1f2   : > { %3026 = vmatmul.mubr.f32.gmra.mrb[2].mxu0 %v16250_v58  ;;  %v11236_v58 = vpack.c.bf16 %v1956_v43, %v1953_v56  ;;  %v1981_v56 = vld [vmem:[%s20010_s0 + $0x1640] sm:$0xff] }
 0x1f3   : > { %3031 = vmatprep.mubr.f32.mxu0 %v16260_v47  ;;  %11233 = vmatpush1.bf16.msra.mxu0 %v11232_v55  ;;  %v16478_v30 = vadd.f32 %v9424_v60, %v16074_v40  ;;  %v9425_v47 = vpop.f32.mrb[106].mxu1  ;;  %v1977_v46 = vld [vmem:[%s20010_s0 + $0x1620] sm:$0xff]  ;;  %v1980_v60 = vld [vmem:[%s20010_s0 + $0x1638] sm:$0xff] }
 0x1f4   : > { %11235 = vmatprep.subr.bf16.mxu0 %v11234_v34  ;;  %v9426_v53 = vpop.f32.mrb[107].mxu1  ;;  %4267 = vmatmul.mubr.f32.gmra.mrb[214].mxu1 %v16510_v57  ;;  %v1978_v34 = vld [vmem:[%s20010_s0 + $0x1628] sm:$0xff] }
 0x1f5   : > { %v9427_v40 = vadd.f32 %v9426_v53, %v9425_v47  ;;  %4271 = vmatprep.mubr.f32.mxu1 %v16514_v49  ;;  %v11250_v6 = vpack.c.bf16 %v1981_v56, %v1978_v34  ;;  %v16556_v47 = vld [vmem:[#allocation2 + $0x678] sm:$0xff] }
 0x1f6   : > { %3032 = vmatmul.mubr.f32.gmra.mrb[4].mxu0 %v16279_v52  ;;  %v11240_v52 = vpack.c.bf16 %v1962_v61, %v1959_v11  ;;  %v1987_v11 = vld [vmem:[%s20010_s0 + $0x1670] sm:$0xff] }
 0x1f7   : > { %3037 = vmatprep.mubr.f32.mxu0 %v16289_v20  ;;  %11237 = vmatpush1.bf16.msra.mxu0 %v11236_v58  ;;  %v16501_v16 = vadd.f32 %v9427_v40, %v16097_v5  ;;  %v9428_v20 = vpop.f32.mrb[108].mxu1  ;;  %v1983_v40 = vld [vmem:[%s20010_s0 + $0x1650] sm:$0xff] }
 0x1f8   : > { %11239 = vmatprep.subr.bf16.mxu0 %v11238_v42  ;;  %v9429_v19 = vpop.f32.mrb[109].mxu1  ;;  %4272 = vmatmul.mubr.f32.gmra.mrb[216].mxu1 %v16533_v21  ;;  %v1984_v42 = vld [vmem:[%s20010_s0 + $0x1658] sm:$0xff] }
 0x1f9   : > { %v9430_v5 = vadd.f32 %v9429_v19, %v9428_v20  ;;  %4276 = vmatprep.mubr.f32.mxu1 %v16537_v59  ;;  %v11254_v53 = vpack.c.bf16 %v1987_v11, %v1984_v42 }
 0x1fa   : > { %3038 = vmatmul.mubr.f32.gmra.mrb[6].mxu0 %v16308_v22  ;;  %v11244_v22 = vpack.c.bf16 %v1968_v41, %v1965_v33  ;;  %v16575_v41 = vld [vmem:[#allocation2 + $0x6f0] sm:$0xff] }
 0x1fb   : > { %3043 = vmatprep.mubr.f32.mxu0 %v16318_v10  ;;  %11241 = vmatpush1.bf16.msra.mxu0 %v11240_v52  ;;  %v16524_v55 = vadd.f32 %v9430_v5, %v16120_v23  ;;  %v9431_v10 = vpop.f32.mrb[110].mxu1  ;;  %v1986_v52 = vld [vmem:[%s20010_s0 + $0x1668] sm:$0xff]  ;;  %v16588_v5 = vld [vmem:[#allocation2 + $0x70] sm:$0xff] }
 0x1fc   : > { %11243 = vmatprep.subr.bf16.mxu0 %v11242_v36  ;;  %v9432_v43 = vpop.f32.mrb[111].mxu1  ;;  %4277 = vmatmul.mubr.f32.gmra.mrb[218].mxu1 %v16556_v47  ;;  %v11256_v2 = vpack.c.bf16 %v1986_v52, %v1983_v40  ;;  %v16668_v52 = vld [vmem:[#allocation2 + $0x778] sm:$0xf] }
 0x1fd   : > { %v9433_v23 = vadd.f32 %v9432_v43, %v9431_v10  ;;  %4281 = vmatprep.mubr.f32.mxu1 %v16560_v39 }
 0x1fe   : > { %3044 = vmatmul.mubr.f32.gmra.mrb[8].mxu0 %v16337_v50  ;;  %v11248_v50 = vpack.c.bf16 %v1974_v13, %v1971_v7  ;;  %v16595_v7 = vld [vmem:[#allocation2 + $0xe8] sm:$0xff] }
 0x1ff   : > { %3049 = vmatprep.mubr.f32.mxu0 %v16347_v35  ;;  %11245 = vmatpush1.bf16.msra.mxu0 %v11244_v22  ;;  %v16547_v58 = vadd.f32 %v9433_v23, %v16143_v8  ;;  %v9434_v35 = vpop.f32.mrb[112].mxu1 }
 0x200   : > { %11247 = vmatprep.subr.bf16.mxu0 %v11246_v48  ;;  %v9435_v61 = vpop.f32.mrb[113].mxu1  ;;  %4282 = vmatmul.mubr.f32.gmra.mrb[220].mxu1 %v16575_v41 }
 0x201   : > { %v9436_v8 = vadd.f32 %v9435_v61, %v9434_v35  ;;  %v9437_v36 = vpop.f32.mrb[114].mxu1  ;;  %4286 = vmatprep.mubr.f32.mxu1 %v16563_v32 }
 0x202   : > { %3050 = vmatmul.mubr.f32.gmra.mrb[10].mxu0 %v16366_v44  ;;  %v11252_v44 = vpack.c.bf16 %v1980_v60, %v1977_v46  ;;  %v9438_v33 = vpop.f32.mrb[115].mxu1 }
 0x203   : > { %3055 = vmatprep.mubr.f32.mxu0 %v16376_v14  ;;  %11249 = vmatpush1.bf16.msra.mxu0 %v11248_v50  ;;  %v16572_v14 = vadd.f32 %v9436_v8, %v16168_v62  ;;  %v9439_v20 = vadd.f32 %v9438_v33, %v9437_v36  ;;  %v9440_v19 = vpop.f32.mrb[116].mxu1 }
 0x204   : > { %11251 = vmatprep.subr.bf16.mxu0 %v11250_v6  ;;  %4287 = vmatmul.mubr.f32.gmra.mrb[222].mxu1 %v16580_v17 }
 0x205   : > { %v16583_v62 = vadd.f32 %v9439_v20, %v16184_v25  ;;  %10498 = vmatprep.mubr.f32.mxu1 %v16588_v5 }
 0x206   : > { %3056 = vmatmul.mubr.f32.gmra.mrb[12].mxu0 %v16395_v27  ;;  %v9441_v27 = vpop.f32.mrb[117].mxu1 }
 0x207   : > { %3061 = vmatprep.mubr.f32.mxu0 %v16399_v51  ;;  %11253 = vmatpush1.bf16.msra.mxu0 %v11252_v44  ;;  %v9442_v51 = vadd.f32 %v9441_v27, %v9440_v19  ;;  %v9443_v48 = vpop.f32.mrb[118].mxu1 }
 0x208   : > { %11255 = vmatprep.subr.bf16.mxu0 %v11254_v53  ;;  %v9444_v25 = vpop.f32.mrb[119].mxu1  ;;  %10499 = vmatmul.mubr.f32.vlgmr.msra.gmra.mrb[224].mxu1 %v16595_v7 }
 0x209   : > { %v16592_v22 = vadd.f32 %v9442_v51, %v16211_v0  ;;  %v9446_v0 = vpop.f32.mrb[120].mxu1 }
 0x20a   : > { %3062 = vmatmul.mubr.f32.gmra.mrb[14].mxu0 %v16418_v26  ;;  %v9445_v26 = vadd.f32 %v9444_v25, %v9443_v48  ;;  %v9447_v10 = vpop.f32.mrb[121].mxu1 }
 0x20b   : > { %3067 = vmatprep.mubr.f32.mxu0 %v16422_v31  ;;  %11257 = vmatpush1.bf16.msra.mxu0 %v11256_v2  ;;  %v16599_v31 = vld [vmem:[#allocation2 + $0x160] sm:$0xff]  ;;  %v9448_v34 = vadd.f32 %v9447_v10, %v9446_v0 }
 0x20c   : > { %10501 = vmatprep.mubr.f32.mxu1 %v16599_v31  ;;  %v16603_v13 = vadd.f32 %v9445_v26, %v16241_v54  ;;  %v9449_v54 = vpop.f32.mrb[122].mxu1 }
 0x20d   : > { %v16614_v56 = vadd.f32 %v9448_v34, %v16270_v12  ;;  %v9450_v43 = vpop.f32.mrb[123].mxu1 }
 0x20e   : > { %3068 = vmatmul.mubr.f32.gmra.mrb[16].mxu0 %v16441_v1  ;;  %v16606_v1 = vld [vmem:[#allocation2 + $0x1d8] sm:$0xff]  ;;  %v9451_v23 = vadd.f32 %v9450_v43, %v9449_v54  ;;  %v9452_v12 = vpop.f32.mrb[124].mxu1 }
 0x20f   : > { %3073 = vmatprep.mubr.f32.mxu0 %v16445_v63  ;;  %10502 = vmatmul.mubr.f32.gmra.mrb[226].mxu1 %v16606_v1  ;;  %v16610_v63 = vld [vmem:[#allocation2 + $0x250] sm:$0xff]  ;;  %v9453_v6 = vpop.f32.mrb[125].mxu1 }
 0x210   : > { %10504 = vmatprep.mubr.f32.mxu1 %v16610_v63  ;;  %v16625_v50 = vadd.f32 %v9451_v23, %v16299_v4  ;;  %v9454_v46 = vadd.f32 %v9453_v6, %v9452_v12  ;;  %v9455_v4 = vpop.f32.mrb[126].mxu1 }
 0x211   : > { %v9456_v35 = vpop.f32.mrb[127].mxu1 }
 0x212   : > { %3074 = vmatmul.mubr.f32.gmra.mrb[18].mxu0 %v16464_v37  ;;  %v16617_v37 = vld [vmem:[#allocation2 + $0x2c8] sm:$0xff]  ;;  %v16636_v60 = vadd.f32 %v9454_v46, %v16328_v15  ;;  %v9457_v42 = vadd.f32 %v9456_v35, %v9455_v4  ;;  %v9490_v15 = vpop.f32.mrb[128].mxu1 }
 0x213   : > { %3079 = vmatprep.mubr.f32.mxu0 %v16468_v28  ;;  %10505 = vmatmul.mubr.f32.gmra.mrb[228].mxu1 %v16617_v37  ;;  %v16621_v28 = vld [vmem:[#allocation2 + $0x340] sm:$0xff]  ;;  %v9491_v61 = vpop.f32.mrb[129].mxu1 }
 0x214   : > { %10507 = vmatprep.mubr.f32.mxu1 %v16621_v28  ;;  %v16647_v11 = vadd.f32 %v9457_v42, %v16357_v45  ;;  %v9492_v8 = vadd.f32 %v9491_v61, %v9490_v15  ;;  %v9493_v45 = vpop.f32.mrb[130].mxu1 }
 0x215   : > { %v9494_v53 = vpop.f32.mrb[131].mxu1 }
 0x216   : > { %3080 = vmatmul.mubr.f32.gmra.mrb[20].mxu0 %v16487_v38  ;;  %v16628_v38 = vld [vmem:[#allocation2 + $0x3b8] sm:$0xff]  ;;  %v16658_v44 = vadd.f32 %v9492_v8, %v16386_v24  ;;  %v9495_v40 = vadd.f32 %v9494_v53, %v9493_v45  ;;  %v9496_v36 = vpop.f32.mrb[132].mxu1 }
 0x217   : > { %3085 = vmatprep.mubr.f32.mxu0 %v16491_v29  ;;  %10508 = vmatmul.mubr.f32.gmra.mrb[230].mxu1 %v16628_v38  ;;  %v16632_v29 = vld [vmem:[#allocation2 + $0x430] sm:$0xff]  ;;  %v9497_v33 = vpop.f32.mrb[133].mxu1 }
 0x218   : > { %10510 = vmatprep.mubr.f32.mxu1 %v16632_v29  ;;  %v16671_v24 = vadd.f32 %v9495_v40, %v16409_v3  ;;  %v9499_v2 = vpop.f32.mrb[134].mxu1 }
 0x219   : > { %v9500_v3 = vpop.f32.mrb[135].mxu1 }
 0x21a   : > { %3086 = vmatmul.mubr.f32.gmra.mrb[22].mxu0 %v16510_v57  ;;  %v16639_v57 = vld [vmem:[#allocation2 + $0x4a8] sm:$0xff] }
 0x21b   : > { %3091 = vmatprep.mubr.f32.mxu0 %v16514_v49  ;;  %10511 = vmatmul.mubr.f32.gmra.mrb[232].mxu1 %v16639_v57  ;;  %v16643_v49 = vld [vmem:[#allocation2 + $0x520] sm:$0xff] }
 0x21c   : > { %10513 = vmatprep.mubr.f32.mxu1 %v16643_v49  ;;  %v9502_v27 = vpop.f32.mrb[136].mxu1 }
 0x21d   : > { %v9503_v51 = vpop.f32.mrb[137].mxu1 }
 0x21e   : > { %3092 = vmatmul.mubr.f32.gmra.mrb[24].mxu0 %v16533_v21  ;;  %v16650_v21 = vld [vmem:[#allocation2 + $0x598] sm:$0xff]  ;;  %v9504_v48 = vadd.f32 %v9503_v51, %v9502_v27 }
 0x21f   : > { %3097 = vmatprep.mubr.f32.mxu0 %v16537_v59  ;;  %10514 = vmatmul.mubr.f32.gmra.mrb[234].mxu1 %v16650_v21  ;;  %v16654_v59 = vld [vmem:[#allocation2 + $0x610] sm:$0xff] }
 0x220   : > { %10516 = vmatprep.mubr.f32.mxu1 %v16654_v59  ;;  %v9505_v25 = vpop.f32.mrb[138].mxu1 }
 0x222   : > { %3098 = vmatmul.mubr.f32.gmra.mrb[26].mxu0 %v16556_v47  ;;  %v16661_v47 = vld [vmem:[#allocation2 + $0x688] sm:$0xff] }
 0x223   : > { %3103 = vmatprep.mubr.f32.mxu0 %v16560_v39  ;;  %10517 = vmatmul.mubr.f32.gmra.mrb[236].mxu1 %v16661_v47  ;;  %v16665_v39 = vld [vmem:[#allocation2 + $0x700] sm:$0xff] }
 0x224   : > { %10519 = vmatprep.mubr.f32.mxu1 %v16665_v39 }
 0x226   : > { %3104 = vmatmul.mubr.f32.gmra.mrb[28].mxu0 %v16575_v41  ;;  %v16675_v41 = vld [vmem:[#allocation4] sm:$0xff] }
 0x227   : > { %3109 = vmatprep.mubr.f32.mxu0 %v16563_v32  ;;  %10520 = vmatmul.mubr.f32.gmra.mrb[238].mxu1 %v16668_v52  ;;  %v9498_v32 = vadd.f32 %v9497_v33, %v9496_v36 }
 0x228   : > { %4557 = vmatprep.mubr.f32.mxu1 %v16675_v41 }
 0x229   : > { %v16680_v20 = vadd.f32 %v9498_v32, %v16432_v18  ;;  %v16690_v18 = vadd.f32 %v9504_v48, %v16478_v30 }
 0x22a   : > { %3110 = vmatmul.mubr.f32.gmra.mrb[30].mxu0 %v16580_v17  ;;  %v9501_v17 = vadd.f32 %v9500_v3, %v9499_v2 }
 0x22b   : > { %3180 = vmatprep.mubr.f32.mxu0 %v16675_v41 }
 0x22c   : > { %v16685_v19 = vadd.f32 %v9501_v17, %v16455_v9 }
 0x22e   : > { %3181 = vmatmul.mubr.f32.vlgmr.msra.gmra.mrb[0].mxu0 %v16588_v5  ;;  %v9506_v5 = vpop.f32.mrb[139].mxu1 }
 0x22f   : > { %3186 = vmatprep.mubr.f32.mxu0 %v16675_v41  ;;  %v9507_v26 = vadd.f32 %v9506_v5, %v9505_v25  ;;  %v9508_v0 = vpop.f32.mrb[140].mxu1 }
 0x231   : > { %v16695_v9 = vadd.f32 %v9507_v26, %v16501_v16 }
 0x232   : > { %3187 = vmatmul.mubr.f32.gmra.mrb[2].mxu0 %v16595_v7  ;;  %v9509_v7 = vpop.f32.mrb[141].mxu1 }
 0x233   : > { %3192 = vmatprep.mubr.f32.mxu0 %v16675_v41  ;;  %v9510_v10 = vadd.f32 %v9509_v7, %v9508_v0  ;;  %v9511_v34 = vpop.f32.mrb[142].mxu1 }
 0x235   : > { %v16700_v30 = vadd.f32 %v9510_v10, %v16524_v55 }
 0x236   : > { %3193 = vmatmul.mubr.f32.gmra.mrb[4].mxu0 %v16599_v31  ;;  %v9512_v31 = vpop.f32.mrb[143].mxu1 }
 0x237   : > { %3198 = vmatprep.mubr.f32.mxu0 %v16675_v41  ;;  %v9513_v54 = vadd.f32 %v9512_v31, %v9511_v34  ;;  %v9514_v43 = vpop.f32.mrb[144].mxu1 }
 0x239   : > { %v16705_v16 = vadd.f32 %v9513_v54, %v16547_v58 }
 0x23a   : > { %3199 = vmatmul.mubr.f32.gmra.mrb[6].mxu0 %v16606_v1  ;;  %v9515_v1 = vpop.f32.mrb[145].mxu1 }
 0x23b   : > { %3204 = vmatprep.mubr.f32.mxu0 %v16675_v41  ;;  %v9516_v23 = vadd.f32 %v9515_v1, %v9514_v43  ;;  %v9517_v12 = vpop.f32.mrb[146].mxu1 }
 0x23d   : > { %v16710_v55 = vadd.f32 %v9516_v23, %v16572_v14 }
 0x23e   : > { %3205 = vmatmul.mubr.f32.gmra.mrb[8].mxu0 %v16610_v63  ;;  %v9518_v63 = vpop.f32.mrb[147].mxu1 }
 0x23f   : > { %3210 = vmatprep.mubr.f32.mxu0 %v16675_v41  ;;  %v9519_v6 = vadd.f32 %v9518_v63, %v9517_v12  ;;  %v9520_v46 = vpop.f32.mrb[148].mxu1 }
 0x241   : > { %v16715_v58 = vadd.f32 %v9519_v6, %v16583_v62 }
 0x242   : > { %3211 = vmatmul.mubr.f32.gmra.mrb[10].mxu0 %v16617_v37  ;;  %v9521_v37 = vpop.f32.mrb[149].mxu1 }
 0x243   : > { %3216 = vmatprep.mubr.f32.mxu0 %v16675_v41  ;;  %v9522_v4 = vadd.f32 %v9521_v37, %v9520_v46  ;;  %v9523_v35 = vpop.f32.mrb[150].mxu1 }
 0x245   : > { %v16720_v14 = vadd.f32 %v9522_v4, %v16592_v22 }
 0x246   : > { %3217 = vmatmul.mubr.f32.gmra.mrb[12].mxu0 %v16621_v28  ;;  %v9524_v28 = vpop.f32.mrb[151].mxu1 }
 0x247   : > { %3222 = vmatprep.mubr.f32.mxu0 %v16675_v41  ;;  %v9525_v42 = vadd.f32 %v9524_v28, %v9523_v35  ;;  %v9526_v15 = vpop.f32.mrb[152].mxu1 }
 0x249   : > { %v16725_v62 = vadd.f32 %v9525_v42, %v16603_v13 }
 0x24a   : > { %3223 = vmatmul.mubr.f32.gmra.mrb[14].mxu0 %v16628_v38  ;;  %v9527_v38 = vpop.f32.mrb[153].mxu1 }
 0x24b   : > { %3228 = vmatprep.mubr.f32.mxu0 %v16675_v41  ;;  %v9528_v61 = vadd.f32 %v9527_v38, %v9526_v15  ;;  %v9529_v8 = vpop.f32.mrb[154].mxu1 }
 0x24d   : > { %v16730_v22 = vadd.f32 %v9528_v61, %v16614_v56 }
 0x24e   : > { %3229 = vmatmul.mubr.f32.gmra.mrb[16].mxu0 %v16632_v29  ;;  %v9530_v29 = vpop.f32.mrb[155].mxu1 }
 0x24f   : > { %3234 = vmatprep.mubr.f32.mxu0 %v16675_v41  ;;  %v9531_v45 = vadd.f32 %v9530_v29, %v9529_v8  ;;  %v9532_v53 = vpop.f32.mrb[156].mxu1 }
 0x251   : > { %v16735_v13 = vadd.f32 %v9531_v45, %v16625_v50 }
 0x252   : > { %3235 = vmatmul.mubr.f32.gmra.mrb[18].mxu0 %v16639_v57  ;;  %v9533_v57 = vpop.f32.mrb[157].mxu1 }
 0x253   : > { %3240 = vmatprep.mubr.f32.mxu0 %v16675_v41  ;;  %v9534_v40 = vadd.f32 %v9533_v57, %v9532_v53  ;;  %v9535_v36 = vpop.f32.mrb[158].mxu1 }
 0x255   : > { %v16740_v56 = vadd.f32 %v9534_v40, %v16636_v60 }
 0x256   : > { %3241 = vmatmul.mubr.f32.gmra.mrb[20].mxu0 %v16643_v49  ;;  %v9536_v49 = vpop.f32.mrb[159].mxu1 }
 0x257   : > { %3246 = vmatprep.mubr.f32.mxu0 %v16675_v41  ;;  %v9537_v33 = vadd.f32 %v9536_v49, %v9535_v36  ;;  %v9570_v32 = vpop.f32.mrb[160].mxu1 }
 0x259   : > { %v16745_v50 = vadd.f32 %v9537_v33, %v16647_v11 }
 0x25a   : > { %3247 = vmatmul.mubr.f32.gmra.mrb[22].mxu0 %v16650_v21  ;;  %v9571_v21 = vpop.f32.mrb[161].mxu1 }
 0x25b   : > { %3252 = vmatprep.mubr.f32.mxu0 %v16675_v41  ;;  %v9572_v2 = vadd.f32 %v9571_v21, %v9570_v32  ;;  %v9573_v3 = vpop.f32.mrb[162].mxu1 }
 0x25d   : > { %v16750_v60 = vadd.f32 %v9572_v2, %v16658_v44 }
 0x25e   : > { %3253 = vmatmul.mubr.f32.gmra.mrb[24].mxu0 %v16654_v59  ;;  %v9574_v59 = vpop.f32.mrb[163].mxu1 }
 0x25f   : > { %3258 = vmatprep.mubr.f32.mxu0 %v16675_v41  ;;  %v9575_v17 = vadd.f32 %v9574_v59, %v9573_v3  ;;  %v9576_v27 = vpop.f32.mrb[164].mxu1 }
 0x261   : > { %v16755_v11 = vadd.f32 %v9575_v17, %v16671_v24 }
 0x262   : > { %3259 = vmatmul.mubr.f32.gmra.mrb[26].mxu0 %v16661_v47  ;;  %v9577_v47 = vpop.f32.mrb[165].mxu1 }
 0x263   : > { %3264 = vmatprep.mubr.f32.mxu0 %v16675_v41  ;;  %v9578_v51 = vadd.f32 %v9577_v47, %v9576_v27  ;;  %v9579_v44 = vpop.f32.mrb[166].mxu1 }
 0x264   : > { %v9580_v25 = vpop.f32.mrb[167].mxu1 }
 0x265   : > { %v16759_v48 = vadd.f32 %v9578_v51, %v16680_v20  ;;  %v9581_v5 = vadd.f32 %v9580_v25, %v9579_v44  ;;  %v9582_v26 = vpop.f32.mrb[168].mxu1 }
 0x266   : > { %3265 = vmatmul.mubr.f32.gmra.mrb[28].mxu0 %v16665_v39  ;;  %v9583_v0 = vpop.f32.mrb[169].mxu1 }
 0x267   : > { %3270 = vmatprep.mubr.f32.mxu0 %v16675_v41  ;;  %v16762_v39 = vadd.f32 %v9581_v5, %v16685_v19  ;;  %v9584_v7 = vadd.f32 %v9583_v0, %v9582_v26  ;;  %v9585_v10 = vpop.f32.mrb[170].mxu1 }
 0x268   : > { %v9586_v34 = vpop.f32.mrb[171].mxu1 }
 0x269   : > { %v16765_v24 = vadd.f32 %v9584_v7, %v16690_v18  ;;  %v9588_v20 = vpop.f32.mrb[172].mxu1 }
 0x26a   : > { %3271 = vmatmul.mubr.f32.gmra.mrb[30].mxu0 %v16668_v52  ;;  %v9587_v52 = vadd.f32 %v9586_v34, %v9585_v10  ;;  %v9589_v54 = vpop.f32.mrb[173].mxu1 }
 0x26b   : > { %v9590_v43 = vadd.f32 %v9589_v54, %v9588_v20  ;;  %v9591_v19 = vpop.f32.mrb[174].mxu1 }
 0x26c   : > { %v16768_v31 = vadd.f32 %v9587_v52, %v16695_v9  ;;  %v9592_v23 = vpop.f32.mrb[175].mxu1 }
 0x26d   : > { %v16771_v1 = vadd.f32 %v9590_v43, %v16700_v30  ;;  %v9593_v12 = vadd.f32 %v9592_v23, %v9591_v19  ;;  %v9594_v18 = vpop.f32.mrb[176].mxu1 }
 0x26e   : > { %v9595_v6 = vpop.f32.mrb[177].mxu1 }
 0x26f   : > { %v16774_v63 = vadd.f32 %v9593_v12, %v16705_v16  ;;  %v9596_v46 = vadd.f32 %v9595_v6, %v9594_v18 }
 0x270   : > { %v9597_v9 = vpop.f32.mrb[178].mxu1 }
 0x271   : > { %v16777_v37 = vadd.f32 %v9596_v46, %v16710_v55  ;;  %v9598_v4 = vpop.f32.mrb[179].mxu1 }
 0x272   : > { %v9599_v35 = vadd.f32 %v9598_v4, %v9597_v9 }
 0x274   : > { %v16780_v28 = vadd.f32 %v9599_v35, %v16715_v58  ;;  %v9600_v30 = vpop.f32.mrb[180].mxu1 }
 0x275   : > { %v9601_v42 = vpop.f32.mrb[181].mxu1 }
 0x276   : > { %v9602_v15 = vadd.f32 %v9601_v42, %v9600_v30 }
 0x278   : > { %v16783_v38 = vadd.f32 %v9602_v15, %v16720_v14  ;;  %v9603_v16 = vpop.f32.mrb[182].mxu1 }
 0x279   : > { %v9604_v61 = vpop.f32.mrb[183].mxu1 }
 0x27a   : > { %v9605_v8 = vadd.f32 %v9604_v61, %v9603_v16 }
 0x27c   : > { %v16786_v29 = vadd.f32 %v9605_v8, %v16725_v62  ;;  %v9606_v55 = vpop.f32.mrb[184].mxu1 }
 0x27d   : > { %v9607_v45 = vpop.f32.mrb[185].mxu1 }
 0x27e   : > { %v9608_v53 = vadd.f32 %v9607_v45, %v9606_v55 }
 0x280   : > { %v16789_v57 = vadd.f32 %v9608_v53, %v16730_v22  ;;  %v9609_v58 = vpop.f32.mrb[186].mxu1 }
 0x281   : > { %v9610_v40 = vpop.f32.mrb[187].mxu1 }
 0x282   : > { %v9611_v36 = vadd.f32 %v9610_v40, %v9609_v58 }
 0x284   : > { %v16792_v49 = vadd.f32 %v9611_v36, %v16735_v13  ;;  %v9612_v14 = vpop.f32.mrb[188].mxu1 }
 0x285   : > { %v9613_v33 = vpop.f32.mrb[189].mxu1 }
 0x286   : > { %v9614_v32 = vadd.f32 %v9613_v33, %v9612_v14 }
 0x288   : > { %v16795_v21 = vadd.f32 %v9614_v32, %v16740_v56  ;;  %v9615_v62 = vpop.f32.mrb[190].mxu1 }
 0x289   : > { %v9616_v2 = vpop.f32.mrb[191].mxu1 }
 0x28a   : > { %v9617_v3 = vadd.f32 %v9616_v2, %v9615_v62 }
 0x28c   : > { %v16798_v59 = vadd.f32 %v9617_v3, %v16745_v50 }
 0x29b   : > { %v9650_v22 = vpop.f32.mrb[192].mxu1 }
 0x29c   : > { %v9651_v17 = vpop.f32.mrb[193].mxu1 }
 0x29d   : > { %v9652_v27 = vadd.f32 %v9651_v17, %v9650_v22 }
 0x29f   : > { %v9653_v47 = vpop.f32.mrb[194].mxu1  ;;  %v16801_v51 = vadd.f32 %v9652_v27, %v16750_v60 }
 0x2a0   : > { %v9654_v13 = vpop.f32.mrb[195].mxu1 }
 0x2a1   : > { %v9655_v44 = vadd.f32 %v9654_v13, %v9653_v47 }
 0x2a3   : > { %v9656_v25 = vpop.f32.mrb[196].mxu1  ;;  %v4219_v5 = vadd.f32 %v9655_v44, %v16755_v11 }
 0x2a4   : > { %v9657_v56 = vpop.f32.mrb[197].mxu1 }
 0x2a5   : > { %v9658_v26 = vadd.f32 %v9657_v56, %v9656_v25 }
 0x2a7   : > { %v9659_v0 = vpop.f32.mrb[198].mxu1  ;;  %v4224_v7 = vadd.f32 %v9658_v26, %v16759_v48 }
 0x2a8   : > { %v9660_v10 = vpop.f32.mrb[199].mxu1 }
 0x2a9   : > { %v9661_v50 = vadd.f32 %v9660_v10, %v9659_v0 }
 0x2ab   : > { %v9662_v34 = vpop.f32.mrb[200].mxu1  ;;  %v4229_v52 = vadd.f32 %v9661_v50, %v16762_v39 }
 0x2ac   : > { %v9663_v20 = vpop.f32.mrb[201].mxu1 }
 0x2ad   : > { %v9664_v54 = vadd.f32 %v9663_v20, %v9662_v34 }
 0x2af   : > { %v9665_v43 = vpop.f32.mrb[202].mxu1  ;;  %v4234_v60 = vadd.f32 %v9664_v54, %v16765_v24 }
 0x2b0   : > { %v9666_v19 = vpop.f32.mrb[203].mxu1 }
 0x2b1   : > { %v9667_v23 = vadd.f32 %v9666_v19, %v9665_v43 }
 0x2b3   : > { %v9668_v12 = vpop.f32.mrb[204].mxu1  ;;  %v4239_v11 = vadd.f32 %v9667_v23, %v16768_v31 }
 0x2b4   : > { %v9669_v18 = vpop.f32.mrb[205].mxu1 }
 0x2b5   : > { %v9670_v6 = vadd.f32 %v9669_v18, %v9668_v12 }
 0x2b7   : > { %v9671_v46 = vpop.f32.mrb[206].mxu1  ;;  %v4244_v48 = vadd.f32 %v9670_v6, %v16771_v1 }
 0x2b8   : > { %v9672_v9 = vpop.f32.mrb[207].mxu1 }
 0x2b9   : > { %v9673_v4 = vadd.f32 %v9672_v9, %v9671_v46 }
 0x2bb   : > { %v9674_v35 = vpop.f32.mrb[208].mxu1  ;;  %v4249_v39 = vadd.f32 %v9673_v4, %v16774_v63 }
 0x2bc   : > { %v9675_v30 = vpop.f32.mrb[209].mxu1 }
 0x2bd   : > { %v9676_v42 = vadd.f32 %v9675_v30, %v9674_v35 }
 0x2bf   : > { %v9677_v15 = vpop.f32.mrb[210].mxu1  ;;  %v4254_v24 = vadd.f32 %v9676_v42, %v16777_v37 }
 0x2c0   : > { %v9678_v16 = vpop.f32.mrb[211].mxu1 }
 0x2c1   : > { %v9679_v61 = vadd.f32 %v9678_v16, %v9677_v15 }
 0x2c3   : > { %v9680_v8 = vpop.f32.mrb[212].mxu1  ;;  %v4259_v31 = vadd.f32 %v9679_v61, %v16780_v28 }
 0x2c4   : > { %v9681_v55 = vpop.f32.mrb[213].mxu1 }
 0x2c5   : > { %v9682_v45 = vadd.f32 %v9681_v55, %v9680_v8 }
 0x2c7   : > { %v9683_v53 = vpop.f32.mrb[214].mxu1  ;;  %v4264_v1 = vadd.f32 %v9682_v45, %v16783_v38 }
 0x2c8   : > { %v9684_v58 = vpop.f32.mrb[215].mxu1 }
 0x2c9   : > { %v9685_v40 = vadd.f32 %v9684_v58, %v9683_v53 }
 0x2cb   : > { %v9686_v36 = vpop.f32.mrb[216].mxu1  ;;  %v4269_v63 = vadd.f32 %v9685_v40, %v16786_v29 }
 0x2cc   : > { %v9687_v14 = vpop.f32.mrb[217].mxu1 }
 0x2cd   : > { %v9688_v33 = vadd.f32 %v9687_v14, %v9686_v36 }
 0x2cf   : > { %v9689_v32 = vpop.f32.mrb[218].mxu1  ;;  %v4274_v37 = vadd.f32 %v9688_v33, %v16789_v57 }
 0x2d0   : > { %v9690_v62 = vpop.f32.mrb[219].mxu1 }
 0x2d1   : > { %v9691_v2 = vadd.f32 %v9690_v62, %v9689_v32 }
 0x2d3   : > { %v9692_v3 = vpop.f32.mrb[220].mxu1  ;;  %v4279_v28 = vadd.f32 %v9691_v2, %v16792_v49 }
 0x2d4   : > { %v9693_v22 = vpop.f32.mrb[221].mxu1 }
 0x2d5   : > { %v9694_v17 = vadd.f32 %v9693_v22, %v9692_v3 }
 0x2d7   : > { %v9695_v27 = vpop.f32.mrb[222].mxu1  ;;  %v4284_v38 = vadd.f32 %v9694_v17, %v16795_v21 }
 0x2d8   : > { %v9696_v47 = vpop.f32.mrb[223].mxu1 }
 0x2d9   : > { %v9697_v13 = vadd.f32 %v9696_v47, %v9695_v27 }
 0x2db   : > { %v10500_v44 = vpop.f32.mrb[224].mxu1  ;;  %v4289_v29 = vadd.f32 %v9697_v13, %v16798_v59 }
 0x2dc   : > { %v16818_v25 = vadd.f32 %v10500_v44, %v4219_v5  ;;  %v4358_v56 = vpop.f32.mrb[225].mxu1 }
 0x2dd   : > { %v16821_v57 = vadd.f32 %v4358_v56, %v16801_v51 }
 0x2df   : > { %v11549_v26 = vpack.c.bf16 %v16818_v25, %v16821_v57  ;;  %v4439_v25 = vld [vmem:[%s19978_s2 + $0x10] sm:$0xff]  ;;  %v4440_v57 = vld [vmem:[%s19978_s2 + $0x18] sm:$0xff] }
 0x2e2   : > { %v10503_v49 = vpop.f32.mrb[226].mxu1 }
 0x2e3   : > { %v16825_v0 = vadd.f32 %v10503_v49, %v4229_v52  ;;  %v4368_v10 = vpop.f32.mrb[227].mxu1 }
 0x2e4   : > { %v16827_v50 = vadd.f32 %v4368_v10, %v4224_v7 }
 0x2e6   : > { %v11552_v21 = vpack.c.bf16 %v16825_v0, %v16827_v50  ;;  %v10506_v34 = vpop.f32.mrb[228].mxu1  ;;  %v4442_v0 = vld [vmem:[%s19978_s2 + $0x28] sm:$0xff]  ;;  %v4443_v50 = vld [vmem:[%s19978_s2 + $0x30] sm:$0x3] }
 0x2e7   : > { %v16831_v59 = vadd.f32 %v10506_v34, %v4239_v11  ;;  %v4378_v5 = vpop.f32.mrb[229].mxu1 }
 0x2e8   : > { %v16833_v20 = vadd.f32 %v4378_v5, %v4234_v60 }
 0x2ea   : > { %v11555_v51 = vpack.c.bf16 %v16831_v59, %v16833_v20  ;;  %v10509_v54 = vpop.f32.mrb[230].mxu1  ;;  %v4446_v59 = vlaneseq }
 0x2eb   : > { %v16837_v43 = vadd.f32 %v10509_v54, %v4249_v39  ;;  %v4388_v52 = vpop.f32.mrb[231].mxu1 }
 0x2ec   : > { %v16839_v19 = vadd.f32 %v4388_v52, %v4244_v48  ;;  %v16973_v20 = vshrl.u32 %v4446_v59, 7  ;;  %v4929_v59 = vld [vmem:[%s19981_s5 + $0x38] sm:$0xff] }
 0x2ee   : > { %v11558_v7 = vpack.c.bf16 %v16837_v43, %v16839_v19  ;;  %v10512_v23 = vpop.f32.mrb[232].mxu1  ;;  %v16979_v43 = vld [vmem:[%s19979_s3] sm:$0x7]  ;;  %v4452_v19 = vsub.s32 1, %v16973_v20 }
 0x2ef   : > { %v16843_v12 = vadd.f32 %v10512_v23, %v4259_v31  ;;  %v4398_v11 = vpop.f32.mrb[233].mxu1 }
 0x2f0   : > { %v16845_v18 = vadd.f32 %v4398_v11, %v4254_v24 }
 0x2f2   : > { %v11561_v60 = vpack.c.bf16 %v16843_v12, %v16845_v18  ;;  %v10515_v6 = vpop.f32.mrb[234].mxu1  ;;  %v4453_v12 = vrot.slane %v16979_v43, %v4452_v19  ;;  %v4928_v19 = vld [vmem:[%s19981_s5 + $0x30] sm:$0xff] }
 0x2f3   : > { %v16849_v46 = vadd.f32 %v10515_v6, %v4269_v63  ;;  %v4408_v9 = vpop.f32.mrb[235].mxu1 }
 0x2f4   : > { %v16851_v4 = vadd.f32 %v4408_v9, %v4264_v1 }
 0x2f6   : > { %v11564_v48 = vpack.c.bf16 %v16849_v46, %v16851_v4  ;;  %v10518_v35 = vpop.f32.mrb[236].mxu1 }
 0x2f7   : > { %v16855_v39 = vadd.f32 %v10518_v35, %v4279_v28  ;;  %v4418_v30 = vpop.f32.mrb[237].mxu1 }
 0x2f8   : > { %v16857_v42 = vadd.f32 %v4418_v30, %v4274_v37 }
 0x2fa   : > { %v11567_v15 = vpack.c.bf16 %v16855_v39, %v16857_v42  ;;  %v10521_v24 = vpop.f32.mrb[238].mxu1 }
 0x2fb   : > { %v16861_v16 = vadd.f32 %v10521_v24, %v4289_v29  ;;  %v4428_v61 = vpop.f32.mrb[239].mxu1 }
 0x2fc   : > { %v16863_v8 = vadd.f32 %v4428_v61, %v4284_v38 }
 0x2fe   : > { %v11570_v55 = vpack.c.bf16 %v16861_v16, %v16863_v8 }
 0x301   : > { %v3182_v31 = vpop.f32.mrb[0].mxu0 }
 0x302   : > { %v3184_v45 = vpop.f32.mrb[1].mxu0 }
 0x305   : > { %v3188_v53 = vpop.f32.mrb[2].mxu0 }
 0x306   : > { %v11516_v1 = vpack.c.bf16 %v3188_v53, %v3182_v31  ;;  %v3190_v58 = vpop.f32.mrb[3].mxu0 }
 0x307   : > { %v11514_v40 = vpack.c.bf16 %v3190_v58, %v3184_v45 }
 0x309   : > { %v3194_v36 = vpop.f32.mrb[4].mxu0  ;;  %11515 = vmatprep.subr.bf16.mxu1 %v11514_v40 }
 0x30a   : > { %v3196_v63 = vpop.f32.mrb[5].mxu0  ;;  %11517 = vmatpush1.bf16.msra.mxu1 %v11516_v1 }
 0x30d   : > { %v3200_v14 = vpop.f32.mrb[6].mxu0 }
 0x30e   : > { %v11520_v33 = vpack.c.bf16 %v3200_v14, %v3194_v36  ;;  %v3202_v32 = vpop.f32.mrb[7].mxu0  ;;  %v6505_v14 = vld [vmem:[%s19982_s6 + $0x388] sm:$0xff] }
 0x30f   : > { %v11518_v37 = vpack.c.bf16 %v3202_v32, %v3196_v63  ;;  %v4437_v32 = vld [vmem:[%s19978_s2] sm:$0xff] }
 0x311   : > { %v3206_v62 = vpop.f32.mrb[8].mxu0  ;;  %11519 = vmatprep.subr.bf16.mxu1 %v11518_v37  ;;  %v12905_v37 = vmov 0.0|0.0  }
 0x312   : > { %v3208_v2 = vpop.f32.mrb[9].mxu0  ;;  %11521 = vmatpush1.bf16.msra.mxu1 %v11520_v33 }
 0x315   : > { %v3212_v3 = vpop.f32.mrb[10].mxu0 }
 0x316   : > { %v11524_v28 = vpack.c.bf16 %v3212_v3, %v3206_v62  ;;  %v3214_v22 = vpop.f32.mrb[11].mxu0  ;;  %v4438_v62 = vld [vmem:[%s19978_s2 + $0x8] sm:$0xff] }
 0x317   : > { %v11522_v17 = vpack.c.bf16 %v3214_v22, %v3208_v2 }
 0x319   : > { %v3218_v27 = vpop.f32.mrb[12].mxu0  ;;  %11523 = vmatprep.subr.bf16.mxu1 %v11522_v17 }
 0x31a   : > { %v3220_v38 = vpop.f32.mrb[13].mxu0  ;;  %11525 = vmatpush1.bf16.msra.mxu1 %v11524_v28 }
 0x31d   : > { %v3224_v47 = vpop.f32.mrb[14].mxu0 }
 0x31e   : > { %v11528_v13 = vpack.c.bf16 %v3224_v47, %v3218_v27  ;;  %v3226_v44 = vpop.f32.mrb[15].mxu0 }
 0x31f   : > { %v11526_v29 = vpack.c.bf16 %v3226_v44, %v3220_v38 }
 0x321   : > { %v3230_v56 = vpop.f32.mrb[16].mxu0  ;;  %11527 = vmatprep.subr.bf16.mxu1 %v11526_v29 }
 0x322   : > { %v3232_v49 = vpop.f32.mrb[17].mxu0  ;;  %11529 = vmatpush1.bf16.msra.mxu1 %v11528_v13 }
 0x325   : > { %v3236_v10 = vpop.f32.mrb[18].mxu0 }
 0x326   : > { %v11532_v34 = vpack.c.bf16 %v3236_v10, %v3230_v56  ;;  %v3238_v5 = vpop.f32.mrb[19].mxu0 }
 0x327   : > { %v11530_v54 = vpack.c.bf16 %v3238_v5, %v3232_v49 }
 0x329   : > { %v3242_v52 = vpop.f32.mrb[20].mxu0  ;;  %11531 = vmatprep.subr.bf16.mxu1 %v11530_v54 }
 0x32a   : > { %v3244_v23 = vpop.f32.mrb[21].mxu0  ;;  %11533 = vmatpush1.bf16.msra.mxu1 %v11532_v34 }
 0x32d   : > { %v3248_v11 = vpop.f32.mrb[22].mxu0 }
 0x32e   : > { %v11536_v6 = vpack.c.bf16 %v3248_v11, %v3242_v52  ;;  %v3250_v9 = vpop.f32.mrb[23].mxu0 }
 0x32f   : > { %v11534_v35 = vpack.c.bf16 %v3250_v9, %v3244_v23 }
 0x331   : > { %v3254_v30 = vpop.f32.mrb[24].mxu0  ;;  %11535 = vmatprep.subr.bf16.mxu1 %v11534_v35 }
 0x332   : > { %v3256_v24 = vpop.f32.mrb[25].mxu0  ;;  %11537 = vmatpush1.bf16.msra.mxu1 %v11536_v6 }
 0x335   : > { %v3260_v61 = vpop.f32.mrb[26].mxu0 }
 0x336   : > { %v11540_v31 = vpack.c.bf16 %v3260_v61, %v3254_v30  ;;  %v3262_v45 = vpop.f32.mrb[27].mxu0 }
 0x337   : > { %v11538_v53 = vpack.c.bf16 %v3262_v45, %v3256_v24 }
 0x339   : > { %v3266_v1 = vpop.f32.mrb[28].mxu0  ;;  %11539 = vmatprep.subr.bf16.mxu1 %v11538_v53  ;;  %v4456_v53 = vsub.s32 2, %v16973_v20 }
 0x33a   : > { %v3268_v58 = vpop.f32.mrb[29].mxu0  ;;  %11541 = vmatpush1.bf16.msra.mxu1 %v11540_v31 }
 0x33d   : > { %v3272_v40 = vpop.f32.mrb[30].mxu0 }
 0x33e   : > { %v11545_v36 = vpack.c.bf16 %v3272_v40, %v3266_v1  ;;  %v3274_v63 = vpop.f32.mrb[31].mxu0 }
 0x33f   : > { %v11542_v33 = vpack.c.bf16 %v3274_v63, %v3268_v58  ;;  %v16986_v58 = vrot.slane %v16979_v43, %v4456_v53 }
 0x341   : > { %11544 = vmatprep.subr.msk.bf16.mxu1 %vm16868_vm2, %v11542_v33 }
 0x342   : > { %11547 = vmatpush1.bf16.msk.msra.mxu1 %vm16868_vm2, %v11545_v36 }
 0x343   : > { %11548 = vmatprep.subr.bf16.mxu1 %v12905_v37 }
 0x345   : > { %9056 = vmatmul.mubr.msk.f32.vlgmr.msra.gmra.mrb[240].mxu1 %vm4461_vm3, %v4437_v32 }
 0x346   : > { %11550 = vmatpush3.bf16.msra.mxu1 %v11549_v26  ;;  %4563 = vmatprep.mubr.f32.mxu1 %v16675_v41  ;;  %v4441_v26 = vld [vmem:[%s19978_s2 + $0x20] sm:$0xff] }
 0x347   : > { %11551 = vmatprep.subr.bf16.mxu1 %v12905_v37 }
 0x349   : > { %9057 = vmatmul.mubr.msk.f32.gmra.mrb[242].mxu1 %vm4461_vm3, %v4438_v62 }
 0x34a   : > { %11553 = vmatpush3.bf16.msra.mxu1 %v11552_v21  ;;  %4569 = vmatprep.mubr.f32.mxu1 %v16675_v41  ;;  %v16969_v21 = vld [vmem:[%s19980_s4] sm:$0xff] }
 0x34b   : > { %11554 = vmatprep.subr.bf16.mxu1 %v12905_v37  ;;  %10589 = vmatprep.mubr.msk.f32.mxu0 %vm4725_vm5, %v16969_v21 }
 0x34d   : > { %9058 = vmatmul.mubr.msk.f32.gmra.mrb[244].mxu1 %vm4461_vm3, %v4439_v25 }
 0x34e   : > { %11556 = vmatpush3.bf16.msra.mxu1 %v11555_v51  ;;  %4575 = vmatprep.mubr.f32.mxu1 %v16675_v41  ;;  %v4448_v51 = vsub.s32 0, %v16973_v20 }
 0x34f   : > { %11557 = vmatprep.subr.bf16.mxu1 %v12905_v37 }
 0x351   : > { %9059 = vmatmul.mubr.msk.f32.gmra.mrb[246].mxu1 %vm4461_vm3, %v4440_v57 }
 0x352   : > { %11559 = vmatpush3.bf16.msra.mxu1 %v11558_v7  ;;  %4581 = vmatprep.mubr.f32.mxu1 %v16675_v41  ;;  %v4449_v7 = vrot.slane %v16979_v43, %v4448_v51  ;;  %v4922_v43 = vld [vmem:[%s19981_s5] sm:$0xff] }
 0x353   : > { %11560 = vmatprep.subr.bf16.mxu1 %v12905_v37 }
 0x355   : > { %9060 = vmatmul.mubr.msk.f32.gmra.mrb[248].mxu1 %vm4461_vm3, %v4441_v26 }
 0x356   : > { %11562 = vmatpush3.bf16.msra.mxu1 %v11561_v60  ;;  %4587 = vmatprep.mubr.f32.mxu1 %v16675_v41 }
 0x357   : > { %11563 = vmatprep.subr.bf16.mxu1 %v12905_v37 }
 0x359   : > { %9061 = vmatmul.mubr.msk.f32.gmra.mrb[250].mxu1 %vm4461_vm3, %v4442_v0 }
 0x35a   : > { %11565 = vmatpush3.bf16.msra.mxu1 %v11564_v48  ;;  %4593 = vmatprep.mubr.f32.mxu1 %v16675_v41 }
 0x35b   : > { %11566 = vmatprep.subr.bf16.mxu1 %v12905_v37 }
 0x35d   : > { %9062 = vmatmul.mubr.msk.f32.gmra.mrb[252].mxu1 %vm4461_vm3, %v4443_v50 }
 0x35e   : > { %11568 = vmatpush3.bf16.msra.mxu1 %v11567_v15  ;;  %10554 = vmatprep.mubr.msk.f32.mxu1 %vm12906_vm4, %v16675_v41 }
 0x35f   : > { %11569 = vmatprep.subr.bf16.mxu1 %v12905_v37 }
 0x362   : > { %11572 = vmatpush3.bf16.msk.msra.mxu1 %vm16868_vm2, %v11570_v55 }
 0x365   : > { %10555 = vmatmul.mubr.msk.f32.vlgmr.msra.gmra.mrb[254].mxu1 %vm4461_vm3, %v4437_v32 }
 0x366   : > { %10557 = vmatprep.mubr.msk.f32.mxu1 %vm12906_vm4, %v16675_v41 }
 0x369   : > { %10558 = vmatmul.mubr.msk.f32.gmra.mrb[0].mxu1 %vm4461_vm3, %v4438_v62 }
 0x36a   : > { %10560 = vmatprep.mubr.msk.f32.mxu1 %vm12906_vm4, %v16675_v41 }
 0x36d   : > { %10561 = vmatmul.mubr.msk.f32.gmra.mrb[2].mxu1 %vm4461_vm3, %v4439_v25 }
 0x36e   : > { %10563 = vmatprep.mubr.msk.f32.mxu1 %vm12906_vm4, %v16675_v41 }
 0x371   : > { %10564 = vmatmul.mubr.msk.f32.gmra.mrb[4].mxu1 %vm4461_vm3, %v4440_v57 }
 0x372   : > { %10566 = vmatprep.mubr.msk.f32.mxu1 %vm12906_vm4, %v16675_v41 }
 0x375   : > { %10567 = vmatmul.mubr.msk.f32.gmra.mrb[6].mxu1 %vm4461_vm3, %v4441_v26 }
 0x376   : > { %10569 = vmatprep.mubr.msk.f32.mxu1 %vm12906_vm4, %v16675_v41 }
 0x379   : > { %10570 = vmatmul.mubr.msk.f32.gmra.mrb[8].mxu1 %vm4461_vm3, %v4442_v0 }
 0x37a   : > { %10572 = vmatprep.mubr.msk.f32.mxu1 %vm12906_vm4, %v16675_v41 }
 0x37d   : > { %10573 = vmatmul.mubr.msk.f32.gmra.mrb[10].mxu1 %vm4461_vm3, %v4443_v50  ;;  %v4923_v50 = vld [vmem:[%s19981_s5 + $0x8] sm:$0xff] }
 0x37e   : > { %4812 = vmatprep.mubr.f32.mxu1 %v16675_v41 }
 0x418   : > { %v4559_v18 = vpop.f32.mrb[240].mxu1 }
 0x419   : > { %v4560_v60 = vadd.f32 %v4559_v18, %v4449_v7  ;;  %v4561_v46 = vpop.f32.mrb[241].mxu1  ;;  %v4941_v18 = vld [vmem:[%s19981_s5 + $0x98] sm:$0xff] }
 0x41a   : > { %v4562_v4 = vadd.f32 %v4561_v46, %v4453_v12  ;;  %v11597_v46 = vpack.c.bf16 %v4929_v59, %v4923_v50  ;;  %v4982_v59 = vld [vmem:[%s19981_s5 + $0x1e0] sm:$0xff] }
 0x41b   : > { %12690 = vtanh.f32 %v4560_v60 }
 0x41c   : > { %v4565_v48 = vpop.f32.mrb[242].mxu1  ;;  %12692 = vtanh.f32 %v4562_v4 }
 0x41d   : > { %v4566_v39 = vadd.f32 %v4565_v48, %v4449_v7  ;;  %v4567_v42 = vpop.f32.mrb[243].mxu1  ;;  %v11599_v48 = vpack.c.bf16 %v4928_v19, %v4922_v43 }
 0x41e   : > { %v4568_v15 = vadd.f32 %v4567_v42, %v4453_v12 }
 0x41f   : > { %12694 = vtanh.f32 %v4566_v39 }
 0x420   : > { %12696 = vtanh.f32 %v4568_v15  ;;  %v4571_v16 = vpop.f32.mrb[244].mxu1  ;;  %v4934_v15 = vld [vmem:[%s19981_s5 + $0x60] sm:$0xff] }
 0x421   : > { %v4572_v8 = vadd.f32 %v4571_v16, %v4449_v7  ;;  %v4573_v55 = vpop.f32.mrb[245].mxu1  ;;  %v4940_v16 = vld [vmem:[%s19981_s5 + $0x90] sm:$0xff] }
 0x422   : > { %v4574_v2 = vadd.f32 %v4573_v55, %v4453_v12  ;;  %v4947_v55 = vld [vmem:[%s19981_s5 + $0xc8] sm:$0xff] }
 0x423   : > { %12698 = vtanh.f32 %v4572_v8 }
 0x424   : > { %v4577_v3 = vpop.f32.mrb[246].mxu1  ;;  %12700 = vtanh.f32 %v4574_v2  ;;  %v4953_v2 = vld [vmem:[%s19981_s5 + $0xf8] sm:$0xff] }
 0x425   : > { %v4578_v28 = vadd.f32 %v4577_v3, %v4449_v7  ;;  %v4579_v22 = vpop.f32.mrb[247].mxu1  ;;  %v12691_v27 = vpop.eup %12690 }
 0x426   : > { %v4580_v17 = vadd.f32 %v4579_v22, %v4453_v12  ;;  %v12693_v38 = vpop.eup %12692  ;;  %v11603_v22 = vpack.c.bf16 %v4940_v16, %v4934_v15  ;;  %v5006_v15 = vld [vmem:[%s19981_s5 + $0x2a0] sm:$0xff]  ;;  %v5012_v16 = vld [vmem:[%s19981_s5 + $0x2d0] sm:$0xff] }
 0x427   : > { %12702 = vtanh.f32 %v4578_v28  ;;  %v17028_v28 = vld [vmem:[%s19980_s4 + $0x8] sm:$0xff] }
 0x428   : > { %12704 = vtanh.f32 %v4580_v17  ;;  %v4583_v47 = vpop.f32.mrb[248].mxu1 }
 0x429   : > { %v12695_v13 = vpop.eup %12694  ;;  %v4584_v44 = vadd.f32 %v4583_v47, %v4449_v7  ;;  %v4585_v29 = vpop.f32.mrb[249].mxu1  ;;  %v4952_v47 = vld [vmem:[%s19981_s5 + $0xf0] sm:$0xff] }
 0x42a   : > { %v12697_v56 = vpop.eup %12696  ;;  %v4586_v49 = vadd.f32 %v4585_v29, %v4453_v12  ;;  %v11575_v10 = vpack.c.bf16 %v12695_v13, %v12691_v27  ;;  %v4959_v13 = vld [vmem:[%s19981_s5 + $0x128] sm:$0xff] }
 0x42b   : > { %v11573_v34 = vpack.c.bf16 %v12697_v56, %v12693_v38  ;;  %12706 = vtanh.f32 %v4584_v44  ;;  %v11605_v38 = vpack.c.bf16 %v4953_v2, %v4947_v55  ;;  %v4965_v44 = vld [vmem:[%s19981_s5 + $0x158] sm:$0xff] }
 0x42c   : > { %v4589_v5 = vpop.f32.mrb[250].mxu1  ;;  %12708 = vtanh.f32 %v4586_v49  ;;  %v17050_v49 = vld [vmem:[%s19980_s4 + $0x10] sm:$0xff]  ;;  %v5025_v55 = vld [vmem:[%s19981_s5 + $0x338] sm:$0xff] }
 0x42d   : > { %v4590_v54 = vadd.f32 %v4589_v5, %v4449_v7  ;;  %v4591_v52 = vpop.f32.mrb[251].mxu1  ;;  %11574 = vmatprep.subr.bf16.mxu1 %v11573_v34  ;;  %v12699_v11 = vpop.eup %12698 }
 0x42e   : > { %v4592_v23 = vadd.f32 %v4591_v52, %v4453_v12  ;;  %11576 = vmatpush1.bf16.msra.mxu1 %v11575_v10  ;;  %v12701_v6 = vpop.eup %12700 }
 0x42f   : > { %12710 = vtanh.f32 %v4590_v54 }
 0x430   : > { %12712 = vtanh.f32 %v4592_v23  ;;  %v4595_v9 = vpop.f32.mrb[252].mxu1  ;;  %v11609_v23 = vpack.c.bf16 %v4965_v44, %v4959_v13  ;;  %v5030_v44 = vld [vmem:[%s19981_s5 + $0x360] sm:$0xff] }
 0x431   : > { %v12703_v35 = vpop.eup %12702  ;;  %v4596_v30 = vadd.f32 %v4595_v9, %v4449_v7  ;;  %v4597_v24 = vpop.f32.mrb[253].mxu1  ;;  %v4977_v9 = vld [vmem:[%s19981_s5 + $0x1b8] sm:$0xff] }
 0x432   : > { %v12705_v61 = vpop.eup %12704  ;;  %v4598_v31 = vadd.f32 %v4597_v24, %v4453_v12  ;;  %v11579_v45 = vpack.c.bf16 %v12703_v35, %v12699_v11  ;;  %v4935_v12 = vld [vmem:[%s19981_s5 + $0x68] sm:$0xff]  ;;  %v4958_v11 = vld [vmem:[%s19981_s5 + $0x120] sm:$0xff]  ;;  %v17073_v24 = vld [vmem:[%s19980_s4 + $0x18] sm:$0x1] }
 0x433   : > { %v11577_v1 = vpack.c.bf16 %v12705_v61, %v12701_v6  ;;  %v11601_v42 = vpack.c.bf16 %v4941_v18, %v4935_v12  ;;  %v4971_v6 = vld [vmem:[%s19981_s5 + $0x188] sm:$0xff]  ;;  %v5000_v12 = vld [vmem:[%s19981_s5 + $0x270] sm:$0xff] }
 0x434   : > { %12714 = vtanh.f32 %v4598_v31  ;;  %v11613_v53 = vpack.c.bf16 %v4977_v9, %v4971_v6  ;;  %v5007_v18 = vld [vmem:[%s19981_s5 + $0x2a8] sm:$0xff]  ;;  %v5060_v6 = vld [vmem:[%s19981_s5 + $0x450] sm:$0xff] }
 0x435   : > { %12716 = vtanh.f32 %v4596_v30  ;;  %11578 = vmatprep.subr.bf16.mxu1 %v11577_v1  ;;  %v12707_v40 = vpop.eup %12706  ;;  %v17067_v30 = vld [vmem:[#allocation4] sm:$0xff]  ;;  %v5067_v9 = vld [vmem:[%s19981_s5 + $0x488] sm:$0xff] }
 0x436   : > { %11580 = vmatpush1.bf16.msra.mxu1 %v11579_v45  ;;  %v12709_v36 = vpop.eup %12708  ;;  %v4970_v1 = vld [vmem:[%s19981_s5 + $0x180] sm:$0xff] }
 0x438   : > { %v4666_v63 = vpop.f32.mrb[254].mxu1 }
 0x439   : > { %v12711_v33 = vpop.eup %12710  ;;  %v10556_v32 = vpop.f32.mrb[255].mxu1  ;;  %v4667_v25 = vadd.f32 %v4666_v63, %v16986_v58  ;;  %v4989_v63 = vld [vmem:[%s19981_s5 + $0x218] sm:$0xff] }
 0x43a   : > { %v12713_v62 = vpop.eup %12712  ;;  %v11583_v57 = vpack.c.bf16 %v12711_v33, %v12707_v40  ;;  %v4976_v40 = vld [vmem:[%s19981_s5 + $0x1b0] sm:$0xff] }
 0x43b   : > { %v11581_v26 = vpack.c.bf16 %v12713_v62, %v12709_v36  ;;  %12718 = vtanh.f32 %v4667_v25  ;;  %v4983_v36 = vld [vmem:[%s19981_s5 + $0x1e8] sm:$0xff] }
 0x43c   : > { %v4671_v0 = vpop.f32.mrb[0].mxu1  ;;  %v11617_v50 = vpack.c.bf16 %v4989_v63, %v4983_v36  ;;  %v5078_v63 = vld [vmem:[%s19981_s5 + $0x4e0] sm:$0xff] }
 0x43d   : > { %v4672_v20 = vadd.f32 %v4671_v0, %v16986_v58  ;;  %v10559_v51 = vpop.f32.mrb[1].mxu1  ;;  %11582 = vmatprep.subr.bf16.mxu1 %v11581_v26  ;;  %v11615_v26 = vpack.c.bf16 %v4976_v40, %v4970_v1  ;;  %v5085_v1 = vld [vmem:[%s19981_s5 + $0x518] sm:$0xff] }
 0x43e   : > { %v12715_v7 = vpop.eup %12714  ;;  %11584 = vmatpush1.bf16.msra.mxu1 %v11583_v57  ;;  %v4995_v51 = vld [vmem:[%s19981_s5 + $0x248] sm:$0xff] }
 0x43f   : > { %v12717_v60 = vpop.eup %12716  ;;  %12720 = vtanh.f32 %v4672_v20  ;;  %9071 = vmatprep.subr.msk.mxu1 %vm4738_vm6, %v12715_v7  ;;  %v4988_v20 = vld [vmem:[%s19981_s5 + $0x210] sm:$0xff]  ;;  %v4994_v7 = vld [vmem:[%s19981_s5 + $0x240] sm:$0xff] }
 0x440   : > { %v4676_v4 = vpop.f32.mrb[2].mxu1  ;;  %v11619_v43 = vpack.c.bf16 %v4988_v20, %v4982_v59  ;;  %v5109_v59 = vld [vmem:[%s19981_s5 + $0x5d8] sm:$0xff] }
 0x441   : > { %v10562_v39 = vpop.f32.mrb[3].mxu1  ;;  %v4677_v8 = vadd.f32 %v4676_v4, %v16986_v58 }
 0x442   : > { %9072 = vmatpush1.msk.msra.mxu1 %vm4738_vm6, %v12717_v60  ;;  %v5013_v60 = vld [vmem:[%s19981_s5 + $0x2d8] sm:$0xff] }
 0x443   : > { %9073 = vmatmul.mubr.msk.f32.vlgmr.msra.gmra.mrb[12].mxu1 %vm4725_vm5, %v16969_v21  ;;  %11598 = vmatprep.subr.bf16.mxu1 %v11597_v46  ;;  %12722 = vtanh.f32 %v4677_v8  ;;  %v4946_v21 = vld [vmem:[%s19981_s5 + $0xc0] sm:$0xff]  ;;  %v5019_v8 = vld [vmem:[%s19981_s5 + $0x308] sm:$0xff] }
 0x444   : > { %v4681_v3 = vpop.f32.mrb[4].mxu1  ;;  %4818 = vmatprep.mubr.f32.mxu1 %v16675_v41  ;;  %11600 = vmatpush1.bf16.msra.mxu1 %v11599_v48  ;;  %v11607_v5 = vpack.c.bf16 %v4952_v47, %v4946_v21  ;;  %v11623_v48 = vpack.c.bf16 %v5000_v12, %v4994_v7  ;;  %v5037_v21 = vld [vmem:[%s19981_s5 + $0x398] sm:$0xff]  ;;  %v4927_v7 = vld [vmem:[%s19981_s5 + $0x28] sm:$0xff] }
 0x445   : > { %v4682_v17 = vadd.f32 %v4681_v3, %v16986_v58  ;;  %v10565_v27 = vpop.f32.mrb[5].mxu1  ;;  %11602 = vmatprep.subr.bf16.mxu1 %v11601_v42  ;;  %v12719_v29 = vpop.eup %12718  ;;  %v11625_v42 = vpack.c.bf16 %v5013_v60, %v5007_v18  ;;  %v11627_v3 = vpack.c.bf16 %v5012_v16, %v5006_v15  ;;  %v4933_v12 = vld [vmem:[%s19981_s5 + $0x58] sm:$0xff]  ;;  %v5115_v60 = vld [vmem:[%s19981_s5 + $0x608] sm:$0xff] }
 0x446   : > { %v5024_v27 = vld [vmem:[%s19981_s5 + $0x330] sm:$0xff]  ;;  %v11753_v18 = vpack.c.bf16 %v4933_v12, %v4927_v7  ;;  %v5127_v15 = vld [vmem:[%s19981_s5 + $0x668] sm:$0xff]  ;;  %v5133_v16 = vld [vmem:[%s19981_s5 + $0x698] sm:$0xff] }
 0x447   : > { %12724 = vtanh.f32 %v4682_v17  ;;  %9074 = vmatmul.mubr.msk.f32.gmra.mrb[14].mxu1 %vm4725_vm5, %v17028_v28  ;;  %v5018_v17 = vld [vmem:[%s19981_s5 + $0x300] sm:$0xff] }
 0x448   : > { %v4686_v56 = vpop.f32.mrb[6].mxu1  ;;  %4824 = vmatprep.mubr.f32.mxu1 %v16675_v41  ;;  %11604 = vmatpush1.bf16.msra.mxu1 %v11603_v22  ;;  %v4964_v41 = vld [vmem:[%s19981_s5 + $0x150] sm:$0xff]  ;;  %v11629_v22 = vpack.c.bf16 %v5025_v55, %v5019_v8  ;;  %v11631_v47 = vpack.c.bf16 %v5024_v27, %v5018_v17  ;;  %v11665_v8 = vpack.c.bf16 %v5133_v16, %v5127_v15  ;;  %v5126_v55 = vld [vmem:[%s19981_s5 + $0x660] sm:$0xff]  ;;  %v5145_v17 = vld [vmem:[%s19981_s5 + $0x6f8] sm:$0xf] }
 0x449   : > { %v12721_v10 = vpop.eup %12720  ;;  %v10568_v34 = vpop.f32.mrb[7].mxu1  ;;  %11606 = vmatprep.subr.bf16.mxu1 %v11605_v38  ;;  %v4687_v54 = vadd.f32 %v4686_v56, %v16986_v58  ;;  %v11611_v45 = vpack.c.bf16 %v4964_v41, %v4958_v11  ;;  %v5031_v38 = vld [vmem:[%s19981_s5 + $0x368] sm:$0xff]  ;;  %v5054_v41 = vld [vmem:[%s19981_s5 + $0x420] sm:$0xff]  ;;  %v5017_v16 = vld [vmem:[%s19981_s5 + $0x2f8] sm:$0xff] }
 0x44a   : > { %v11585_v52 = vpack.c.bf16 %v12721_v10, %v12719_v29  ;;  %v11633_v13 = vpack.c.bf16 %v5037_v21, %v5031_v38  ;;  %v5036_v29 = vld [vmem:[%s19981_s5 + $0x390] sm:$0xff]  ;;  %v5043_v56 = vld [vmem:[%s19981_s5 + $0x3c8] sm:$0xff]  ;;  %v5138_v38 = vld [vmem:[%s19981_s5 + $0x6c0] sm:$0xff] }
 0x44b   : > { %9075 = vmatmul.mubr.msk.f32.gmra.mrb[16].mxu1 %vm4725_vm5, %v17050_v49  ;;  %12726 = vtanh.f32 %v4687_v54  ;;  %v11635_v10 = vpack.c.bf16 %v5036_v29, %v5030_v44  ;;  %v5055_v54 = vld [vmem:[%s19981_s5 + $0x428] sm:$0xff]  ;;  %v5144_v21 = vld [vmem:[%s19981_s5 + $0x6f0] sm:$0xf]  ;;  %v4986_v12 = vld [vmem:[%s19981_s5 + $0x200] sm:$0xff] }
 0x44c   : > { %v4691_v35 = vpop.f32.mrb[8].mxu1  ;;  %11586 = vmatprep.subr.bf16.mxu0 %v11585_v52  ;;  %4830 = vmatprep.mubr.f32.mxu1 %v17067_v30  ;;  %v4931_v44 = vld [vmem:[%s19981_s5 + $0x48] sm:$0xff] }
 0x44d   : > { %v4692_v61 = vadd.f32 %v4691_v35, %v16986_v58  ;;  %11588 = vmatpush3.bf16.msra.mxu0 %v11585_v52  ;;  %v10571_v31 = vpop.f32.mrb[9].mxu1  ;;  %11608 = vmatpush1.bf16.msra.mxu1 %v11607_v5  ;;  %v12723_v33 = vpop.eup %12722  ;;  %v5042_v5 = vld [vmem:[%s19981_s5 + $0x3c0] sm:$0xff]  ;;  %v5061_v52 = vld [vmem:[%s19981_s5 + $0x458] sm:$0xff]  ;;  %v5011_v15 = vld [vmem:[%s19981_s5 + $0x2c8] sm:$0xff] }
 0x44e   : > { %11610 = vmatprep.subr.bf16.mxu1 %v11609_v23  ;;  %v11641_v11 = vpack.c.bf16 %v5061_v52, %v5055_v54  ;;  %v5073_v35 = vld [vmem:[%s19981_s5 + $0x4b8] sm:$0xff]  ;;  %v5066_v31 = vld [vmem:[%s19981_s5 + $0x480] sm:$0xff] }
 0x44f   : > { %12728 = vtanh.f32 %v4692_v61  ;;  %9076 = vmatmul.mubr.msk.f32.gmra.mrb[18].mxu1 %vm4725_vm5, %v17073_v24  ;;  %v11645_v61 = vpack.c.bf16 %v5073_v35, %v5067_v9 }
 0x450   : > { %v4696_v32 = vpop.f32.mrb[10].mxu1 }
 0x451   : > { %v12725_v62 = vpop.eup %12724  ;;  %v4697_v25 = vadd.f32 %v4696_v32, %v16986_v58  ;;  %v10574_v57 = vpop.f32.mrb[11].mxu1  ;;  %11612 = vmatpush1.bf16.msra.mxu1 %v11611_v45  ;;  %v5001_v58 = vld [vmem:[%s19981_s5 + $0x278] sm:$0xff]  ;;  %v5072_v45 = vld [vmem:[%s19981_s5 + $0x4b0] sm:$0xff]  ;;  %v5091_v32 = vld [vmem:[%s19981_s5 + $0x548] sm:$0xff] }
 0x452   : > { %v11589_v0 = vpack.c.bf16 %v12725_v62, %v12723_v33  ;;  %11614 = vmatprep.subr.bf16.mxu1 %v11613_v53  ;;  %v11621_v19 = vpack.c.bf16 %v5001_v58, %v4995_v51  ;;  %v5079_v53 = vld [vmem:[%s19981_s5 + $0x4e8] sm:$0xff]  ;;  %v11647_v40 = vpack.c.bf16 %v5072_v45, %v5066_v31  ;;  %v5084_v33 = vld [vmem:[%s19981_s5 + $0x510] sm:$0xff]  ;;  %v5097_v62 = vld [vmem:[%s19981_s5 + $0x578] sm:$0xff] }
 0x453   : > { %12730 = vtanh.f32 %v4697_v25  ;;  %v11649_v36 = vpack.c.bf16 %v5085_v1, %v5079_v53  ;;  %v11651_v25 = vpack.c.bf16 %v5084_v33, %v5078_v63  ;;  %v11653_v57 = vpack.c.bf16 %v5097_v62, %v5091_v32  ;;  %v5102_v58 = vld [vmem:[%s19981_s5 + $0x5a0] sm:$0xff]  ;;  %v4956_v31 = vld [vmem:[%s19981_s5 + $0x110] sm:$0xff]  ;;  %v4963_v53 = vld [vmem:[%s19981_s5 + $0x148] sm:$0xff] }
 0x454   : > { %11590 = vmatprep.subr.bf16.mxu0 %v11589_v0  ;;  %v4969_v1 = vld [vmem:[%s19981_s5 + $0x178] sm:$0xff]  ;;  %v4962_v33 = vld [vmem:[%s19981_s5 + $0x140] sm:$0xff]  ;;  %v4968_v32 = vld [vmem:[%s19981_s5 + $0x170] sm:$0xff] }
 0x455   : > { %11592 = vmatpush3.bf16.msra.mxu0 %v11589_v0  ;;  %11616 = vmatpush1.bf16.msra.mxu1 %v11615_v26  ;;  %v12727_v46 = vpop.eup %12726  ;;  %v5090_v26 = vld [vmem:[%s19981_s5 + $0x540] sm:$0xff]  ;;  %v5096_v0 = vld [vmem:[%s19981_s5 + $0x570] sm:$0xff]  ;;  %v11765_v63 = vpack.c.bf16 %v4969_v1, %v4963_v53 }
 0x456   : > { %11618 = vmatprep.subr.bf16.mxu1 %v11617_v50  ;;  %v5103_v50 = vld [vmem:[%s19981_s5 + $0x5a8] sm:$0xff]  ;;  %v11655_v20 = vpack.c.bf16 %v5096_v0, %v5090_v26  ;;  %v11767_v26 = vpack.c.bf16 %v4968_v32, %v4962_v33  ;;  %v5040_v53 = vld [vmem:[%s19981_s5 + $0x3b0] sm:$0xff] }
 0x457   : > { %v11657_v51 = vpack.c.bf16 %v5109_v59, %v5103_v50  ;;  %v4974_v59 = vld [vmem:[%s19981_s5 + $0x1a0] sm:$0xff]  ;;  %v4948_v32 = vld [vmem:[%s19981_s5 + $0xd0] sm:$0xff] }
 0x459   : > { %v12729_v4 = vpop.eup %12728  ;;  %11620 = vmatpush1.bf16.msra.mxu1 %v11619_v43  ;;  %v5108_v43 = vld [vmem:[%s19981_s5 + $0x5d0] sm:$0xff] }
 0x45a   : > { %v11593_v39 = vpack.c.bf16 %v12729_v4, %v12727_v46  ;;  %11622 = vmatprep.subr.bf16.mxu1 %v11621_v19  ;;  %v11659_v19 = vpack.c.bf16 %v5108_v43, %v5102_v58  ;;  %v5121_v46 = vld [vmem:[%s19981_s5 + $0x638] sm:$0xff]  ;;  %v4987_v58 = vld [vmem:[%s19981_s5 + $0x208] sm:$0xff] }
 0x45b   : > { %v11661_v4 = vpack.c.bf16 %v5121_v46, %v5115_v60  ;;  %v4993_v43 = vld [vmem:[%s19981_s5 + $0x238] sm:$0xff]  ;;  %v4999_v60 = vld [vmem:[%s19981_s5 + $0x268] sm:$0xff] }
 0x45c   : > { %11594 = vmatprep.subr.bf16.mxu0 %v11593_v39  ;;  %v11773_v7 = vpack.c.bf16 %v4993_v43, %v4987_v58  ;;  %v5005_v46 = vld [vmem:[%s19981_s5 + $0x298] sm:$0xff]  ;;  %v5046_v43 = vld [vmem:[%s19981_s5 + $0x3e0] sm:$0xff] }
 0x45d   : > { %v12731_v2 = vpop.eup %12730  ;;  %11596 = vmatpush3.bf16.msra.mxu0 %v11593_v39  ;;  %11624 = vmatpush1.bf16.msra.mxu1 %v11623_v48  ;;  %v5114_v48 = vld [vmem:[%s19981_s5 + $0x600] sm:$0xff]  ;;  %v5120_v39 = vld [vmem:[%s19981_s5 + $0x630] sm:$0xff] }
 0x45e   : > { %10587 = vmatprep.subr.msk.mxu0 %vm4738_vm6, %v12731_v2  ;;  %11626 = vmatprep.subr.bf16.mxu1 %v11625_v42  ;;  %v11663_v42 = vpack.c.bf16 %v5120_v39, %v5114_v48  ;;  %v11777_v48 = vpack.c.bf16 %v5005_v46, %v4999_v60  ;;  %v4998_v39 = vld [vmem:[%s19981_s5 + $0x260] sm:$0xff]  ;;  %v4960_v46 = vld [vmem:[%s19981_s5 + $0x130] sm:$0xff] }
 0x461   : > { %10588 = vmatpush3.msk.msra.mxu0 %vm4738_vm6, %v12731_v2  ;;  %11628 = vmatpush1.bf16.msra.mxu1 %v11627_v3  ;;  %v5132_v2 = vld [vmem:[%s19981_s5 + $0x690] sm:$0xff] }
 0x462   : > { %10590 = vmatmul.mubr.msk.f32.vlgmr.msra.gmra.mrb[32].mxu0 %vm4725_vm5, %v17028_v28  ;;  %11630 = vmatprep.subr.bf16.mxu1 %v11629_v22  ;;  %v5049_v28 = vld [vmem:[%s19981_s5 + $0x3f8] sm:$0xff]  ;;  %v11667_v3 = vpack.c.bf16 %v5132_v2, %v5126_v55  ;;  %v5139_v22 = vld [vmem:[%s19981_s5 + $0x6c8] sm:$0xff]  ;;  %v11781_v55 = vpack.c.bf16 %v5017_v16, %v5011_v15  ;;  %v5010_v2 = vld [vmem:[%s19981_s5 + $0x2c0] sm:$0xff] }
 0x463   : > { %10592 = vmatprep.mubr.msk.f32.mxu0 %vm4725_vm5, %v17050_v49  ;;  %v11637_v34 = vpack.c.bf16 %v5049_v28, %v5043_v56  ;;  %v5048_v49 = vld [vmem:[%s19981_s5 + $0x3f0] sm:$0xff]  ;;  %11662 = vmatprep.subr.bf16.mxu0 %v11661_v4  ;;  %v11669_v27 = vpack.c.bf16 %v5145_v17, %v5139_v22  ;;  %v4926_v56 = vld [vmem:[%s19981_s5 + $0x20] sm:$0xff]  ;;  %v5023_v22 = vld [vmem:[%s19981_s5 + $0x328] sm:$0xff] }
 0x464   : > { %v11639_v23 = vpack.c.bf16 %v5048_v49, %v5042_v5  ;;  %11664 = vmatpush1.bf16.msra.mxu0 %v11663_v42  ;;  %v4932_v28 = vld [vmem:[%s19981_s5 + $0x50] sm:$0xff]  ;;  %v5029_v17 = vld [vmem:[%s19981_s5 + $0x358] sm:$0xff]  ;;  %v5058_v16 = vld [vmem:[%s19981_s5 + $0x440] sm:$0xff] }
 0x465   : > { %11632 = vmatpush1.bf16.msra.mxu1 %v11631_v47  ;;  %11666 = vmatprep.subr.bf16.mxu0 %v11665_v8  ;;  %v11672_v47 = vpack.c.bf16 %v5144_v21, %v5138_v38  ;;  %v11755_v49 = vpack.c.bf16 %v4932_v28, %v4926_v56  ;;  %v5004_v42 = vld [vmem:[%s19981_s5 + $0x290] sm:$0xff]  ;;  %v4930_v38 = vld [vmem:[%s19981_s5 + $0x40] sm:$0xff] }
 0x466   : > { %10593 = vmatmul.mubr.msk.f32.gmra.mrb[34].mxu0 %vm4725_vm5, %v17073_v24  ;;  %11634 = vmatprep.subr.bf16.mxu1 %v11633_v13  ;;  %v11643_v24 = vpack.c.bf16 %v5060_v6, %v5054_v41  ;;  %v4925_v13 = vld [vmem:[%s19981_s5 + $0x18] sm:$0xff]  ;;  %v4951_v41 = vld [vmem:[%s19981_s5 + $0xe8] sm:$0xff]  ;;  %v11779_v8 = vpack.c.bf16 %v5004_v42, %v4998_v39  ;;  %v5028_v56 = vld [vmem:[%s19981_s5 + $0x350] sm:$0xff] }
 0x467   : > { %5334 = vmatprep.mubr.f32.mxu0 %v17067_v30  ;;  %v11675_v29 = vpack.c.bf16 %v4931_v44, %v4925_v13  ;;  %v4957_v6 = vld [vmem:[%s19981_s5 + $0x118] sm:$0xff]  ;;  %v4943_v13 = vld [vmem:[%s19981_s5 + $0xa8] sm:$0xff]  ;;  %v11785_v44 = vpack.c.bf16 %v5029_v17, %v5023_v22  ;;  %v4972_v17 = vld [vmem:[%s19981_s5 + $0x190] sm:$0xff] }
 0x468   : > { %11668 = vmatpush1.bf16.msra.mxu0 %v11667_v3  ;;  %v5016_v3 = vld [vmem:[%s19981_s5 + $0x2f0] sm:$0xff]  ;;  %v4973_v39 = vld [vmem:[%s19981_s5 + $0x198] sm:$0xff]  ;;  %v4979_v42 = vld [vmem:[%s19981_s5 + $0x1c8] sm:$0xff] }
 0x469   : > { %11636 = vmatpush1.bf16.msra.mxu1 %v11635_v10  ;;  %11671 = vmatprep.subr.msk.bf16.mxu0 %vm16868_vm2, %v11669_v27  ;;  %v4939_v10 = vld [vmem:[%s19981_s5 + $0x88] sm:$0xff]  ;;  %v4924_v27 = vld [vmem:[%s19981_s5 + $0x10] sm:$0xff]  ;;  %v11783_v21 = vpack.c.bf16 %v5016_v3, %v5010_v2  ;;  %v5077_v3 = vld [vmem:[%s19981_s5 + $0x4d8] sm:$0xff]  ;;  %v11691_v22 = vpack.c.bf16 %v4979_v42, %v4973_v39 }
 0x46a   : > { %11638 = vmatprep.subr.bf16.mxu1 %v11637_v34  ;;  %v4945_v34 = vld [vmem:[%s19981_s5 + $0xb8] sm:$0xff]  ;;  %v11677_v28 = vpack.c.bf16 %v4930_v38, %v4924_v27  ;;  %v5071_v2 = vld [vmem:[%s19981_s5 + $0x4a8] sm:$0xff]  ;;  %v4978_v27 = vld [vmem:[%s19981_s5 + $0x1c0] sm:$0xff] }
 0x46b   : > { %v11757_v52 = vpack.c.bf16 %v4945_v34, %v4939_v10  ;;  %v5035_v10 = vld [vmem:[%s19981_s5 + $0x388] sm:$0xff]  ;;  %v5041_v34 = vld [vmem:[%s19981_s5 + $0x3b8] sm:$0xff]  ;;  %v5106_v42 = vld [vmem:[%s19981_s5 + $0x5c0] sm:$0xff] }
 0x46c   : > { %11674 = vmatpush1.bf16.msk.msra.mxu0 %vm16868_vm2, %v11672_v47  ;;  %v4937_v47 = vld [vmem:[%s19981_s5 + $0x78] sm:$0xff] }
 0x46d   : > { %11640 = vmatpush1.bf16.msra.mxu1 %v11639_v23  ;;  %11676 = vmatprep.subr.bf16.mxu0 %v11675_v29  ;;  %v4938_v23 = vld [vmem:[%s19981_s5 + $0x80] sm:$0xff] }
 0x46e   : > { %11642 = vmatprep.subr.bf16.mxu1 %v11641_v11  ;;  %v4944_v11 = vld [vmem:[%s19981_s5 + $0xb0] sm:$0xff]  ;;  %v5022_v29 = vld [vmem:[%s19981_s5 + $0x320] sm:$0xff] }
 0x46f   : > { %v11759_v9 = vpack.c.bf16 %v4944_v11, %v4938_v23  ;;  %v4936_v23 = vld [vmem:[%s19981_s5 + $0x70] sm:$0xff]  ;;  %v4942_v11 = vld [vmem:[%s19981_s5 + $0xa0] sm:$0xff] }
 0x470   : > { %v11681_v1 = vpack.c.bf16 %v4942_v11, %v4936_v23  ;;  %v4990_v23 = vld [vmem:[%s19981_s5 + $0x220] sm:$0xff] }
 0x471   : > { %11644 = vmatpush1.bf16.msra.mxu1 %v11643_v24  ;;  %v11761_v24 = vpack.c.bf16 %v4957_v6, %v4951_v41  ;;  %v11787_v6 = vpack.c.bf16 %v5028_v56, %v5022_v29  ;;  %v5076_v29 = vld [vmem:[%s19981_s5 + $0x4d0] sm:$0xff]  ;;  %v11693_v56 = vpack.c.bf16 %v4978_v27, %v4972_v17  ;;  %v5033_v27 = vld [vmem:[%s19981_s5 + $0x378] sm:$0xff] }
 0x472   : > { %11646 = vmatprep.subr.bf16.mxu1 %v11645_v61  ;;  %v4950_v61 = vld [vmem:[%s19981_s5 + $0xe0] sm:$0xff] }
 0x475   : > { %11648 = vmatpush1.bf16.msra.mxu1 %v11647_v40  ;;  %v11763_v40 = vpack.c.bf16 %v4956_v31, %v4950_v61  ;;  %v11789_v61 = vpack.c.bf16 %v5041_v34, %v5035_v10  ;;  %v5034_v31 = vld [vmem:[%s19981_s5 + $0x380] sm:$0xff]  ;;  %v5089_v10 = vld [vmem:[%s19981_s5 + $0x538] sm:$0xff] }
 0x476   : > { %11650 = vmatprep.subr.bf16.mxu1 %v11649_v36 }
 0x479   : > { %11652 = vmatpush1.bf16.msra.mxu1 %v11651_v25  ;;  %v4975_v25 = vld [vmem:[%s19981_s5 + $0x1a8] sm:$0xff] }
 0x47a   : > { %11654 = vmatprep.subr.bf16.mxu1 %v11653_v57  ;;  %v4981_v57 = vld [vmem:[%s19981_s5 + $0x1d8] sm:$0xff] }
 0x47b   : > { %v11769_v50 = vpack.c.bf16 %v4981_v57, %v4975_v25  ;;  %v4954_v25 = vld [vmem:[%s19981_s5 + $0x100] sm:$0xff] }
 0x47d   : > { %11656 = vmatpush1.bf16.msra.mxu1 %v11655_v20  ;;  %v4980_v20 = vld [vmem:[%s19981_s5 + $0x1d0] sm:$0xff] }
 0x47e   : > { %11658 = vmatprep.subr.bf16.mxu1 %v11657_v51 }
 0x481   : > { %11660 = vmatpush1.bf16.msra.mxu1 %v11659_v19  ;;  %v11771_v19 = vpack.c.bf16 %v4980_v20, %v4974_v59  ;;  %v4967_v59 = vld [vmem:[%s19981_s5 + $0x168] sm:$0xff] }
 0x482   : > { %11754 = vmatprep.subr.bf16.mxu1 %v11753_v18  ;;  %v4992_v18 = vld [vmem:[%s19981_s5 + $0x230] sm:$0xff] }
 0x483   : > { %v11775_v4 = vpack.c.bf16 %v4992_v18, %v4986_v12  ;;  %v5059_v12 = vld [vmem:[%s19981_s5 + $0x448] sm:$0xff]  ;;  %v5065_v18 = vld [vmem:[%s19981_s5 + $0x478] sm:$0xff] }
 0x484   : > { %v11797_v15 = vpack.c.bf16 %v5065_v18, %v5059_v12  ;;  %v5008_v18 = vld [vmem:[%s19981_s5 + $0x2b0] sm:$0xff] }
 0x516   : > { %v17290_v5 = vpop.f32.mrb[12].mxu1 }
 0x517   : > { %v17292_v54 = vpop.f32.mrb[13].mxu1 }
 0x518   : > { %5245 = vmatprep.mubr.f32.mxu1 %v17292_v54 }
 0x519   : > { %5246 = vmatmul.mubr.f32.vlgmr.msra.gmra.mrb[20].mxu1 %v17290_v5 }
 0x51a   : > { %11756 = vmatpush1.bf16.msra.mxu1 %v11755_v49  ;;  %v17308_v35 = vpop.f32.mrb[14].mxu1 }
 0x51b   : > { %11758 = vmatprep.subr.bf16.mxu1 %v11757_v52  ;;  %v17316_v45 = vpop.f32.mrb[15].mxu1  ;;  %v11679_v52 = vpack.c.bf16 %v4943_v13, %v4937_v47  ;;  %v4991_v47 = vld [vmem:[%s19981_s5 + $0x228] sm:$0xff]  ;;  %v11801_v13 = vpack.c.bf16 %v5077_v3, %v5071_v2  ;;  %v5020_v3 = vld [vmem:[%s19981_s5 + $0x310] sm:$0xff] }
 0x51c   : > { %5251 = vmatprep.mubr.f32.mxu1 %v17316_v45 }
 0x51d   : > { %5252 = vmatmul.mubr.f32.gmra.mrb[22].mxu1 %v17308_v35 }
 0x51e   : > { %11760 = vmatpush1.bf16.msra.mxu1 %v11759_v9  ;;  %v17326_v36 = vpop.f32.mrb[16].mxu1  ;;  %v4949_v9 = vld [vmem:[%s19981_s5 + $0xd8] sm:$0xff] }
 0x51f   : > { %11762 = vmatprep.subr.bf16.mxu1 %v11761_v24  ;;  %v17334_v62 = vpop.f32.mrb[17].mxu1  ;;  %v4955_v24 = vld [vmem:[%s19981_s5 + $0x108] sm:$0xff] }
 0x520   : > { %5257 = vmatprep.mubr.f32.mxu1 %v17334_v62  ;;  %v11683_v33 = vpack.c.bf16 %v4955_v24, %v4949_v9  ;;  %v5082_v24 = vld [vmem:[%s19981_s5 + $0x500] sm:$0xff] }
 0x521   : > { %5258 = vmatmul.mubr.f32.gmra.mrb[24].mxu1 %v17326_v36 }
 0x522   : > { %11764 = vmatpush1.bf16.msra.mxu1 %v11763_v40  ;;  %v17344_v0 = vpop.f32.mrb[18].mxu1  ;;  %v5047_v40 = vld [vmem:[%s19981_s5 + $0x3e8] sm:$0xff] }
 0x523   : > { %11766 = vmatprep.subr.bf16.mxu1 %v11765_v63  ;;  %v17352_v51 = vpop.f32.mrb[19].mxu1  ;;  %v5053_v63 = vld [vmem:[%s19981_s5 + $0x418] sm:$0xff] }
 0x524   : > { %5263 = vmatprep.mubr.f32.mxu1 %v17352_v51  ;;  %v11793_v58 = vpack.c.bf16 %v5053_v63, %v5047_v40  ;;  %v4996_v63 = vld [vmem:[%s19981_s5 + $0x250] sm:$0xff] }
 0x525   : > { %5264 = vmatmul.mubr.f32.gmra.mrb[26].mxu1 %v17344_v0 }
 0x526   : > { %11768 = vmatpush1.bf16.msra.mxu1 %v11767_v26  ;;  %5601 = vmatprep.mubr.f32.mxu1 %v17292_v54  ;;  %v11791_v26 = vpack.c.bf16 %v5040_v53, %v5034_v31  ;;  %v5095_v53 = vld [vmem:[%s19981_s5 + $0x568] sm:$0xff] }
 0x527   : > { %11770 = vmatprep.subr.bf16.mxu1 %v11769_v50  ;;  %v4961_v50 = vld [vmem:[%s19981_s5 + $0x138] sm:$0xff] }
 0x528   : > { %v11687_v60 = vpack.c.bf16 %v4967_v59, %v4961_v50  ;;  %v5094_v59 = vld [vmem:[%s19981_s5 + $0x560] sm:$0xff] }
 0x52a   : > { %11772 = vmatpush1.bf16.msra.mxu1 %v11771_v19  ;;  %v5052_v19 = vld [vmem:[%s19981_s5 + $0x410] sm:$0xff] }
 0x52b   : > { %11774 = vmatprep.subr.bf16.mxu1 %v11773_v7  ;;  %v11685_v7 = vpack.c.bf16 %v4954_v25, %v4948_v32  ;;  %v5009_v25 = vld [vmem:[%s19981_s5 + $0x2b8] sm:$0xff] }
 0x52e   : > { %11776 = vmatpush1.bf16.msra.mxu1 %v11775_v4  ;;  %v4966_v4 = vld [vmem:[%s19981_s5 + $0x160] sm:$0xff] }
 0x52f   : > { %11778 = vmatprep.subr.bf16.mxu1 %v11777_v48  ;;  %v11795_v48 = vpack.c.bf16 %v5052_v19, %v5046_v43  ;;  %v5107_v19 = vld [vmem:[%s19981_s5 + $0x5c8] sm:$0xff] }
 0x532   : > { %11780 = vmatpush1.bf16.msra.mxu1 %v11779_v8  ;;  %v5064_v8 = vld [vmem:[%s19981_s5 + $0x470] sm:$0xff] }
 0x533   : > { %11782 = vmatprep.subr.bf16.mxu1 %v11781_v55  ;;  %v11689_v55 = vpack.c.bf16 %v4966_v4, %v4960_v46  ;;  %v11799_v38 = vpack.c.bf16 %v5064_v8, %v5058_v16  ;;  %v5021_v4 = vld [vmem:[%s19981_s5 + $0x318] sm:$0xff]  ;;  %v5119_v8 = vld [vmem:[%s19981_s5 + $0x628] sm:$0xff] }
 0x535   : > { %v17423_v49 = vpop.f32.mrb[32].mxu0 }
 0x536   : > { %11784 = vmatpush1.bf16.msra.mxu1 %v11783_v21  ;;  %v17431_v41 = vpop.f32.mrb[33].mxu0  ;;  %v4985_v21 = vld [vmem:[%s19981_s5 + $0x1f8] sm:$0xff] }
 0x537   : > { %9084 = vmatmul.mubr.msk.f32.vlgmr.msra.gmra.mrb[36].mxu0 %vm5150_vm7, %v17431_v41  ;;  %11786 = vmatprep.subr.bf16.mxu1 %v11785_v44  ;;  %v5070_v44 = vld [vmem:[%s19981_s5 + $0x4a0] sm:$0xff]  ;;  %v11695_v34 = vpack.c.bf16 %v4991_v47, %v4985_v21 }
 0x538   : > { %11678 = vmatpush1.bf16.msra.mxu0 %v11677_v28  ;;  %5340 = vmatprep.mubr.f32.mxu0 %v17067_v30  ;;  %v5083_v28 = vld [vmem:[%s19981_s5 + $0x508] sm:$0xff]  ;;  %v11803_v11 = vpack.c.bf16 %v5076_v29, %v5070_v44  ;;  %v5118_v47 = vld [vmem:[%s19981_s5 + $0x620] sm:$0xff] }
 0x539   : > { %11680 = vmatprep.subr.bf16.mxu0 %v11679_v52  ;;  %v17460_v57 = vpop.f32.mrb[34].mxu0  ;;  %v4984_v52 = vld [vmem:[%s19981_s5 + $0x1f0] sm:$0xff]  ;;  %v11805_v9 = vpack.c.bf16 %v5089_v10, %v5083_v28  ;;  %v5131_v29 = vld [vmem:[%s19981_s5 + $0x688] sm:$0xff] }
 0x53a   : > { %11788 = vmatpush1.bf16.msra.mxu1 %v11787_v6  ;;  %v17468_v20 = vpop.f32.mrb[35].mxu0  ;;  %v4997_v6 = vld [vmem:[%s19981_s5 + $0x258] sm:$0xff]  ;;  %v11697_v31 = vpack.c.bf16 %v4990_v23, %v4984_v52  ;;  %v5032_v10 = vld [vmem:[%s19981_s5 + $0x370] sm:$0xff] }
 0x53b   : > { %9085 = vmatmul.mubr.msk.f32.gmra.mrb[38].mxu0 %vm5150_vm7, %v17423_v49  ;;  %11790 = vmatprep.subr.bf16.mxu1 %v11789_v61  ;;  %v5088_v61 = vld [vmem:[%s19981_s5 + $0x530] sm:$0xff]  ;;  %v5045_v23 = vld [vmem:[%s19981_s5 + $0x3d8] sm:$0xff] }
 0x53c   : > { %11682 = vmatpush1.bf16.msra.mxu0 %v11681_v1  ;;  %5346 = vmatprep.mubr.f32.mxu0 %v17067_v30  ;;  %v5101_v1 = vld [vmem:[%s19981_s5 + $0x598] sm:$0xff]  ;;  %v11807_v32 = vpack.c.bf16 %v5088_v61, %v5082_v24  ;;  %v5143_v61 = vld [vmem:[%s19981_s5 + $0x6e8] sm:$0xff] }
 0x53d   : > { %11684 = vmatprep.subr.bf16.mxu0 %v11683_v33  ;;  %v5002_v33 = vld [vmem:[%s19981_s5 + $0x280] sm:$0xff]  ;;  %v11809_v50 = vpack.c.bf16 %v5101_v1, %v5095_v53  ;;  %v5044_v1 = vld [vmem:[%s19981_s5 + $0x3d0] sm:$0xff] }
 0x53e   : > { %11792 = vmatpush1.bf16.msra.mxu1 %v11791_v26  ;;  %v5015_v26 = vld [vmem:[%s19981_s5 + $0x2e8] sm:$0xff]  ;;  %v11701_v43 = vpack.c.bf16 %v5002_v33, %v4996_v63  ;;  %v5057_v33 = vld [vmem:[%s19981_s5 + $0x438] sm:$0xff] }
 0x53f   : > { %11794 = vmatprep.subr.bf16.mxu1 %v11793_v58  ;;  %9086 = vmatmul.mubr.msk.f32.gmra.mrb[40].mxu0 %vm5150_vm7, %v17468_v20  ;;  %v5100_v58 = vld [vmem:[%s19981_s5 + $0x590] sm:$0xff]  ;;  %v11703_v12 = vpack.c.bf16 %v5015_v26, %v5009_v25  ;;  %v5142_v26 = vld [vmem:[%s19981_s5 + $0x6e0] sm:$0xff] }
 0x540   : > { %11686 = vmatpush1.bf16.msra.mxu0 %v11685_v7  ;;  %5352 = vmatprep.mubr.f32.mxu0 %v17067_v30  ;;  %v5113_v7 = vld [vmem:[%s19981_s5 + $0x5f8] sm:$0xff]  ;;  %v11811_v46 = vpack.c.bf16 %v5100_v58, %v5094_v59 }
 0x541   : > { %11688 = vmatprep.subr.bf16.mxu0 %v11687_v60  ;;  %v5014_v60 = vld [vmem:[%s19981_s5 + $0x2e0] sm:$0xff]  ;;  %v11813_v39 = vpack.c.bf16 %v5113_v7, %v5107_v19 }
 0x542   : > { %11796 = vmatpush1.bf16.msra.mxu1 %v11795_v48  ;;  %v5027_v48 = vld [vmem:[%s19981_s5 + $0x348] sm:$0xff]  ;;  %v11705_v16 = vpack.c.bf16 %v5014_v60, %v5008_v18  ;;  %v5062_v19 = vld [vmem:[%s19981_s5 + $0x460] sm:$0xff] }
 0x543   : > { %11798 = vmatprep.subr.bf16.mxu1 %v11797_v15  ;;  %9087 = vmatmul.mubr.msk.f32.gmra.mrb[42].mxu0 %vm5150_vm7, %v17460_v57  ;;  %v5112_v15 = vld [vmem:[%s19981_s5 + $0x5f0] sm:$0xff]  ;;  %v11707_v2 = vpack.c.bf16 %v5027_v48, %v5021_v4  ;;  %v5075_v18 = vld [vmem:[%s19981_s5 + $0x4c8] sm:$0xff]  ;;  %v5074_v48 = vld [vmem:[%s19981_s5 + $0x4c0] sm:$0xff] }
 0x544   : > { %11690 = vmatpush1.bf16.msra.mxu0 %v11689_v55  ;;  %5423 = vmatprep.mubr.f32.mxu0 %v17292_v54  ;;  %v5003_v54 = vld [vmem:[%s19981_s5 + $0x288] sm:$0xff]  ;;  %v5125_v55 = vld [vmem:[%s19981_s5 + $0x658] sm:$0xff]  ;;  %v11815_v17 = vpack.c.bf16 %v5112_v15, %v5106_v42  ;;  %v5068_v4 = vld [vmem:[%s19981_s5 + $0x490] sm:$0xff] }
 0x545   : > { %11692 = vmatprep.subr.bf16.mxu0 %v11691_v22  ;;  %v11699_v40 = vpack.c.bf16 %v5003_v54, %v4997_v6  ;;  %v5026_v22 = vld [vmem:[%s19981_s5 + $0x340] sm:$0xff]  ;;  %v11817_v21 = vpack.c.bf16 %v5125_v55, %v5119_v8  ;;  %v5087_v42 = vld [vmem:[%s19981_s5 + $0x528] sm:$0xff]  ;;  %v11725_v15 = vpack.c.bf16 %v5074_v48, %v5068_v4  ;;  %v5080_v8 = vld [vmem:[%s19981_s5 + $0x4f0] sm:$0xff] }
 0x546   : > { %11800 = vmatpush1.bf16.msra.mxu1 %v11799_v38  ;;  %v5039_v38 = vld [vmem:[%s19981_s5 + $0x3a8] sm:$0xff]  ;;  %v11709_v44 = vpack.c.bf16 %v5026_v22, %v5020_v3  ;;  %v5130_v54 = vld [vmem:[%s19981_s5 + $0x680] sm:$0xff] }
 0x547   : > { %11802 = vmatprep.subr.bf16.mxu1 %v11801_v13  ;;  %v5124_v13 = vld [vmem:[%s19981_s5 + $0x650] sm:$0xff]  ;;  %v11711_v28 = vpack.c.bf16 %v5039_v38, %v5033_v27  ;;  %v5086_v55 = vld [vmem:[%s19981_s5 + $0x520] sm:$0xff]  ;;  %v5099_v3 = vld [vmem:[%s19981_s5 + $0x588] sm:$0xff] }
 0x548   : > { %11694 = vmatpush1.bf16.msra.mxu0 %v11693_v56  ;;  %v5137_v56 = vld [vmem:[%s19981_s5 + $0x6b8] sm:$0xff]  ;;  %v11819_v52 = vpack.c.bf16 %v5124_v13, %v5118_v47  ;;  %v11729_v22 = vpack.c.bf16 %v5086_v55, %v5080_v8  ;;  %v5092_v27 = vld [vmem:[%s19981_s5 + $0x550] sm:$0xff]  ;;  %v5098_v38 = vld [vmem:[%s19981_s5 + $0x580] sm:$0xff] }
 0x549   : > { %11696 = vmatprep.subr.bf16.mxu0 %v11695_v34  ;;  %v5038_v34 = vld [vmem:[%s19981_s5 + $0x3a0] sm:$0xff]  ;;  %v11821_v6 = vpack.c.bf16 %v5137_v56, %v5131_v29  ;;  %v5111_v47 = vld [vmem:[%s19981_s5 + $0x5e8] sm:$0xff]  ;;  %v11733_v13 = vpack.c.bf16 %v5098_v38, %v5092_v27  ;;  %v5104_v29 = vld [vmem:[%s19981_s5 + $0x5b0] sm:$0xff] }
 0x54a   : > { %11804 = vmatpush1.bf16.msra.mxu1 %v11803_v11  ;;  %v5051_v11 = vld [vmem:[%s19981_s5 + $0x408] sm:$0xff]  ;;  %v11713_v24 = vpack.c.bf16 %v5038_v34, %v5032_v10  ;;  %v5110_v56 = vld [vmem:[%s19981_s5 + $0x5e0] sm:$0xff] }
 0x54b   : > { %11806 = vmatprep.subr.bf16.mxu1 %v11805_v9  ;;  %v5136_v9 = vld [vmem:[%s19981_s5 + $0x6b0] sm:$0xff]  ;;  %v11715_v53 = vpack.c.bf16 %v5051_v11, %v5045_v23  ;;  %v5123_v10 = vld [vmem:[%s19981_s5 + $0x648] sm:$0xff]  ;;  %v11737_v34 = vpack.c.bf16 %v5110_v56, %v5104_v29  ;;  %v5122_v11 = vld [vmem:[%s19981_s5 + $0x640] sm:$0xff] }
 0x54c   : > { %11698 = vmatpush1.bf16.msra.mxu0 %v11697_v31  ;;  %v5149_v31 = vld [vmem:[%s19981_s5 + $0x718] sm:$0xf]  ;;  %v11823_v63 = vpack.c.bf16 %v5136_v9, %v5130_v54  ;;  %v5116_v23 = vld [vmem:[%s19981_s5 + $0x610] sm:$0xff]  ;;  %v5135_v54 = vld [vmem:[%s19981_s5 + $0x6a8] sm:$0xff] }
 0x54d   : > { %11700 = vmatprep.subr.bf16.mxu0 %v11699_v40  ;;  %v5050_v40 = vld [vmem:[%s19981_s5 + $0x400] sm:$0xff]  ;;  %v11825_v25 = vpack.c.bf16 %v5149_v31, %v5143_v61  ;;  %v11741_v9 = vpack.c.bf16 %v5122_v11, %v5116_v23  ;;  %v5128_v61 = vld [vmem:[%s19981_s5 + $0x670] sm:$0xff]  ;;  %v5141_v31 = vld [vmem:[%s19981_s5 + $0x6d8] sm:$0xff] }
 0x54e   : > { %11808 = vmatpush1.bf16.msra.mxu1 %v11807_v32  ;;  %v5063_v32 = vld [vmem:[%s19981_s5 + $0x468] sm:$0xff]  ;;  %v11717_v59 = vpack.c.bf16 %v5050_v40, %v5044_v1  ;;  %v6412_v4 = vld [vmem:[%s19982_s6 + $0xa0] sm:$0xff]  ;;  %v6511_v23 = vld [vmem:[%s19982_s6 + $0x3b8] sm:$0xff] }
 0x54f   : > { %11810 = vmatprep.subr.bf16.mxu1 %v11809_v50  ;;  %v5148_v50 = vld [vmem:[%s19981_s5 + $0x710] sm:$0xf]  ;;  %v11719_v58 = vpack.c.bf16 %v5063_v32, %v5057_v33  ;;  %v5146_v33 = vld [vmem:[%s19981_s5 + $0x700] sm:$0xf]  ;;  %v6413_v48 = vld [vmem:[%s19982_s6 + $0xa8] sm:$0xff] }
 0x550   : > { %11702 = vmatpush1.bf16.msra.mxu0 %v11701_v43  ;;  %v5056_v43 = vld [vmem:[%s19981_s5 + $0x430] sm:$0xff]  ;;  %v11828_v7 = vpack.c.bf16 %v5148_v50, %v5142_v26  ;;  %v6408_v32 = vld [vmem:[%s19982_s6 + $0x80] sm:$0xff]  ;;  %v11839_v55 = vpack.c.bf16 %v6413_v48, %v6412_v4  ;;  %v6509_v38 = vld [vmem:[%s19982_s6 + $0x3a8] sm:$0xff] }
 0x551   : > { %11704 = vmatprep.subr.bf16.mxu0 %v11703_v12  ;;  %v5069_v12 = vld [vmem:[%s19981_s5 + $0x498] sm:$0xff]  ;;  %v11721_v60 = vpack.c.bf16 %v5062_v19, %v5056_v43  ;;  %v6392_v26 = vld [vmem:[%s19982_s6] sm:$0xff]  ;;  %v6493_v29 = vld [vmem:[%s19982_s6 + $0x328] sm:$0xff] }
 0x552   : > { %11812 = vmatpush1.bf16.msra.mxu1 %v11811_v46  ;;  %v11723_v46 = vpack.c.bf16 %v5075_v18, %v5069_v12  ;;  %v17831_v19 = vld [vmem:[#allocation4] sm:$0xff]  ;;  %v6394_v12 = vld [vmem:[%s19982_s6 + $0x10] sm:$0xff] }
 0x553   : > { %11814 = vmatprep.subr.bf16.mxu1 %v11813_v39  ;;  %v5081_v39 = vld [vmem:[%s19981_s5 + $0x4f8] sm:$0xff] }
 0x554   : > { %11706 = vmatpush1.bf16.msra.mxu0 %v11705_v16  ;;  %v11727_v16 = vpack.c.bf16 %v5087_v42, %v5081_v39  ;;  %v6490_v42 = vld [vmem:[%s19982_s6 + $0x310] sm:$0xff] }
 0x555   : > { %11708 = vmatprep.subr.bf16.mxu0 %v11707_v2  ;;  %v5093_v2 = vld [vmem:[%s19981_s5 + $0x558] sm:$0xff] }
 0x556   : > { %11816 = vmatpush1.bf16.msra.mxu1 %v11815_v17  ;;  %v11731_v17 = vpack.c.bf16 %v5099_v3, %v5093_v2  ;;  %v6396_v2 = vld [vmem:[%s19982_s6 + $0x20] sm:$0xff]  ;;  %v6397_v3 = vld [vmem:[%s19982_s6 + $0x28] sm:$0xff] }
 0x557   : > { %11818 = vmatprep.subr.bf16.mxu1 %v11817_v21  ;;  %v5105_v21 = vld [vmem:[%s19981_s5 + $0x5b8] sm:$0xff]  ;;  %v11841_v27 = vpack.c.bf16 %v6397_v3, %v6396_v2  ;;  %v6440_v2 = vld [vmem:[%s19982_s6 + $0x180] sm:$0xff]  ;;  %v6441_v3 = vld [vmem:[%s19982_s6 + $0x188] sm:$0xff] }
 0x558   : > { %11710 = vmatpush1.bf16.msra.mxu0 %v11709_v44  ;;  %v11735_v44 = vpack.c.bf16 %v5111_v47, %v5105_v21  ;;  %v6399_v47 = vld [vmem:[%s19982_s6 + $0x38] sm:$0xff] }
 0x559   : > { %5602 = vmatmul.mubr.f32.vlgmr.msra.gmra.mrb[28].mxu1 %v17290_v5  ;;  %11712 = vmatprep.subr.bf16.mxu0 %v11711_v28  ;;  %v5117_v28 = vld [vmem:[%s19981_s5 + $0x618] sm:$0xff] }
 0x55a   : > { %5607 = vmatprep.mubr.f32.mxu1 %v17316_v45  ;;  %11820 = vmatpush1.bf16.msra.mxu1 %v11819_v52  ;;  %v11739_v52 = vpack.c.bf16 %v5123_v10, %v5117_v28  ;;  %v6416_v28 = vld [vmem:[%s19982_s6 + $0xc0] sm:$0xff]  ;;  %v6417_v10 = vld [vmem:[%s19982_s6 + $0xc8] sm:$0xff] }
 0x55b   : > { %11822 = vmatprep.subr.bf16.mxu1 %v11821_v6  ;;  %v5129_v6 = vld [vmem:[%s19981_s5 + $0x678] sm:$0xff]  ;;  %v11847_v11 = vpack.c.bf16 %v6417_v10, %v6416_v28 }
 0x55c   : > { %11714 = vmatpush1.bf16.msra.mxu0 %v11713_v24  ;;  %v11743_v24 = vpack.c.bf16 %v5135_v54, %v5129_v6  ;;  %v6401_v6 = vld [vmem:[%s19982_s6 + $0x48] sm:$0xff] }
 0x55d   : > { %5608 = vmatmul.mubr.f32.gmra.mrb[30].mxu1 %v17308_v35  ;;  %11716 = vmatprep.subr.bf16.mxu0 %v11715_v53  ;;  %v5147_v53 = vld [vmem:[%s19981_s5 + $0x708] sm:$0xf] }
 0x55e   : > { %5613 = vmatprep.mubr.f32.mxu1 %v17334_v62  ;;  %11824 = vmatpush1.bf16.msra.mxu1 %v11823_v63  ;;  %v11747_v40 = vpack.c.bf16 %v5147_v53, %v5141_v31  ;;  %v5140_v63 = vld [vmem:[%s19981_s5 + $0x6d0] sm:$0xff]  ;;  %v6419_v31 = vld [vmem:[%s19982_s6 + $0xd8] sm:$0xff]  ;;  %v6512_v53 = vld [vmem:[%s19982_s6 + $0x3c0] sm:$0xff] }
 0x55f   : > { %11827 = vmatprep.subr.msk.bf16.mxu1 %vm16868_vm2, %v11825_v25 }
 0x560   : > { %11718 = vmatpush1.bf16.msra.mxu0 %v11717_v59  ;;  %v6488_v59 = vld [vmem:[%s19982_s6 + $0x300] sm:$0xff] }
 0x561   : > { %5614 = vmatmul.mubr.f32.gmra.mrb[32].mxu1 %v17326_v36  ;;  %11720 = vmatprep.subr.bf16.mxu0 %v11719_v58  ;;  %v6489_v58 = vld [vmem:[%s19982_s6 + $0x308] sm:$0xff] }
 0x562   : > { %5619 = vmatprep.mubr.f32.mxu1 %v17352_v51  ;;  %11830 = vmatpush1.bf16.msk.msra.mxu1 %vm16868_vm2, %v11828_v7  ;;  %v11929_v43 = vpack.c.bf16 %v6489_v58, %v6488_v59  ;;  %v6405_v59 = vld [vmem:[%s19982_s6 + $0x68] sm:$0xff]  ;;  %v6422_v58 = vld [vmem:[%s19982_s6 + $0xf0] sm:$0xff] }
 0x564   : > { %11722 = vmatpush1.bf16.msra.mxu0 %v11721_v60  ;;  %v6395_v60 = vld [vmem:[%s19982_s6 + $0x18] sm:$0xff] }
 0x565   : > { %5620 = vmatmul.mubr.f32.gmra.mrb[34].mxu1 %v17344_v0  ;;  %11724 = vmatprep.subr.bf16.mxu0 %v11723_v46  ;;  %v6507_v46 = vld [vmem:[%s19982_s6 + $0x398] sm:$0xff] }
 0x566   : > { %5690 = vmatprep.mubr.f32.mxu1 %v17067_v30 }
 0x568   : > { %11726 = vmatpush1.bf16.msra.mxu0 %v11725_v15  ;;  %v6491_v15 = vld [vmem:[%s19982_s6 + $0x318] sm:$0xff] }
 0x569   : > { %9096 = vmatmul.mubr.msk.f32.vlgmr.msra.gmra.mrb[28].mxu1 %vm5150_vm7, %v17431_v41  ;;  %11728 = vmatprep.subr.bf16.mxu0 %v11727_v16  ;;  %v11837_v16 = vpack.c.bf16 %v6395_v60, %v6394_v12  ;;  %v11933_v8 = vpack.c.bf16 %v6491_v15, %v6490_v42  ;;  %v6498_v12 = vld [vmem:[%s19982_s6 + $0x350] sm:$0xff]  ;;  %v6501_v42 = vld [vmem:[%s19982_s6 + $0x368] sm:$0xff] }
 0x56a   : > { %5696 = vmatprep.mubr.f32.mxu1 %v17067_v30 }
 0x56c   : > { %11730 = vmatpush1.bf16.msra.mxu0 %v11729_v22  ;;  %v6415_v22 = vld [vmem:[%s19982_s6 + $0xb8] sm:$0xff] }
 0x56d   : > { %9097 = vmatmul.mubr.msk.f32.gmra.mrb[30].mxu1 %vm5150_vm7, %v17423_v49  ;;  %11732 = vmatprep.subr.bf16.mxu0 %v11731_v17  ;;  %v6508_v17 = vld [vmem:[%s19982_s6 + $0x3a0] sm:$0xff] }
 0x56e   : > { %5702 = vmatprep.mubr.f32.mxu1 %v17067_v30 }
 0x570   : > { %11734 = vmatpush1.bf16.msra.mxu0 %v11733_v13  ;;  %v11935_v13 = vpack.c.bf16 %v6509_v38, %v6508_v17  ;;  %v6519_v17 = vld [vmem:[%s19982_s6 + $0x3f8] sm:$0xff]  ;;  %v11863_v38 = vpack.c.bf16 %v6441_v3, %v6440_v2 }
 0x571   : > { %9098 = vmatmul.mubr.msk.f32.gmra.mrb[32].mxu1 %vm5150_vm7, %v17468_v20  ;;  %11736 = vmatprep.subr.bf16.mxu0 %v11735_v44  ;;  %v6492_v44 = vld [vmem:[%s19982_s6 + $0x320] sm:$0xff] }
 0x572   : > { %5708 = vmatprep.mubr.f32.mxu1 %v17067_v30  ;;  %v5134_v30 = vld [vmem:[%s19981_s5 + $0x6a0] sm:$0xff]  ;;  %v11937_v56 = vpack.c.bf16 %v6493_v29, %v6492_v44  ;;  %v6569_v44 = vld [vmem:[%s19982_s6 + $0x588] sm:$0xff] }
 0x573   : > { %v11745_v1 = vpack.c.bf16 %v5134_v30, %v5128_v61  ;;  %v6418_v30 = vld [vmem:[%s19982_s6 + $0xd0] sm:$0xff] }
 0x574   : > { %11738 = vmatpush1.bf16.msra.mxu0 %v11737_v34  ;;  %v6510_v34 = vld [vmem:[%s19982_s6 + $0x3b0] sm:$0xff] }
 0x575   : > { %9099 = vmatmul.mubr.msk.f32.gmra.mrb[34].mxu1 %vm5150_vm7, %v17460_v57  ;;  %11740 = vmatprep.subr.bf16.mxu0 %v11739_v52  ;;  %v11939_v54 = vpack.c.bf16 %v6511_v23, %v6510_v34 }
 0x577   : > { %5424 = vmatmul.mubr.f32.vlgmr.msra.gmra.mrb[44].mxu0 %v17290_v5  ;;  %v6409_v5 = vld [vmem:[%s19982_s6 + $0x88] sm:$0xff] }
 0x578   : > { %5429 = vmatprep.mubr.f32.mxu0 %v17316_v45  ;;  %11742 = vmatpush1.bf16.msra.mxu0 %v11741_v9  ;;  %v11750_v45 = vpack.c.bf16 %v5146_v33, %v5140_v63  ;;  %v11831_v25 = vpack.c.bf16 %v6409_v5, %v6408_v32  ;;  %v6494_v9 = vld [vmem:[%s19982_s6 + $0x330] sm:$0xff]  ;;  %v11851_v63 = vpack.c.bf16 %v6419_v31, %v6418_v30  ;;  %v6403_v33 = vld [vmem:[%s19982_s6 + $0x58] sm:$0xff]  ;;  %v6496_v5 = vld [vmem:[%s19982_s6 + $0x340] sm:$0xff] }
 0x579   : > { %11744 = vmatprep.subr.bf16.mxu0 %v11743_v24  ;;  %v6495_v24 = vld [vmem:[%s19982_s6 + $0x338] sm:$0xff] }
 0x57a   : > { %v11941_v61 = vpack.c.bf16 %v6495_v24, %v6494_v9 }
 0x57b   : > { %5430 = vmatmul.mubr.f32.gmra.mrb[46].mxu0 %v17308_v35  ;;  %v6393_v35 = vld [vmem:[%s19982_s6 + $0x8] sm:$0xff] }
 0x57c   : > { %5435 = vmatprep.mubr.f32.mxu0 %v17334_v62  ;;  %11746 = vmatpush1.bf16.msra.mxu0 %v11745_v1  ;;  %v6410_v62 = vld [vmem:[%s19982_s6 + $0x90] sm:$0xff]  ;;  %v11833_v7 = vpack.c.bf16 %v6393_v35, %v6392_v26  ;;  %v6420_v26 = vld [vmem:[%s19982_s6 + $0xe0] sm:$0xff]  ;;  %v6421_v35 = vld [vmem:[%s19982_s6 + $0xe8] sm:$0xff] }
 0x57d   : > { %11749 = vmatprep.subr.msk.bf16.mxu0 %vm16868_vm2, %v11747_v40  ;;  %v6402_v40 = vld [vmem:[%s19982_s6 + $0x50] sm:$0xff] }
 0x57f   : > { %5436 = vmatmul.mubr.f32.gmra.mrb[48].mxu0 %v17326_v36  ;;  %v6504_v36 = vld [vmem:[%s19982_s6 + $0x380] sm:$0xff] }
 0x580   : > { %5441 = vmatprep.mubr.f32.mxu0 %v17352_v51  ;;  %11752 = vmatpush1.bf16.msk.msra.mxu0 %vm16868_vm2, %v11750_v45  ;;  %v6411_v51 = vld [vmem:[%s19982_s6 + $0x98] sm:$0xff]  ;;  %v11927_v50 = vpack.c.bf16 %v6505_v14, %v6504_v36  ;;  %v6497_v45 = vld [vmem:[%s19982_s6 + $0x348] sm:$0xff]  ;;  %v11853_v36 = vpack.c.bf16 %v6403_v33, %v6402_v40  ;;  %vm8756_vm2 = vcmask 687104  }
 0x581   : > { %11832 = vmatprep.subr.bf16.mxu0 %v11831_v25  ;;  %v11835_v18 = vpack.c.bf16 %v6411_v51, %v6410_v62  ;;  %v11945_v25 = vpack.c.bf16 %v6497_v45, %v6496_v5  ;;  %v6514_v62 = vld [vmem:[%s19982_s6 + $0x3d0] sm:$0xff]  ;;  %v6515_v14 = vld [vmem:[%s19982_s6 + $0x3d8] sm:$0xff]  ;;  %v11855_v51 = vpack.c.bf16 %v6421_v35, %v6420_v26 }
 0x582   : > { %11928 = vmatprep.subr.bf16.mxu1 %v11927_v50  ;;  %v6404_v50 = vld [vmem:[%s19982_s6 + $0x60] sm:$0xff] }
 0x583   : > { %5442 = vmatmul.mubr.f32.gmra.mrb[50].mxu0 %v17344_v0  ;;  %11930 = vmatpush3.bf16.msra.mxu1 %v11929_v43  ;;  %v6506_v0 = vld [vmem:[%s19982_s6 + $0x390] sm:$0xff]  ;;  %v11947_v43 = vpack.c.bf16 %v6515_v14, %v6514_v62  ;;  %v11857_v4 = vpack.c.bf16 %v6405_v59, %v6404_v50 }
 0x584   : > { %5512 = vmatprep.mubr.f32.mxu0 %v17831_v19  ;;  %v11931_v39 = vpack.c.bf16 %v6507_v46, %v6506_v0  ;;  %v6516_v0 = vld [vmem:[%s19982_s6 + $0x3e0] sm:$0xff]  ;;  %v6517_v46 = vld [vmem:[%s19982_s6 + $0x3e8] sm:$0xff] }
 0x585   : > { %v11951_v48 = vpack.c.bf16 %v6517_v46, %v6516_v0 }
 0x586   : > { %11932 = vmatprep.subr.bf16.mxu1 %v11931_v39  ;;  %v6500_v39 = vld [vmem:[%s19982_s6 + $0x360] sm:$0xff] }
 0x587   : > { %9090 = vmatmul.mubr.msk.f32.vlgmr.msra.gmra.mrb[44].mxu0 %vm5150_vm7, %v17431_v41  ;;  %11934 = vmatpush3.bf16.msra.mxu1 %v11933_v8  ;;  %v6414_v41 = vld [vmem:[%s19982_s6 + $0xb0] sm:$0xff]  ;;  %v6407_v8 = vld [vmem:[%s19982_s6 + $0x78] sm:$0xff] }
 0x588   : > { %5518 = vmatprep.mubr.f32.mxu0 %v17831_v19  ;;  %11834 = vmatpush3.bf16.msra.mxu0 %v11833_v7  ;;  %v11843_v21 = vpack.c.bf16 %v6415_v22, %v6414_v41  ;;  %v6423_v7 = vld [vmem:[%s19982_s6 + $0xf8] sm:$0xff]  ;;  %v6518_v41 = vld [vmem:[%s19982_s6 + $0x3f0] sm:$0xff] }
 0x589   : > { %11836 = vmatprep.subr.bf16.mxu0 %v11835_v18  ;;  %11936 = vmatprep.subr.bf16.mxu1 %v11935_v13  ;;  %v6499_v18 = vld [vmem:[%s19982_s6 + $0x358] sm:$0xff]  ;;  %v11859_v15 = vpack.c.bf16 %v6423_v7, %v6422_v58  ;;  %v6568_v13 = vld [vmem:[%s19982_s6 + $0x580] sm:$0xff] }
 0x58a   : > { %v11949_v60 = vpack.c.bf16 %v6499_v18, %v6498_v12  ;;  %v11991_v29 = vpack.c.bf16 %v6569_v44, %v6568_v13  ;;  %v18084_v13 = vld [vmem:[%s19982_s6 + $0x190] sm:$0xff] }
 0x58b   : > { %9091 = vmatmul.mubr.msk.f32.gmra.mrb[46].mxu0 %vm5150_vm7, %v17423_v49  ;;  %v6398_v49 = vld [vmem:[%s19982_s6 + $0x30] sm:$0xff]  ;;  %11938 = vmatpush3.bf16.msra.mxu1 %v11937_v56 }
 0x58c   : > { %5524 = vmatprep.mubr.f32.mxu0 %v17831_v19  ;;  %11838 = vmatpush3.bf16.msra.mxu0 %v11837_v16  ;;  %v11845_v52 = vpack.c.bf16 %v6399_v47, %v6398_v49  ;;  %v6406_v16 = vld [vmem:[%s19982_s6 + $0x70] sm:$0xff]  ;;  %v6503_v49 = vld [vmem:[%s19982_s6 + $0x378] sm:$0xff] }
 0x58d   : > { %11840 = vmatprep.subr.bf16.mxu0 %v11839_v55  ;;  %11940 = vmatprep.subr.bf16.mxu1 %v11939_v54  ;;  %v11953_v55 = vpack.c.bf16 %v6501_v42, %v6500_v39  ;;  %v11861_v22 = vpack.c.bf16 %v6407_v8, %v6406_v16 }
 0x58f   : > { %9092 = vmatmul.mubr.msk.f32.gmra.mrb[48].mxu0 %vm5150_vm7, %v17468_v20  ;;  %v6400_v20 = vld [vmem:[%s19982_s6 + $0x40] sm:$0xff]  ;;  %11942 = vmatpush3.bf16.msra.mxu1 %v11941_v61 }
 0x590   : > { %5530 = vmatprep.mubr.f32.mxu0 %v17831_v19  ;;  %11842 = vmatpush3.bf16.msra.mxu0 %v11841_v27  ;;  %v11849_v1 = vpack.c.bf16 %v6401_v6, %v6400_v20  ;;  %v6502_v27 = vld [vmem:[%s19982_s6 + $0x370] sm:$0xff] }
 0x591   : > { %11844 = vmatprep.subr.bf16.mxu0 %v11843_v21  ;;  %v11955_v21 = vpack.c.bf16 %v6519_v17, %v6518_v41  ;;  %v11957_v47 = vpack.c.bf16 %v6503_v49, %v6502_v27 }
 0x593   : > { %9093 = vmatmul.mubr.msk.f32.gmra.mrb[50].mxu0 %vm5150_vm7, %v17460_v57  ;;  %v6513_v57 = vld [vmem:[%s19982_s6 + $0x3c8] sm:$0xff] }
 0x594   : > { %11846 = vmatpush3.bf16.msra.mxu0 %v11845_v52  ;;  %v11943_v32 = vpack.c.bf16 %v6513_v57, %v6512_v53 }
 0x595   : > { %11848 = vmatprep.subr.bf16.mxu0 %v11847_v11 }
 0x596   : > { %11944 = vmatprep.subr.bf16.mxu1 %v11943_v32 }
 0x597   : > { %11946 = vmatpush3.bf16.msra.mxu1 %v11945_v25 }
 0x598   : > { %11850 = vmatpush3.bf16.msra.mxu0 %v11849_v1  ;;  %11948 = vmatprep.subr.bf16.mxu1 %v11947_v43 }
 0x599   : > { %11852 = vmatprep.subr.bf16.mxu0 %v11851_v63 }
 0x59b   : > { %11950 = vmatpush3.bf16.msra.mxu1 %v11949_v60 }
 0x59c   : > { %11854 = vmatpush3.bf16.msra.mxu0 %v11853_v36  ;;  %11952 = vmatprep.subr.bf16.mxu1 %v11951_v48 }
 0x59d   : > { %11856 = vmatprep.subr.bf16.mxu0 %v11855_v51 }
 0x59f   : > { %11954 = vmatpush3.bf16.msra.mxu1 %v11953_v55 }
 0x5a0   : > { %11858 = vmatpush3.bf16.msra.mxu0 %v11857_v4  ;;  %11956 = vmatprep.subr.bf16.mxu1 %v11955_v21  ;;  %v18074_v21 = vld [vmem:[%s19982_s6 + $0x100] sm:$0xff] }
 0x5a1   : > { %11860 = vmatprep.subr.bf16.mxu0 %v11859_v15 }
 0x5a3   : > { %11958 = vmatpush3.bf16.msra.mxu1 %v11957_v47  ;;  %v18079_v47 = vld [vmem:[%s19982_s6 + $0x108] sm:$0xff] }
 0x5a4   : > { %11862 = vmatpush3.bf16.msra.mxu0 %v11861_v22  ;;  %11992 = vmatprep.subr.bf16.mxu1 %v11991_v29 }
 0x5a5   : > { %11864 = vmatprep.subr.bf16.mxu0 %v11863_v38 }
 0x5ec   : > { %v5247_v56 = vpop.f32.mrb[20].mxu1 }
 0x5ed   : > { %v5249_v28 = vpop.f32.mrb[21].mxu1 }
 0x5f0   : > { %v5253_v10 = vpop.f32.mrb[22].mxu1 }
 0x5f1   : > { %v5255_v34 = vpop.f32.mrb[23].mxu1 }
 0x5f4   : > { %v5259_v52 = vpop.f32.mrb[24].mxu1 }
 0x5f5   : > { %v5261_v20 = vpop.f32.mrb[25].mxu1 }
 0x5f8   : > { %v18019_v23 = vpop.f32.mrb[26].mxu1 }
 0x5f9   : > { %v18021_v11 = vpop.f32.mrb[27].mxu1 }
 0x60a   : > { %v5336_v6 = vpop.f32.mrb[36].mxu0 }
 0x60b   : > { %v5337_v54 = vadd.f32 %v5336_v6, %v5247_v56  ;;  %v5338_v9 = vpop.f32.mrb[37].mxu0 }
 0x60c   : > { %v5339_v24 = vadd.f32 %v5338_v9, %v5249_v28  ;;  %v6443_v28 = vld [vmem:[%s19982_s6 + $0x198] sm:$0xff] }
 0x60d   : > { %5715 = vst [vmem:[#allocation3] sm:$0xff] %v5337_v54  ;;  %5833 = vst.msk [vmem:[#allocation4] sm:$0xff] %vm5832_vm8, %v5337_v54 }
 0x60e   : > { %5716 = vst [vmem:[#allocation3 + $0x8] sm:$0xff] %v5339_v24  ;;  %5915 = vst.msk [vmem:[#allocation4 + $0x28] sm:$0xff] %vm5832_vm8, %v5339_v24  ;;  %v5342_v61 = vpop.f32.mrb[38].mxu0 }
 0x60f   : > { %v18025_v30 = vadd.f32 %v5342_v61, %v5253_v10  ;;  %v5344_v31 = vpop.f32.mrb[39].mxu0  ;;  %v18100_v10 = vld [vmem:[%s19982_s6 + $0x500] sm:$0xff] }
 0x610   : > { %v18027_v53 = vadd.f32 %v5344_v31, %v5255_v34  ;;  %v18105_v34 = vld [vmem:[%s19982_s6 + $0x508] sm:$0xff]  ;;  %v6426_v31 = vld [vmem:[%s19982_s6 + $0x110] sm:$0xff] }
 0x611   : > { %v5845_v1 = vrot.slane %v18025_v30, 1  ;;  %5834 = vst.msk [vmem:[#allocation4 + $0xf0] sm:$0xff] %vm5832_vm8, %v18025_v30  ;;  %v5863_v40 = vrot.slane %v18025_v30, 2  ;;  %v5881_v57 = vrot.slane %v18025_v30, 3  ;;  %v5900_v63 = vrot.slane %v18025_v30, 4 }
 0x612   : > { %v5925_v33 = vrot.slane %v18027_v53, 1  ;;  %5916 = vst.msk [vmem:[#allocation4 + $0x118] sm:$0xff] %vm5832_vm8, %v18027_v53  ;;  %v5348_v32 = vpop.f32.mrb[40].mxu0  ;;  %v5942_v5 = vrot.slane %v18027_v53, 2  ;;  %v5959_v45 = vrot.slane %v18027_v53, 3  ;;  %v5978_v25 = vrot.slane %v18027_v53, 4 }
 0x613   : > { %v18041_v26 = vadd.f32 %v5348_v32, %v5259_v52  ;;  %v5350_v35 = vpop.f32.mrb[41].mxu0  ;;  %v11865_v32 = vpack.c.bf16 %v18079_v47, %v18074_v21  ;;  %v11993_v30 = vpack.c.bf16 %v18105_v34, %v18100_v10  ;;  %v6572_v53 = vld [vmem:[%s19982_s6 + $0x5a0] sm:$0xff]  ;;  %v6431_v47 = vld [vmem:[%s19982_s6 + $0x138] sm:$0xff] }
 0x614   : > { %v5837_v62 = vld [vmem:[#allocation3] sm:$0xfe]  ;;  %v18043_v51 = vadd.f32 %v5350_v35, %v5261_v20  ;;  %v6570_v35 = vld [vmem:[%s19982_s6 + $0x590] sm:$0xff] }
 0x615   : > { %v5855_v36 = vld [vmem:[#allocation3] sm:$0xfc]  ;;  %v5844_v50 = vrot.slane %v5837_v62, 1  ;;  %5727 = vst [vmem:[#allocation3 + $0x60] sm:$0xff] %v18041_v26  ;;  %v5883_v7 = vrot.slane %v18041_v26, 3  ;;  %v5902_v0 = vrot.slane %v18041_v26, 4 }
 0x616   : > { %v5873_v14 = vld [vmem:[#allocation3] sm:$0xf8]  ;;  %v5862_v59 = vrot.slane %v5855_v36, 2  ;;  %v5918_v18 = vld [vmem:[#allocation3 + $0x8] sm:$0xfe]  ;;  %5728 = vst [vmem:[#allocation3 + $0x68] sm:$0xff] %v18043_v51 }
 0x617   : > { %v5880_v58 = vrot.slane %v5873_v14, 3  ;;  %v5891_v43 = vld [vmem:[#allocation3] sm:$0xf0]  ;;  %v5935_v60 = vld [vmem:[#allocation3 + $0x8] sm:$0xfc]  ;;  %v5924_v46 = vrot.slane %v5918_v18, 1  ;;  %v5846_v15 = vsel %vm5843_vm10, %v5844_v50, %v5845_v1  ;;  %v5884_v44 = vsel %vm5879_vm11, %v5881_v57, %v5883_v7 }
 0x618   : > { %v5899_v12 = vrot.slane %v5891_v43, 4  ;;  %v5941_v4 = vrot.slane %v5935_v60, 2  ;;  %v5952_v48 = vld [vmem:[#allocation3 + $0x8] sm:$0xf8]  ;;  %v5864_v42 = vsel %vm5861_vm9, %v5862_v59, %v5863_v40  ;;  %5890 = vst.msk [vmem:[#allocation4 + $0x1f8] sm:$0x1f] %vm5835_vm12, %v5883_v7  ;;  %v5903_v52 = vsel %vm4483_vm0, %v5900_v63, %v5902_v0 }
 0x619   : > { %v5969_v39 = vld [vmem:[#allocation3 + $0x8] sm:$0xf0]  ;;  %v5958_v16 = vrot.slane %v5952_v48, 3  ;;  %5870 = vst.msk [vmem:[#allocation4 + $0x10] sm:$0xff] %vm5832_vm8, %v5864_v42  ;;  %5852 = vst.msk [vmem:[#allocation4 + $0x8] sm:$0xff] %vm5832_vm8, %v5846_v15  ;;  %v5961_v2 = vrot.slane %v18043_v51, 3  ;;  %v5926_v41 = vsel %vm5843_vm10, %v5924_v46, %v5925_v33  ;;  %v5882_v27 = vsel %vm5879_vm11, %v5880_v58, %v5881_v57 }
 0x61a   : > { %v5977_v8 = vrot.slane %v5969_v39, 4  ;;  %v5901_v55 = vsel %vm4483_vm0, %v5899_v12, %v5900_v63  ;;  %v5354_v3 = vpop.f32.mrb[42].mxu0  ;;  %v5980_v22 = vrot.slane %v18043_v51, 4  ;;  %v5943_v17 = vsel %vm5861_vm9, %v5941_v4, %v5942_v5  ;;  %5932 = vst.msk [vmem:[#allocation4 + $0x30] sm:$0xff] %vm5832_vm8, %v5926_v41  ;;  %5888 = vst.msk [vmem:[#allocation4 + $0x18] sm:$0xff] %vm5832_vm8, %v5882_v27  ;;  %v6571_v62 = vld [vmem:[%s19982_s6 + $0x598] sm:$0xff] }
 0x61b   : > { %5909 = vst.msk [vmem:[#allocation4 + $0x20] sm:$0xff] %vm5832_vm8, %v5901_v55  ;;  %v5356_v49 = vpop.f32.mrb[43].mxu0  ;;  %v5960_v38 = vsel %vm5879_vm11, %v5958_v16, %v5959_v45  ;;  %5949 = vst.msk [vmem:[#allocation4 + $0x38] sm:$0xff] %vm5832_vm8, %v5943_v17  ;;  %v5355_v29 = vadd.f32 %v5354_v3, %v18019_v23  ;;  %v11867_v14 = vpack.c.bf16 %v6443_v28, %v18084_v13  ;;  %v6427_v50 = vld [vmem:[%s19982_s6 + $0x118] sm:$0xff]  ;;  %v6444_v58 = vld [vmem:[%s19982_s6 + $0x1a0] sm:$0xff] }
 0x61c   : > { %5968 = vst.msk [vmem:[#allocation4 + $0x220] sm:$0x1f] %vm5835_vm12, %v5961_v2  ;;  %v5357_v56 = vadd.f32 %v5356_v49, %v18021_v11  ;;  %v5979_v20 = vsel %vm4483_vm0, %v5977_v8, %v5978_v25  ;;  %v5981_v23 = vsel %vm4483_vm0, %v5978_v25, %v5980_v22  ;;  %v5962_v11 = vsel %vm5879_vm11, %v5959_v45, %v5961_v2  ;;  %v5831_v6 = vld [vmem:[#allocation3 + $0x60] sm:$0x1f]  ;;  %v6445_v60 = vld [vmem:[%s19982_s6 + $0x1a8] sm:$0xff]  ;;  %v6555_v48 = vld [vmem:[%s19982_s6 + $0x518] sm:$0xff] }
 0x61d   : > { %5966 = vst.msk [vmem:[#allocation4 + $0x40] sm:$0xff] %vm5832_vm8, %v5960_v38  ;;  %5889 = vst.msk [vmem:[#allocation4 + $0x108] sm:$0xff] %vm5832_vm8, %v5884_v44  ;;  %v5839_v54 = vld [vmem:[#allocation3 + $0x60] sm:$0x3f]  ;;  %v5914_v57 = vld [vmem:[#allocation3 + $0x68] sm:$0x1f]  ;;  %v11995_v4 = vpack.c.bf16 %v6571_v62, %v6570_v35  ;;  %v11869_v39 = vpack.c.bf16 %v6427_v50, %v6426_v31  ;;  %v11871_v15 = vpack.c.bf16 %v6445_v60, %v6444_v58 }
 0x61e   : > { %v5857_v9 = vld [vmem:[#allocation3 + $0x60] sm:$0x7f]  ;;  %5733 = vst [vmem:[#allocation3 + $0x90] sm:$0x1] %v5355_v29  ;;  %5734 = vst [vmem:[#allocation3 + $0x98] sm:$0x1] %v5357_v56 }
 0x61f   : > { %5910 = vst.msk [vmem:[#allocation4 + $0x110] sm:$0xff] %vm5832_vm8, %v5903_v52  ;;  %5987 = vst.msk [vmem:[#allocation4 + $0x48] sm:$0xff] %vm5832_vm8, %v5979_v20  ;;  %v5847_v24 = vrot.slane %v5839_v54, 1  ;;  %v5865_v61 = vrot.slane %v5857_v9, 2  ;;  %v5920_v63 = vld [vmem:[#allocation3 + $0x68] sm:$0x3f] }
 0x620   : > { %5988 = vst.msk [vmem:[#allocation4 + $0x138] sm:$0xff] %vm5832_vm8, %v5981_v23  ;;  %5967 = vst.msk [vmem:[#allocation4 + $0x130] sm:$0xff] %vm5832_vm8, %v5962_v11  ;;  %v5927_v45 = vrot.slane %v5920_v63, 1  ;;  %v5937_v25 = vld [vmem:[#allocation3 + $0x68] sm:$0x7f]  ;;  %v6302_v12 = vld [vmem:[#allocation4] sm:$0xff] }
 0x621   : > { %5836 = vst.msk [vmem:[#allocation4 + $0x1e0] sm:$0x1f] %vm5835_vm12, %v5831_v6  ;;  %5917 = vst.msk [vmem:[#allocation4 + $0x208] sm:$0x1f] %vm5835_vm12, %v5914_v57  ;;  %v6303_v36 = vld [vmem:[#allocation4 + $0x8] sm:$0xff]  ;;  %v5944_v59 = vrot.slane %v5937_v25, 2  ;;  %v5848_v43 = vsel %vm5843_vm10, %v5845_v1, %v5847_v24  ;;  %v5866_v7 = vsel %vm5861_vm9, %v5863_v40, %v5865_v61 }
 0x622   : > { %5854 = vst.msk [vmem:[#allocation4 + $0x1e8] sm:$0x1f] %vm5835_vm12, %v5847_v24  ;;  %5872 = vst.msk [vmem:[#allocation4 + $0x1f0] sm:$0x1f] %vm5835_vm12, %v5865_v61  ;;  %6936 = vmatprep.mubr.f32.mxu0 %v6303_v36  ;;  %v5928_v18 = vsel %vm5843_vm10, %v5925_v33, %v5927_v45  ;;  %v6554_v1 = vld [vmem:[%s19982_s6 + $0x510] sm:$0xff]  ;;  %v6309_v40 = vld [vmem:[#allocation4 + $0x38] sm:$0xff] }
 0x623   : > { %5853 = vst.msk [vmem:[#allocation4 + $0xf8] sm:$0xff] %vm5832_vm8, %v5848_v43  ;;  %5871 = vst.msk [vmem:[#allocation4 + $0x100] sm:$0xff] %vm5832_vm8, %v5866_v7  ;;  %6937 = vmatmul.mubr.f32.vlgmr.msra.gmra.mrb[52].mxu0 %v6302_v12  ;;  %v6308_v33 = vld [vmem:[#allocation4 + $0x30] sm:$0xff]  ;;  %v5945_v46 = vsel %vm5861_vm9, %v5942_v5, %v5944_v59  ;;  %v6428_v42 = vld [vmem:[%s19982_s6 + $0x120] sm:$0xff]  ;;  %7176 = vmatprep.mubr.f32.mxu1 %v6309_v40  ;;  %v11997_v27 = vpack.c.bf16 %v6555_v48, %v6554_v1 }
 0x624   : > { %5934 = vst.msk [vmem:[#allocation4 + $0x210] sm:$0x1f] %vm5835_vm12, %v5927_v45  ;;  %5951 = vst.msk [vmem:[#allocation4 + $0x218] sm:$0x1f] %vm5835_vm12, %v5944_v59  ;;  %11866 = vmatpush3.bf16.msra.mxu0 %v11865_v32  ;;  %v6573_v5 = vld [vmem:[%s19982_s6 + $0x5a8] sm:$0xff]  ;;  %7177 = vmatmul.mubr.f32.vlgmr.msra.gmra.mrb[36].mxu1 %v6308_v33  ;;  %v6446_v2 = vld [vmem:[%s19982_s6 + $0x1b0] sm:$0xff] }
 0x625   : > { %5933 = vst.msk [vmem:[#allocation4 + $0x120] sm:$0xff] %vm5832_vm8, %v5928_v18  ;;  %5950 = vst.msk [vmem:[#allocation4 + $0x128] sm:$0xff] %vm5832_vm8, %v5945_v46  ;;  %11868 = vmatprep.subr.bf16.mxu0 %v11867_v14  ;;  %v6429_v16 = vld [vmem:[%s19982_s6 + $0x128] sm:$0xff]  ;;  %v5894_v8 = vld [vmem:[#allocation3 + $0x90] sm:$0x1]  ;;  %11994 = vmatpush3.bf16.msra.mxu1 %v11993_v30  ;;  %v11999_v38 = vpack.c.bf16 %v6573_v5, %v6572_v53 }
 0x626   : > { %v5972_v55 = vld [vmem:[#allocation3 + $0x98] sm:$0x1]  ;;  %v5904_v41 = vrot.slane %v5894_v8, 4  ;;  %v6430_v49 = vld [vmem:[%s19982_s6 + $0x130] sm:$0xff]  ;;  %11996 = vmatprep.subr.bf16.mxu1 %v11995_v4  ;;  %v11873_v21 = vpack.c.bf16 %v6429_v16, %v6428_v42  ;;  %v6556_v13 = vld [vmem:[%s19982_s6 + $0x520] sm:$0xff] }
 0x627   : > { %v6447_v3 = vld [vmem:[%s19982_s6 + $0x1b8] sm:$0xff]  ;;  %v5982_v17 = vrot.slane %v5972_v55, 4  ;;  %v6557_v44 = vld [vmem:[%s19982_s6 + $0x528] sm:$0xff]  ;;  %v6448_v10 = vld [vmem:[%s19982_s6 + $0x1c0] sm:$0xff]  ;;  %v11877_v54 = vpack.c.bf16 %v6431_v47, %v6430_v49 }
 0x628   : > { %11870 = vmatpush3.bf16.msra.mxu0 %v11869_v39  ;;  %v5905_v29 = vsel %vm4483_vm0, %v5902_v0, %v5904_v41  ;;  %v11875_v28 = vpack.c.bf16 %v6447_v3, %v6446_v2  ;;  %v6449_v26 = vld [vmem:[%s19982_s6 + $0x1c8] sm:$0xff]  ;;  %v6332_v51 = vld [vmem:[#allocation4 + $0xf0] sm:$0xff]  ;;  %v12001_v11 = vpack.c.bf16 %v6557_v44, %v6556_v13  ;;  %v6575_v6 = vld [vmem:[%s19982_s6 + $0x5b8] sm:$0xff] }
 0x629   : > { %v5983_v56 = vsel %vm4483_vm0, %v5980_v22, %v5982_v17  ;;  %11872 = vmatprep.subr.bf16.mxu0 %v11871_v15  ;;  %v6363_v52 = vld [vmem:[#allocation4 + $0x1e8] sm:$0x1f]  ;;  %5911 = vst.msk [vmem:[#allocation4 + $0x200] sm:$0x1f] %vm5835_vm12, %v5905_v29  ;;  %11998 = vmatpush3.bf16.msra.mxu1 %v11997_v27  ;;  %v6574_v0 = vld [vmem:[%s19982_s6 + $0x5b0] sm:$0xff]  ;;  %v6432_v22 = vld [vmem:[%s19982_s6 + $0x140] sm:$0xff]  ;;  %v11879_v31 = vpack.c.bf16 %v6449_v26, %v6448_v10 }
 0x62a   : > { %v6333_v34 = vld [vmem:[#allocation4 + $0xf8] sm:$0xff]  ;;  %5989 = vst.msk [vmem:[#allocation4 + $0x228] sm:$0x1f] %vm5835_vm12, %v5983_v56  ;;  %12000 = vmatprep.subr.bf16.mxu1 %v11999_v38  ;;  %v6362_v9 = vld [vmem:[#allocation4 + $0x1e0] sm:$0x1f]  ;;  %v6558_v24 = vld [vmem:[%s19982_s6 + $0x530] sm:$0xff]  ;;  %v12003_v62 = vpack.c.bf16 %v6575_v6, %v6574_v0 }
 0x62b   : > { %6941 = vmatprep.mubr.f32.mxu0 %v6333_v34  ;;  %v6559_v61 = vld [vmem:[%s19982_s6 + $0x538] sm:$0xff]  ;;  %v6433_v57 = vld [vmem:[%s19982_s6 + $0x148] sm:$0xff]  ;;  %v6576_v63 = vld [vmem:[%s19982_s6 + $0x5c0] sm:$0xff] }
 0x62c   : > { %6942 = vmatmul.mubr.f32.gmra.mrb[54].mxu0 %v6332_v51  ;;  %v6339_v20 = vld [vmem:[#allocation4 + $0x128] sm:$0xff]  ;;  %v6338_v23 = vld [vmem:[#allocation4 + $0x120] sm:$0xff]  ;;  %v6450_v45 = vld [vmem:[%s19982_s6 + $0x1d0] sm:$0xff]  ;;  %v12005_v50 = vpack.c.bf16 %v6559_v61, %v6558_v24  ;;  %v11881_v59 = vpack.c.bf16 %v6433_v57, %v6432_v22 }
 0x62d   : > { %11874 = vmatpush3.bf16.msra.mxu0 %v11873_v21  ;;  %6946 = vmatprep.mubr.f32.mxu0 %v6363_v52  ;;  %v6577_v32 = vld [vmem:[%s19982_s6 + $0x5c8] sm:$0xff]  ;;  %v6451_v25 = vld [vmem:[%s19982_s6 + $0x1d8] sm:$0xff]  ;;  %v6368_v14 = vld [vmem:[#allocation4 + $0x210] sm:$0x1f] }
 0x62e   : > { %11876 = vmatprep.subr.bf16.mxu0 %v11875_v28  ;;  %7181 = vmatprep.mubr.f32.mxu1 %v6339_v20  ;;  %v6369_v35 = vld [vmem:[#allocation4 + $0x218] sm:$0x1f]  ;;  %v6434_v58 = vld [vmem:[%s19982_s6 + $0x150] sm:$0xff]  ;;  %v12007_v43 = vpack.c.bf16 %v6577_v32, %v6576_v63  ;;  %v6560_v7 = vld [vmem:[%s19982_s6 + $0x540] sm:$0xff]  ;;  %v11883_v18 = vpack.c.bf16 %v6451_v25, %v6450_v45 }
 0x62f   : > { %7182 = vmatmul.mubr.f32.gmra.mrb[38].mxu1 %v6338_v23  ;;  %v6305_v36 = vld [vmem:[#allocation4 + $0x18] sm:$0xff]  ;;  %v6561_v12 = vld [vmem:[%s19982_s6 + $0x548] sm:$0xff]  ;;  %v6578_v30 = vld [vmem:[%s19982_s6 + $0x5d0] sm:$0xff] }
 0x630   : > { %6947 = vmatmul.mubr.f32.gmra.mrb[56].mxu0 %v6362_v9  ;;  %12002 = vmatpush3.bf16.msra.mxu1 %v12001_v11  ;;  %v6435_v60 = vld [vmem:[%s19982_s6 + $0x158] sm:$0xff]  ;;  %v6452_v40 = vld [vmem:[%s19982_s6 + $0x1e0] sm:$0xff]  ;;  %v6453_v33 = vld [vmem:[%s19982_s6 + $0x1e8] sm:$0xff]  ;;  %v12009_v46 = vpack.c.bf16 %v6561_v12, %v6560_v7 }
 0x631   : > { %11878 = vmatpush3.bf16.msra.mxu0 %v11877_v54  ;;  %7016 = vmatprep.mubr.f32.mxu0 %v6305_v36  ;;  %v6579_v1 = vld [vmem:[%s19982_s6 + $0x5d8] sm:$0xff]  ;;  %v11885_v4 = vpack.c.bf16 %v6435_v60, %v6434_v58  ;;  %v6436_v48 = vld [vmem:[%s19982_s6 + $0x160] sm:$0xff]  ;;  %v6562_v42 = vld [vmem:[%s19982_s6 + $0x550] sm:$0xff]  ;;  %v11887_v5 = vpack.c.bf16 %v6453_v33, %v6452_v40 }
 0x632   : > { %11880 = vmatprep.subr.bf16.mxu0 %v11879_v31  ;;  %7186 = vmatprep.mubr.f32.mxu1 %v6369_v35  ;;  %v12011_v39 = vpack.c.bf16 %v6579_v1, %v6578_v30  ;;  %v6563_v53 = vld [vmem:[%s19982_s6 + $0x558] sm:$0xff]  ;;  %v6437_v15 = vld [vmem:[%s19982_s6 + $0x168] sm:$0xff]  ;;  %v6580_v16 = vld [vmem:[%s19982_s6 + $0x5e0] sm:$0xff] }
 0x633   : > { %7187 = vmatmul.mubr.f32.gmra.mrb[40].mxu1 %v6368_v14  ;;  %12004 = vmatprep.subr.bf16.mxu1 %v12003_v62  ;;  %v6581_v8 = vld [vmem:[%s19982_s6 + $0x5e8] sm:$0xff]  ;;  %v6454_v55 = vld [vmem:[%s19982_s6 + $0x1f0] sm:$0xff]  ;;  %v6455_v2 = vld [vmem:[%s19982_s6 + $0x1f8] sm:$0xff]  ;;  %v12013_v3 = vpack.c.bf16 %v6563_v53, %v6562_v42  ;;  %v11889_v41 = vpack.c.bf16 %v6437_v15, %v6436_v48 }
 0x634   : > { %12006 = vmatpush3.bf16.msra.mxu1 %v12005_v50  ;;  %v6438_v17 = vld [vmem:[%s19982_s6 + $0x170] sm:$0xff]  ;;  %v12015_v27 = vpack.c.bf16 %v6581_v8, %v6580_v16  ;;  %v6564_v49 = vld [vmem:[%s19982_s6 + $0x560] sm:$0xff]  ;;  %v6565_v38 = vld [vmem:[%s19982_s6 + $0x568] sm:$0xff]  ;;  %v11891_v21 = vpack.c.bf16 %v6455_v2, %v6454_v55 }
 0x635   : > { %11882 = vmatpush3.bf16.msra.mxu0 %v11881_v59  ;;  %12008 = vmatprep.subr.bf16.mxu1 %v12007_v43  ;;  %v6439_v47 = vld [vmem:[%s19982_s6 + $0x178] sm:$0xff]  ;;  %v6582_v13 = vld [vmem:[%s19982_s6 + $0x5f0] sm:$0xff]  ;;  %v6472_v29 = vld [vmem:[%s19982_s6 + $0x280] sm:$0xff]  ;;  %v12017_v28 = vpack.c.bf16 %v6565_v38, %v6564_v49 }
 0x636   : > { %11884 = vmatprep.subr.bf16.mxu0 %v11883_v18  ;;  %v6583_v44 = vld [vmem:[%s19982_s6 + $0x5f8] sm:$0xff]  ;;  %v6473_v56 = vld [vmem:[%s19982_s6 + $0x288] sm:$0xff]  ;;  %v11893_v10 = vpack.c.bf16 %v6439_v47, %v6438_v17  ;;  %v6566_v52 = vld [vmem:[%s19982_s6 + $0x570] sm:$0xff] }
 0x637   : > { %v12019_v34 = vpack.c.bf16 %v6583_v44, %v6582_v13  ;;  %v6567_v26 = vld [vmem:[%s19982_s6 + $0x578] sm:$0xff]  ;;  %v11895_v51 = vpack.c.bf16 %v6473_v56, %v6472_v29  ;;  %v6456_v0 = vld [vmem:[%s19982_s6 + $0x200] sm:$0xff]  ;;  %v6457_v22 = vld [vmem:[%s19982_s6 + $0x208] sm:$0xff] }
 0x638   : > { %12010 = vmatpush3.bf16.msra.mxu1 %v12009_v46  ;;  %v6474_v20 = vld [vmem:[%s19982_s6 + $0x290] sm:$0xff]  ;;  %v6475_v11 = vld [vmem:[%s19982_s6 + $0x298] sm:$0xff]  ;;  %v6632_v6 = vld [vmem:[%s19982_s6 + $0x780] sm:$0xff]  ;;  %v12021_v24 = vpack.c.bf16 %v6567_v26, %v6566_v52  ;;  %v11897_v61 = vpack.c.bf16 %v6457_v22, %v6456_v0 }
 0x639   : > { %11886 = vmatpush3.bf16.msra.mxu0 %v11885_v4  ;;  %12012 = vmatprep.subr.bf16.mxu1 %v12011_v39  ;;  %v6633_v54 = vld [vmem:[%s19982_s6 + $0x788] sm:$0xff]  ;;  %v6458_v31 = vld [vmem:[%s19982_s6 + $0x210] sm:$0xff]  ;;  %v11899_v57 = vpack.c.bf16 %v6475_v11, %v6474_v20  ;;  %v6459_v63 = vld [vmem:[%s19982_s6 + $0x218] sm:$0xff] }
 0x63a   : > { %11888 = vmatprep.subr.bf16.mxu0 %v11887_v5  ;;  %v6476_v32 = vld [vmem:[%s19982_s6 + $0x2a0] sm:$0xff]  ;;  %v6477_v45 = vld [vmem:[%s19982_s6 + $0x2a8] sm:$0xff]  ;;  %v12055_v25 = vpack.c.bf16 %v6633_v54, %v6632_v6  ;;  %v6304_v62 = vld [vmem:[#allocation4 + $0x10] sm:$0xff]  ;;  %v11901_v58 = vpack.c.bf16 %v6459_v63, %v6458_v31 }
 0x63b   : > { %v6335_v14 = vld [vmem:[#allocation4 + $0x108] sm:$0xff]  ;;  %v11903_v43 = vpack.c.bf16 %v6477_v45, %v6476_v32  ;;  %v18367_v7 = vld [vmem:[%s19982_s6 + $0x220] sm:$0xff]  ;;  %v18377_v18 = vld [vmem:[%s19982_s6 + $0x2b0] sm:$0xff] }
 0x63c   : > { %12014 = vmatpush3.bf16.msra.mxu1 %v12013_v3  ;;  %v5692_v23 = vpop.f32.mrb[28].mxu1  ;;  %v18372_v12 = vld [vmem:[%s19982_s6 + $0x228] sm:$0xff]  ;;  %v6334_v33 = vld [vmem:[#allocation4 + $0x100] sm:$0xff]  ;;  %v6365_v46 = vld [vmem:[#allocation4 + $0x1f8] sm:$0x1f] }
 0x63d   : > { %11890 = vmatpush3.bf16.msra.mxu0 %v11889_v41  ;;  %12016 = vmatprep.subr.bf16.mxu1 %v12015_v27  ;;  %5719 = vst [vmem:[#allocation3 + $0x20] sm:$0xff] %v5692_v23  ;;  %6149 = vst.msk [vmem:[#allocation4 + $0xa0] sm:$0xff] %vm5832_vm8, %v5692_v23  ;;  %v5694_v9 = vpop.f32.mrb[29].mxu1  ;;  %v6479_v4 = vld [vmem:[%s19982_s6 + $0x2b8] sm:$0xff]  ;;  %v18394_v55 = vld [vmem:[%s19982_s6 + $0x230] sm:$0xff]  ;;  %v11905_v49 = vpack.c.bf16 %v18372_v12, %v18367_v7 }
 0x63e   : > { %11892 = vmatprep.subr.bf16.mxu0 %v11891_v21  ;;  %5720 = vst [vmem:[#allocation3 + $0x28] sm:$0xff] %v5694_v9  ;;  %6227 = vst.msk [vmem:[#allocation4 + $0xc8] sm:$0xff] %vm5832_vm8, %v5694_v9  ;;  %v18399_v2 = vld [vmem:[%s19982_s6 + $0x238] sm:$0xff]  ;;  %v11907_v38 = vpack.c.bf16 %v6479_v4, %v18377_v18  ;;  %v18409_v21 = vld [vmem:[%s19982_s6 + $0x2c0] sm:$0xff] }
 0x63f   : > { %v18414_v47 = vld [vmem:[%s19982_s6 + $0x2c8] sm:$0xff]  ;;  %v6364_v22 = vld [vmem:[#allocation4 + $0x1f0] sm:$0x1f]  ;;  %v6464_v32 = vld [vmem:[%s19982_s6 + $0x240] sm:$0xff] }
 0x640   : > { %12018 = vmatpush3.bf16.msra.mxu1 %v12017_v28  ;;  %v18354_v35 = vpop.f32.mrb[30].mxu1  ;;  %v6307_v9 = vld [vmem:[#allocation4 + $0x28] sm:$0xff]  ;;  %v11911_v63 = vpack.c.bf16 %v18414_v47, %v18409_v21 }
 0x641   : > { %11894 = vmatpush3.bf16.msra.mxu0 %v11893_v10  ;;  %12020 = vmatprep.subr.bf16.mxu1 %v12019_v34  ;;  %6150 = vst.msk [vmem:[#allocation4 + $0x190] sm:$0xff] %vm5832_vm8, %v18354_v35  ;;  %v18358_v36 = vpop.f32.mrb[31].mxu1  ;;  %v6159_v50 = vrot.slane %v18354_v35, 1  ;;  %v6176_v59 = vrot.slane %v18354_v35, 2  ;;  %v6193_v60 = vrot.slane %v18354_v35, 3  ;;  %v6212_v30 = vrot.slane %v18354_v35, 4 }
 0x642   : > { %11896 = vmatprep.subr.bf16.mxu0 %v11895_v51  ;;  %6228 = vst.msk [vmem:[#allocation4 + $0x1b8] sm:$0xff] %vm5832_vm8, %v18358_v36  ;;  %v6237_v1 = vrot.slane %v18358_v36, 1  ;;  %v6271_v40 = vrot.slane %v18358_v36, 3  ;;  %v6254_v23 = vrot.slane %v18358_v36, 2  ;;  %v6465_v45 = vld [vmem:[%s19982_s6 + $0x248] sm:$0xff] }
 0x644   : > { %7017 = vmatmul.mubr.f32.vlgmr.msra.gmra.mrb[58].mxu0 %v6304_v62  ;;  %12022 = vmatpush3.bf16.msra.mxu1 %v12021_v24  ;;  %v18386_v48 = vld [vmem:[#allocation3 + $0x20] sm:$0xfe]  ;;  %v18389_v8 = vpop.f32.mrb[32].mxu1 }
 0x645   : > { %7021 = vmatprep.mubr.f32.mxu0 %v6335_v14  ;;  %11898 = vmatpush3.bf16.msra.mxu0 %v11897_v61  ;;  %v6169_v39 = vld [vmem:[#allocation3 + $0x20] sm:$0xfc]  ;;  %v6158_v53 = vrot.slane %v18386_v48, 1  ;;  %v6230_v41 = vld [vmem:[#allocation3 + $0x28] sm:$0xfe]  ;;  %5731 = vst [vmem:[#allocation3 + $0x80] sm:$0xff] %v18389_v8 }
 0x646   : > { %11900 = vmatprep.subr.bf16.mxu0 %v11899_v57  ;;  %12056 = vmatprep.subr.bf16.mxu1 %v12055_v25  ;;  %v6186_v42 = vld [vmem:[#allocation3 + $0x20] sm:$0xf8]  ;;  %v6175_v5 = vrot.slane %v6169_v39, 2  ;;  %v6247_v17 = vld [vmem:[#allocation3 + $0x28] sm:$0xfc]  ;;  %v6195_v27 = vrot.slane %v18389_v8, 3  ;;  %v11909_v57 = vpack.c.bf16 %v18399_v2, %v18394_v55 }
 0x647   : > { %v6192_v15 = vrot.slane %v6186_v42, 3  ;;  %v6203_v16 = vld [vmem:[#allocation3 + $0x20] sm:$0xf0]  ;;  %v6236_v13 = vrot.slane %v6230_v41, 1  ;;  %v6253_v44 = vrot.slane %v6247_v17, 2  ;;  %v6214_v51 = vrot.slane %v18389_v8, 4 }
 0x648   : > { %7022 = vmatmul.mubr.f32.gmra.mrb[60].mxu0 %v6334_v33  ;;  %v6211_v3 = vrot.slane %v6203_v16, 4  ;;  %v6264_v29 = vld [vmem:[#allocation3 + $0x28] sm:$0xf8]  ;;  %v6177_v28 = vsel %vm5861_vm9, %v6175_v5, %v6176_v59  ;;  %6202 = vst.msk [vmem:[#allocation4 + $0x298] sm:$0x1f] %vm5835_vm12, %v6195_v27  ;;  %v18428_v0 = vpop.f32.mrb[33].mxu1  ;;  %v6160_v25 = vsel %vm5843_vm10, %v6158_v53, %v6159_v50  ;;  %v6196_v62 = vsel %vm5879_vm11, %v6193_v60, %v6195_v27 }
 0x649   : > { %11902 = vmatpush3.bf16.msra.mxu0 %v11901_v58  ;;  %7026 = vmatprep.mubr.f32.mxu0 %v6365_v46  ;;  %v6281_v56 = vld [vmem:[#allocation3 + $0x28] sm:$0xf0]  ;;  %v6194_v10 = vsel %vm5879_vm11, %v6192_v15, %v6193_v60  ;;  %v6270_v34 = vrot.slane %v6264_v29, 3  ;;  %6183 = vst.msk [vmem:[#allocation4 + $0xb0] sm:$0xff] %vm5832_vm8, %v6177_v28  ;;  %v6238_v20 = vsel %vm5843_vm10, %v6236_v13, %v6237_v1  ;;  %5732 = vst [vmem:[#allocation3 + $0x88] sm:$0xff] %v18428_v0  ;;  %v5710_v54 = vpop.f32.mrb[34].mxu1 }
 0x64a   : > { %11904 = vmatprep.subr.bf16.mxu0 %v11903_v43  ;;  %v6289_v52 = vrot.slane %v6281_v56, 4  ;;  %v6213_v26 = vsel %vm4483_vm0, %v6211_v3, %v6212_v30  ;;  %6200 = vst.msk [vmem:[#allocation4 + $0xb8] sm:$0xff] %vm5832_vm8, %v6194_v10  ;;  %v6273_v11 = vrot.slane %v18428_v0, 3  ;;  %v6292_v6 = vrot.slane %v18428_v0, 4  ;;  %6244 = vst.msk [vmem:[#allocation4 + $0xd0] sm:$0xff] %vm5832_vm8, %v6238_v20  ;;  %v5712_v31 = vpop.f32.mrb[35].mxu1 }
 0x64b   : > { %6221 = vst.msk [vmem:[#allocation4 + $0xc0] sm:$0xff] %vm5832_vm8, %v6213_v26  ;;  %v6272_v24 = vsel %vm5879_vm11, %v6270_v34, %v6271_v40  ;;  %v6290_v61 = vrot.slane %v18358_v36, 4  ;;  %5737 = vst [vmem:[#allocation3 + $0xb0] sm:$0x1] %v5710_v54  ;;  %v6255_v14 = vsel %vm5861_vm9, %v6253_v44, %v6254_v23  ;;  %v6482_v58 = vld [vmem:[%s19982_s6 + $0x2d0] sm:$0xff]  ;;  %v6483_v43 = vld [vmem:[%s19982_s6 + $0x2d8] sm:$0xff]  ;;  %v6215_v7 = vsel %vm4483_vm0, %v6212_v30, %v6214_v51 }
 0x64c   : > { %7027 = vmatmul.mubr.f32.gmra.mrb[62].mxu0 %v6364_v22  ;;  %6278 = vst.msk [vmem:[#allocation4 + $0xe0] sm:$0xff] %vm5832_vm8, %v6272_v24  ;;  %5738 = vst [vmem:[#allocation3 + $0xb8] sm:$0x1] %v5712_v31  ;;  %v6148_v18 = vld [vmem:[#allocation3 + $0x80] sm:$0x1f]  ;;  %v6274_v4 = vsel %vm5879_vm11, %v6271_v40, %v6273_v11  ;;  %v11913_v30 = vpack.c.bf16 %v6465_v45, %v6464_v32  ;;  %v6466_v42 = vld [vmem:[%s19982_s6 + $0x250] sm:$0xff]  ;;  %v11915_v53 = vpack.c.bf16 %v6483_v43, %v6482_v58 }
 0x64d   : > { %11906 = vmatpush3.bf16.msra.mxu0 %v11905_v49  ;;  %7096 = vmatprep.mubr.f32.mxu0 %v6307_v9  ;;  %6280 = vst.msk [vmem:[#allocation4 + $0x2c0] sm:$0x1f] %vm5835_vm12, %v6273_v11  ;;  %v6291_v12 = vsel %vm4483_vm0, %v6289_v52, %v6290_v61  ;;  %v6154_v60 = vld [vmem:[#allocation3 + $0x80] sm:$0x3f]  ;;  %v6293_v46 = vsel %vm4483_vm0, %v6290_v61, %v6292_v6  ;;  %6151 = vst.msk [vmem:[#allocation4 + $0x280] sm:$0x1f] %vm5835_vm12, %v6148_v18 }
 0x64e   : > { %11908 = vmatprep.subr.bf16.mxu0 %v11907_v38  ;;  %6166 = vst.msk [vmem:[#allocation4 + $0xa8] sm:$0xff] %vm5832_vm8, %v6160_v25  ;;  %6201 = vst.msk [vmem:[#allocation4 + $0x1a8] sm:$0xff] %vm5832_vm8, %v6196_v62  ;;  %v6171_v33 = vld [vmem:[#allocation3 + $0x80] sm:$0x7f]  ;;  %v6161_v48 = vrot.slane %v6154_v60, 1  ;;  %v6467_v40 = vld [vmem:[%s19982_s6 + $0x258] sm:$0xff] }
 0x64f   : > { %6261 = vst.msk [vmem:[#allocation4 + $0xd8] sm:$0xff] %vm5832_vm8, %v6255_v14  ;;  %6222 = vst.msk [vmem:[#allocation4 + $0x1b0] sm:$0xff] %vm5832_vm8, %v6215_v7  ;;  %v6178_v39 = vrot.slane %v6171_v33, 2  ;;  %v6484_v5 = vld [vmem:[%s19982_s6 + $0x2e0] sm:$0xff]  ;;  %v6485_v15 = vld [vmem:[%s19982_s6 + $0x2e8] sm:$0xff]  ;;  %v11917_v21 = vpack.c.bf16 %v6467_v40, %v6466_v42 }
 0x650   : > { %6299 = vst.msk [vmem:[#allocation4 + $0xe8] sm:$0xff] %vm5832_vm8, %v6291_v12  ;;  %6300 = vst.msk [vmem:[#allocation4 + $0x1d8] sm:$0xff] %vm5832_vm8, %v6293_v46  ;;  %v6226_v55 = vld [vmem:[#allocation3 + $0x88] sm:$0x1f]  ;;  %v6162_v41 = vsel %vm5843_vm10, %v6159_v50, %v6161_v48  ;;  %v11919_v50 = vpack.c.bf16 %v6485_v15, %v6484_v5  ;;  %v6468_v13 = vld [vmem:[%s19982_s6 + $0x260] sm:$0xff] }
 0x651   : > { %11910 = vmatpush3.bf16.msra.mxu0 %v11909_v57  ;;  %6279 = vst.msk [vmem:[#allocation4 + $0x1d0] sm:$0xff] %vm5832_vm8, %v6274_v4  ;;  %v6179_v16 = vsel %vm5861_vm9, %v6176_v59, %v6178_v39  ;;  %v6232_v2 = vld [vmem:[#allocation3 + $0x88] sm:$0x3f]  ;;  %6167 = vst.msk [vmem:[#allocation4 + $0x198] sm:$0xff] %vm5832_vm8, %v6162_v41  ;;  %v6487_v56 = vld [vmem:[%s19982_s6 + $0x2f8] sm:$0xff] }
 0x652   : > { %11912 = vmatprep.subr.bf16.mxu0 %v11911_v63  ;;  %6185 = vst.msk [vmem:[#allocation4 + $0x290] sm:$0x1f] %vm5835_vm12, %v6178_v39  ;;  %6168 = vst.msk [vmem:[#allocation4 + $0x288] sm:$0x1f] %vm5835_vm12, %v6161_v48  ;;  %v6249_v3 = vld [vmem:[#allocation3 + $0x88] sm:$0x7f] }
 0x653   : > { %6184 = vst.msk [vmem:[#allocation4 + $0x1a0] sm:$0xff] %vm5832_vm8, %v6179_v16  ;;  %v6239_v17 = vrot.slane %v6232_v2, 1  ;;  %v6256_v27 = vrot.slane %v6249_v3, 2  ;;  %v6206_v49 = vld [vmem:[#allocation3 + $0xb0] sm:$0x1]  ;;  %v6469_v44 = vld [vmem:[%s19982_s6 + $0x268] sm:$0xff] }
 0x654   : > { %6229 = vst.msk [vmem:[#allocation4 + $0x2a8] sm:$0x1f] %vm5835_vm12, %v6226_v55  ;;  %v6216_v59 = vrot.slane %v6206_v49, 4  ;;  %v6284_v38 = vld [vmem:[#allocation3 + $0xb8] sm:$0x1]  ;;  %v11921_v10 = vpack.c.bf16 %v6469_v44, %v6468_v13  ;;  %v6470_v52 = vld [vmem:[%s19982_s6 + $0x270] sm:$0xff] }
 0x655   : > { %11914 = vmatpush3.bf16.msra.mxu0 %v11913_v30  ;;  %v6240_v47 = vsel %vm5843_vm10, %v6237_v1, %v6239_v17  ;;  %6246 = vst.msk [vmem:[#allocation4 + $0x2b0] sm:$0x1f] %vm5835_vm12, %v6239_v17  ;;  %6263 = vst.msk [vmem:[#allocation4 + $0x2b8] sm:$0x1f] %vm5835_vm12, %v6256_v27  ;;  %v6294_v35 = vrot.slane %v6284_v38, 4  ;;  %v6257_v29 = vsel %vm5861_vm9, %v6254_v23, %v6256_v27  ;;  %v6486_v1 = vld [vmem:[%s19982_s6 + $0x2f0] sm:$0xff] }
 0x656   : > { %11916 = vmatprep.subr.bf16.mxu0 %v11915_v53  ;;  %6245 = vst.msk [vmem:[#allocation4 + $0x1c0] sm:$0xff] %vm5832_vm8, %v6240_v47  ;;  %6262 = vst.msk [vmem:[#allocation4 + $0x1c8] sm:$0xff] %vm5832_vm8, %v6257_v29  ;;  %v6217_v28 = vsel %vm4483_vm0, %v6214_v51, %v6216_v59  ;;  %v11923_v34 = vpack.c.bf16 %v6487_v56, %v6486_v1  ;;  %v6471_v8 = vld [vmem:[%s19982_s6 + $0x278] sm:$0xff]  ;;  %v6536_v26 = vld [vmem:[%s19982_s6 + $0x480] sm:$0xff] }
 0x657   : > { %6223 = vst.msk [vmem:[#allocation4 + $0x2a0] sm:$0x1f] %vm5835_vm12, %v6217_v28  ;;  %v6295_v36 = vsel %vm4483_vm0, %v6292_v6, %v6294_v35  ;;  %v6537_v51 = vld [vmem:[%s19982_s6 + $0x488] sm:$0xff]  ;;  %v11925_v22 = vpack.c.bf16 %v6471_v8, %v6470_v52  ;;  %v6520_v11 = vld [vmem:[%s19982_s6 + $0x400] sm:$0xff]  ;;  %v6538_v54 = vld [vmem:[%s19982_s6 + $0x490] sm:$0xff] }
 0x658   : > { %6301 = vst.msk [vmem:[#allocation4 + $0x2c8] sm:$0x1f] %vm5835_vm12, %v6295_v36  ;;  %v11959_v23 = vpack.c.bf16 %v6537_v51, %v6536_v26  ;;  %v6521_v6 = vld [vmem:[%s19982_s6 + $0x408] sm:$0xff]  ;;  %v6539_v9 = vld [vmem:[%s19982_s6 + $0x498] sm:$0xff]  ;;  %v6522_v31 = vld [vmem:[%s19982_s6 + $0x410] sm:$0xff] }
 0x659   : > { %11918 = vmatpush3.bf16.msra.mxu0 %v11917_v21  ;;  %v11961_v61 = vpack.c.bf16 %v6521_v6, %v6520_v11  ;;  %v6523_v57 = vld [vmem:[%s19982_s6 + $0x418] sm:$0xff]  ;;  %v18581_v63 = vld [vmem:[%s19982_s6 + $0x4a0] sm:$0xff]  ;;  %v11963_v45 = vpack.c.bf16 %v6539_v9, %v6538_v54  ;;  %v6541_v25 = vld [vmem:[%s19982_s6 + $0x4a8] sm:$0xff] }
 0x65a   : > { %11920 = vmatprep.subr.bf16.mxu0 %v11919_v50  ;;  %v5514_v0 = vpop.f32.mrb[44].mxu0  ;;  %v18593_v62 = vld [vmem:[%s19982_s6 + $0x420] sm:$0xff]  ;;  %v18598_v14 = vld [vmem:[%s19982_s6 + $0x428] sm:$0xff]  ;;  %v18609_v60 = vld [vmem:[%s19982_s6 + $0x4b0] sm:$0xff]  ;;  %v11965_v15 = vpack.c.bf16 %v6523_v57, %v6522_v31  ;;  %v11967_v27 = vpack.c.bf16 %v6541_v25, %v18581_v63 }
 0x65b   : > { %5717 = vst [vmem:[#allocation3 + $0x10] sm:$0xff] %v5514_v0  ;;  %5993 = vst.msk [vmem:[#allocation4 + $0x50] sm:$0xff] %vm5832_vm8, %v5514_v0  ;;  %v5516_v20 = vpop.f32.mrb[45].mxu0  ;;  %v6306_v18 = vld [vmem:[#allocation4 + $0x20] sm:$0xff]  ;;  %v6337_v39 = vld [vmem:[#allocation4 + $0x118] sm:$0xff]  ;;  %v11969_v47 = vpack.c.bf16 %v18598_v14, %v18593_v62 }
 0x65c   : > { %5718 = vst [vmem:[#allocation3 + $0x18] sm:$0xff] %v5516_v20  ;;  %6071 = vst.msk [vmem:[#allocation4 + $0x78] sm:$0xff] %vm5832_vm8, %v5516_v20  ;;  %v18618_v30 = vld [vmem:[%s19982_s6 + $0x4b8] sm:$0xff]  ;;  %v6336_v5 = vld [vmem:[#allocation4 + $0x110] sm:$0xff] }
 0x65d   : > { %11922 = vmatpush3.bf16.msra.mxu0 %v11921_v10  ;;  %v6367_v17 = vld [vmem:[#allocation4 + $0x208] sm:$0x1f]  ;;  %v11971_v35 = vpack.c.bf16 %v18618_v30, %v18609_v60  ;;  %v6527_v20 = vld [vmem:[%s19982_s6 + $0x438] sm:$0xff]  ;;  %v6544_v31 = vld [vmem:[%s19982_s6 + $0x4c0] sm:$0xff] }
 0x65e   : > { %11924 = vmatprep.subr.bf16.mxu0 %v11923_v34  ;;  %v18570_v24 = vpop.f32.mrb[46].mxu0  ;;  %v6545_v57 = vld [vmem:[%s19982_s6 + $0x4c8] sm:$0xff]  ;;  %v6546_v60 = vld [vmem:[%s19982_s6 + $0x4d0] sm:$0xff]  ;;  %v6547_v30 = vld [vmem:[%s19982_s6 + $0x4d8] sm:$0xff] }
 0x65f   : > { %5994 = vst.msk [vmem:[#allocation4 + $0x140] sm:$0xff] %vm5832_vm8, %v18570_v24  ;;  %v18585_v32 = vpop.f32.mrb[47].mxu0  ;;  %v6003_v58 = vrot.slane %v18570_v24, 1  ;;  %v6020_v43 = vrot.slane %v18570_v24, 2  ;;  %v6037_v7 = vrot.slane %v18570_v24, 3  ;;  %v6056_v12 = vrot.slane %v18570_v24, 4 }
 0x660   : > { %6072 = vst.msk [vmem:[#allocation4 + $0x168] sm:$0xff] %vm5832_vm8, %v18585_v32  ;;  %v6081_v33 = vrot.slane %v18585_v32, 1  ;;  %v6098_v46 = vrot.slane %v18585_v32, 2  ;;  %v6115_v4 = vrot.slane %v18585_v32, 3  ;;  %v6134_v48 = vrot.slane %v18585_v32, 4  ;;  %v6311_v62 = vld [vmem:[#allocation4 + $0x48] sm:$0xff] }
 0x661   : > { %11926 = vmatpush3.bf16.msra.mxu0 %v11925_v22  ;;  %v6526_v22 = vld [vmem:[%s19982_s6 + $0x430] sm:$0xff]  ;;  %v6617_v14 = vld [vmem:[%s19982_s6 + $0x708] sm:$0xff]  ;;  %v6531_v24 = vld [vmem:[%s19982_s6 + $0x458] sm:$0xff] }
 0x662   : > { %11960 = vmatprep.subr.bf16.mxu0 %v11959_v23  ;;  %v5996_v42 = vld [vmem:[#allocation3 + $0x10] sm:$0xfe]  ;;  %v18620_v41 = vpop.f32.mrb[48].mxu0  ;;  %v18660_v23 = vld [vmem:[%s19982_s6 + $0x700] sm:$0xff] }
 0x663   : > { %v6013_v53 = vld [vmem:[#allocation3 + $0x10] sm:$0xfc]  ;;  %v6002_v16 = vrot.slane %v5996_v42, 1  ;;  %v6074_v59 = vld [vmem:[#allocation3 + $0x18] sm:$0xfe]  ;;  %5729 = vst [vmem:[#allocation3 + $0x70] sm:$0xff] %v18620_v41 }
 0x664   : > { %7097 = vmatmul.mubr.f32.vlgmr.msra.gmra.mrb[64].mxu0 %v6306_v18  ;;  %v6030_v40 = vld [vmem:[#allocation3 + $0x10] sm:$0xf8]  ;;  %v6019_v55 = vrot.slane %v6013_v53, 2  ;;  %v6091_v38 = vld [vmem:[#allocation3 + $0x18] sm:$0xfc]  ;;  %v6039_v21 = vrot.slane %v18620_v41, 3 }
 0x665   : > { %7101 = vmatprep.mubr.f32.mxu0 %v6337_v39  ;;  %11962 = vmatpush3.bf16.msra.mxu0 %v11961_v61  ;;  %v6036_v2 = vrot.slane %v6030_v40, 3  ;;  %v6047_v3 = vld [vmem:[#allocation3 + $0x10] sm:$0xf0]  ;;  %v6080_v50 = vrot.slane %v6074_v59, 1  ;;  %v6097_v13 = vrot.slane %v6091_v38, 2  ;;  %v6004_v56 = vsel %vm5843_vm10, %v6002_v16, %v6003_v58  ;;  %v18641_v52 = vpop.f32.mrb[49].mxu0 }
 0x666   : > { %11964 = vmatprep.subr.bf16.mxu0 %v11963_v45  ;;  %v6055_v49 = vrot.slane %v6047_v3, 4  ;;  %v6108_v44 = vld [vmem:[#allocation3 + $0x18] sm:$0xf8]  ;;  %v6021_v1 = vsel %vm5861_vm9, %v6019_v55, %v6020_v43  ;;  %v6058_v34 = vrot.slane %v18620_v41, 4  ;;  %6046 = vst.msk [vmem:[#allocation4 + $0x248] sm:$0x1f] %vm5835_vm12, %v6039_v21  ;;  %v6040_v45 = vsel %vm5879_vm11, %v6037_v7, %v6039_v21 }
 0x667   : > { %v6125_v29 = vld [vmem:[#allocation3 + $0x18] sm:$0xf0]  ;;  %v6114_v28 = vrot.slane %v6108_v44, 3  ;;  %6027 = vst.msk [vmem:[#allocation4 + $0x60] sm:$0xff] %vm5832_vm8, %v6021_v1  ;;  %6010 = vst.msk [vmem:[#allocation4 + $0x58] sm:$0xff] %vm5832_vm8, %v6004_v56  ;;  %v6082_v8 = vsel %vm5843_vm10, %v6080_v50, %v6081_v33  ;;  %v6117_v26 = vrot.slane %v18641_v52, 3  ;;  %v6038_v11 = vsel %vm5879_vm11, %v6036_v2, %v6037_v7 }
 0x668   : > { %7102 = vmatmul.mubr.f32.gmra.mrb[66].mxu0 %v6336_v5  ;;  %v6133_v36 = vrot.slane %v6125_v29, 4  ;;  %v6057_v10 = vsel %vm4483_vm0, %v6055_v49, %v6056_v12  ;;  %5730 = vst [vmem:[#allocation3 + $0x78] sm:$0xff] %v18641_v52  ;;  %v6136_v51 = vrot.slane %v18641_v52, 4  ;;  %v5532_v0 = vpop.f32.mrb[50].mxu0  ;;  %6088 = vst.msk [vmem:[#allocation4 + $0x80] sm:$0xff] %vm5832_vm8, %v6082_v8  ;;  %v6059_v54 = vsel %vm4483_vm0, %v6056_v12, %v6058_v34  ;;  %v18699_v7 = vld [vmem:[%s19982_s6 + $0x440] sm:$0xff] }
 0x669   : > { %7106 = vmatprep.mubr.f32.mxu0 %v6367_v17  ;;  %11966 = vmatpush3.bf16.msra.mxu0 %v11965_v15  ;;  %6065 = vst.msk [vmem:[#allocation4 + $0x70] sm:$0xff] %vm5832_vm8, %v6057_v10  ;;  %v6116_v6 = vsel %vm5879_vm11, %v6114_v28, %v6115_v4  ;;  %5735 = vst [vmem:[#allocation3 + $0xa0] sm:$0x1] %v5532_v0  ;;  %v5534_v9 = vpop.f32.mrb[51].mxu0  ;;  %v6366_v61 = vld [vmem:[#allocation4 + $0x200] sm:$0x1f]  ;;  %v6118_v25 = vsel %vm5879_vm11, %v6115_v4, %v6117_v26 }
 0x66a   : > { %11968 = vmatprep.subr.bf16.mxu0 %v11967_v27  ;;  %6044 = vst.msk [vmem:[#allocation4 + $0x68] sm:$0xff] %vm5832_vm8, %v6038_v11  ;;  %v6135_v63 = vsel %vm4483_vm0, %v6133_v36, %v6134_v48  ;;  %6122 = vst.msk [vmem:[#allocation4 + $0x90] sm:$0xff] %vm5832_vm8, %v6116_v6  ;;  %v6099_v12 = vsel %vm5861_vm9, %v6097_v13, %v6098_v46  ;;  %v6137_v18 = vsel %vm4483_vm0, %v6134_v48, %v6136_v51  ;;  %v6529_v39 = vld [vmem:[%s19982_s6 + $0x448] sm:$0xff]  ;;  %v6634_v42 = vld [vmem:[%s19982_s6 + $0x790] sm:$0xff] }
 0x66b   : > { %6066 = vst.msk [vmem:[#allocation4 + $0x160] sm:$0xff] %vm5832_vm8, %v6059_v54  ;;  %5736 = vst [vmem:[#allocation3 + $0xa8] sm:$0x1] %v5534_v9  ;;  %v11973_v4 = vpack.c.bf16 %v6527_v20, %v6526_v22  ;;  %v6635_v53 = vld [vmem:[%s19982_s6 + $0x798] sm:$0xff]  ;;  %v5992_v48 = vld [vmem:[#allocation3 + $0x70] sm:$0x1f]  ;;  %v11975_v15 = vpack.c.bf16 %v6545_v57, %v6544_v31  ;;  %v12057_v17 = vpack.c.bf16 %v6617_v14, %v18660_v23 }
 0x66c   : > { %6124 = vst.msk [vmem:[#allocation4 + $0x270] sm:$0x1f] %vm5835_vm12, %v6117_v26  ;;  %7107 = vmatmul.mubr.f32.gmra.mrb[68].mxu0 %v6366_v61  ;;  %v5998_v40 = vld [vmem:[#allocation3 + $0x70] sm:$0x3f]  ;;  %v6619_v55 = vld [vmem:[%s19982_s6 + $0x718] sm:$0xff]  ;;  %v6636_v27 = vld [vmem:[%s19982_s6 + $0x7a0] sm:$0xff]  ;;  %v12059_v38 = vpack.c.bf16 %v6635_v53, %v6634_v42  ;;  %v11977_v13 = vpack.c.bf16 %v6529_v39, %v18699_v7  ;;  %v11979_v36 = vpack.c.bf16 %v6547_v30, %v6546_v60 }
 0x66d   : > { %6143 = vst.msk [vmem:[#allocation4 + $0x98] sm:$0xff] %vm5832_vm8, %v6135_v63  ;;  %6045 = vst.msk [vmem:[#allocation4 + $0x158] sm:$0xff] %vm5832_vm8, %v6040_v45  ;;  %11970 = vmatpush3.bf16.msra.mxu0 %v11969_v47  ;;  %7256 = vmatprep.mubr.f32.mxu0 %v6311_v62  ;;  %v6015_v5 = vld [vmem:[#allocation3 + $0x70] sm:$0x7f]  ;;  %v6005_v2 = vrot.slane %v5998_v40, 1  ;;  %v6637_v21 = vld [vmem:[%s19982_s6 + $0x7a8] sm:$0xff] }
 0x66e   : > { %6123 = vst.msk [vmem:[#allocation4 + $0x180] sm:$0xff] %vm5832_vm8, %v6118_v25  ;;  %6105 = vst.msk [vmem:[#allocation4 + $0x88] sm:$0xff] %vm5832_vm8, %v6099_v12  ;;  %11972 = vmatprep.subr.bf16.mxu0 %v11971_v35  ;;  %v18729_v16 = vld [vmem:[%s19982_s6 + $0x710] sm:$0xff]  ;;  %v6022_v3 = vrot.slane %v6015_v5, 2  ;;  %v6313_v49 = vld [vmem:[#allocation4 + $0x58] sm:$0xff]  ;;  %v12063_v20 = vpack.c.bf16 %v6637_v21, %v6636_v27 }
 0x66f   : > { %6144 = vst.msk [vmem:[#allocation4 + $0x188] sm:$0xff] %vm5832_vm8, %v6137_v18  ;;  %v6312_v59 = vld [vmem:[#allocation4 + $0x50] sm:$0xff]  ;;  %v6070_v47 = vld [vmem:[#allocation3 + $0x78] sm:$0x1f]  ;;  %7336 = vmatprep.mubr.f32.mxu1 %v6313_v49  ;;  %v6006_v44 = vsel %vm5843_vm10, %v6003_v58, %v6005_v2  ;;  %v12061_v8 = vpack.c.bf16 %v6619_v55, %v18729_v16  ;;  %v6548_v26 = vld [vmem:[%s19982_s6 + $0x4e0] sm:$0xff] }
 0x670   : > { %5995 = vst.msk [vmem:[#allocation4 + $0x230] sm:$0x1f] %vm5835_vm12, %v5992_v48  ;;  %6012 = vst.msk [vmem:[#allocation4 + $0x238] sm:$0x1f] %vm5835_vm12, %v6005_v2  ;;  %v6076_v35 = vld [vmem:[#allocation3 + $0x78] sm:$0x3f]  ;;  %v6023_v29 = vsel %vm5861_vm9, %v6020_v43, %v6022_v3  ;;  %7337 = vmatmul.mubr.f32.vlgmr.msra.gmra.mrb[42].mxu1 %v6312_v59 }
 0x671   : > { %6029 = vst.msk [vmem:[#allocation4 + $0x240] sm:$0x1f] %vm5835_vm12, %v6022_v3  ;;  %v6093_v50 = vld [vmem:[#allocation3 + $0x78] sm:$0x7f]  ;;  %11974 = vmatpush3.bf16.msra.mxu0 %v11973_v4  ;;  %v6083_v1 = vrot.slane %v6076_v35, 1  ;;  %v6530_v10 = vld [vmem:[%s19982_s6 + $0x450] sm:$0xff]  ;;  %12058 = vmatpush3.bf16.msra.mxu1 %v12057_v17 }
 0x672   : > { %v6100_v56 = vrot.slane %v6093_v50, 2  ;;  %6073 = vst.msk [vmem:[#allocation4 + $0x258] sm:$0x1f] %vm5835_vm12, %v6070_v47  ;;  %v6050_v28 = vld [vmem:[#allocation3 + $0xa0] sm:$0x1]  ;;  %11976 = vmatprep.subr.bf16.mxu0 %v11975_v15  ;;  %v6549_v0 = vld [vmem:[%s19982_s6 + $0x4e8] sm:$0xff]  ;;  %12060 = vmatprep.subr.bf16.mxu1 %v12059_v38  ;;  %v11981_v54 = vpack.c.bf16 %v6531_v24, %v6530_v10 }
 0x673   : > { %6011 = vst.msk [vmem:[#allocation4 + $0x148] sm:$0xff] %vm5832_vm8, %v6006_v44  ;;  %6028 = vst.msk [vmem:[#allocation4 + $0x150] sm:$0xff] %vm5832_vm8, %v6023_v29  ;;  %v6060_v58 = vrot.slane %v6050_v28, 4  ;;  %v6128_v43 = vld [vmem:[#allocation3 + $0xa8] sm:$0x1]  ;;  %v6084_v11 = vsel %vm5843_vm10, %v6081_v33, %v6083_v1  ;;  %v6620_v9 = vld [vmem:[%s19982_s6 + $0x720] sm:$0xff]  ;;  %v11983_v33 = vpack.c.bf16 %v6549_v0, %v6548_v26 }
 0x674   : > { %6090 = vst.msk [vmem:[#allocation4 + $0x260] sm:$0x1f] %vm5835_vm12, %v6083_v1  ;;  %6107 = vst.msk [vmem:[#allocation4 + $0x268] sm:$0x1f] %vm5835_vm12, %v6100_v56  ;;  %v6138_v22 = vrot.slane %v6128_v43, 4  ;;  %v6101_v23 = vsel %vm5861_vm9, %v6098_v46, %v6100_v56  ;;  %v6621_v61 = vld [vmem:[%s19982_s6 + $0x728] sm:$0xff] }
 0x675   : > { %v6061_v6 = vsel %vm4483_vm0, %v6058_v34, %v6060_v58  ;;  %11978 = vmatpush3.bf16.msra.mxu0 %v11977_v13  ;;  %v6532_v32 = vld [vmem:[%s19982_s6 + $0x460] sm:$0xff]  ;;  %6106 = vst.msk [vmem:[#allocation4 + $0x178] sm:$0xff] %vm5832_vm8, %v6101_v23  ;;  %6089 = vst.msk [vmem:[#allocation4 + $0x170] sm:$0xff] %vm5832_vm8, %v6084_v11  ;;  %v6533_v46 = vld [vmem:[%s19982_s6 + $0x468] sm:$0xff]  ;;  %12062 = vmatpush3.bf16.msra.mxu1 %v12061_v8  ;;  %v12065_v45 = vpack.c.bf16 %v6621_v61, %v6620_v9 }
 0x676   : > { %6067 = vst.msk [vmem:[#allocation4 + $0x250] sm:$0x1f] %vm5835_vm12, %v6061_v6  ;;  %11980 = vmatprep.subr.bf16.mxu0 %v11979_v36  ;;  %v6638_v41 = vld [vmem:[%s19982_s6 + $0x7b0] sm:$0xff]  ;;  %v6639_v34 = vld [vmem:[%s19982_s6 + $0x7b8] sm:$0xff]  ;;  %v6139_v31 = vsel %vm4483_vm0, %v6136_v51, %v6138_v22  ;;  %12064 = vmatprep.subr.bf16.mxu1 %v12063_v20  ;;  %v11985_v62 = vpack.c.bf16 %v6533_v46, %v6532_v32  ;;  %v6342_v18 = vld [vmem:[#allocation4 + $0x140] sm:$0xff] }
 0x677   : > { %v6550_v57 = vld [vmem:[%s19982_s6 + $0x4f0] sm:$0xff]  ;;  %v6551_v63 = vld [vmem:[%s19982_s6 + $0x4f8] sm:$0xff]  ;;  %6145 = vst.msk [vmem:[#allocation4 + $0x278] sm:$0x1f] %vm5835_vm12, %v6139_v31  ;;  %v12067_v14 = vpack.c.bf16 %v6639_v34, %v6638_v41  ;;  %v6640_v39 = vld [vmem:[%s19982_s6 + $0x7c0] sm:$0xff] }
 0x678   : > { %v6622_v25 = vld [vmem:[%s19982_s6 + $0x730] sm:$0xff]  ;;  %v6623_v52 = vld [vmem:[%s19982_s6 + $0x738] sm:$0xff]  ;;  %v11987_v4 = vpack.c.bf16 %v6551_v63, %v6550_v57  ;;  %v6641_v42 = vld [vmem:[%s19982_s6 + $0x7c8] sm:$0xff] }
 0x679   : > { %11982 = vmatpush3.bf16.msra.mxu0 %v11981_v54  ;;  %v6534_v7 = vld [vmem:[%s19982_s6 + $0x470] sm:$0xff]  ;;  %v6535_v12 = vld [vmem:[%s19982_s6 + $0x478] sm:$0xff]  ;;  %v6600_v48 = vld [vmem:[%s19982_s6 + $0x680] sm:$0xff]  ;;  %12066 = vmatpush3.bf16.msra.mxu1 %v12065_v45  ;;  %v12069_v5 = vpack.c.bf16 %v6623_v52, %v6622_v25  ;;  %v12071_v55 = vpack.c.bf16 %v6641_v42, %v6640_v39 }
 0x67a   : > { %v6343_v51 = vld [vmem:[#allocation4 + $0x148] sm:$0xff]  ;;  %11984 = vmatprep.subr.bf16.mxu0 %v11983_v33  ;;  %v6373_v53 = vld [vmem:[#allocation4 + $0x238] sm:$0x1f]  ;;  %v6624_v15 = vld [vmem:[%s19982_s6 + $0x740] sm:$0xff]  ;;  %12068 = vmatprep.subr.bf16.mxu1 %v12067_v14  ;;  %v11989_v16 = vpack.c.bf16 %v6535_v12, %v6534_v7 }
 0x67b   : > { %7341 = vmatprep.mubr.f32.mxu1 %v6343_v51  ;;  %v6601_v40 = vld [vmem:[%s19982_s6 + $0x688] sm:$0xff]  ;;  %v6584_v3 = vld [vmem:[%s19982_s6 + $0x600] sm:$0xff]  ;;  %v6372_v60 = vld [vmem:[#allocation4 + $0x230] sm:$0x1f] }
 0x67c   : > { %7342 = vmatmul.mubr.f32.gmra.mrb[44].mxu1 %v6342_v18  ;;  %v6625_v2 = vld [vmem:[%s19982_s6 + $0x748] sm:$0xff]  ;;  %v12023_v30 = vpack.c.bf16 %v6601_v40, %v6600_v48  ;;  %v6642_v27 = vld [vmem:[%s19982_s6 + $0x7d0] sm:$0xff]  ;;  %v6643_v49 = vld [vmem:[%s19982_s6 + $0x7d8] sm:$0xff] }
 0x67d   : > { %7346 = vmatprep.mubr.f32.mxu1 %v6373_v53  ;;  %11986 = vmatpush3.bf16.msra.mxu0 %v11985_v62  ;;  %v6585_v17 = vld [vmem:[%s19982_s6 + $0x608] sm:$0xff]  ;;  %v6317_v59 = vld [vmem:[#allocation4 + $0x78] sm:$0xff]  ;;  %v6602_v38 = vld [vmem:[%s19982_s6 + $0x690] sm:$0xff]  ;;  %v12073_v47 = vpack.c.bf16 %v6625_v2, %v6624_v15  ;;  %v12075_v29 = vpack.c.bf16 %v6643_v49, %v6642_v27 }
 0x67e   : > { %11988 = vmatprep.subr.bf16.mxu0 %v11987_v4  ;;  %v6603_v21 = vld [vmem:[%s19982_s6 + $0x698] sm:$0xff]  ;;  %12070 = vmatpush3.bf16.msra.mxu1 %v12069_v5  ;;  %v12025_v35 = vpack.c.bf16 %v6585_v17, %v6584_v3  ;;  %v6626_v50 = vld [vmem:[%s19982_s6 + $0x750] sm:$0xff]  ;;  %v6644_v28 = vld [vmem:[%s19982_s6 + $0x7e0] sm:$0xff] }
 0x67f   : > { %12072 = vmatprep.subr.bf16.mxu1 %v12071_v55  ;;  %v6627_v13 = vld [vmem:[%s19982_s6 + $0x758] sm:$0xff]  ;;  %v6586_v44 = vld [vmem:[%s19982_s6 + $0x610] sm:$0xff]  ;;  %v12027_v1 = vpack.c.bf16 %v6603_v21, %v6602_v38  ;;  %v6645_v36 = vld [vmem:[%s19982_s6 + $0x7e8] sm:$0xff] }
 0x680   : > { %7347 = vmatmul.mubr.f32.gmra.mrb[46].mxu1 %v6372_v60  ;;  %v6587_v56 = vld [vmem:[%s19982_s6 + $0x618] sm:$0xff]  ;;  %v6310_v10 = vld [vmem:[#allocation4 + $0x40] sm:$0xff]  ;;  %v6605_v58 = vld [vmem:[%s19982_s6 + $0x6a8] sm:$0xff]  ;;  %v12077_v8 = vpack.c.bf16 %v6627_v13, %v6626_v50  ;;  %v12079_v23 = vpack.c.bf16 %v6645_v36, %v6644_v28 }
 0x681   : > { %7496 = vmatprep.mubr.f32.mxu1 %v6317_v59  ;;  %11990 = vmatpush3.bf16.msra.mxu0 %v11989_v16  ;;  %v6604_v24 = vld [vmem:[%s19982_s6 + $0x6a0] sm:$0xff]  ;;  %v6341_v43 = vld [vmem:[#allocation4 + $0x138] sm:$0xff]  ;;  %v12029_v26 = vpack.c.bf16 %v6587_v56, %v6586_v44  ;;  %v6629_v22 = vld [vmem:[%s19982_s6 + $0x768] sm:$0xff] }
 0x682   : > { %12024 = vmatprep.subr.bf16.mxu0 %v12023_v30  ;;  %12074 = vmatpush3.bf16.msra.mxu1 %v12073_v47  ;;  %v6628_v0 = vld [vmem:[%s19982_s6 + $0x760] sm:$0xff]  ;;  %v12031_v11 = vpack.c.bf16 %v6605_v58, %v6604_v24  ;;  %v6589_v6 = vld [vmem:[%s19982_s6 + $0x628] sm:$0xff]  ;;  %v6646_v54 = vld [vmem:[%s19982_s6 + $0x7f0] sm:$0xff] }
 0x683   : > { %v6588_v20 = vld [vmem:[%s19982_s6 + $0x620] sm:$0xff]  ;;  %12076 = vmatprep.subr.bf16.mxu1 %v12075_v29  ;;  %v6647_v9 = vld [vmem:[%s19982_s6 + $0x7f8] sm:$0xff]  ;;  %v6340_v61 = vld [vmem:[#allocation4 + $0x130] sm:$0xff]  ;;  %v12081_v41 = vpack.c.bf16 %v6629_v22, %v6628_v0 }
 0x684   : > { %7257 = vmatmul.mubr.f32.vlgmr.msra.gmra.mrb[70].mxu0 %v6310_v10  ;;  %v6606_v32 = vld [vmem:[%s19982_s6 + $0x6b0] sm:$0xff]  ;;  %v6607_v33 = vld [vmem:[%s19982_s6 + $0x6b8] sm:$0xff]  ;;  %v6371_v46 = vld [vmem:[#allocation4 + $0x228] sm:$0x1f]  ;;  %v12033_v34 = vpack.c.bf16 %v6589_v6, %v6588_v20  ;;  %v12083_v45 = vpack.c.bf16 %v6647_v9, %v6646_v54 }
 0x685   : > { %7261 = vmatprep.mubr.f32.mxu0 %v6341_v43  ;;  %12026 = vmatpush3.bf16.msra.mxu0 %v12025_v35  ;;  %v6630_v31 = vld [vmem:[%s19982_s6 + $0x770] sm:$0xff]  ;;  %v6631_v57 = vld [vmem:[%s19982_s6 + $0x778] sm:$0xff]  ;;  %v12035_v25 = vpack.c.bf16 %v6607_v33, %v6606_v32  ;;  %v6696_v51 = vld [vmem:[%s19982_s6 + $0x980] sm:$0xff] }
 0x686   : > { %12028 = vmatprep.subr.bf16.mxu0 %v12027_v1  ;;  %12078 = vmatpush3.bf16.msra.mxu1 %v12077_v8  ;;  %v6590_v63 = vld [vmem:[%s19982_s6 + $0x630] sm:$0xff]  ;;  %v6591_v52 = vld [vmem:[%s19982_s6 + $0x638] sm:$0xff]  ;;  %v6697_v62 = vld [vmem:[%s19982_s6 + $0x988] sm:$0xff]  ;;  %v12085_v4 = vpack.c.bf16 %v6631_v57, %v6630_v31 }
 0x687   : > { %12080 = vmatprep.subr.bf16.mxu1 %v12079_v23  ;;  %v6370_v14 = vld [vmem:[#allocation4 + $0x220] sm:$0x1f]  ;;  %v6609_v12 = vld [vmem:[%s19982_s6 + $0x6c8] sm:$0xff]  ;;  %v12037_v39 = vpack.c.bf16 %v6591_v52, %v6590_v63  ;;  %v12119_v42 = vpack.c.bf16 %v6697_v62, %v6696_v51  ;;  %v6698_v16 = vld [vmem:[%s19982_s6 + $0x990] sm:$0xff] }
 0x688   : > { %7262 = vmatmul.mubr.f32.gmra.mrb[72].mxu0 %v6340_v61  ;;  %v6608_v7 = vld [vmem:[%s19982_s6 + $0x6c0] sm:$0xff]  ;;  %v6315_v18 = vld [vmem:[#allocation4 + $0x68] sm:$0xff]  ;;  %v6699_v55 = vld [vmem:[%s19982_s6 + $0x998] sm:$0xff] }
 0x689   : > { %7266 = vmatprep.mubr.f32.mxu0 %v6371_v46  ;;  %12030 = vmatpush3.bf16.msra.mxu0 %v12029_v26  ;;  %v6680_v53 = vld [vmem:[%s19982_s6 + $0x900] sm:$0xff]  ;;  %v6681_v48 = vld [vmem:[%s19982_s6 + $0x908] sm:$0xff]  ;;  %v12039_v5 = vpack.c.bf16 %v6609_v12, %v6608_v7  ;;  %v6610_v2 = vld [vmem:[%s19982_s6 + $0x6d0] sm:$0xff]  ;;  %v12123_v27 = vpack.c.bf16 %v6699_v55, %v6698_v16 }
 0x68a   : > { %12032 = vmatprep.subr.bf16.mxu0 %v12031_v11  ;;  %12082 = vmatpush3.bf16.msra.mxu1 %v12081_v41  ;;  %v6592_v40 = vld [vmem:[%s19982_s6 + $0x640] sm:$0xff]  ;;  %v6593_v15 = vld [vmem:[%s19982_s6 + $0x648] sm:$0xff]  ;;  %v6611_v3 = vld [vmem:[%s19982_s6 + $0x6d8] sm:$0xff]  ;;  %v12121_v17 = vpack.c.bf16 %v6681_v48, %v6680_v53 }
 0x68b   : > { %12084 = vmatprep.subr.bf16.mxu1 %v12083_v45  ;;  %v6682_v60 = vld [vmem:[%s19982_s6 + $0x910] sm:$0xff]  ;;  %v12041_v30 = vpack.c.bf16 %v6593_v15, %v6592_v40  ;;  %v6683_v49 = vld [vmem:[%s19982_s6 + $0x918] sm:$0xff]  ;;  %v12043_v47 = vpack.c.bf16 %v6611_v3, %v6610_v2  ;;  %v6700_v35 = vld [vmem:[%s19982_s6 + $0x9a0] sm:$0xff] }
 0x68c   : > { %7267 = vmatmul.mubr.f32.gmra.mrb[74].mxu0 %v6370_v14  ;;  %v6594_v59 = vld [vmem:[%s19982_s6 + $0x650] sm:$0xff]  ;;  %v6595_v38 = vld [vmem:[%s19982_s6 + $0x658] sm:$0xff]  ;;  %v6701_v50 = vld [vmem:[%s19982_s6 + $0x9a8] sm:$0xff]  ;;  %v12125_v1 = vpack.c.bf16 %v6683_v49, %v6682_v60 }
 0x68d   : > { %12034 = vmatpush3.bf16.msra.mxu0 %v12033_v34  ;;  %7416 = vmatprep.mubr.f32.mxu0 %v6315_v18  ;;  %v6316_v21 = vld [vmem:[#allocation4 + $0x70] sm:$0xff]  ;;  %v6347_v13 = vld [vmem:[#allocation4 + $0x168] sm:$0xff]  ;;  %v6612_v44 = vld [vmem:[%s19982_s6 + $0x6e0] sm:$0xff]  ;;  %v12045_v28 = vpack.c.bf16 %v6595_v38, %v6594_v59  ;;  %v12127_v36 = vpack.c.bf16 %v6701_v50, %v6700_v35 }
 0x68e   : > { %12036 = vmatprep.subr.bf16.mxu0 %v12035_v25  ;;  %12086 = vmatpush3.bf16.msra.mxu1 %v12085_v4  ;;  %v6613_v29 = vld [vmem:[%s19982_s6 + $0x6e8] sm:$0xff]  ;;  %v6684_v56 = vld [vmem:[%s19982_s6 + $0x920] sm:$0xff]  ;;  %v6702_v26 = vld [vmem:[%s19982_s6 + $0x9b0] sm:$0xff] }
 0x68f   : > { %12120 = vmatprep.subr.bf16.mxu1 %v12119_v42  ;;  %v6685_v10 = vld [vmem:[%s19982_s6 + $0x928] sm:$0xff]  ;;  %v6596_v24 = vld [vmem:[%s19982_s6 + $0x660] sm:$0xff]  ;;  %v12047_v8 = vpack.c.bf16 %v6613_v29, %v6612_v44  ;;  %v6703_v0 = vld [vmem:[%s19982_s6 + $0x9b8] sm:$0xff] }
 0x690   : > { %v6597_v58 = vld [vmem:[%s19982_s6 + $0x668] sm:$0xff]  ;;  %v6346_v43 = vld [vmem:[#allocation4 + $0x160] sm:$0xff]  ;;  %v6377_v22 = vld [vmem:[#allocation4 + $0x258] sm:$0x1f]  ;;  %v12129_v11 = vpack.c.bf16 %v6685_v10, %v6684_v56  ;;  %v12131_v9 = vpack.c.bf16 %v6703_v0, %v6702_v26 }
 0x691   : > { %12038 = vmatpush3.bf16.msra.mxu0 %v12037_v39  ;;  %7497 = vmatmul.mubr.f32.vlgmr.msra.gmra.mrb[48].mxu1 %v6316_v21  ;;  %v6614_v20 = vld [vmem:[%s19982_s6 + $0x6f0] sm:$0xff]  ;;  %v6615_v23 = vld [vmem:[%s19982_s6 + $0x6f8] sm:$0xff]  ;;  %v12049_v54 = vpack.c.bf16 %v6597_v58, %v6596_v24  ;;  %v6704_v34 = vld [vmem:[%s19982_s6 + $0x9c0] sm:$0xff] }
 0x692   : > { %12040 = vmatprep.subr.bf16.mxu0 %v12039_v5  ;;  %7501 = vmatprep.mubr.f32.mxu1 %v6347_v13  ;;  %v6686_v6 = vld [vmem:[%s19982_s6 + $0x930] sm:$0xff]  ;;  %v6687_v61 = vld [vmem:[%s19982_s6 + $0x938] sm:$0xff]  ;;  %v12051_v41 = vpack.c.bf16 %v6615_v23, %v6614_v20  ;;  %v6705_v31 = vld [vmem:[%s19982_s6 + $0x9c8] sm:$0xff] }
 0x693   : > { %12122 = vmatpush3.bf16.msra.mxu1 %v12121_v17  ;;  %v6598_v32 = vld [vmem:[%s19982_s6 + $0x670] sm:$0xff]  ;;  %v6599_v33 = vld [vmem:[%s19982_s6 + $0x678] sm:$0xff]  ;;  %v6664_v63 = vld [vmem:[%s19982_s6 + $0x880] sm:$0xff]  ;;  %v12133_v25 = vpack.c.bf16 %v6687_v61, %v6686_v6  ;;  %v12135_v51 = vpack.c.bf16 %v6705_v31, %v6704_v34 }
 0x694   : > { %12124 = vmatprep.subr.bf16.mxu1 %v12123_v27  ;;  %v6376_v46 = vld [vmem:[#allocation4 + $0x250] sm:$0x1f]  ;;  %v6321_v57 = vld [vmem:[#allocation4 + $0x98] sm:$0xff]  ;;  %v6665_v45 = vld [vmem:[%s19982_s6 + $0x888] sm:$0xff]  ;;  %v12053_v52 = vpack.c.bf16 %v6599_v33, %v6598_v32 }
 0x695   : > { %12042 = vmatpush3.bf16.msra.mxu0 %v12041_v30  ;;  %7502 = vmatmul.mubr.f32.gmra.mrb[50].mxu1 %v6346_v43  ;;  %v6688_v62 = vld [vmem:[%s19982_s6 + $0x940] sm:$0xff]  ;;  %v6689_v14 = vld [vmem:[%s19982_s6 + $0x948] sm:$0xff]  ;;  %v12087_v7 = vpack.c.bf16 %v6665_v45, %v6664_v63  ;;  %v6706_v4 = vld [vmem:[%s19982_s6 + $0x9d0] sm:$0xff] }
 0x696   : > { %12044 = vmatprep.subr.bf16.mxu0 %v12043_v47  ;;  %7506 = vmatprep.mubr.f32.mxu1 %v6377_v22  ;;  %v6648_v12 = vld [vmem:[%s19982_s6 + $0x800] sm:$0xff]  ;;  %v6649_v18 = vld [vmem:[%s19982_s6 + $0x808] sm:$0xff]  ;;  %v6707_v39 = vld [vmem:[%s19982_s6 + $0x9d8] sm:$0xff]  ;;  %v12137_v48 = vpack.c.bf16 %v6689_v14, %v6688_v62 }
 0x697   : > { %12126 = vmatpush3.bf16.msra.mxu1 %v12125_v1  ;;  %v6666_v42 = vld [vmem:[%s19982_s6 + $0x890] sm:$0xff]  ;;  %v6667_v53 = vld [vmem:[%s19982_s6 + $0x898] sm:$0xff]  ;;  %v12089_v40 = vpack.c.bf16 %v6649_v18, %v6648_v12  ;;  %v12139_v55 = vpack.c.bf16 %v6707_v39, %v6706_v4  ;;  %v6708_v17 = vld [vmem:[%s19982_s6 + $0x9e0] sm:$0xff] }
 0x698   : > { %12128 = vmatprep.subr.bf16.mxu1 %v12127_v36  ;;  %v6690_v5 = vld [vmem:[%s19982_s6 + $0x950] sm:$0xff]  ;;  %v6691_v15 = vld [vmem:[%s19982_s6 + $0x958] sm:$0xff]  ;;  %v12091_v2 = vpack.c.bf16 %v6667_v53, %v6666_v42  ;;  %v6709_v60 = vld [vmem:[%s19982_s6 + $0x9e8] sm:$0xff] }
 0x699   : > { %12046 = vmatpush3.bf16.msra.mxu0 %v12045_v28  ;;  %7507 = vmatmul.mubr.f32.gmra.mrb[52].mxu1 %v6376_v46  ;;  %v6650_v16 = vld [vmem:[%s19982_s6 + $0x810] sm:$0xff]  ;;  %v6651_v3 = vld [vmem:[%s19982_s6 + $0x818] sm:$0xff]  ;;  %v6314_v30 = vld [vmem:[#allocation4 + $0x60] sm:$0xff]  ;;  %v12141_v38 = vpack.c.bf16 %v6691_v15, %v6690_v5  ;;  %v12143_v13 = vpack.c.bf16 %v6709_v60, %v6708_v17 }
 0x69a   : > { %12048 = vmatprep.subr.bf16.mxu0 %v12047_v8  ;;  %7656 = vmatprep.mubr.f32.mxu1 %v6321_v57  ;;  %v6668_v27 = vld [vmem:[%s19982_s6 + $0x8a0] sm:$0xff]  ;;  %v6669_v49 = vld [vmem:[%s19982_s6 + $0x8a8] sm:$0xff]  ;;  %v6345_v59 = vld [vmem:[#allocation4 + $0x158] sm:$0xff]  ;;  %v12093_v21 = vpack.c.bf16 %v6651_v3, %v6650_v16 }
 0x69b   : > { %12130 = vmatpush3.bf16.msra.mxu1 %v12129_v11  ;;  %v6692_v47 = vld [vmem:[%s19982_s6 + $0x960] sm:$0xff]  ;;  %v6693_v35 = vld [vmem:[%s19982_s6 + $0x968] sm:$0xff]  ;;  %v12095_v44 = vpack.c.bf16 %v6669_v49, %v6668_v27  ;;  %v6710_v1 = vld [vmem:[%s19982_s6 + $0x9f0] sm:$0xff] }
 0x69c   : > { %12132 = vmatprep.subr.bf16.mxu1 %v12131_v9  ;;  %v6652_v50 = vld [vmem:[%s19982_s6 + $0x820] sm:$0xff]  ;;  %v6653_v29 = vld [vmem:[%s19982_s6 + $0x828] sm:$0xff]  ;;  %v6711_v56 = vld [vmem:[%s19982_s6 + $0x9f8] sm:$0xff]  ;;  %v12145_v58 = vpack.c.bf16 %v6693_v35, %v6692_v47 }
 0x69d   : > { %12050 = vmatpush3.bf16.msra.mxu0 %v12049_v54  ;;  %v6344_v28 = vld [vmem:[#allocation4 + $0x150] sm:$0xff]  ;;  %v6671_v10 = vld [vmem:[%s19982_s6 + $0x8b8] sm:$0xff]  ;;  %v6375_v24 = vld [vmem:[#allocation4 + $0x248] sm:$0x1f]  ;;  %v12097_v43 = vpack.c.bf16 %v6653_v29, %v6652_v50  ;;  %v12147_v22 = vpack.c.bf16 %v6711_v56, %v6710_v1 }
 0x69e   : > { %12052 = vmatprep.subr.bf16.mxu0 %v12051_v41  ;;  %v6670_v36 = vld [vmem:[%s19982_s6 + $0x8b0] sm:$0xff]  ;;  %v6695_v26 = vld [vmem:[%s19982_s6 + $0x978] sm:$0xff]  ;;  %v6760_v11 = vld [vmem:[%s19982_s6 + $0xb80] sm:$0xff] }
 0x69f   : > { %12134 = vmatpush3.bf16.msra.mxu1 %v12133_v25  ;;  %v6694_v8 = vld [vmem:[%s19982_s6 + $0x970] sm:$0xff]  ;;  %v12099_v20 = vpack.c.bf16 %v6671_v10, %v6670_v36  ;;  %v6655_v23 = vld [vmem:[%s19982_s6 + $0x838] sm:$0xff]  ;;  %v6761_v6 = vld [vmem:[%s19982_s6 + $0xb88] sm:$0xff] }
 0x6a0   : > { %12136 = vmatprep.subr.bf16.mxu1 %v12135_v51  ;;  %v6654_v0 = vld [vmem:[%s19982_s6 + $0x830] sm:$0xff]  ;;  %v6374_v54 = vld [vmem:[#allocation4 + $0x240] sm:$0x1f]  ;;  %v6673_v61 = vld [vmem:[%s19982_s6 + $0x8c8] sm:$0xff]  ;;  %v12149_v33 = vpack.c.bf16 %v6695_v26, %v6694_v8  ;;  %v12183_v41 = vpack.c.bf16 %v6761_v6, %v6760_v11 }
 0x6a1   : > { %12054 = vmatpush3.bf16.msra.mxu0 %v12053_v52  ;;  %v6672_v9 = vld [vmem:[%s19982_s6 + $0x8c0] sm:$0xff]  ;;  %v6319_v32 = vld [vmem:[#allocation4 + $0x88] sm:$0xff]  ;;  %v12101_v46 = vpack.c.bf16 %v6655_v23, %v6654_v0  ;;  %v6762_v25 = vld [vmem:[%s19982_s6 + $0xb90] sm:$0xff] }
 0x6a2   : > { %12088 = vmatprep.subr.bf16.mxu0 %v12087_v7  ;;  %v6744_v34 = vld [vmem:[%s19982_s6 + $0xb00] sm:$0xff]  ;;  %v6745_v31 = vld [vmem:[%s19982_s6 + $0xb08] sm:$0xff]  ;;  %v12103_v63 = vpack.c.bf16 %v6673_v61, %v6672_v9  ;;  %v6763_v52 = vld [vmem:[%s19982_s6 + $0xb98] sm:$0xff] }
 0x6a3   : > { %12138 = vmatpush3.bf16.msra.mxu1 %v12137_v48  ;;  %v6656_v57 = vld [vmem:[%s19982_s6 + $0x840] sm:$0xff]  ;;  %v6657_v45 = vld [vmem:[%s19982_s6 + $0x848] sm:$0xff]  ;;  %v6674_v51 = vld [vmem:[%s19982_s6 + $0x8d0] sm:$0xff]  ;;  %v12185_v14 = vpack.c.bf16 %v6745_v31, %v6744_v34  ;;  %v12187_v18 = vpack.c.bf16 %v6763_v52, %v6762_v25 }
 0x6a4   : > { %7417 = vmatmul.mubr.f32.vlgmr.msra.gmra.mrb[76].mxu0 %v6314_v30  ;;  %12140 = vmatprep.subr.bf16.mxu1 %v12139_v55  ;;  %v6675_v62 = vld [vmem:[%s19982_s6 + $0x8d8] sm:$0xff]  ;;  %v6746_v7 = vld [vmem:[%s19982_s6 + $0xb10] sm:$0xff]  ;;  %v12105_v12 = vpack.c.bf16 %v6657_v45, %v6656_v57  ;;  %v6765_v5 = vld [vmem:[%s19982_s6 + $0xba8] sm:$0xff] }
 0x6a5   : > { %7421 = vmatprep.mubr.f32.mxu0 %v6345_v59  ;;  %12090 = vmatpush3.bf16.msra.mxu0 %v12089_v40  ;;  %v6747_v4 = vld [vmem:[%s19982_s6 + $0xb18] sm:$0xff]  ;;  %v6658_v39 = vld [vmem:[%s19982_s6 + $0x850] sm:$0xff]  ;;  %v12107_v48 = vpack.c.bf16 %v6675_v62, %v6674_v51  ;;  %v6764_v40 = vld [vmem:[%s19982_s6 + $0xba0] sm:$0xff] }
 0x6a6   : > { %12092 = vmatprep.subr.bf16.mxu0 %v12091_v2  ;;  %v6659_v42 = vld [vmem:[%s19982_s6 + $0x858] sm:$0xff]  ;;  %v6320_v53 = vld [vmem:[#allocation4 + $0x90] sm:$0xff]  ;;  %v6351_v15 = vld [vmem:[#allocation4 + $0x188] sm:$0xff]  ;;  %v12189_v2 = vpack.c.bf16 %v6747_v4, %v6746_v7  ;;  %v12191_v60 = vpack.c.bf16 %v6765_v5, %v6764_v40 }
 0x6a7   : > { %12142 = vmatpush3.bf16.msra.mxu1 %v12141_v38  ;;  %v6676_v16 = vld [vmem:[%s19982_s6 + $0x8e0] sm:$0xff]  ;;  %v6677_v55 = vld [vmem:[%s19982_s6 + $0x8e8] sm:$0xff]  ;;  %v12109_v17 = vpack.c.bf16 %v6659_v42, %v6658_v39  ;;  %v6767_v47 = vld [vmem:[%s19982_s6 + $0xbb8] sm:$0xff] }
 0x6a8   : > { %7422 = vmatmul.mubr.f32.gmra.mrb[78].mxu0 %v6344_v28  ;;  %12144 = vmatprep.subr.bf16.mxu1 %v12143_v13  ;;  %v6748_v3 = vld [vmem:[%s19982_s6 + $0xb20] sm:$0xff]  ;;  %v6749_v30 = vld [vmem:[%s19982_s6 + $0xb28] sm:$0xff]  ;;  %v12111_v38 = vpack.c.bf16 %v6677_v55, %v6676_v16  ;;  %v6381_v35 = vld [vmem:[#allocation4 + $0x278] sm:$0x1f] }
 0x6a9   : > { %7426 = vmatprep.mubr.f32.mxu0 %v6375_v24  ;;  %12094 = vmatpush3.bf16.msra.mxu0 %v12093_v21  ;;  %v6660_v27 = vld [vmem:[%s19982_s6 + $0x860] sm:$0xff]  ;;  %v6661_v49 = vld [vmem:[%s19982_s6 + $0x868] sm:$0xff]  ;;  %v6766_v21 = vld [vmem:[%s19982_s6 + $0xbb0] sm:$0xff] }
 0x6aa   : > { %12096 = vmatprep.subr.bf16.mxu0 %v12095_v44  ;;  %v6350_v59 = vld [vmem:[#allocation4 + $0x180] sm:$0xff]  ;;  %v6678_v50 = vld [vmem:[%s19982_s6 + $0x8f0] sm:$0xff]  ;;  %v6679_v13 = vld [vmem:[%s19982_s6 + $0x8f8] sm:$0xff]  ;;  %v12193_v44 = vpack.c.bf16 %v6749_v30, %v6748_v3  ;;  %v12113_v1 = vpack.c.bf16 %v6661_v49, %v6660_v27  ;;  %v12195_v56 = vpack.c.bf16 %v6767_v47, %v6766_v21 }
 0x6ab   : > { %12146 = vmatpush3.bf16.msra.mxu1 %v12145_v58  ;;  %v6750_v29 = vld [vmem:[%s19982_s6 + $0xb30] sm:$0xff]  ;;  %v6751_v28 = vld [vmem:[%s19982_s6 + $0xb38] sm:$0xff]  ;;  %v12115_v58 = vpack.c.bf16 %v6679_v13, %v6678_v50  ;;  %v6769_v8 = vld [vmem:[%s19982_s6 + $0xbc8] sm:$0xff] }
 0x6ac   : > { %7427 = vmatmul.mubr.f32.gmra.mrb[80].mxu0 %v6374_v54  ;;  %12148 = vmatprep.subr.bf16.mxu1 %v12147_v22  ;;  %v6662_v36 = vld [vmem:[%s19982_s6 + $0x870] sm:$0xff]  ;;  %v6663_v10 = vld [vmem:[%s19982_s6 + $0x878] sm:$0xff]  ;;  %v6728_v0 = vld [vmem:[%s19982_s6 + $0xa80] sm:$0xff] }
 0x6ad   : > { %12098 = vmatpush3.bf16.msra.mxu0 %v12097_v43  ;;  %7576 = vmatprep.mubr.f32.mxu0 %v6319_v32  ;;  %v6380_v24 = vld [vmem:[#allocation4 + $0x270] sm:$0x1f]  ;;  %v6768_v43 = vld [vmem:[%s19982_s6 + $0xbc0] sm:$0xff]  ;;  %v6325_v26 = vld [vmem:[#allocation4 + $0xb8] sm:$0xff]  ;;  %v12117_v23 = vpack.c.bf16 %v6663_v10, %v6662_v36 }
 0x6ae   : > { %12100 = vmatprep.subr.bf16.mxu0 %v12099_v20  ;;  %v6729_v22 = vld [vmem:[%s19982_s6 + $0xa88] sm:$0xff]  ;;  %v12197_v20 = vpack.c.bf16 %v6751_v28, %v6750_v29  ;;  %v12199_v11 = vpack.c.bf16 %v6769_v8, %v6768_v43  ;;  %v6752_v6 = vld [vmem:[%s19982_s6 + $0xb40] sm:$0xff]  ;;  %v6731_v34 = vld [vmem:[%s19982_s6 + $0xa98] sm:$0xff] }
 0x6af   : > { %12150 = vmatpush3.bf16.msra.mxu1 %v12149_v33  ;;  %v6753_v54 = vld [vmem:[%s19982_s6 + $0xb48] sm:$0xff]  ;;  %v12151_v9 = vpack.c.bf16 %v6729_v22, %v6728_v0  ;;  %v6712_v61 = vld [vmem:[%s19982_s6 + $0xa00] sm:$0xff]  ;;  %v6770_v33 = vld [vmem:[%s19982_s6 + $0xbd0] sm:$0xff] }
 0x6b0   : > { %12184 = vmatprep.subr.bf16.mxu1 %v12183_v41  ;;  %v6713_v32 = vld [vmem:[%s19982_s6 + $0xa08] sm:$0xff]  ;;  %v6730_v41 = vld [vmem:[%s19982_s6 + $0xa90] sm:$0xff]  ;;  %v12201_v31 = vpack.c.bf16 %v6753_v54, %v6752_v6  ;;  %v6755_v45 = vld [vmem:[%s19982_s6 + $0xb58] sm:$0xff] }
 0x6b1   : > { %12102 = vmatpush3.bf16.msra.mxu0 %v12101_v46  ;;  %v6771_v46 = vld [vmem:[%s19982_s6 + $0xbd8] sm:$0xff]  ;;  %v12153_v57 = vpack.c.bf16 %v6713_v32, %v6712_v61  ;;  %v6714_v25 = vld [vmem:[%s19982_s6 + $0xa10] sm:$0xff]  ;;  %v12155_v51 = vpack.c.bf16 %v6731_v34, %v6730_v41  ;;  %v6773_v7 = vld [vmem:[%s19982_s6 + $0xbe8] sm:$0xff] }
 0x6b2   : > { %12104 = vmatprep.subr.bf16.mxu0 %v12103_v63  ;;  %7657 = vmatmul.mubr.f32.vlgmr.msra.gmra.mrb[54].mxu1 %v6320_v53  ;;  %v6754_v63 = vld [vmem:[%s19982_s6 + $0xb50] sm:$0xff]  ;;  %v12203_v52 = vpack.c.bf16 %v6771_v46, %v6770_v33  ;;  %v6715_v62 = vld [vmem:[%s19982_s6 + $0xa18] sm:$0xff]  ;;  %v6733_v4 = vld [vmem:[%s19982_s6 + $0xaa8] sm:$0xff] }
 0x6b3   : > { %7661 = vmatprep.mubr.f32.mxu1 %v6351_v15  ;;  %12186 = vmatpush3.bf16.msra.mxu1 %v12185_v14  ;;  %v6772_v14 = vld [vmem:[%s19982_s6 + $0xbe0] sm:$0xff]  ;;  %v6349_v39 = vld [vmem:[#allocation4 + $0x178] sm:$0xff]  ;;  %v12205_v42 = vpack.c.bf16 %v6755_v45, %v6754_v63  ;;  %v12157_v53 = vpack.c.bf16 %v6715_v62, %v6714_v25  ;;  %v6757_v40 = vld [vmem:[%s19982_s6 + $0xb68] sm:$0xff] }
 0x6b4   : > { %12188 = vmatprep.subr.bf16.mxu1 %v12187_v18  ;;  %v6732_v18 = vld [vmem:[%s19982_s6 + $0xaa0] sm:$0xff]  ;;  %v12207_v15 = vpack.c.bf16 %v6773_v7, %v6772_v14  ;;  %v6717_v55 = vld [vmem:[%s19982_s6 + $0xa28] sm:$0xff]  ;;  %v6775_v3 = vld [vmem:[%s19982_s6 + $0xbf8] sm:$0xff] }
 0x6b5   : > { %12106 = vmatpush3.bf16.msra.mxu0 %v12105_v12  ;;  %v6318_v12 = vld [vmem:[#allocation4 + $0x80] sm:$0xff]  ;;  %v12159_v16 = vpack.c.bf16 %v6733_v4, %v6732_v18  ;;  %v6735_v30 = vld [vmem:[%s19982_s6 + $0xab8] sm:$0xff]  ;;  %v6379_v27 = vld [vmem:[#allocation4 + $0x268] sm:$0x1f] }
 0x6b6   : > { %12108 = vmatprep.subr.bf16.mxu0 %v12107_v48  ;;  %7662 = vmatmul.mubr.f32.gmra.mrb[56].mxu1 %v6350_v59  ;;  %v6756_v48 = vld [vmem:[%s19982_s6 + $0xb60] sm:$0xff]  ;;  %v6759_v21 = vld [vmem:[%s19982_s6 + $0xb78] sm:$0xff]  ;;  %v6718_v47 = vld [vmem:[%s19982_s6 + $0xa30] sm:$0xff] }
 0x6b7   : > { %7666 = vmatprep.mubr.f32.mxu1 %v6381_v35  ;;  %12190 = vmatpush3.bf16.msra.mxu1 %v12189_v2  ;;  %v6716_v5 = vld [vmem:[%s19982_s6 + $0xa20] sm:$0xff]  ;;  %v6774_v2 = vld [vmem:[%s19982_s6 + $0xbf0] sm:$0xff]  ;;  %v12209_v49 = vpack.c.bf16 %v6757_v40, %v6756_v48  ;;  %v6719_v13 = vld [vmem:[%s19982_s6 + $0xa38] sm:$0xff] }
 0x6b8   : > { %12192 = vmatprep.subr.bf16.mxu1 %v12191_v60  ;;  %v6734_v60 = vld [vmem:[%s19982_s6 + $0xab0] sm:$0xff]  ;;  %v12161_v59 = vpack.c.bf16 %v6717_v55, %v6716_v5  ;;  %v12211_v35 = vpack.c.bf16 %v6775_v3, %v6774_v2  ;;  %v6825_v29 = vld [vmem:[%s19982_s6 + $0xd88] sm:$0xff]  ;;  %v6808_v43 = vld [vmem:[%s19982_s6 + $0xd00] sm:$0xff] }
 0x6b9   : > { %12110 = vmatpush3.bf16.msra.mxu0 %v12109_v17  ;;  %v6348_v17 = vld [vmem:[#allocation4 + $0x170] sm:$0xff]  ;;  %v12163_v50 = vpack.c.bf16 %v6735_v30, %v6734_v60  ;;  %v6737_v28 = vld [vmem:[%s19982_s6 + $0xac8] sm:$0xff]  ;;  %v6739_v6 = vld [vmem:[%s19982_s6 + $0xad8] sm:$0xff] }
 0x6ba   : > { %12112 = vmatprep.subr.bf16.mxu0 %v12111_v38  ;;  %7667 = vmatmul.mubr.f32.gmra.mrb[58].mxu1 %v6380_v24  ;;  %v6758_v38 = vld [vmem:[%s19982_s6 + $0xb70] sm:$0xff]  ;;  %v6323_v36 = vld [vmem:[#allocation4 + $0xa8] sm:$0xff]  ;;  %v12165_v24 = vpack.c.bf16 %v6719_v13, %v6718_v47  ;;  %v6811_v46 = vld [vmem:[%s19982_s6 + $0xd18] sm:$0xff] }
 0x6bb   : > { %12194 = vmatpush3.bf16.msra.mxu1 %v12193_v44  ;;  %7816 = vmatprep.mubr.f32.mxu1 %v6325_v26  ;;  %v6824_v44 = vld [vmem:[%s19982_s6 + $0xd80] sm:$0xff]  ;;  %v12213_v10 = vpack.c.bf16 %v6759_v21, %v6758_v38  ;;  %v6809_v8 = vld [vmem:[%s19982_s6 + $0xd08] sm:$0xff]  ;;  %v6324_v54 = vld [vmem:[#allocation4 + $0xb0] sm:$0xff] }
 0x6bc   : > { %12196 = vmatprep.subr.bf16.mxu1 %v12195_v56  ;;  %v6736_v56 = vld [vmem:[%s19982_s6 + $0xac0] sm:$0xff]  ;;  %v6721_v22 = vld [vmem:[%s19982_s6 + $0xa48] sm:$0xff]  ;;  %v6810_v33 = vld [vmem:[%s19982_s6 + $0xd10] sm:$0xff] }
 0x6bd   : > { %12114 = vmatpush3.bf16.msra.mxu0 %v12113_v1  ;;  %v6378_v1 = vld [vmem:[#allocation4 + $0x260] sm:$0x1f]  ;;  %v12167_v0 = vpack.c.bf16 %v6737_v28, %v6736_v56  ;;  %v6722_v41 = vld [vmem:[%s19982_s6 + $0xa50] sm:$0xff]  ;;  %v6829_v63 = vld [vmem:[%s19982_s6 + $0xda8] sm:$0xff]  ;;  %v12253_v62 = vpack.c.bf16 %v6811_v46, %v6810_v33 }
 0x6be   : > { %12116 = vmatprep.subr.bf16.mxu0 %v12115_v58  ;;  %v12247_v58 = vpack.c.bf16 %v6825_v29, %v6824_v44  ;;  %v6720_v26 = vld [vmem:[%s19982_s6 + $0xa40] sm:$0xff]  ;;  %v6355_v45 = vld [vmem:[#allocation4 + $0x1a8] sm:$0xff]  ;;  %v6831_v48 = vld [vmem:[%s19982_s6 + $0xdb8] sm:$0xff] }
 0x6bf   : > { %12198 = vmatpush3.bf16.msra.mxu1 %v12197_v20  ;;  %v6826_v20 = vld [vmem:[%s19982_s6 + $0xd90] sm:$0xff]  ;;  %v12169_v61 = vpack.c.bf16 %v6721_v22, %v6720_v26  ;;  %v6740_v25 = vld [vmem:[%s19982_s6 + $0xae0] sm:$0xff]  ;;  %v6813_v18 = vld [vmem:[%s19982_s6 + $0xd28] sm:$0xff] }
 0x6c0   : > { %12200 = vmatprep.subr.bf16.mxu1 %v12199_v11  ;;  %v6738_v11 = vld [vmem:[%s19982_s6 + $0xad0] sm:$0xff]  ;;  %v6724_v4 = vld [vmem:[%s19982_s6 + $0xa60] sm:$0xff]  ;;  %v6385_v40 = vld [vmem:[#allocation4 + $0x298] sm:$0x1f] }
 0x6c1   : > { %12118 = vmatpush3.bf16.msra.mxu0 %v12117_v23  ;;  %v6827_v23 = vld [vmem:[%s19982_s6 + $0xd98] sm:$0xff]  ;;  %v12171_v34 = vpack.c.bf16 %v6739_v6, %v6738_v11  ;;  %v6742_v5 = vld [vmem:[%s19982_s6 + $0xaf0] sm:$0xff]  ;;  %v6833_v38 = vld [vmem:[%s19982_s6 + $0xdc8] sm:$0xff] }
 0x6c2   : > { %12152 = vmatprep.subr.bf16.mxu0 %v12151_v9  ;;  %v12249_v9 = vpack.c.bf16 %v6809_v8, %v6808_v43  ;;  %v12251_v32 = vpack.c.bf16 %v6827_v23, %v6826_v20  ;;  %v6815_v60 = vld [vmem:[%s19982_s6 + $0xd38] sm:$0xff]  ;;  %v6726_v30 = vld [vmem:[%s19982_s6 + $0xa70] sm:$0xff]  ;;  %v6792_v47 = vld [vmem:[%s19982_s6 + $0xc80] sm:$0xff] }
 0x6c3   : > { %12202 = vmatpush3.bf16.msra.mxu1 %v12201_v31  ;;  %v6723_v31 = vld [vmem:[%s19982_s6 + $0xa58] sm:$0xff]  ;;  %v6816_v29 = vld [vmem:[%s19982_s6 + $0xd40] sm:$0xff]  ;;  %v6818_v22 = vld [vmem:[%s19982_s6 + $0xd50] sm:$0xff] }
 0x6c4   : > { %7577 = vmatmul.mubr.f32.vlgmr.msra.gmra.mrb[82].mxu0 %v6318_v12  ;;  %12204 = vmatprep.subr.bf16.mxu1 %v12203_v52  ;;  %v6741_v52 = vld [vmem:[%s19982_s6 + $0xae8] sm:$0xff]  ;;  %v12173_v14 = vpack.c.bf16 %v6723_v31, %v6722_v41  ;;  %v6812_v12 = vld [vmem:[%s19982_s6 + $0xd20] sm:$0xff]  ;;  %v6329_v21 = vld [vmem:[#allocation4 + $0xd8] sm:$0xff] }
 0x6c5   : > { %7581 = vmatprep.mubr.f32.mxu0 %v6349_v39  ;;  %12154 = vmatpush3.bf16.msra.mxu0 %v12153_v57  ;;  %v6828_v57 = vld [vmem:[%s19982_s6 + $0xda0] sm:$0xff]  ;;  %v12175_v39 = vpack.c.bf16 %v6741_v52, %v6740_v25  ;;  %v12257_v55 = vpack.c.bf16 %v6813_v18, %v6812_v12  ;;  %v6795_v43 = vld [vmem:[%s19982_s6 + $0xc98] sm:$0xff]  ;;  %v6778_v6 = vld [vmem:[%s19982_s6 + $0xc10] sm:$0xff] }
 0x6c6   : > { %12156 = vmatprep.subr.bf16.mxu0 %v12155_v51  ;;  %v6354_v51 = vld [vmem:[#allocation4 + $0x1a0] sm:$0xff]  ;;  %v12255_v7 = vpack.c.bf16 %v6829_v63, %v6828_v57  ;;  %v6819_v20 = vld [vmem:[%s19982_s6 + $0xd58] sm:$0xff]  ;;  %v6797_v33 = vld [vmem:[%s19982_s6 + $0xca8] sm:$0xff] }
 0x6c7   : > { %12206 = vmatpush3.bf16.msra.mxu1 %v12205_v42  ;;  %v6725_v42 = vld [vmem:[%s19982_s6 + $0xa68] sm:$0xff]  ;;  %v6776_v28 = vld [vmem:[%s19982_s6 + $0xc00] sm:$0xff]  ;;  %v6353_v46 = vld [vmem:[#allocation4 + $0x198] sm:$0xff]  ;;  %v12269_v41 = vpack.c.bf16 %v6819_v20, %v6818_v22 }
 0x6c8   : > { %7582 = vmatmul.mubr.f32.gmra.mrb[84].mxu0 %v6348_v17  ;;  %12208 = vmatprep.subr.bf16.mxu1 %v12207_v15  ;;  %v6743_v15 = vld [vmem:[%s19982_s6 + $0xaf8] sm:$0xff]  ;;  %v12177_v2 = vpack.c.bf16 %v6725_v42, %v6724_v4  ;;  %v6814_v17 = vld [vmem:[%s19982_s6 + $0xd30] sm:$0xff]  ;;  %v6322_v26 = vld [vmem:[#allocation4 + $0xa0] sm:$0xff] }
 0x6c9   : > { %7586 = vmatprep.mubr.f32.mxu0 %v6379_v27  ;;  %12158 = vmatpush3.bf16.msra.mxu0 %v12157_v53  ;;  %v6830_v53 = vld [vmem:[%s19982_s6 + $0xdb0] sm:$0xff]  ;;  %v12179_v27 = vpack.c.bf16 %v6743_v15, %v6742_v5  ;;  %v6820_v57 = vld [vmem:[%s19982_s6 + $0xd60] sm:$0xff]  ;;  %v6821_v63 = vld [vmem:[%s19982_s6 + $0xd68] sm:$0xff] }
 0x6ca   : > { %12160 = vmatprep.subr.bf16.mxu0 %v12159_v16  ;;  %v6384_v16 = vld [vmem:[#allocation4 + $0x290] sm:$0x1f]  ;;  %v12259_v3 = vpack.c.bf16 %v6831_v48, %v6830_v53  ;;  %v6780_v52 = vld [vmem:[%s19982_s6 + $0xc20] sm:$0xff]  ;;  %v6799_v12 = vld [vmem:[%s19982_s6 + $0xcb8] sm:$0xff]  ;;  %v12273_v4 = vpack.c.bf16 %v6821_v63, %v6820_v57 }
 0x6cb   : > { %12210 = vmatpush3.bf16.msra.mxu1 %v12209_v49  ;;  %v6727_v49 = vld [vmem:[%s19982_s6 + $0xa78] sm:$0xff]  ;;  %v6383_v18 = vld [vmem:[#allocation4 + $0x288] sm:$0x1f]  ;;  %v6822_v42 = vld [vmem:[%s19982_s6 + $0xd70] sm:$0xff] }
 0x6cc   : > { %7587 = vmatmul.mubr.f32.gmra.mrb[86].mxu0 %v6378_v1  ;;  %12212 = vmatprep.subr.bf16.mxu1 %v12211_v35  ;;  %v6793_v35 = vld [vmem:[%s19982_s6 + $0xc88] sm:$0xff]  ;;  %v12181_v13 = vpack.c.bf16 %v6727_v49, %v6726_v30  ;;  %v6823_v53 = vld [vmem:[%s19982_s6 + $0xd78] sm:$0xff]  ;;  %v6782_v5 = vld [vmem:[%s19982_s6 + $0xc30] sm:$0xff] }
 0x6cd   : > { %12162 = vmatpush3.bf16.msra.mxu0 %v12161_v59  ;;  %7736 = vmatprep.mubr.f32.mxu0 %v6323_v36  ;;  %v6832_v59 = vld [vmem:[%s19982_s6 + $0xdc0] sm:$0xff]  ;;  %v6817_v1 = vld [vmem:[%s19982_s6 + $0xd48] sm:$0xff]  ;;  %v12215_v56 = vpack.c.bf16 %v6793_v35, %v6792_v47  ;;  %v6783_v15 = vld [vmem:[%s19982_s6 + $0xc38] sm:$0xff] }
 0x6ce   : > { %12164 = vmatprep.subr.bf16.mxu0 %v12163_v50  ;;  %v12261_v50 = vpack.c.bf16 %v6815_v60, %v6814_v17  ;;  %v12263_v44 = vpack.c.bf16 %v6833_v38, %v6832_v59  ;;  %v6777_v36 = vld [vmem:[%s19982_s6 + $0xc08] sm:$0xff]  ;;  %v12265_v8 = vpack.c.bf16 %v6817_v1, %v6816_v29  ;;  %v12277_v17 = vpack.c.bf16 %v6823_v53, %v6822_v42  ;;  %v6802_v59 = vld [vmem:[%s19982_s6 + $0xcd0] sm:$0xff]  ;;  %v6803_v38 = vld [vmem:[%s19982_s6 + $0xcd8] sm:$0xff] }
 0x6cf   : > { %12214 = vmatpush3.bf16.msra.mxu1 %v12213_v10  ;;  %v6834_v10 = vld [vmem:[%s19982_s6 + $0xdd0] sm:$0xff]  ;;  %v12229_v60 = vpack.c.bf16 %v6783_v15, %v6782_v5  ;;  %v6785_v49 = vld [vmem:[%s19982_s6 + $0xc48] sm:$0xff]  ;;  %v12235_v35 = vpack.c.bf16 %v6803_v38, %v6802_v59  ;;  %v6804_v29 = vld [vmem:[%s19982_s6 + $0xce0] sm:$0xff] }
 0x6d0   : > { %12248 = vmatprep.subr.bf16.mxu1 %v12247_v58  ;;  %v6794_v58 = vld [vmem:[%s19982_s6 + $0xc90] sm:$0xff]  ;;  %v6805_v1 = vld [vmem:[%s19982_s6 + $0xce8] sm:$0xff] }
 0x6d1   : > { %12166 = vmatpush3.bf16.msra.mxu0 %v12165_v24  ;;  %v6835_v24 = vld [vmem:[%s19982_s6 + $0xdd8] sm:$0xff]  ;;  %v12219_v11 = vpack.c.bf16 %v6795_v43, %v6794_v58  ;;  %v6328_v47 = vld [vmem:[#allocation4 + $0xd0] sm:$0xff]  ;;  %v6841_v57 = vld [vmem:[%s19982_s6 + $0xe08] sm:$0xff] }
 0x6d2   : > { %12168 = vmatprep.subr.bf16.mxu0 %v12167_v0  ;;  %7817 = vmatmul.mubr.f32.vlgmr.msra.gmra.mrb[60].mxu1 %v6324_v54  ;;  %v12217_v0 = vpack.c.bf16 %v6777_v36, %v6776_v28  ;;  %v12267_v23 = vpack.c.bf16 %v6835_v24, %v6834_v10  ;;  %v6779_v54 = vld [vmem:[%s19982_s6 + $0xc18] sm:$0xff]  ;;  %v6358_v28 = vld [vmem:[#allocation4 + $0x1c0] sm:$0xff]  ;;  %v12239_v36 = vpack.c.bf16 %v6805_v1, %v6804_v29  ;;  %v6789_v24 = vld [vmem:[%s19982_s6 + $0xc68] sm:$0xff] }
 0x6d3   : > { %7821 = vmatprep.mubr.f32.mxu1 %v6355_v45  ;;  %12250 = vmatpush3.bf16.msra.mxu1 %v12249_v9  ;;  %v6836_v9 = vld [vmem:[%s19982_s6 + $0xde0] sm:$0xff]  ;;  %v12221_v31 = vpack.c.bf16 %v6779_v54, %v6778_v6  ;;  %v6389_v58 = vld [vmem:[#allocation4 + $0x2b8] sm:$0x1f]  ;;  %v6806_v43 = vld [vmem:[%s19982_s6 + $0xcf0] sm:$0xff] }
 0x6d4   : > { %12252 = vmatprep.subr.bf16.mxu1 %v12251_v32  ;;  %v6796_v32 = vld [vmem:[%s19982_s6 + $0xca0] sm:$0xff]  ;;  %v6790_v54 = vld [vmem:[%s19982_s6 + $0xc70] sm:$0xff]  ;;  %v6861_v42 = vld [vmem:[%s19982_s6 + $0xea8] sm:$0xff] }
 0x6d5   : > { %12170 = vmatpush3.bf16.msra.mxu0 %v12169_v61  ;;  %v6837_v61 = vld [vmem:[%s19982_s6 + $0xde8] sm:$0xff]  ;;  %v12223_v25 = vpack.c.bf16 %v6797_v33, %v6796_v32  ;;  %v6788_v10 = vld [vmem:[%s19982_s6 + $0xc60] sm:$0xff]  ;;  %v6858_v63 = vld [vmem:[%s19982_s6 + $0xe90] sm:$0xff] }
 0x6d6   : > { %12172 = vmatprep.subr.bf16.mxu0 %v12171_v34  ;;  %7822 = vmatmul.mubr.f32.gmra.mrb[62].mxu1 %v6354_v51  ;;  %v6352_v34 = vld [vmem:[#allocation4 + $0x190] sm:$0xff]  ;;  %v12271_v45 = vpack.c.bf16 %v6837_v61, %v6836_v9  ;;  %v6781_v51 = vld [vmem:[%s19982_s6 + $0xc28] sm:$0xff]  ;;  %v12241_v22 = vpack.c.bf16 %v6789_v24, %v6788_v10  ;;  %v6791_v9 = vld [vmem:[%s19982_s6 + $0xc78] sm:$0xff] }
 0x6d7   : > { %7826 = vmatprep.mubr.f32.mxu1 %v6385_v40  ;;  %12254 = vmatpush3.bf16.msra.mxu1 %v12253_v62  ;;  %v6838_v62 = vld [vmem:[%s19982_s6 + $0xdf0] sm:$0xff]  ;;  %v6856_v32 = vld [vmem:[%s19982_s6 + $0xe80] sm:$0xff]  ;;  %v6857_v33 = vld [vmem:[%s19982_s6 + $0xe88] sm:$0xff] }
 0x6d8   : > { %12256 = vmatprep.subr.bf16.mxu1 %v12255_v7  ;;  %v6798_v7 = vld [vmem:[%s19982_s6 + $0xcb0] sm:$0xff]  ;;  %v6387_v38 = vld [vmem:[#allocation4 + $0x2a8] sm:$0x1f]  ;;  %v6864_v29 = vld [vmem:[%s19982_s6 + $0xec0] sm:$0xff] }
 0x6d9   : > { %12174 = vmatpush3.bf16.msra.mxu0 %v12173_v14  ;;  %v6839_v14 = vld [vmem:[%s19982_s6 + $0xdf8] sm:$0xff]  ;;  %v12227_v40 = vpack.c.bf16 %v6799_v12, %v6798_v7  ;;  %v6842_v7 = vld [vmem:[%s19982_s6 + $0xe10] sm:$0xff]  ;;  %v6865_v1 = vld [vmem:[%s19982_s6 + $0xec8] sm:$0xff] }
 0x6da   : > { %12176 = vmatprep.subr.bf16.mxu0 %v12175_v39  ;;  %7827 = vmatmul.mubr.f32.gmra.mrb[64].mxu1 %v6384_v16  ;;  %v12225_v39 = vpack.c.bf16 %v6781_v51, %v6780_v52  ;;  %v12275_v48 = vpack.c.bf16 %v6839_v14, %v6838_v62  ;;  %v6382_v16 = vld [vmem:[#allocation4 + $0x280] sm:$0x1f]  ;;  %v6843_v12 = vld [vmem:[%s19982_s6 + $0xe18] sm:$0xff]  ;;  %v6849_v24 = vld [vmem:[%s19982_s6 + $0xe48] sm:$0xff] }
 0x6db   : > { %12258 = vmatpush3.bf16.msra.mxu1 %v12257_v55  ;;  %7976 = vmatprep.mubr.f32.mxu1 %v6329_v21  ;;  %v6800_v55 = vld [vmem:[%s19982_s6 + $0xcc0] sm:$0xff] }
 0x6dc   : > { %12260 = vmatprep.subr.bf16.mxu1 %v12259_v3  ;;  %v6327_v3 = vld [vmem:[#allocation4 + $0xc8] sm:$0xff]  ;;  %v6848_v10 = vld [vmem:[%s19982_s6 + $0xe40] sm:$0xff] }
 0x6dd   : > { %12178 = vmatpush3.bf16.msra.mxu0 %v12177_v2  ;;  %v6801_v2 = vld [vmem:[%s19982_s6 + $0xcc8] sm:$0xff] }
 0x6de   : > { %12180 = vmatprep.subr.bf16.mxu0 %v12179_v27  ;;  %v12231_v30 = vpack.c.bf16 %v6801_v2, %v6800_v55  ;;  %v6784_v27 = vld [vmem:[%s19982_s6 + $0xc40] sm:$0xff] }
 0x6df   : > { %12262 = vmatpush3.bf16.msra.mxu1 %v12261_v50  ;;  %v12233_v21 = vpack.c.bf16 %v6785_v49, %v6784_v27  ;;  %v6786_v50 = vld [vmem:[%s19982_s6 + $0xc50] sm:$0xff]  ;;  %v6863_v49 = vld [vmem:[%s19982_s6 + $0xeb8] sm:$0xff] }
 0x6e0   : > { %12264 = vmatprep.subr.bf16.mxu1 %v12263_v44  ;;  %v6359_v44 = vld [vmem:[#allocation4 + $0x1c8] sm:$0xff]  ;;  %v6862_v27 = vld [vmem:[%s19982_s6 + $0xeb0] sm:$0xff] }
 0x6e1   : > { %12182 = vmatpush3.bf16.msra.mxu0 %v12181_v13  ;;  %v6787_v13 = vld [vmem:[%s19982_s6 + $0xc58] sm:$0xff] }
 0x6e2   : > { %12216 = vmatprep.subr.bf16.mxu0 %v12215_v56  ;;  %v12237_v56 = vpack.c.bf16 %v6787_v13, %v6786_v50  ;;  %v6846_v50 = vld [vmem:[%s19982_s6 + $0xe30] sm:$0xff]  ;;  %v6847_v13 = vld [vmem:[%s19982_s6 + $0xe38] sm:$0xff] }
 0x6e3   : > { %12266 = vmatpush3.bf16.msra.mxu1 %v12265_v8  ;;  %v6807_v8 = vld [vmem:[%s19982_s6 + $0xcf8] sm:$0xff] }
 0x6e4   : > { %7737 = vmatmul.mubr.f32.vlgmr.msra.gmra.mrb[88].mxu0 %v6322_v26  ;;  %12268 = vmatprep.subr.bf16.mxu1 %v12267_v23  ;;  %v12243_v6 = vpack.c.bf16 %v6807_v8, %v6806_v43  ;;  %v6867_v43 = vld [vmem:[%s19982_s6 + $0xed8] sm:$0xff]  ;;  %v12297_v8 = vpack.c.bf16 %v6849_v24, %v6848_v10 }
 0x6e5   : > { %7741 = vmatprep.mubr.f32.mxu0 %v6353_v46  ;;  %12218 = vmatpush3.bf16.msra.mxu0 %v12217_v0 }
 0x6e6   : > { %12220 = vmatprep.subr.bf16.mxu0 %v12219_v11  ;;  %v6388_v11 = vld [vmem:[#allocation4 + $0x2b0] sm:$0x1f] }
 0x6e7   : > { %12270 = vmatpush3.bf16.msra.mxu1 %v12269_v41  ;;  %v12245_v41 = vpack.c.bf16 %v6791_v9, %v6790_v54  ;;  %v6852_v9 = vld [vmem:[%s19982_s6 + $0xe60] sm:$0xff] }
 0x6e8   : > { %7742 = vmatmul.mubr.f32.gmra.mrb[90].mxu0 %v6352_v34  ;;  %12272 = vmatprep.subr.bf16.mxu1 %v12271_v45  ;;  %v12279_v34 = vpack.c.bf16 %v6857_v33, %v6856_v32  ;;  %v6859_v45 = vld [vmem:[%s19982_s6 + $0xe98] sm:$0xff]  ;;  %v6870_v33 = vld [vmem:[%s19982_s6 + $0xef0] sm:$0xff] }
 0x6e9   : > { %7746 = vmatprep.mubr.f32.mxu0 %v6383_v18  ;;  %12222 = vmatpush3.bf16.msra.mxu0 %v12221_v31  ;;  %v6840_v31 = vld [vmem:[%s19982_s6 + $0xe00] sm:$0xff]  ;;  %v12283_v14 = vpack.c.bf16 %v6859_v45, %v6858_v63  ;;  %v6854_v45 = vld [vmem:[%s19982_s6 + $0xe70] sm:$0xff] }
 0x6ea   : > { %12224 = vmatprep.subr.bf16.mxu0 %v12223_v25  ;;  %v12281_v51 = vpack.c.bf16 %v6841_v57, %v6840_v31 }
 0x6eb   : > { %12274 = vmatpush3.bf16.msra.mxu1 %v12273_v4  ;;  %v6326_v4 = vld [vmem:[#allocation4 + $0xc0] sm:$0xff] }
 0x6ec   : > { %7747 = vmatmul.mubr.f32.gmra.mrb[92].mxu0 %v6382_v16  ;;  %12276 = vmatprep.subr.bf16.mxu1 %v12275_v48  ;;  %v12285_v16 = vpack.c.bf16 %v6843_v12, %v6842_v7 }
 0x6ed   : > { %12226 = vmatpush3.bf16.msra.mxu0 %v12225_v39  ;;  %7896 = vmatprep.mubr.f32.mxu0 %v6327_v3  ;;  %v6860_v39 = vld [vmem:[%s19982_s6 + $0xea0] sm:$0xff] }
 0x6ee   : > { %12228 = vmatprep.subr.bf16.mxu0 %v12227_v40  ;;  %v6357_v40 = vld [vmem:[#allocation4 + $0x1b8] sm:$0xff]  ;;  %v12287_v2 = vpack.c.bf16 %v6861_v42, %v6860_v39  ;;  %v6844_v3 = vld [vmem:[%s19982_s6 + $0xe20] sm:$0xff] }
 0x6ef   : > { %12278 = vmatpush3.bf16.msra.mxu1 %v12277_v17  ;;  %v6845_v17 = vld [vmem:[%s19982_s6 + $0xe28] sm:$0xff] }
 0x6f0   : > { %12311 = vmatprep.subr.bf16.mxu1 %v12905_v37 }
 0x6f1   : > { %12230 = vmatpush3.bf16.msra.mxu0 %v12229_v60 }
 0x6f2   : > { %12232 = vmatprep.subr.bf16.mxu0 %v12231_v30  ;;  %7977 = vmatmul.mubr.f32.vlgmr.msra.gmra.mrb[66].mxu1 %v6328_v47  ;;  %v6356_v30 = vld [vmem:[#allocation4 + $0x1b0] sm:$0xff]  ;;  %v12289_v47 = vpack.c.bf16 %v6845_v17, %v6844_v3 }
 0x6f3   : > { %7981 = vmatprep.mubr.f32.mxu1 %v6359_v44  ;;  %v6386_v44 = vld [vmem:[#allocation4 + $0x2a0] sm:$0x1f] }
 0x6f5   : > { %12234 = vmatpush3.bf16.msra.mxu0 %v12233_v21 }
 0x6f6   : > { %12236 = vmatprep.subr.bf16.mxu0 %v12235_v35  ;;  %7982 = vmatmul.mubr.f32.gmra.mrb[68].mxu1 %v6358_v28  ;;  %v9796_v26 = vpop.f32.mrb[52].mxu0  ;;  %v12291_v35 = vpack.c.bf16 %v6863_v49, %v6862_v27  ;;  %v12293_v28 = vpack.c.bf16 %v6847_v13, %v6846_v50 }
 0x6f7   : > { %7986 = vmatprep.mubr.f32.mxu1 %v6389_v58  ;;  %v9797_v0 = vpop.f32.mrb[53].mxu0  ;;  %v9919_v23 = vpop.f32.mrb[36].mxu1  ;;  %v6866_v58 = vld [vmem:[%s19982_s6 + $0xed0] sm:$0xff] }
 0x6f8   : > { %v19542_v20 = vadd.f32 %v9797_v0, %v9796_v26  ;;  %v9920_v61 = vpop.f32.mrb[37].mxu1  ;;  %v12299_v26 = vpack.c.bf16 %v6867_v43, %v6866_v58  ;;  %v6850_v0 = vld [vmem:[%s19982_s6 + $0xe50] sm:$0xff] }
 0x6f9   : > { %12238 = vmatpush3.bf16.msra.mxu0 %v12237_v56  ;;  %v19556_v46 = vadd.f32 %v9920_v61, %v9919_v23  ;;  %v6331_v56 = vld [vmem:[#allocation4 + $0xe8] sm:$0xff]  ;;  %v6868_v23 = vld [vmem:[%s19982_s6 + $0xee0] sm:$0xff] }
 0x6fa   : > { %12240 = vmatprep.subr.bf16.mxu0 %v12239_v36  ;;  %7987 = vmatmul.mubr.f32.gmra.mrb[70].mxu1 %v6388_v11  ;;  %v12295_v36 = vpack.c.bf16 %v6865_v1, %v6864_v29  ;;  %v6869_v11 = vld [vmem:[%s19982_s6 + $0xee8] sm:$0xff] }
 0x6fb   : > { %10601 = vmatprep.mubr.msk.f32.mxu1 %vm12906_vm4, %v17831_v19  ;;  %v12303_v54 = vpack.c.bf16 %v6869_v11, %v6868_v23  ;;  %v6853_v61 = vld [vmem:[%s19982_s6 + $0xe68] sm:$0xff] }
 0x6fc   : > { %v12305_v57 = vpack.c.bf16 %v6853_v61, %v6852_v9 }
 0x6fd   : > { %12242 = vmatpush3.bf16.msra.mxu0 %v12241_v22  ;;  %v6851_v22 = vld [vmem:[%s19982_s6 + $0xe58] sm:$0xff] }
 0x6fe   : > { %12244 = vmatprep.subr.bf16.mxu0 %v12243_v6  ;;  %v12301_v6 = vpack.c.bf16 %v6851_v22, %v6850_v0 }
 0x6ff   : > { %v9799_v25 = vpop.f32.mrb[54].mxu0 }
 0x700   : > { %v9800_v52 = vpop.f32.mrb[55].mxu0 }
 0x701   : > { %12246 = vmatpush3.bf16.msra.mxu0 %v12245_v41  ;;  %v19572_v62 = vadd.f32 %v9800_v52, %v9799_v25  ;;  %v6871_v41 = vld [vmem:[%s19982_s6 + $0xef8] sm:$0xff] }
 0x702   : > { %12280 = vmatprep.subr.bf16.mxu0 %v12279_v34  ;;  %v9922_v18 = vpop.f32.mrb[38].mxu1  ;;  %v12307_v63 = vpack.c.bf16 %v6871_v41, %v6870_v33  ;;  %v6855_v25 = vld [vmem:[%s19982_s6 + $0xe78] sm:$0xff] }
 0x703   : > { %v9802_v53 = vpop.f32.mrb[56].mxu0  ;;  %v9923_v48 = vpop.f32.mrb[39].mxu1  ;;  %v12309_v12 = vpack.c.bf16 %v6855_v25, %v6854_v45 }
 0x704   : > { %7897 = vmatmul.mubr.f32.vlgmr.msra.gmra.mrb[94].mxu0 %v6326_v4  ;;  %v9803_v5 = vpop.f32.mrb[57].mxu0  ;;  %v19586_v15 = vadd.f32 %v9923_v48, %v9922_v18 }
 0x705   : > { %7901 = vmatprep.mubr.f32.mxu0 %v6357_v40  ;;  %12282 = vmatpush3.bf16.msra.mxu0 %v12281_v51  ;;  %v19588_v55 = vadd.f32 %v9803_v5, %v9802_v53  ;;  %v6330_v53 = vld [vmem:[#allocation4 + $0xe0] sm:$0xff]  ;;  %v6361_v40 = vld [vmem:[#allocation4 + $0x1d8] sm:$0xff]  ;;  %v6391_v5 = vld [vmem:[#allocation4 + $0x2c8] sm:$0x1f] }
 0x706   : > { %12284 = vmatprep.subr.bf16.mxu0 %v12283_v14  ;;  %v9925_v60 = vpop.f32.mrb[40].mxu1 }
 0x707   : > { %v9926_v59 = vpop.f32.mrb[41].mxu1 }
 0x708   : > { %7902 = vmatmul.mubr.f32.gmra.mrb[96].mxu0 %v6356_v30  ;;  %v19602_v21 = vadd.f32 %v9926_v59, %v9925_v60 }
 0x709   : > { %7906 = vmatprep.mubr.f32.mxu0 %v6387_v38  ;;  %12286 = vmatpush3.bf16.msra.mxu0 %v12285_v16  ;;  %v6390_v16 = vld [vmem:[#allocation4 + $0x2c0] sm:$0x1f] }
 0x70a   : > { %12288 = vmatprep.subr.bf16.mxu0 %v12287_v2 }
 0x70c   : > { %7907 = vmatmul.mubr.f32.gmra.mrb[98].mxu0 %v6386_v44 }
 0x70d   : > { %12290 = vmatpush3.bf16.msra.mxu0 %v12289_v47  ;;  %8056 = vmatprep.mubr.f32.mxu0 %v6331_v56 }
 0x70e   : > { %12292 = vmatprep.subr.bf16.mxu0 %v12291_v35 }
 0x711   : > { %12294 = vmatpush3.bf16.msra.mxu0 %v12293_v28 }
 0x712   : > { %12296 = vmatprep.subr.bf16.mxu0 %v12295_v36 }
 0x715   : > { %12298 = vmatpush3.bf16.msra.mxu0 %v12297_v8 }
 0x716   : > { %12300 = vmatprep.subr.bf16.mxu0 %v12299_v26 }
 0x717   : > { %v9837_v32 = vpop.f32.mrb[58].mxu0 }
 0x718   : > { %v9838_v34 = vpop.f32.mrb[59].mxu0 }
 0x719   : > { %v9839_v31 = vadd.f32 %v9838_v34, %v9837_v32  ;;  %12302 = vmatpush3.bf16.msra.mxu0 %v12301_v6 }
 0x71a   : > { %12304 = vmatprep.subr.bf16.mxu0 %v12303_v54 }
 0x71b   : > { %v7019_v52 = vadd.f32 %v9839_v31, %v19542_v20  ;;  %v9840_v51 = vpop.f32.mrb[60].mxu0  ;;  %v6360_v20 = vld [vmem:[#allocation4 + $0x1d0] sm:$0xff] }
 0x71c   : > { %v9841_v14 = vpop.f32.mrb[61].mxu0 }
 0x71d   : > { %v9842_v7 = vadd.f32 %v9841_v14, %v9840_v51  ;;  %12306 = vmatpush3.bf16.msra.mxu0 %v12305_v57 }
 0x71e   : > { %12308 = vmatprep.subr.bf16.mxu0 %v12307_v63 }
 0x71f   : > { %v7024_v18 = vadd.f32 %v9842_v7, %v19572_v62  ;;  %v9843_v4 = vpop.f32.mrb[62].mxu0 }
 0x720   : > { %v9844_v39 = vpop.f32.mrb[63].mxu0 }
 0x721   : > { %12310 = vmatpush3.bf16.msra.mxu0 %v12309_v12  ;;  %v9845_v42 = vadd.f32 %v9844_v39, %v9843_v4 }
 0x722   : > { %12338 = vmatprep.subr.bf16.mxu0 %v12905_v37 }
 0x723   : > { %v7029_v48 = vadd.f32 %v9845_v42, %v19588_v55 }
 0x724   : > { %8057 = vmatmul.mubr.f32.vlgmr.msra.gmra.mrb[100].mxu0 %v6330_v53 }
 0x725   : > { %8061 = vmatprep.mubr.f32.mxu0 %v6361_v40 }
 0x728   : > { %8062 = vmatmul.mubr.f32.gmra.mrb[102].mxu0 %v6360_v20 }
 0x729   : > { %8066 = vmatprep.mubr.f32.mxu0 %v6391_v5 }
 0x72c   : > { %8067 = vmatmul.mubr.f32.gmra.mrb[104].mxu0 %v6390_v16 }
 0x72d   : > { %10660 = vmatprep.mubr.msk.f32.mxu0 %vm12906_vm4, %v17831_v19 }
 0x737   : > { %v9878_v62 = vpop.f32.mrb[64].mxu0 }
 0x738   : > { %v9879_v2 = vpop.f32.mrb[65].mxu0 }
 0x739   : > { %v9880_v3 = vadd.f32 %v9879_v2, %v9878_v62 }
 0x73b   : > { %v7099_v17 = vadd.f32 %v9880_v3, %v7019_v52  ;;  %v9881_v60 = vpop.f32.mrb[66].mxu0 }
 0x73c   : > { %v9882_v30 = vpop.f32.mrb[67].mxu0 }
 0x73d   : > { %v9883_v27 = vadd.f32 %v9882_v30, %v9881_v60  ;;  %v7179_v55 = vadd.f32 %v19556_v46, %v7099_v17 }
 0x73f   : > { %v7104_v49 = vadd.f32 %v9883_v27, %v7024_v18  ;;  %v9884_v59 = vpop.f32.mrb[68].mxu0 }
 0x740   : > { %v9885_v38 = vpop.f32.mrb[69].mxu0 }
 0x741   : > { %v9886_v47 = vadd.f32 %v9885_v38, %v9884_v59  ;;  %v7184_v35 = vadd.f32 %v19586_v15, %v7104_v49 }
 0x743   : > { %v7109_v50 = vadd.f32 %v9886_v47, %v7029_v48  ;;  %v10001_v13 = vpop.f32.mrb[42].mxu1 }
 0x744   : > { %v10002_v29 = vpop.f32.mrb[43].mxu1 }
 0x745   : > { %v7189_v44 = vadd.f32 %v19602_v21, %v7109_v50  ;;  %v10003_v1 = vadd.f32 %v10002_v29, %v10001_v13 }
 0x74f   : > { %v10004_v56 = vpop.f32.mrb[44].mxu1 }
 0x750   : > { %v10005_v28 = vpop.f32.mrb[45].mxu1 }
 0x751   : > { %v10006_v36 = vadd.f32 %v10005_v28, %v10004_v56 }
 0x753   : > { %v10007_v10 = vpop.f32.mrb[46].mxu1 }
 0x754   : > { %v10008_v24 = vpop.f32.mrb[47].mxu1 }
 0x755   : > { %v10009_v58 = vadd.f32 %v10008_v24, %v10007_v10 }
 0x757   : > { %v9960_v43 = vpop.f32.mrb[70].mxu0 }
 0x758   : > { %v9961_v46 = vpop.f32.mrb[71].mxu0 }
 0x759   : > { %v9962_v8 = vadd.f32 %v9961_v46, %v9960_v43 }
 0x75b   : > { %v7259_v26 = vadd.f32 %v9962_v8, %v7179_v55  ;;  %v9963_v0 = vpop.f32.mrb[72].mxu0 }
 0x75c   : > { %v9964_v22 = vpop.f32.mrb[73].mxu0 }
 0x75d   : > { %v9965_v23 = vadd.f32 %v9964_v22, %v9963_v0  ;;  %v7339_v15 = vadd.f32 %v10003_v1, %v7259_v26 }
 0x75f   : > { %v7264_v11 = vadd.f32 %v9965_v23, %v7184_v35  ;;  %v9966_v6 = vpop.f32.mrb[74].mxu0 }
 0x760   : > { %v9967_v54 = vpop.f32.mrb[75].mxu0 }
 0x761   : > { %v9968_v21 = vadd.f32 %v9967_v54, %v9966_v6  ;;  %v7344_v9 = vadd.f32 %v10006_v36, %v7264_v11 }
 0x763   : > { %v7269_v61 = vadd.f32 %v9968_v21, %v7189_v44 }
 0x764   : > { %v10083_v33 = vpop.f32.mrb[48].mxu1 }
 0x765   : > { %v7349_v32 = vadd.f32 %v10009_v58, %v7269_v61  ;;  %v10084_v41 = vpop.f32.mrb[49].mxu1 }
 0x766   : > { %v10085_v34 = vadd.f32 %v10084_v41, %v10083_v33 }
 0x768   : > { %v10086_v31 = vpop.f32.mrb[50].mxu1 }
 0x769   : > { %v10087_v57 = vpop.f32.mrb[51].mxu1 }
 0x76a   : > { %v10088_v63 = vadd.f32 %v10087_v57, %v10086_v31 }
 0x76c   : > { %v10089_v45 = vpop.f32.mrb[52].mxu1 }
 0x76d   : > { %v10090_v25 = vpop.f32.mrb[53].mxu1 }
 0x76e   : > { %v10091_v52 = vadd.f32 %v10090_v25, %v10089_v45 }
 0x777   : > { %v10042_v51 = vpop.f32.mrb[76].mxu0 }
 0x778   : > { %v10043_v14 = vpop.f32.mrb[77].mxu0 }
 0x779   : > { %v10044_v7 = vadd.f32 %v10043_v14, %v10042_v51 }
 0x77b   : > { %v7419_v12 = vadd.f32 %v10044_v7, %v7339_v15  ;;  %v10045_v18 = vpop.f32.mrb[78].mxu0 }
 0x77c   : > { %v10046_v4 = vpop.f32.mrb[79].mxu0 }
 0x77d   : > { %v10047_v39 = vadd.f32 %v10046_v4, %v10045_v18  ;;  %v7499_v42 = vadd.f32 %v10085_v34, %v7419_v12 }
 0x77f   : > { %v7424_v53 = vadd.f32 %v10047_v39, %v7344_v9  ;;  %v10048_v48 = vpop.f32.mrb[80].mxu0 }
 0x780   : > { %v10049_v40 = vpop.f32.mrb[81].mxu0 }
 0x781   : > { %v10050_v20 = vadd.f32 %v10049_v40, %v10048_v48  ;;  %v7504_v5 = vadd.f32 %v10088_v63, %v7424_v53 }
 0x783   : > { %v7429_v16 = vadd.f32 %v10050_v20, %v7349_v32 }
 0x785   : > { %v7509_v62 = vadd.f32 %v10091_v52, %v7429_v16  ;;  %v10165_v2 = vpop.f32.mrb[54].mxu1 }
 0x786   : > { %v10166_v3 = vpop.f32.mrb[55].mxu1 }
 0x787   : > { %v10167_v17 = vadd.f32 %v10166_v3, %v10165_v2 }
 0x789   : > { %v10168_v60 = vpop.f32.mrb[56].mxu1 }
 0x78a   : > { %v10169_v30 = vpop.f32.mrb[57].mxu1 }
 0x78b   : > { %v10170_v27 = vadd.f32 %v10169_v30, %v10168_v60 }
 0x78d   : > { %v10171_v55 = vpop.f32.mrb[58].mxu1 }
 0x78e   : > { %v10172_v49 = vpop.f32.mrb[59].mxu1 }
 0x78f   : > { %v10173_v59 = vadd.f32 %v10172_v49, %v10171_v55 }
 0x797   : > { %v10124_v38 = vpop.f32.mrb[82].mxu0 }
 0x798   : > { %v10125_v47 = vpop.f32.mrb[83].mxu0 }
 0x799   : > { %v10126_v35 = vadd.f32 %v10125_v47, %v10124_v38 }
 0x79b   : > { %v7579_v50 = vadd.f32 %v10126_v35, %v7499_v42  ;;  %v10127_v13 = vpop.f32.mrb[84].mxu0 }
 0x79c   : > { %v10128_v44 = vpop.f32.mrb[85].mxu0 }
 0x79d   : > { %v10129_v29 = vadd.f32 %v10128_v44, %v10127_v13  ;;  %v7659_v1 = vadd.f32 %v10167_v17, %v7579_v50 }
 0x79f   : > { %v7584_v56 = vadd.f32 %v10129_v29, %v7504_v5  ;;  %v10130_v28 = vpop.f32.mrb[86].mxu0 }
 0x7a0   : > { %v10131_v36 = vpop.f32.mrb[87].mxu0 }
 0x7a1   : > { %v10132_v10 = vadd.f32 %v10131_v36, %v10130_v28  ;;  %v7664_v24 = vadd.f32 %v10170_v27, %v7584_v56 }
 0x7a3   : > { %v7589_v58 = vadd.f32 %v10132_v10, %v7509_v62 }
 0x7a5   : > { %v7669_v43 = vadd.f32 %v10173_v59, %v7589_v58  ;;  %v10247_v46 = vpop.f32.mrb[60].mxu1 }
 0x7a6   : > { %v10248_v8 = vpop.f32.mrb[61].mxu1 }
 0x7a7   : > { %v10249_v26 = vadd.f32 %v10248_v8, %v10247_v46  ;;  %v9100_v46 = vld [vmem:[%s19984_s8] ss:$0 sm:$0xff] }
 0x7a9   : > { %v10250_v0 = vpop.f32.mrb[62].mxu1 }
 0x7aa   : > { %v10251_v22 = vpop.f32.mrb[63].mxu1 }
 0x7ab   : > { %v10252_v23 = vadd.f32 %v10251_v22, %v10250_v0  ;;  %v8233_v22 = vld [vmem:[%s19986_s10] sm:$0xff] }
 0x7ad   : > { %v10253_v15 = vpop.f32.mrb[64].mxu1 }
 0x7ae   : > { %v10254_v11 = vpop.f32.mrb[65].mxu1 }
 0x7af   : > { %v10255_v6 = vadd.f32 %v10254_v11, %v10253_v15  ;;  %v8158_v15 = vld [vmem:[%s19985_s9] sm:$0xf] }
 0x7b7   : > { %v10206_v54 = vpop.f32.mrb[88].mxu0 }
 0x7b8   : > { %v10207_v21 = vpop.f32.mrb[89].mxu0 }
 0x7b9   : > { %v10208_v9 = vadd.f32 %v10207_v21, %v10206_v54  ;;  %v8235_v54 = vld [vmem:[%s19986_s10 + $0x10] sm:$0xff]  ;;  %v8236_v21 = vld [vmem:[%s19986_s10 + $0x18] sm:$0xff] }
 0x7bb   : > { %v7739_v61 = vadd.f32 %v10208_v9, %v7659_v1  ;;  %v10209_v32 = vpop.f32.mrb[90].mxu0  ;;  %v12318_v9 = vpack.c.bf16 %v8236_v21, %v8235_v54  ;;  %v9115_v54 = vld [vmem:[%s19987_s11 + $0x88] sm:$0xff] }
 0x7bc   : > { %v10210_v33 = vpop.f32.mrb[91].mxu0 }
 0x7bd   : > { %v10211_v41 = vadd.f32 %v10210_v33, %v10209_v32  ;;  %v7819_v34 = vadd.f32 %v10249_v26, %v7739_v61  ;;  %v8237_v61 = vld [vmem:[%s19986_s10 + $0x20] sm:$0xff]  ;;  %v8238_v32 = vld [vmem:[%s19986_s10 + $0x28] sm:$0xff] }
 0x7be   : > { %v12321_v33 = vpack.c.bf16 %v8238_v32, %v8237_v61  ;;  %v9116_v61 = vld [vmem:[%s19987_s11 + $0x90] sm:$0xff]  ;;  %v9117_v32 = vld [vmem:[%s19987_s11 + $0x98] sm:$0xff] }
 0x7bf   : > { %v7744_v31 = vadd.f32 %v10211_v41, %v7664_v24  ;;  %v10212_v57 = vpop.f32.mrb[92].mxu0  ;;  %v8239_v41 = vld [vmem:[%s19986_s10 + $0x30] sm:$0xff] }
 0x7c0   : > { %v10213_v63 = vpop.f32.mrb[93].mxu0 }
 0x7c1   : > { %v10214_v45 = vadd.f32 %v10213_v63, %v10212_v57  ;;  %v7824_v25 = vadd.f32 %v10252_v23, %v7744_v31  ;;  %v8234_v23 = vld [vmem:[%s19986_s10 + $0x8] sm:$0xff]  ;;  %v8241_v57 = vld [vmem:[%s19986_s10 + $0x40] sm:$0xff] }
 0x7c2   : > { %v12315_v11 = vpack.c.bf16 %v8234_v23, %v8233_v22  ;;  %v8242_v63 = vld [vmem:[%s19986_s10 + $0x48] sm:$0xff]  ;;  %v9111_v23 = vld [vmem:[%s19987_s11 + $0x70] sm:$0xff] }
 0x7c3   : > { %v7749_v52 = vadd.f32 %v10214_v45, %v7669_v43  ;;  %v8072_v43 = vld [vmem:[%s19983_s7] sm:$0xff]  ;;  %v12327_v45 = vpack.c.bf16 %v8242_v63, %v8241_v57  ;;  %v9120_v57 = vld [vmem:[%s19987_s11 + $0xb0] sm:$0xff]  ;;  %v9121_v63 = vld [vmem:[%s19987_s11 + $0xb8] sm:$0xff] }
 0x7c5   : > { %v7829_v51 = vadd.f32 %v10255_v6, %v7749_v52  ;;  %v10329_v14 = vpop.f32.mrb[66].mxu1  ;;  %v8244_v52 = vld [vmem:[%s19986_s10 + $0x58] sm:$0xff] }
 0x7c6   : > { %v10330_v7 = vpop.f32.mrb[67].mxu1 }
 0x7c7   : > { %v10331_v12 = vadd.f32 %v10330_v7, %v10329_v14  ;;  %v8245_v14 = vld [vmem:[%s19986_s10 + $0x60] sm:$0xff]  ;;  %v8246_v7 = vld [vmem:[%s19986_s10 + $0x68] sm:$0xff] }
 0x7c9   : > { %v10332_v18 = vpop.f32.mrb[68].mxu1 }
 0x7ca   : > { %v10333_v4 = vpop.f32.mrb[69].mxu1 }
 0x7cb   : > { %v10334_v39 = vadd.f32 %v10333_v4, %v10332_v18  ;;  %v8247_v18 = vld [vmem:[%s19986_s10 + $0x70] sm:$0xff]  ;;  %v8248_v4 = vld [vmem:[%s19986_s10 + $0x78] sm:$0xff] }
 0x7cd   : > { %v10335_v42 = vpop.f32.mrb[70].mxu1 }
 0x7ce   : > { %v10336_v53 = vpop.f32.mrb[71].mxu1 }
 0x7cf   : > { %v10337_v48 = vadd.f32 %v10336_v53, %v10335_v42  ;;  %v8320_v42 = vld [vmem:[%s19987_s11] sm:$0xff]  ;;  %v8321_v53 = vld [vmem:[%s19987_s11 + $0x8] sm:$0xff] }
 0x7d7   : > { %v10288_v40 = vpop.f32.mrb[94].mxu0 }
 0x7d8   : > { %v10289_v20 = vpop.f32.mrb[95].mxu0 }
 0x7d9   : > { %v10290_v5 = vadd.f32 %v10289_v20, %v10288_v40  ;;  %v12339_v40 = vpack.c.bf16 %v8321_v53, %v8320_v42  ;;  %v8323_v20 = vld [vmem:[%s19987_s11 + $0x18] sm:$0xff]  ;;  %v9129_v53 = vld [vmem:[%s19987_s11 + $0xf0] sm:$0xff] }
 0x7db   : > { %v7899_v16 = vadd.f32 %v10290_v5, %v7819_v34  ;;  %v10291_v62 = vpop.f32.mrb[96].mxu0  ;;  %v8240_v34 = vld [vmem:[%s19986_s10 + $0x38] sm:$0xff]  ;;  %12340 = vmatpush3.bf16.msra.mxu0 %v12339_v40 }
 0x7dc   : > { %v10292_v2 = vpop.f32.mrb[97].mxu0  ;;  %v12324_v31 = vpack.c.bf16 %v8240_v34, %v8239_v41  ;;  %12341 = vmatprep.subr.bf16.mxu0 %v12905_v37  ;;  %v9118_v41 = vld [vmem:[%s19987_s11 + $0xa0] sm:$0xff]  ;;  %v9119_v34 = vld [vmem:[%s19987_s11 + $0xa8] sm:$0xff] }
 0x7dd   : > { %v10293_v3 = vadd.f32 %v10292_v2, %v10291_v62  ;;  %v7979_v17 = vadd.f32 %v10331_v12, %v7899_v16  ;;  %v12333_v12 = vpack.c.bf16 %v8246_v7, %v8245_v14  ;;  %v8324_v16 = vld [vmem:[%s19987_s11 + $0x20] sm:$0xff]  ;;  %v8325_v62 = vld [vmem:[%s19987_s11 + $0x28] sm:$0xff]  ;;  %v9125_v7 = vld [vmem:[%s19987_s11 + $0xd0] sm:$0xff] }
 0x7de   : > { %v12345_v2 = vpack.c.bf16 %v8325_v62, %v8324_v16  ;;  %v8662_v16 = vld [vmem:[%s19989_s13 + $0x48] sm:$0xff]  ;;  %v8663_v62 = vld [vmem:[%s19989_s13 + $0x50] sm:$0xff] }
 0x7df   : > { %v7904_v60 = vadd.f32 %v10293_v3, %v7824_v25  ;;  %v10294_v30 = vpop.f32.mrb[98].mxu0  ;;  %v8243_v25 = vld [vmem:[%s19986_s10 + $0x50] sm:$0xff] }
 0x7e0   : > { %v10295_v27 = vpop.f32.mrb[99].mxu0  ;;  %v8326_v3 = vld [vmem:[%s19987_s11 + $0x30] sm:$0xff] }
 0x7e1   : > { %v10296_v55 = vadd.f32 %v10295_v27, %v10294_v30  ;;  %v7984_v49 = vadd.f32 %v10334_v39, %v7904_v60  ;;  %v12336_v39 = vpack.c.bf16 %v8248_v4, %v8247_v18  ;;  %v9127_v4 = vld [vmem:[%s19987_s11 + $0xe0] sm:$0xff] }
 0x7e3   : > { %v7909_v59 = vadd.f32 %v10296_v55, %v7829_v51  ;;  %v12330_v51 = vpack.c.bf16 %v8244_v52, %v8243_v25  ;;  %v8653_v55 = vld [vmem:[%s19989_s13] sm:$0xff]  ;;  %v9124_v52 = vld [vmem:[%s19987_s11 + $0xc8] sm:$0xff] }
 0x7e4   : > { %v9123_v25 = vld [vmem:[%s19987_s11 + $0xc0] sm:$0xff] }
 0x7e5   : > { %v7989_v38 = vadd.f32 %v10337_v48, %v7909_v59  ;;  %v8322_v48 = vld [vmem:[%s19987_s11 + $0x10] sm:$0xff] }
 0x7e6   : > { %v12342_v5 = vpack.c.bf16 %v8323_v20, %v8322_v48  ;;  %v8655_v59 = vld [vmem:[%s19989_s13 + $0x10] sm:$0xff]  ;;  %v9130_v48 = vld [vmem:[%s19987_s11 + $0xf8] sm:$0xff] }
 0x7e7   : > { %v12384_v40 = vpack.c.bf16 %v9130_v48, %v9129_v53 }
 0x7e8   : > { %12343 = vmatpush3.bf16.msra.mxu0 %v12342_v5  ;;  %v8661_v5 = vld [vmem:[%s19989_s13 + $0x40] sm:$0xff] }
 0x7e9   : > { %12344 = vmatprep.subr.bf16.mxu0 %v12905_v37 }
 0x7ec   : > { %12346 = vmatpush3.bf16.msra.mxu0 %v12345_v2  ;;  %v12399_v2 = vpack.c.bf16 %v8662_v16, %v8661_v5 }
 0x7ed   : > { %12347 = vmatprep.subr.bf16.mxu0 %v12905_v37 }
 0x7f7   : > { %v10370_v47 = vpop.f32.mrb[100].mxu0 }
 0x7f8   : > { %v10371_v35 = vpop.f32.mrb[101].mxu0 }
 0x7f9   : > { %v10372_v50 = vadd.f32 %v10371_v35, %v10370_v47  ;;  %v8656_v47 = vld [vmem:[%s19989_s13 + $0x18] sm:$0xff] }
 0x7fa   : > { %v12390_v35 = vpack.c.bf16 %v8656_v47, %v8655_v59 }
 0x7fb   : > { %v8059_v13 = vadd.f32 %v10372_v50, %v7979_v17  ;;  %v10373_v44 = vpop.f32.mrb[102].mxu0  ;;  %v8327_v17 = vld [vmem:[%s19987_s11 + $0x38] sm:$0xff]  ;;  %v8657_v50 = vld [vmem:[%s19989_s13 + $0x20] sm:$0xff] }
 0x7fc   : > { %v10374_v29 = vpop.f32.mrb[103].mxu0  ;;  %v12348_v60 = vpack.c.bf16 %v8327_v17, %v8326_v3  ;;  %v8664_v3 = vld [vmem:[%s19989_s13 + $0x58] sm:$0xff] }
 0x7fd   : > { %v10375_v1 = vadd.f32 %v10374_v29, %v10373_v44  ;;  %v8659_v29 = vld [vmem:[%s19989_s13 + $0x30] sm:$0xff]  ;;  %v12402_v17 = vpack.c.bf16 %v8664_v3, %v8663_v62 }
 0x7fe   : > { %12349 = vmatpush3.bf16.msra.mxu0 %v12348_v60  ;;  %v8665_v60 = vld [vmem:[%s19989_s13 + $0x60] sm:$0xff] }
 0x7ff   : > { %v8064_v56 = vadd.f32 %v10375_v1, %v7984_v49  ;;  %v10376_v28 = vpop.f32.mrb[104].mxu0  ;;  %12350 = vmatprep.subr.bf16.mxu0 %v12905_v37  ;;  %v8654_v49 = vld [vmem:[%s19989_s13 + $0x8] sm:$0xff]  ;;  %v8660_v1 = vld [vmem:[%s19989_s13 + $0x38] sm:$0xff] }
 0x800   : > { %v10377_v36 = vpop.f32.mrb[105].mxu0 }
 0x801   : > { %v12312_v10 = vpack.c.bf16 %v8064_v56, %v8059_v13  ;;  %v10378_v24 = vadd.f32 %v10377_v36, %v10376_v28  ;;  %v8658_v13 = vld [vmem:[%s19989_s13 + $0x28] sm:$0xff]  ;;  %v12396_v56 = vpack.c.bf16 %v8660_v1, %v8659_v29  ;;  %v9105_v28 = vld [vmem:[%s19987_s11 + $0x40] sm:$0xff]  ;;  %v8747_v29 = vld [vmem:[%s19991_s15 + $0x18] sm:$0xff] }
 0x802   : > { %v12393_v44 = vpack.c.bf16 %v8658_v13, %v8657_v50  ;;  %v9106_v36 = vld [vmem:[%s19987_s11 + $0x48] sm:$0xff] }
 0x803   : > { %v8069_v58 = vadd.f32 %v10378_v24, %v7989_v38  ;;  %12313 = vmatpush3.bf16.msra.mxu1 %v12312_v10  ;;  %v12387_v38 = vpack.c.bf16 %v8654_v49, %v8653_v55  ;;  %v12351_v10 = vpack.c.bf16 %v9106_v36, %v9105_v28  ;;  %v9107_v24 = vld [vmem:[%s19987_s11 + $0x50] sm:$0xff]  ;;  %v8319_v49 = vld [vmem:[%s19988_s12] sm:$0x1]  ;;  %v8745_v50 = vld [vmem:[%s19991_s15 + $0x8] sm:$0xff] }
 0x804   : > { %10599 = vmatprep.subr.mxu1 %v17831_v19  ;;  %v8667_v55 = vld [vmem:[%s19989_s13 + $0x70] sm:$0xff]  ;;  %v8748_v28 = vld [vmem:[%s19991_s15 + $0x20] sm:$0xff]  ;;  %v8749_v36 = vld [vmem:[%s19991_s15 + $0x28] sm:$0xff] }
 0x807   : > { %10600 = vmatpush3.msk.msra.mxu1 %vm5879_vm11, %v8069_v58  ;;  %v9108_v58 = vld [vmem:[%s19987_s11 + $0x58] sm:$0xff] }
 0x808   : > { %10602 = vmatmul.mubr.msk.f32.vlgmr.msra.gmra.mrb[72].mxu1 %vm8080_vm13, %v8072_v43  ;;  %10604 = vmatprep.subr.mxu1 %v17831_v19 }
 0x809   : > { %10606 = vmatprep.mubr.msk.f32.mxu1 %vm12906_vm4, %v17831_v19 }
 0x8db   : > { %v8153_v8 = vpop.f32.mrb[72].mxu1 }
 0x8dc   : > { %v8154_v26 = vadd.f32 %v9100_v46, %v8153_v8  ;;  %v10603_v0 = vpop.f32.mrb[73].mxu1  ;;  %v12354_v8 = vpack.c.bf16 %v9108_v58, %v9107_v24  ;;  %v12414_v24 = vpack.c.bf16 %v8749_v36, %v8748_v28  ;;  %v8751_v58 = vld [vmem:[%s19991_s15 + $0x38] sm:$0xff] }
 0x8dd   : > { %v9110_v0 = vld [vmem:[%s19987_s11 + $0x68] sm:$0xff] }
 0x8de   : > { %12732 = vtanh.f32 %v8154_v26  ;;  %v9109_v26 = vld [vmem:[%s19987_s11 + $0x60] sm:$0xff] }
 0x8df   : > { %v12357_v22 = vpack.c.bf16 %v9110_v0, %v9109_v26  ;;  %v8754_v0 = vld [vmem:[%s19991_s15 + $0x50] sm:$0xf] }
 0x8e8   : > { %v12733_v6 = vpop.eup %12732 }
 0x8e9   : > { %10605 = vmatpush3.msra.mxu1 %v12733_v6  ;;  %v9114_v6 = vld [vmem:[%s19987_s11 + $0x80] sm:$0xff] }
 0x8ea   : > { %10607 = vmatmul.mubr.msk.f32.vlgmr.msra.gmra.mrb[74].mxu1 %vm8159_vm14, %v8158_v15  ;;  %12314 = vmatprep.subr.bf16.mxu1 %v12905_v37  ;;  %v9112_v15 = vld [vmem:[%s19987_s11 + $0x78] sm:$0xff]  ;;  %v12363_v21 = vpack.c.bf16 %v9115_v54, %v9114_v6  ;;  %v8755_v6 = vld [vmem:[#allocation5] sm:$0x1] }
 0x8eb   : > { %12316 = vmatpush3.bf16.msra.mxu1 %v12315_v11  ;;  %10641 = vmatprep.mubr.msk.f32.mxu1 %vm12906_vm4, %v17831_v19  ;;  %v12360_v11 = vpack.c.bf16 %v9112_v15, %v9111_v23 }
 0x8ec   : > { %12317 = vmatprep.subr.bf16.mxu1 %v12905_v37 }
 0x8ef   : > { %12319 = vmatpush3.bf16.msra.mxu1 %v12318_v9 }
 0x8f0   : > { %12320 = vmatprep.subr.bf16.mxu1 %v12905_v37 }
 0x8f3   : > { %12322 = vmatpush3.bf16.msra.mxu1 %v12321_v33  ;;  %v12366_v33 = vpack.c.bf16 %v9117_v32, %v9116_v61 }
 0x8f4   : > { %12323 = vmatprep.subr.bf16.mxu1 %v12905_v37 }
 0x8f7   : > { %12325 = vmatpush3.bf16.msra.mxu1 %v12324_v31  ;;  %v12369_v31 = vpack.c.bf16 %v9119_v34, %v9118_v41 }
 0x8f8   : > { %12326 = vmatprep.subr.bf16.mxu1 %v12905_v37 }
 0x8fb   : > { %12328 = vmatpush3.bf16.msra.mxu1 %v12327_v45  ;;  %v12372_v45 = vpack.c.bf16 %v9121_v63, %v9120_v57 }
 0x8fc   : > { %12329 = vmatprep.subr.bf16.mxu1 %v12905_v37 }
 0x8ff   : > { %12331 = vmatpush3.bf16.msra.mxu1 %v12330_v51  ;;  %v12375_v51 = vpack.c.bf16 %v9124_v52, %v9123_v25 }
 0x900   : > { %12332 = vmatprep.subr.bf16.mxu1 %v12905_v37 }
 0x903   : > { %12334 = vmatpush3.bf16.msra.mxu1 %v12333_v12  ;;  %v9126_v12 = vld [vmem:[%s19987_s11 + $0xd8] sm:$0xff] }
 0x904   : > { %12335 = vmatprep.subr.bf16.mxu1 %v12905_v37  ;;  %v12378_v18 = vpack.c.bf16 %v9126_v12, %v9125_v7 }
 0x907   : > { %12337 = vmatpush3.bf16.msra.mxu1 %v12336_v39  ;;  %v9128_v39 = vld [vmem:[%s19987_s11 + $0xe8] sm:$0xff] }
 0x908   : > { %12386 = vmatprep.subr.bf16.mxu1 %v12905_v37  ;;  %v12381_v42 = vpack.c.bf16 %v9128_v39, %v9127_v4 }
 0x9bd   : > { %v8229_v30 = vpop.f32.mrb[74].mxu1 }
 0x9be   : > { %10642 = vmatmul.mubr.f32.vlgmr.msra.gmra.mrb[76].mxu1 %v8229_v30  ;;  %v10608_v27 = vpop.f32.mrb[75].mxu1  ;;  %v8666_v30 = vld [vmem:[%s19989_s13 + $0x68] sm:$0xff] }
 0x9bf   : > { %10750 = vmatprep.mubr.msk.f32.mxu1 %vm12906_vm4, %v17831_v19  ;;  %12388 = vmatpush3.bf16.msra.mxu1 %v12387_v38  ;;  %v12405_v27 = vpack.c.bf16 %v8666_v30, %v8665_v60 }
 0x9c0   : > { %12389 = vmatprep.subr.bf16.mxu1 %v12905_v37 }
 0x9c3   : > { %12391 = vmatpush3.bf16.msra.mxu1 %v12390_v35  ;;  %v8744_v35 = vld [vmem:[%s19991_s15] sm:$0xff] }
 0x9c4   : > { %12392 = vmatprep.subr.bf16.mxu1 %v12905_v37  ;;  %v12408_v13 = vpack.c.bf16 %v8745_v50, %v8744_v35 }
 0x9c7   : > { %12394 = vmatpush3.bf16.msra.mxu1 %v12393_v44  ;;  %v8746_v44 = vld [vmem:[%s19991_s15 + $0x10] sm:$0xff] }
 0x9c8   : > { %12395 = vmatprep.subr.bf16.mxu1 %v12905_v37 }
 0x9cb   : > { %12397 = vmatpush3.bf16.msra.mxu1 %v12396_v56  ;;  %v12411_v56 = vpack.c.bf16 %v8747_v29, %v8746_v44 }
 0x9cc   : > { %12398 = vmatprep.subr.bf16.mxu1 %v12905_v37 }
 0x9cf   : > { %12400 = vmatpush3.bf16.msra.mxu1 %v12399_v2 }
 0x9d0   : > { %12401 = vmatprep.subr.bf16.mxu1 %v12905_v37 }
 0x9d3   : > { %12403 = vmatpush3.bf16.msra.mxu1 %v12402_v17 }
 0x9d4   : > { %12404 = vmatprep.subr.bf16.mxu1 %v12905_v37 }
 0x9d7   : > { %12406 = vmatpush3.bf16.msra.mxu1 %v12405_v27 }
 0x9d8   : > { %10748 = vmatprep.subr.mxu1 %v17831_v19 }
 0x9db   : > { %10749 = vmatpush3.msra.mxu1 %v8667_v55 }
 0x9dc   : > { %12407 = vmatprep.subr.bf16.mxu1 %v12905_v37 }
 0xa91   : > { %v19810_v43 = vpop.f32.mrb[76].mxu1 }
 0xa92   : > { %10661 = vmatmul.mubr.msk.f32.vlgmr.msra.gmra.mrb[106].mxu0 %vm8328_vm15, %v19810_v43  ;;  %v10643_v46 = vpop.f32.mrb[77].mxu1  ;;  %v8412_v9 = vrot.slane %v19810_v43, 1  ;;  %v8495_v14 = vrot.slane %v19810_v43, 2  ;;  %v8578_v20 = vrot.slane %v19810_v43, 3 }
 0xa93   : > { %12352 = vmatpush3.bf16.msra.mxu0 %v12351_v10  ;;  %10679 = vmatprep.mubr.msk.f32.mxu0 %vm12906_vm4, %v17831_v19  ;;  %v8750_v10 = vld [vmem:[%s19991_s15 + $0x30] sm:$0xff]  ;;  %v8752_v46 = vld [vmem:[%s19991_s15 + $0x40] sm:$0xff] }
 0xa94   : > { %12353 = vmatprep.subr.bf16.mxu0 %v12905_v37  ;;  %v12417_v43 = vpack.c.bf16 %v8751_v58, %v8750_v10 }
 0xa97   : > { %12355 = vmatpush3.bf16.msra.mxu0 %v12354_v8  ;;  %v8753_v8 = vld [vmem:[%s19991_s15 + $0x48] sm:$0xff] }
 0xa98   : > { %12356 = vmatprep.subr.bf16.mxu0 %v12905_v37  ;;  %v12420_v26 = vpack.c.bf16 %v8753_v8, %v8752_v46 }
 0xa9b   : > { %12358 = vmatpush3.bf16.msra.mxu0 %v12357_v22  ;;  %v8668_v22 = vld [vmem:[%s19990_s14] sm:$0x1] }
 0xa9c   : > { %12359 = vmatprep.subr.bf16.mxu0 %v12905_v37 }
 0xa9f   : > { %12361 = vmatpush3.bf16.msra.mxu0 %v12360_v11 }
 0xaa0   : > { %12362 = vmatprep.subr.bf16.mxu0 %v12905_v37 }
 0xaa2   : > { %10680 = vmatmul.mubr.msk.f32.vlgmr.msra.gmra.mrb[106].mxu0 %vm8328_vm15, %v8412_v9 }
 0xaa3   : > { %12364 = vmatpush3.bf16.msra.mxu0 %v12363_v21  ;;  %10698 = vmatprep.mubr.msk.f32.mxu0 %vm12906_vm4, %v17831_v19 }
 0xaa4   : > { %12365 = vmatprep.subr.bf16.mxu0 %v12905_v37 }
 0xaa7   : > { %12367 = vmatpush3.bf16.msra.mxu0 %v12366_v33 }
 0xaa8   : > { %12368 = vmatprep.subr.bf16.mxu0 %v12905_v37 }
 0xaab   : > { %12370 = vmatpush3.bf16.msra.mxu0 %v12369_v31 }
 0xaac   : > { %12371 = vmatprep.subr.bf16.mxu0 %v12905_v37 }
 0xaaf   : > { %12373 = vmatpush3.bf16.msra.mxu0 %v12372_v45 }
 0xab0   : > { %12374 = vmatprep.subr.bf16.mxu0 %v12905_v37 }
 0xab2   : > { %10699 = vmatmul.mubr.msk.f32.vlgmr.msra.gmra.mrb[106].mxu0 %vm8328_vm15, %v8495_v14 }
 0xab3   : > { %12376 = vmatpush3.bf16.msra.mxu0 %v12375_v51  ;;  %10717 = vmatprep.mubr.msk.f32.mxu0 %vm12906_vm4, %v17831_v19 }
 0xab4   : > { %12377 = vmatprep.subr.bf16.mxu0 %v12905_v37 }
 0xab7   : > { %12379 = vmatpush3.bf16.msra.mxu0 %v12378_v18 }
 0xab8   : > { %12380 = vmatprep.subr.bf16.mxu0 %v12905_v37 }
 0xabb   : > { %12382 = vmatpush3.bf16.msra.mxu0 %v12381_v42 }
 0xabc   : > { %12383 = vmatprep.subr.bf16.mxu0 %v12905_v37 }
 0xabf   : > { %12385 = vmatpush3.bf16.msra.mxu0 %v12384_v40 }
 0xac2   : > { %10718 = vmatmul.mubr.msk.f32.vlgmr.msra.gmra.mrb[106].mxu0 %vm8328_vm15, %v8578_v20 }
 0xb95   : > { %v8647_v59 = vpop.f32.mrb[106].mxu0 }
 0xb96   : > { %v12430_v38 = vadd.f32 %v8647_v59, %v8319_v49  ;;  %v10719_v47 = vpop.f32.mrb[107].mxu0 }
 0xb98   : > { %12734 = vtanh.f32 %v12430_v38 }
 0xba2   : > { %v12735_v1 = vpop.eup %12734 }
 0xba3   : > { %10751 = vmatmul.mubr.msk.f32.vlgmr.msra.gmra.mrb[78].mxu1 %vm8669_vm1, %v12735_v1 }
 0xba4   : > { %12409 = vmatpush3.bf16.msra.mxu1 %v12408_v13  ;;  %10775 = vmatprep.mubr.msk.f32.mxu1 %vm12906_vm4, %v17831_v19 }
 0xba5   : > { %12410 = vmatprep.subr.bf16.mxu1 %v12905_v37 }
 0xba8   : > { %12412 = vmatpush3.bf16.msra.mxu1 %v12411_v56 }
 0xba9   : > { %12413 = vmatprep.subr.bf16.mxu1 %v12905_v37 }
 0xbac   : > { %12415 = vmatpush3.bf16.msra.mxu1 %v12414_v24 }
 0xbad   : > { %12416 = vmatprep.subr.bf16.mxu1 %v12905_v37 }
 0xbb0   : > { %12418 = vmatpush3.bf16.msra.mxu1 %v12417_v43 }
 0xbb1   : > { %12419 = vmatprep.subr.bf16.mxu1 %v12905_v37 }
 0xbb4   : > { %12421 = vmatpush3.bf16.msra.mxu1 %v12420_v26 }
 0xbb5   : > { %10773 = vmatprep.subr.mxu1 %v17831_v19 }
 0xbb8   : > { %10774 = vmatpush3.msk.msra.mxu1 %vm4483_vm0, %v8754_v0  ;;  %vm8839_vm0 = vcmask 0  }
 0xc76   : > { %v8739_v23 = vpop.f32.mrb[78].mxu1 }
 0xc77   : > { %v8740_v15 = vadd.f32 %v8739_v23, %v8668_v22  ;;  %v10752_v11 = vpop.f32.mrb[79].mxu1 }
 0xc79   : > { %12736 = vtanh.f32 %v8740_v15 }
 0xc83   : > { %v12737_v37 = vpop.eup %12736 }
 0xc84   : > { %10776 = vmatmul.mubr.msk.f32.vlgmr.msra.gmra.mrb[80].mxu1 %vm8756_vm2, %v12737_v37 }
 0xd57   : > { %v8829_v19 = vpop.f32.mrb[80].mxu1 }
 0xd58   : > { %v8830_v54 = vadd.f32 %v8829_v19, %v8755_v6  ;;  %v10777_v21 = vpop.f32.mrb[81].mxu1 }
 0xd5a   : > { %v9135_v9 = vmul.f32 -1.442695, %v8830_v54 }
 0xd5c   : > { %12738 = vpow2.f32 %v9135_v9 }
 0xd66   : > { %v12739_v61 = vpop.eup %12738 }
 0xd67   : > { %v8836_v32 = vadd.f32 1.0, %v12739_v61 }
 0xd69   : > { %12740 = vrcp.f32 %v8836_v32 }
 0xd73   : > { %v12741_v33 = vpop.eup %12740 }
 0xd74   : > { %8840 = vst.msk [vmem:[%s546_s30] sm:$0x1] %vm8839_vm0, %v12741_v33 }
 0xd75 PF: > { %s29_s26 = sadd.s32 1, %s12901_s26  }
 0xd76   : > { %p26_p4 = scmp.ge.s32.totalorder %s29_s26, 4  }
 0xd78   :  { %28 = sbr.rel (!%p26_p4) target bundleno = 3 (0x3), region = 123 }

</bundles_post_ra>
